<compile_context>
chip_gen: v7x
topology: tpu7x:2x2x1
jax: 0.10.0
libtpu: 0.0.40
codegen_flags: <defaults>
</compile_context>

<pallas_src>
import jax
import jax.numpy as jnp
import numpy as np
from jax.experimental import pallas as pl
from jax.experimental.pallas import tpu as pltpu


# ----------------------------------------------------------------------------
# Normalization (plain JAX — O(naux), not worth a kernel dispatch)
#   int_nelec = sum(norm_vec * var);  scale = nelectron / int_nelec
# NOTE: like the reference module there is no guard for int_nelec ~ 0; a
# near-zero sum produces inf/NaN scale.  Guard upstream if that matters.
# ----------------------------------------------------------------------------
def normalization_scale(var, norm_vec, nelectron):
    int_nelec = jnp.sum(norm_vec.astype(jnp.float32) * var.astype(jnp.float32))
    return jnp.float32(nelectron) / int_nelec


def coeff_for_input(var, norm_vec, nelectron, should_normalize=True):
    if should_normalize:
        return var.astype(jnp.float32) * normalization_scale(var, norm_vec, nelectron)
    return var.astype(jnp.float32)


# ----------------------------------------------------------------------------
# Kernel: rho[g] += sum_n auxao_t[n, g] * coeff[n]   (one naux tile per step)
#   coeff_ref : (tn, 1)  f32  — aux coefficients for this naux tile
#   a_ref     : (tn, tg) bf16 — aux AO values, naux on sublanes / grid on lanes
#   o_ref     : (1, tg)  f32  — resident accumulator across the naux grid axis
# The sublane-axis reduction keeps the XLU nearly idle; the kernel sits at the
# HBM roofline on all generations.
# ----------------------------------------------------------------------------
def _auxrho_kernel(coeff_ref, a_ref, o_ref):
    @pl.when(pl.program_id(1) == 0)
    def _init():
        o_ref[...] = jnp.zeros_like(o_ref)

    a = a_ref[...].astype(jnp.float32)          # per-tile upcast (few MiB max)
    c = coeff_ref[...]                          # (tn, 1), broadcast over lanes
    o_ref[...] += jnp.sum(a * c, axis=0, keepdims=True)


def auxrho_pallas(auxao_t, coeff, *, tg=8192, tn=256):
    """rho[g] = sum_n auxao_t[n, g] * coeff[n].

    auxao_t : (naux, n_grid) aux AO values, stored transposed (bf16) in HBM.
              Produce it in this layout where the AOs are evaluated — a
              post-hoc transpose would cost a full extra HBM read+write.
    coeff   : (naux,) f32 coefficients (normalization already folded in).
    tg      : grid points per block (multiple of 128).  8192 keeps the
              double-buffered bf16 block + f32 temp well under every
              generation's scoped-VMEM default while amortizing the ~0.35us
              per-grid-step overhead.
    tn      : aux fns per block (multiple of 8, must divide naux).
    """
    naux, n_grid = auxao_t.shape
    coeff = coeff.astype(jnp.float32)

    tn = min(tn, naux)
    if naux % tn != 0:
        # TODO(synk): pad the aux dimension to a multiple of 8/tn where the aux
        # AO values are produced (one-time, cheap) rather than here.
        raise ValueError(f"naux={naux} must be a multiple of tn={tn}")
    if tn != naux and tn % 8 != 0:
        raise ValueError(f"tn={tn} must be a multiple of 8 (or equal naux)")

    tg = min(tg, (n_grid // 128) * 128)
    g_main = (n_grid // tg) * tg if tg >= 128 else 0

    rho_parts = []
    if g_main > 0:
        cost = pl.CostEstimate(
            flops=2 * g_main * naux,
            transcendentals=0,
            bytes_accessed=g_main * naux * auxao_t.dtype.itemsize
            + naux * 4
            + g_main * 4,
        )
        out = pl.pallas_call(
            _auxrho_kernel,
            out_shape=jax.ShapeDtypeStruct((1, g_main), jnp.float32),
            grid=(g_main // tg, naux // tn),
            in_specs=[
                pl.BlockSpec((tn, 1), lambda gi, ki: (ki, 0)),    # coeff column
                pl.BlockSpec((tn, tg), lambda gi, ki: (ki, gi)),  # auxao block
            ],
            out_specs=pl.BlockSpec((1, tg), lambda gi, ki: (0, gi)),
            compiler_params=pltpu.CompilerParams(
                dimension_semantics=("parallel", "arbitrary"),
                vmem_limit_bytes=32 * 1024 * 1024,
            ),
            cost_estimate=cost,
        )(coeff.reshape(naux, 1), auxao_t)
        rho_parts.append(out.reshape(g_main))

    if g_main < n_grid:
        # < tg leftover grid points: tiny plain-JAX reduction (avoids padding /
        # copying the dominant, bandwidth-bound HBM stream to tile-align it).
        tail = jnp.sum(
            auxao_t[:, g_main:].astype(jnp.float32) * coeff[:, None], axis=0
        )
        rho_parts.append(tail)

    return rho_parts[0] if len(rho_parts) == 1 else jnp.concatenate(rho_parts)


if __name__ == "__main__":
    # Deterministic synthetic "molecule": naux auxiliary basis fns, n_grid pts.
    key = jax.random.PRNGKey(0)
    k_norm, k_var, k_ao = jax.random.split(key, 3)

    naux = 256          # auxiliary (density-fitting) basis size
    n_grid = 16640      # 2 full 8192-point tiles + a 256-point tail
    nelectron = 10.0    # mol.nelectron

    # Parameters the module would create in __init__ (deterministic surrogates):
    norm_vec = jax.random.uniform(k_norm, (naux,), jnp.float32, 0.1, 1.0)
    var = jax.random.uniform(k_var, (naux,), jnp.float32, 0.0, 1.0)
    # aux AO values on the grid, stored transposed + bf16 in HBM.
    auxao_t = jax.random.normal(k_ao, (naux, n_grid), jnp.float32).astype(jnp.bfloat16)

    # --- driver path: coeff_for_input (normalized) -> auxrho mat-vec ---------
    coeff_in = coeff_for_input(var, norm_vec, nelectron, should_normalize=True)
    rho = auxrho_pallas(auxao_t, coeff_in, tg=8192, tn=128)  # grid = (2, 2) + tail
    jax.block_until_ready(rho)

    # --- pure-JAX reference (explicit f32 accumulation, no matmul rounding) --
    int_nelec_ref = jnp.sum(norm_vec * var)
    coeff_ref = var * (nelectron / int_nelec_ref)
    rho_ref = jnp.sum(auxao_t.astype(jnp.float32) * coeff_ref[:, None], axis=0)

    np.testing.assert_allclose(np.asarray(coeff_in), np.asarray(coeff_ref),
                               rtol=1e-5, atol=1e-5)
    np.testing.assert_allclose(np.asarray(rho), np.asarray(rho_ref),
                               rtol=1e-4, atol=1e-4)

    print("KERNEL_OK")
</pallas_src>

<mosaic_0001>
module attributes {stable_mosaic.version = 11 : i64} {
  func.func @_auxrho_kernel(%arg0: i32, %arg1: i32, %arg2: memref<128x1xf32, #tpu.memory_space<vmem>>, %arg3: memref<128x8192xbf16, #tpu.memory_space<vmem>>, %arg4: memref<1x8192xf32, #tpu.memory_space<vmem>>) attributes {dimension_semantics = [#tpu.dimension_semantics<parallel>, #tpu.dimension_semantics<arbitrary>], iteration_bounds = array<i64: 2, 2>, scalar_prefetch = 0 : i64, scratch_operands = 0 : i64, tpu.core_type = #tpu.core_type<tc>, window_params = [{transform_indices = @transform_0, window_bounds = array<i64: 128, 1>}, {transform_indices = @transform_1, window_bounds = array<i64: 128, 8192>}, {transform_indices = @transform_2, window_bounds = array<i64: 1, 8192>}]} {
    %c0_i32 = arith.constant 0 : i32
    %0 = arith.cmpi eq, %arg1, %c0_i32 : i32
    %1 = arith.extui %0 : i1 to i32
    %c0_i32_0 = arith.constant 0 : i32
    %2 = arith.cmpi ne, %1, %c0_i32_0 : i32
    scf.if %2 {
      %cst_8 = arith.constant 0.000000e+00 : f32
      %13 = vector.broadcast %cst_8 : f32 to vector<1x8192xf32>
      %c0_9 = arith.constant 0 : index
      %c0_10 = arith.constant 0 : index
      %14 = vector.load %arg4[%c0_9, %c0_10] : memref<1x8192xf32, #tpu.memory_space<vmem>>, vector<1x8192xf32>
      tpu.vector_store %arg4[%c0_9, %c0_10], %13 {strides = array<i32>} : memref<1x8192xf32, #tpu.memory_space<vmem>>, vector<1x8192xf32>,
    } else {
    }
    %c0 = arith.constant 0 : index
    %c0_1 = arith.constant 0 : index
    %3 = vector.load %arg3[%c0, %c0_1] : memref<128x8192xbf16, #tpu.memory_space<vmem>>, vector<128x8192xbf16>
    %4 = arith.extf %3 : vector<128x8192xbf16> to vector<128x8192xf32>
    %c0_2 = arith.constant 0 : index
    %c0_3 = arith.constant 0 : index
    %5 = vector.load %arg2[%c0_2, %c0_3] : memref<128x1xf32, #tpu.memory_space<vmem>>, vector<128x1xf32>
    %c0_4 = arith.constant 0 : index
    %c0_5 = arith.constant 0 : index
    %6 = vector.load %arg4[%c0_4, %c0_5] : memref<1x8192xf32, #tpu.memory_space<vmem>>, vector<1x8192xf32>
    %7 = vector.broadcast %5 : vector<128x1xf32> to vector<128x8192xf32>
    %8 = arith.mulf %4, %7 : vector<128x8192xf32>
    %cst = arith.constant dense<0.000000e+00> : vector<8192xf32>
    %9 = vector.multi_reduction <add>, %8, %cst [0] : vector<128x8192xf32> to vector<8192xf32>
    %10 = vector.shape_cast %9 : vector<8192xf32> to vector<1x8192xf32>
    %11 = arith.addf %6, %10 : vector<1x8192xf32>
    %c0_6 = arith.constant 0 : index
    %c0_7 = arith.constant 0 : index
    %12 = vector.load %arg4[%c0_6, %c0_7] : memref<1x8192xf32, #tpu.memory_space<vmem>>, vector<1x8192xf32>
    tpu.vector_store %arg4[%c0_6, %c0_7], %11 {strides = array<i32>} : memref<1x8192xf32, #tpu.memory_space<vmem>>, vector<1x8192xf32>,
    return
  }
  func.func @transform_0(%arg0: i32, %arg1: i32) -> (i32, i32) {
    %c0_i32 = arith.constant 0 : i32
    %c0_i32_0 = arith.constant 0 : i32
    return %arg1, %c0_i32 : i32, i32
  }
  func.func @transform_1(%arg0: i32, %arg1: i32) -> (i32, i32) {
    %c0_i32 = arith.constant 0 : i32
    return %arg1, %arg0 : i32, i32
  }
  func.func @transform_2(%arg0: i32, %arg1: i32) -> (i32, i32) {
    %c0_i32 = arith.constant 0 : i32
    %c0_i32_0 = arith.constant 0 : i32
    return %c0_i32, %arg0 : i32, i32
  }
}

</mosaic_0001>

<bundles_post_ra>
// kernel: tpu_custom_call.1
= control target key start
LH: loop header
LB: loop body
LE: loop exit
PB: predicated region body
PF: predicated region fallthrough
CT: control target
= control target key end

     0   :  { %7 = vsyncpa [#allocation3], 0  ;;  %s14372_s0 = inlined_call_operand.vmem [shape: f32[256,1], index: 0, kind: input, shape index: {}]   ;;  %s14373_s1 = inlined_call_operand.hbm [shape: bf16[256,16640], index: 1, kind: input, shape index: {}]   ;;  %s14374_s2 = inlined_call_operand.hbm [shape: f32[1,16384], index: 2, kind: output, shape index: {}]  }
   0x1   :  { %9 = vsyncpa [#allocation3 + $0x1], 0 }
   0x2   :  { %10 = vsyncpa [#allocation4], 0 }
   0x3   :  { %12 = vsyncpa [#allocation4 + $0x1], 0  ;;  %s5135_s9 = smov 0   ;;  %s5137_s10 = smov 0  }
   0x4   :  { %s5139_s11 = smov 0   ;;  %s5141_s12 = smov 0  }
   0x5   :  { %s5143_s13 = smov 0   ;;  %s5145_s14 = smov 0  }
   0x6   :  { %s5147_s15 = smov 0   ;;  %s5149_s16 = smov 0  }
   0x7   :  { %s5151_s17 = smov 0   ;;  %s5153_s18 = smov 0  }
   0x8   :  { %s5155_s19 = smov 0  }
   0x9 LB: > { %15296 = sst [smem:[#allocation8_spill]] %s5106_s18  ;;  %s4826_s20 = sadd.s32 4294967295, %s5110_s19   ;;  %s5110_s19 = sphi %s5155_s19, %s18_s19   ;;  %s5106_s18 = sphi %s5153_s18, %s19244_s18   ;;  %s5102_s17 = sphi %s5151_s17, %s19252_s17   ;;  %s5098_s16 = sphi %s5149_s16, %s19242_s16   ;;  %s5094_s15 = sphi %s5147_s15, %s19251_s15   ;;  %s5090_s14 = sphi %s5145_s14, %s19250_s14   ;;  %s5086_s13 = sphi %s5143_s13, %s19249_s13   ;;  %s5082_s12 = sphi %s5141_s12, %s19248_s12   ;;  %s5078_s11 = sphi %s5139_s11, %s19247_s11   ;;  %s5074_s10 = sphi %s5137_s10, %s19246_s10   ;;  %s5070_s9 = sphi %s5135_s9, %s19245_s9  }
   0xa   : > { %s4827_s21 = sadd.s32 4294967294, %s5110_s19   ;;  %s27_s22 = sadd.s32 1, %s5102_s17 }
   0xb   : > { %s30_s23 = sadd.s32 1, %s5106_s18  ;;  %p28_p0 = scmp.ge.s32.totalorder %s27_s22, 2 }
   0xc   : > { %s65_s24 = sadd.s32 1, %s5090_s14  ;;  %p72_p1 = scmp.ne.s32.totalorder %s5090_s14, %s5086_s13 }
   0xd   : > { %p73_p2 = scmp.eq.s32.totalorder %s5110_s19, 0  ;;  %s19254_s22 = smov (%p28_p0, %s27_s22), 0 }
   0xe   : > { %15297 = sst [smem:[#allocation9_spill]] %s19254_s22  ;;  %s19256_s23 = smov (!%p28_p0, %s30_s23), %s5106_s18 }
   0xf   : > { %s60_s25 = ssub.s32 %s5102_s17, %s19254_s22  ;;  %p5201_p3 = por %p73_p2, %p72_p1 }
  0x10   : > { %p32_p4 = scmp.ge.s32.totalorder %s19256_s23, 2  ;;  %p78_p5 = scmp.ne.s32.totalorder %s5086_s13, %s5082_s12 }
  0x11   : > { %p79_p6 = scmp.eq.s32.totalorder %s4826_s20, 0  ;;  %s91_s27 = sadd.s32 1, %s5078_s11 }
  0x12   : > { %s19258_s23 = smov (%p32_p4, %s19256_s23), 0  ;;  %p101_p8 = scmp.ne.s32.totalorder %s5078_s11, %s5074_s10 }
  0x13   : > { %15299 = sst [smem:[#allocation10_spill]] %s19258_s23  ;;  %p5209_p7 = por %p79_p6, %p78_p5 }
  0x14   : > { %s61_s29 = ssub.s32 %s5106_s18, %s19258_s23  ;;  %p102_p9 = scmp.eq.s32.totalorder %s4826_s20, 3 }
  0x15   : > { %s62_s30 = sor.u32 %s61_s29, %s60_s25  ;;  %p89_p10 = scmp.eq.s32.totalorder %s61_s29, 0 }
  0x16   : > { %p63_p11 = scmp.eq.s32.totalorder %s62_s30, 0  ;;  %p5217_p12 = por %p102_p9, %p101_p8 }
  0x17   : > { %s5222_s4 = scalar_select %p89_p10, %s5078_s11, %s91_s27  }
  0x18   : > { %s5225_s5 = scalar_select %p63_p11, %s5090_s14, %s65_s24  }
  0x19   : > { %p107_p13 = scmp.ne.s32.totalorder %s5074_s10, %s5070_s9  ;;  %p108_p0 = scmp.eq.s32.totalorder %s4827_s21, 3 }
  0x1a   : > { %p4829_p2 = scmp.ge.s32.totalorder %s5110_s19, 4 }
  0x1b   : > { %p5229_p1 = por %p108_p0, %p107_p13 }
  0x1c   : > { %124 = sbr.rel (%p4829_p2) target bundleno = 66 (0x42), region = 16 }
  0x1d   : > { %s15302_s6 = scalar_select %p5229_p1, 1, 0 }
  0x23   : > { %136 = sbr.rel (!%p5201_p3) target bundleno = 66 (0x42), region = 24  ;;  %s137_s7 = sand.u32 (%p5201_p3), 1, %s5090_s14  }
  0x24   : > { %s4832_s8 = sshll.u32 (%p5201_p3), %s5106_s18, 6  ;;  %s4830_s12 = sshll.u32 (%p5201_p3), %s137_s7, 12 }
  0x25   : > { %s5238_s20 = scalar_lea.sflag (%p5201_p3), [#allocation3], %s137_s7  ;;  %s141_s24 = scalar_lea.vmem (%p5201_p3), [#allocation2], %s4830_s12 }
  0x26   : > { %s4854_s21 = smul.u32 (%p5201_p3), 2080, %s5102_s17  ;;  %s158_s25 = sshll.u32 (%p5201_p3), %s141_s24, 4  ;;  %s5241_s25 = int_to_ptr.vmem [resolvable:$true] %s158_s25 }
  0x27   : > { %s4962_s12 = scalar_lea.hbm (%p5201_p3), %s14373_s1, 266240 }
  0x28   : > { %s153_s27 = sadd.s32 (%p5201_p3), %s4854_s21, %s4832_s8 }
  0x29   : > { %s4836_s29 = sshll.u32 (%p5201_p3), %s153_s27, 6 }
  0x2a   : > { %s5246_s26 = scalar_lea.hbm %s14373_s1, %s4836_s29 }
  0x2b   : > { %s4958_s22 = scalar_lea.hbm %s5246_s26, 65536  ;;  %p4963_p4 = scmp.lt.u32.totalorder %s5246_s26, %s14373_s1 }
  0x2c   : > { %p4959_p3 = scmp.ne.s32.totalorder %s5246_s26, %s4958_s22  ;;  %p4964_p5 = scmp.lt.u32.totalorder %s4962_s12, %s4958_s22 }
  0x2d   : > { %p4966_p8 = scmp.lt.u32.totalorder %s4958_s22, %s5246_s26 }
  0x2e   : > { %p4965_p6 = por %p4964_p5, %p4963_p4 }
  0x30   : > { %p4967_p9 = por %p4966_p8, %p4965_p6 }
  0x32   : > { %p4968_p10 = pnand %p4967_p9, %p4959_p3 }
  0x34   : > { %4971 = shalt.err (!%p4968_p10)
}
  0x35   : > { %s4972_s23 = scalar_lea.vmem %s5241_s25, 65536  ;;  %s5112_s21 = smov [#allocation2]  }
  0x36   : > { %p4973_p11 = scmp.ne.s32.totalorder %s5241_s25, %s4972_s23  ;;  %s4976_s27 = sshll.u32 %s5112_s21, 4  ;;  %s4977_s27 = int_to_ptr.vmem [resolvable:$false] %s4976_s27 }
  0x37   : > { %s4978_s18 = scalar_lea.vmem %s4977_s27, 131072  ;;  %p4979_p13 = scmp.lt.s32.totalorder %s5241_s25, %s4977_s27 }
  0x38   : > { %p4980_p0 = scmp.lt.s32.totalorder %s4978_s18, %s4972_s23 }
  0x3a   : > { %p4981_p2 = por %p4980_p0, %p4979_p13 }
  0x3c   : > { %p4982_p1 = pnand %p4981_p2, %p4973_p11 }
  0x3e   : > { %4985 = shalt.err (!%p4982_p1)
}
  0x3f   : > { %s5113_s29 = smov 8320   ;;  %s5114_s22 = smov 4096  }
  0x40   : > { %s5115_s30 = smov 256  }
  0x41   : > { %164 = dma.hbm_to_vmem [thread:$0]  %s5246_s26, 65536, %s5241_s25, %s5238_s20, %s5113_s29, %s5114_s22, %s5115_s30  }
  0x42 PF: > { %p4840_p3 = scmp.ge.s32.totalorder %s5110_s19, 1  ;;  %p166_p4 = scmp.lt.s32.totalorder %s5110_s19, 5 }
  0x44   : > { %p167_p5 = pnand %p4840_p3, %p166_p4 }
  0x46   : > { %170 = sbr.rel (%p167_p5) target bundleno = 1577 (0x629), region = 28 }
  0x4d   : > { %s172_s7 = sand.u32 1, %s5086_s13  }
  0x4e   : > { %s4841_s12 = sshll.u32 %s172_s7, 12  ;;  %s173_s24 = scalar_lea.sflag [#allocation3], %s172_s7 }
  0x4f   : > { %s5267_s8 = scalar_lea.vmem [#allocation2], %s4841_s12 }
  0x50   : > { %5059 = dma.done.wait (%p5209_p7), %s173_s24, 65536  }
  0x51   : > { %5061 = vsyncadd (%p5209_p7), %s173_s24, 4294901760  ;;  %s199_s20 = sand.u32 1, %s5074_s10   ;;  %s4843_s25 = sshll.u32 %s5094_s15, 4 }
  0x52   : > { %s4842_s26 = sshll.u32 %s199_s20, 6  ;;  %p203_p1 = scmp.lt.s32.totalorder %s4843_s25, 31 }
  0x53   : > { %s5282_s29 = scalar_lea.vmem [#allocation5], %s4842_s26  ;;  %p4845_p6 = scmp.ne.s32.totalorder %s5094_s15, 0 }
  0x54   : > { %s19260_s25 = smov (!%p203_p1, %s4843_s25), 31  ;;  %v5116_v0 = vmov (!%p4845_p6), 0.0  }
  0x55   : > { %s4844_s23 = sshll.u32 %s19260_s25, 3  ;;  %218 = sbr.rel (%p4845_p6) target bundleno = 92 (0x5c), region = 36  ;;  %219 = vst [vmem:[%s5282_s29] sm:$0xff] (!%p4845_p6), %v5116_v0  ;;  %220 = vst [vmem:[%s5282_s29 + $0x8] sm:$0xff] (!%p4845_p6), %v5116_v0 }
  0x56   : > { %s5280_s18 = scalar_lea.vmem %s14372_s0, %s4844_s23  ;;  %221 = vst [vmem:[%s5282_s29 + $0x10] sm:$0xff] (!%p4845_p6), %v5116_v0  ;;  %222 = vst [vmem:[%s5282_s29 + $0x18] sm:$0xff] (!%p4845_p6), %v5116_v0 }
  0x57   : > { %223 = vst [vmem:[%s5282_s29 + $0x20] sm:$0xff] (!%p4845_p6), %v5116_v0  ;;  %224 = vst [vmem:[%s5282_s29 + $0x28] sm:$0xff] (!%p4845_p6), %v5116_v0 }
  0x58   : > { %225 = vst [vmem:[%s5282_s29 + $0x30] sm:$0xff] (!%p4845_p6), %v5116_v0  ;;  %226 = vst [vmem:[%s5282_s29 + $0x38] sm:$0xff] (!%p4845_p6), %v5116_v0 }
  0x5c PF: > { %v1765_v1 = vld [vmem:[%s5280_s18 + $0x10] sm:$0xff]  ;;  %v1763_v2 = vld [vmem:[%s5280_s18] sm:$0xff]  ;;  %v5117_v3 = vmov 0   ;;  %v1766_v4 = vld [vmem:[%s5280_s18 + $0x18] sm:$0xff]  ;;  %s4853_s15 = sshll.u32 %s5098_s16, 10  ;;  %s4730_s28 = sshll.u32 %s5282_s29, 4  ;;  %s14309_s28 = int_to_ptr.vmem [resolvable:$true] %s4730_s28 }
  0x5d   : > { %4957 = vset.pattern.permute.xlu1 %v5117_v3  ;;  %4956 = vset.pattern.permute.xlu0 %v5117_v3  ;;  %v1764_v5 = vld [vmem:[%s5280_s18 + $0x8] sm:$0xff]  ;;  %v1767_v7 = vld [vmem:[%s5280_s18 + $0x20] sm:$0xff]  ;;  %v1770_v8 = vld [vmem:[%s5280_s18 + $0x38] sm:$0xff]  ;;  %s14307_s7 = scalar_lea.hbm %s14374_s2, %s4853_s15  ;;  %s4716_s12 = scalar_lea.sflag [#allocation4], %s199_s20 }
  0x5e   : > { %1799 = vperm.xlu1 %4957, %v1765_v1   ;;  %1789 = vperm.xlu0 %4956, %v1763_v2   ;;  %v1768_v6 = vld [vmem:[%s5280_s18 + $0x28] sm:$0xff]  ;;  %v1769_v9 = vld [vmem:[%s5280_s18 + $0x30] sm:$0xff]  ;;  %v1771_v11 = vld [vmem:[%s5280_s18 + $0x40] sm:$0xff]  ;;  %s4986_s24 = scalar_lea.vmem %s14309_s28, 1024  ;;  %s5119_s16 = smov [#allocation5]  }
  0x5f   : > { %v1772_v10 = vld [vmem:[%s5280_s18 + $0x48] sm:$0xff]  ;;  %v5304_v12 = vld [vmem:[%s5267_s8] sm:$0xff]  ;;  %v1774_v14 = vld [vmem:[%s5280_s18 + $0x58] sm:$0xff]  ;;  %p4987_p7 = scmp.ne.s32.totalorder %s14309_s28, %s4986_s24 }
  0x60   : > { %v5307_v13 = vld [vmem:[%s5267_s8 + $0x8] sm:$0xff]  ;;  %v5311_v15 = vld [vmem:[%s5267_s8 + $0x10] sm:$0xff]  ;;  %v5314_v16 = vld [vmem:[%s5267_s8 + $0x18] sm:$0xff] }
  0x61   : > { %v1773_v17 = vld [vmem:[%s5280_s18 + $0x50] sm:$0xff]  ;;  %v5318_v18 = vld [vmem:[%s5267_s8 + $0x20] sm:$0xff]  ;;  %v5321_v19 = vld [vmem:[%s5267_s8 + $0x28] sm:$0xff]  ;;  %p4988_p8 = pnand %p4987_p7, %p5217_p12 }
  0x62   : > { %1804 = vperm.xlu1 %4957, %v1766_v4   ;;  %1794 = vperm.xlu0 %4956, %v1764_v5   ;;  %v5324_v20 = vld [vmem:[%s5267_s8 + $0x30] sm:$0xff]  ;;  %v5327_v21 = vld [vmem:[%s5267_s8 + $0x38] sm:$0xff]  ;;  %v5334_v26 = vld [vmem:[%s5267_s8 + $0x40] sm:$0xff] }
  0x63   : > { %v5337_v27 = vld [vmem:[%s5267_s8 + $0x48] sm:$0xff]  ;;  %v5345_v33 = vld [vmem:[%s5267_s8 + $0x50] sm:$0xff]  ;;  %v5348_v34 = vld [vmem:[%s5267_s8 + $0x58] sm:$0xff]  ;;  %p4989_p9 = pneg %p4988_p8 }
  0x64   : > { %v1776_v32 = vld [vmem:[%s5280_s18 + $0x68] sm:$0xff]  ;;  %v1775_v39 = vld [vmem:[%s5280_s18 + $0x60] sm:$0xff]  ;;  %v5366_v46 = vld [vmem:[%s5267_s8 + $0x70] sm:$0xff] }
  0x65   : > { %v5356_v40 = vld [vmem:[%s5267_s8 + $0x60] sm:$0xff]  ;;  %v5359_v41 = vld [vmem:[%s5267_s8 + $0x68] sm:$0xff]  ;;  %v5369_v47 = vld [vmem:[%s5267_s8 + $0x78] sm:$0xff] }
  0x66   : > { %1814 = vperm.xlu1 %4957, %v1768_v6   ;;  %1809 = vperm.xlu0 %4956, %v1767_v7   ;;  %v5376_v52 = vld [vmem:[%s5267_s8 + $0x80] sm:$0xff]  ;;  %v5379_v53 = vld [vmem:[%s5267_s8 + $0x88] sm:$0xff]  ;;  %v1778_v58 = vld [vmem:[%s5280_s18 + $0x78] sm:$0xff] }
  0x67   : > { %v5387_v59 = vld [vmem:[%s5267_s8 + $0x90] sm:$0xff]  ;;  %v5390_v60 = vld [vmem:[%s5267_s8 + $0x98] sm:$0xff]  ;;  %v5398_v2 = vld [vmem:[%s5267_s8 + $0xa0] sm:$0xff] }
  0x68   : > { %v1777_v1 = vld [vmem:[%s5280_s18 + $0x70] sm:$0xff]  ;;  %v5401_v3 = vld [vmem:[%s5267_s8 + $0xa8] sm:$0xff]  ;;  %v5438_v7 = vld [vmem:[%s5267_s8 + $0xe0] sm:$0xff] }
  0x69   : > { %v5448_v4 = vld [vmem:[%s5267_s8 + $0xf0] sm:$0xff]  ;;  %v5451_v63 = vld [vmem:[%s5267_s8 + $0xf8] sm:$0xff]  ;;  %v5461_v61 = vld [vmem:[%s5267_s8 + $0x108] sm:$0xff] }
  0x6a   : > { %1824 = vperm.xlu1 %4957, %v1770_v8   ;;  %1819 = vperm.xlu0 %4956, %v1769_v9   ;;  %v5408_v8 = vld [vmem:[%s5267_s8 + $0xb0] sm:$0xff]  ;;  %v5411_v9 = vld [vmem:[%s5267_s8 + $0xb8] sm:$0xff]  ;;  %v5481_v54 = vld [vmem:[%s5267_s8 + $0x128] sm:$0xff] }
  0x6b   : > { %v5468_v6 = vld [vmem:[%s5267_s8 + $0x110] sm:$0xff]  ;;  %v5471_v56 = vld [vmem:[%s5267_s8 + $0x118] sm:$0xff]  ;;  %v5498_v5 = vld [vmem:[%s5267_s8 + $0x140] sm:$0xff] }
  0x6c   : > { %v5491_v50 = vld [vmem:[%s5267_s8 + $0x138] sm:$0xff]  ;;  %v5501_v48 = vld [vmem:[%s5267_s8 + $0x148] sm:$0xff]  ;;  %v5508_v0 = vld [vmem:[%s5267_s8 + $0x150] sm:$0xff] }
  0x6d   : > { %v5511_v44 = vld [vmem:[%s5267_s8 + $0x158] sm:$0xff]  ;;  %v5518_v62 = vld [vmem:[%s5267_s8 + $0x160] sm:$0xff]  ;;  %v5521_v42 = vld [vmem:[%s5267_s8 + $0x168] sm:$0xff] }
  0x6e   : > { %1834 = vperm.xlu1 %4957, %v1772_v10   ;;  %1829 = vperm.xlu0 %4956, %v1771_v11   ;;  %v5441_v10 = vld [vmem:[%s5267_s8 + $0xe8] sm:$0xff]  ;;  %v5478_v11 = vld [vmem:[%s5267_s8 + $0x120] sm:$0xff]  ;;  %15303 = vst [vmem:[#allocation11_spill] sm:$0xff] %v5521_v42  ;;  %v5528_v57 = vld [vmem:[%s5267_s8 + $0x170] sm:$0xff] }
  0x6f   : > { %15304 = vst [vmem:[#allocation12_spill] sm:$0xff] %v5528_v57  ;;  %v5531_v37 = vld [vmem:[%s5267_s8 + $0x178] sm:$0xff]  ;;  %v5538_v55 = vld [vmem:[%s5267_s8 + $0x180] sm:$0xff]  ;;  %v5541_v35 = vld [vmem:[%s5267_s8 + $0x188] sm:$0xff] }
  0x70   : > { %15305 = vst [vmem:[#allocation13_spill] sm:$0xff] %v5531_v37  ;;  %15306 = vst [vmem:[#allocation14_spill] sm:$0xff] %v5538_v55  ;;  %v5548_v51 = vld [vmem:[%s5267_s8 + $0x190] sm:$0xff]  ;;  %v5551_v30 = vld [vmem:[%s5267_s8 + $0x198] sm:$0xff] }
  0x71   : > { %15307 = vst [vmem:[#allocation15_spill] sm:$0xff] %v5541_v35  ;;  %15308 = vst [vmem:[#allocation16_spill] sm:$0xff] %v5548_v51  ;;  %v5558_v49 = vld [vmem:[%s5267_s8 + $0x1a0] sm:$0xff]  ;;  %v5561_v28 = vld [vmem:[%s5267_s8 + $0x1a8] sm:$0xff] }
  0x72   : > { %1844 = vperm.xlu1 %4957, %v1774_v14   ;;  %1839 = vperm.xlu0 %4956, %v1773_v17   ;;  %v5428_v14 = vld [vmem:[%s5267_s8 + $0xd0] sm:$0xff]  ;;  %v5431_v17 = vld [vmem:[%s5267_s8 + $0xd8] sm:$0xff]  ;;  %15309 = vst [vmem:[#allocation17_spill] sm:$0xff] %v5551_v30  ;;  %15310 = vst [vmem:[#allocation18_spill] sm:$0xff] %v5558_v49 }
  0x73   : > { %15311 = vst [vmem:[#allocation19_spill] sm:$0xff] %v5561_v28  ;;  %v5568_v45 = vld [vmem:[%s5267_s8 + $0x1b0] sm:$0xff]  ;;  %v5571_v24 = vld [vmem:[%s5267_s8 + $0x1b8] sm:$0xff]  ;;  %v5578_v43 = vld [vmem:[%s5267_s8 + $0x1c0] sm:$0xff] }
  0x74   : > { %15312 = vst [vmem:[#allocation20_spill] sm:$0xff] %v5568_v45  ;;  %15313 = vst [vmem:[#allocation21_spill] sm:$0xff] %v5571_v24  ;;  %v5581_v22 = vld [vmem:[%s5267_s8 + $0x1c8] sm:$0xff]  ;;  %v5588_v38 = vld [vmem:[%s5267_s8 + $0x1d0] sm:$0xff] }
  0x75   : > { %15314 = vst [vmem:[#allocation22_spill] sm:$0xff] %v5578_v43  ;;  %15315 = vst [vmem:[#allocation23_spill] sm:$0xff] %v5581_v22  ;;  %v5591_v55 = vld [vmem:[%s5267_s8 + $0x1d8] sm:$0xff]  ;;  %v5598_v36 = vld [vmem:[%s5267_s8 + $0x1e0] sm:$0xff] }
  0x76   : > { %1854 = vperm.xlu1 %4957, %v1776_v32   ;;  %1849 = vperm.xlu0 %4956, %v1775_v39   ;;  %v5418_v32 = vld [vmem:[%s5267_s8 + $0xc0] sm:$0xff]  ;;  %v5421_v39 = vld [vmem:[%s5267_s8 + $0xc8] sm:$0xff]  ;;  %15316 = vst [vmem:[#allocation24_spill] sm:$0xff] %v5588_v38  ;;  %15317 = vst [vmem:[#allocation25_spill] sm:$0xff] %v5591_v55 }
  0x77   : > { %15318 = vst [vmem:[#allocation26_spill] sm:$0xff] %v5598_v36  ;;  %v5601_v51 = vld [vmem:[%s5267_s8 + $0x1e8] sm:$0xff]  ;;  %v5608_v31 = vld [vmem:[%s5267_s8 + $0x1f0] sm:$0xff]  ;;  %v5611_v49 = vld [vmem:[%s5267_s8 + $0x1f8] sm:$0xff] }
  0x78   : > { %15319 = vst [vmem:[#allocation27_spill] sm:$0xff] %v5601_v51  ;;  %15320 = vst [vmem:[#allocation28_spill] sm:$0xff] %v5608_v31  ;;  %v5618_v29 = vld [vmem:[%s5267_s8 + $0x200] sm:$0xff]  ;;  %v5621_v45 = vld [vmem:[%s5267_s8 + $0x208] sm:$0xff] }
  0x79   : > { %15321 = vst [vmem:[#allocation29_spill] sm:$0xff] %v5611_v49  ;;  %15322 = vst [vmem:[#allocation30_spill] sm:$0xff] %v5618_v29  ;;  %v5628_v25 = vld [vmem:[%s5267_s8 + $0x210] sm:$0xff]  ;;  %v5631_v43 = vld [vmem:[%s5267_s8 + $0x218] sm:$0xff] }
  0x7a   : > { %1864 = vperm.xlu1 %4957, %v1778_v58   ;;  %1859 = vperm.xlu0 %4956, %v1777_v1   ;;  %v5458_v1 = vld [vmem:[%s5267_s8 + $0x100] sm:$0xff]  ;;  %v5488_v58 = vld [vmem:[%s5267_s8 + $0x130] sm:$0xff]  ;;  %15323 = vst [vmem:[#allocation31_spill] sm:$0xff] %v5621_v45  ;;  %15324 = vst [vmem:[#allocation32_spill] sm:$0xff] %v5628_v25 }
  0x7b   : > { %15325 = vst [vmem:[#allocation33_spill] sm:$0xff] %v5631_v43  ;;  %v5638_v23 = vld [vmem:[%s5267_s8 + $0x220] sm:$0xff]  ;;  %v5641_v38 = vld [vmem:[%s5267_s8 + $0x228] sm:$0xff]  ;;  %v5648_v37 = vld [vmem:[%s5267_s8 + $0x230] sm:$0xff] }
  0x7c   : > { %15326 = vst [vmem:[#allocation34_spill] sm:$0xff] %v5638_v23  ;;  %15327 = vst [vmem:[#allocation35_spill] sm:$0xff] %v5641_v38  ;;  %v5651_v36 = vld [vmem:[%s5267_s8 + $0x238] sm:$0xff]  ;;  %v5658_v35 = vld [vmem:[%s5267_s8 + $0x240] sm:$0xff] }
  0x7d   : > { %15328 = vst [vmem:[#allocation36_spill] sm:$0xff] %v5648_v37  ;;  %15329 = vst [vmem:[#allocation37_spill] sm:$0xff] %v5651_v36  ;;  %v5661_v31 = vld [vmem:[%s5267_s8 + $0x248] sm:$0xff]  ;;  %v5668_v30 = vld [vmem:[%s5267_s8 + $0x250] sm:$0xff] }
  0x7e   : > { %15330 = vst [vmem:[#allocation38_spill] sm:$0xff] %v5658_v35  ;;  %15331 = vst [vmem:[#allocation39_spill] sm:$0xff] %v5661_v31  ;;  %v5671_v29 = vld [vmem:[%s5267_s8 + $0x258] sm:$0xff]  ;;  %v5678_v28 = vld [vmem:[%s5267_s8 + $0x260] sm:$0xff] }
  0x7f   : > { %15332 = vst [vmem:[#allocation40_spill] sm:$0xff] %v5668_v30  ;;  %15333 = vst [vmem:[#allocation41_spill] sm:$0xff] %v5671_v29  ;;  %v5681_v25 = vld [vmem:[%s5267_s8 + $0x268] sm:$0xff]  ;;  %v5688_v24 = vld [vmem:[%s5267_s8 + $0x270] sm:$0xff] }
  0x80   : > { %15334 = vst [vmem:[#allocation42_spill] sm:$0xff] %v5678_v28  ;;  %15335 = vst [vmem:[#allocation43_spill] sm:$0xff] %v5681_v25  ;;  %v5691_v23 = vld [vmem:[%s5267_s8 + $0x278] sm:$0xff]  ;;  %v5698_v22 = vld [vmem:[%s5267_s8 + $0x280] sm:$0xff] }
  0x81   : > { %15336 = vst [vmem:[#allocation44_spill] sm:$0xff] %v5688_v24  ;;  %15337 = vst [vmem:[#allocation45_spill] sm:$0xff] %v5691_v23  ;;  %v5701_v37 = vld [vmem:[%s5267_s8 + $0x288] sm:$0xff]  ;;  %v5708_v55 = vld [vmem:[%s5267_s8 + $0x290] sm:$0xff] }
  0x82   : > { %15338 = vst [vmem:[#allocation46_spill] sm:$0xff] %v5698_v22  ;;  %15339 = vst [vmem:[#allocation47_spill] sm:$0xff] %v5701_v37  ;;  %v5711_v35 = vld [vmem:[%s5267_s8 + $0x298] sm:$0xff]  ;;  %v5718_v51 = vld [vmem:[%s5267_s8 + $0x2a0] sm:$0xff] }
  0x83   : > { %15340 = vst [vmem:[#allocation48_spill] sm:$0xff] %v5708_v55  ;;  %15341 = vst [vmem:[#allocation49_spill] sm:$0xff] %v5711_v35  ;;  %v5721_v30 = vld [vmem:[%s5267_s8 + $0x2a8] sm:$0xff]  ;;  %v5728_v49 = vld [vmem:[%s5267_s8 + $0x2b0] sm:$0xff] }
  0x84   : > { %15342 = vst [vmem:[#allocation50_spill] sm:$0xff] %v5718_v51  ;;  %15343 = vst [vmem:[#allocation51_spill] sm:$0xff] %v5721_v30  ;;  %v5731_v28 = vld [vmem:[%s5267_s8 + $0x2b8] sm:$0xff]  ;;  %v5738_v45 = vld [vmem:[%s5267_s8 + $0x2c0] sm:$0xff] }
  0x85   : > { %15344 = vst [vmem:[#allocation52_spill] sm:$0xff] %v5728_v49  ;;  %15345 = vst [vmem:[#allocation53_spill] sm:$0xff] %v5731_v28  ;;  %v5741_v24 = vld [vmem:[%s5267_s8 + $0x2c8] sm:$0xff]  ;;  %v5748_v43 = vld [vmem:[%s5267_s8 + $0x2d0] sm:$0xff] }
  0x86   : > { %15346 = vst [vmem:[#allocation54_spill] sm:$0xff] %v5738_v45  ;;  %15347 = vst [vmem:[#allocation55_spill] sm:$0xff] %v5741_v24  ;;  %v5751_v22 = vld [vmem:[%s5267_s8 + $0x2d8] sm:$0xff]  ;;  %v5758_v38 = vld [vmem:[%s5267_s8 + $0x2e0] sm:$0xff] }
  0x87   : > { %15348 = vst [vmem:[#allocation56_spill] sm:$0xff] %v5748_v43  ;;  %15349 = vst [vmem:[#allocation57_spill] sm:$0xff] %v5751_v22  ;;  %v5761_v55 = vld [vmem:[%s5267_s8 + $0x2e8] sm:$0xff]  ;;  %v5768_v36 = vld [vmem:[%s5267_s8 + $0x2f0] sm:$0xff] }
  0x88   : > { %15350 = vst [vmem:[#allocation58_spill] sm:$0xff] %v5758_v38  ;;  %15351 = vst [vmem:[#allocation59_spill] sm:$0xff] %v5761_v55  ;;  %v5771_v51 = vld [vmem:[%s5267_s8 + $0x2f8] sm:$0xff]  ;;  %v5778_v31 = vld [vmem:[%s5267_s8 + $0x300] sm:$0xff] }
  0x89   : > { %15352 = vst [vmem:[#allocation60_spill] sm:$0xff] %v5768_v36  ;;  %15353 = vst [vmem:[#allocation61_spill] sm:$0xff] %v5771_v51  ;;  %v5781_v49 = vld [vmem:[%s5267_s8 + $0x308] sm:$0xff]  ;;  %v5788_v29 = vld [vmem:[%s5267_s8 + $0x310] sm:$0xff] }
  0x8a   : > { %15354 = vst [vmem:[#allocation62_spill] sm:$0xff] %v5778_v31  ;;  %15355 = vst [vmem:[#allocation63_spill] sm:$0xff] %v5781_v49  ;;  %v5791_v45 = vld [vmem:[%s5267_s8 + $0x318] sm:$0xff]  ;;  %v5798_v25 = vld [vmem:[%s5267_s8 + $0x320] sm:$0xff] }
  0x8b   : > { %15356 = vst [vmem:[#allocation64_spill] sm:$0xff] %v5788_v29  ;;  %15357 = vst [vmem:[#allocation65_spill] sm:$0xff] %v5791_v45  ;;  %v5801_v43 = vld [vmem:[%s5267_s8 + $0x328] sm:$0xff]  ;;  %v5808_v23 = vld [vmem:[%s5267_s8 + $0x330] sm:$0xff] }
  0x8c   : > { %15358 = vst [vmem:[#allocation66_spill] sm:$0xff] %v5798_v25  ;;  %15359 = vst [vmem:[#allocation67_spill] sm:$0xff] %v5801_v43  ;;  %v5811_v38 = vld [vmem:[%s5267_s8 + $0x338] sm:$0xff]  ;;  %v5818_v37 = vld [vmem:[%s5267_s8 + $0x340] sm:$0xff] }
  0x8d   : > { %15360 = vst [vmem:[#allocation68_spill] sm:$0xff] %v5808_v23  ;;  %15361 = vst [vmem:[#allocation69_spill] sm:$0xff] %v5811_v38  ;;  %v5821_v36 = vld [vmem:[%s5267_s8 + $0x348] sm:$0xff]  ;;  %v5828_v35 = vld [vmem:[%s5267_s8 + $0x350] sm:$0xff] }
  0x8e   : > { %15362 = vst [vmem:[#allocation70_spill] sm:$0xff] %v5818_v37  ;;  %15363 = vst [vmem:[#allocation71_spill] sm:$0xff] %v5821_v36  ;;  %v5831_v31 = vld [vmem:[%s5267_s8 + $0x358] sm:$0xff]  ;;  %v5838_v30 = vld [vmem:[%s5267_s8 + $0x360] sm:$0xff] }
  0x8f   : > { %15364 = vst [vmem:[#allocation72_spill] sm:$0xff] %v5828_v35  ;;  %15365 = vst [vmem:[#allocation73_spill] sm:$0xff] %v5831_v31  ;;  %v5841_v29 = vld [vmem:[%s5267_s8 + $0x368] sm:$0xff]  ;;  %v5848_v28 = vld [vmem:[%s5267_s8 + $0x370] sm:$0xff] }
  0x90   : > { %15366 = vst [vmem:[#allocation74_spill] sm:$0xff] %v5838_v30  ;;  %15367 = vst [vmem:[#allocation75_spill] sm:$0xff] %v5841_v29  ;;  %v5851_v25 = vld [vmem:[%s5267_s8 + $0x378] sm:$0xff]  ;;  %v5858_v24 = vld [vmem:[%s5267_s8 + $0x380] sm:$0xff] }
  0x91   : > { %15368 = vst [vmem:[#allocation76_spill] sm:$0xff] %v5848_v28  ;;  %15369 = vst [vmem:[#allocation77_spill] sm:$0xff] %v5851_v25  ;;  %v5861_v23 = vld [vmem:[%s5267_s8 + $0x388] sm:$0xff]  ;;  %v5868_v22 = vld [vmem:[%s5267_s8 + $0x390] sm:$0xff] }
  0x92   : > { %15370 = vst [vmem:[#allocation78_spill] sm:$0xff] %v5858_v24  ;;  %15371 = vst [vmem:[#allocation79_spill] sm:$0xff] %v5861_v23  ;;  %v5871_v37 = vld [vmem:[%s5267_s8 + $0x398] sm:$0xff]  ;;  %v5878_v55 = vld [vmem:[%s5267_s8 + $0x3a0] sm:$0xff] }
  0x93   : > { %15372 = vst [vmem:[#allocation80_spill] sm:$0xff] %v5868_v22  ;;  %15373 = vst [vmem:[#allocation81_spill] sm:$0xff] %v5871_v37  ;;  %v5881_v35 = vld [vmem:[%s5267_s8 + $0x3a8] sm:$0xff]  ;;  %v5888_v51 = vld [vmem:[%s5267_s8 + $0x3b0] sm:$0xff] }
  0x94   : > { %15374 = vst [vmem:[#allocation82_spill] sm:$0xff] %v5878_v55  ;;  %15375 = vst [vmem:[#allocation83_spill] sm:$0xff] %v5881_v35  ;;  %v5891_v30 = vld [vmem:[%s5267_s8 + $0x3b8] sm:$0xff]  ;;  %v5898_v49 = vld [vmem:[%s5267_s8 + $0x3c0] sm:$0xff] }
  0x95   : > { %15376 = vst [vmem:[#allocation84_spill] sm:$0xff] %v5888_v51  ;;  %15377 = vst [vmem:[#allocation85_spill] sm:$0xff] %v5891_v30  ;;  %v5901_v28 = vld [vmem:[%s5267_s8 + $0x3c8] sm:$0xff]  ;;  %v5908_v45 = vld [vmem:[%s5267_s8 + $0x3d0] sm:$0xff] }
  0x96   : > { %15378 = vst [vmem:[#allocation86_spill] sm:$0xff] %v5898_v49  ;;  %15379 = vst [vmem:[#allocation87_spill] sm:$0xff] %v5901_v28  ;;  %v5911_v24 = vld [vmem:[%s5267_s8 + $0x3d8] sm:$0xff]  ;;  %v5918_v43 = vld [vmem:[%s5267_s8 + $0x3e0] sm:$0xff] }
  0x97   : > { %15380 = vst [vmem:[#allocation88_spill] sm:$0xff] %v5908_v45  ;;  %15381 = vst [vmem:[#allocation89_spill] sm:$0xff] %v5911_v24  ;;  %v5921_v22 = vld [vmem:[%s5267_s8 + $0x3e8] sm:$0xff]  ;;  %v5928_v38 = vld [vmem:[%s5267_s8 + $0x3f0] sm:$0xff] }
  0x98   : > { %15382 = vst [vmem:[#allocation90_spill] sm:$0xff] %v5918_v43  ;;  %15383 = vst [vmem:[#allocation91_spill] sm:$0xff] %v5921_v22  ;;  %v5931_v55 = vld [vmem:[%s5267_s8 + $0x3f8] sm:$0xff]  ;;  %v5938_v36 = vld [vmem:[%s5267_s8 + $0x400] sm:$0xff] }
  0x99   : > { %15384 = vst [vmem:[#allocation92_spill] sm:$0xff] %v5928_v38  ;;  %15385 = vst [vmem:[#allocation93_spill] sm:$0xff] %v5931_v55  ;;  %v5941_v51 = vld [vmem:[%s5267_s8 + $0x408] sm:$0xff]  ;;  %v5948_v31 = vld [vmem:[%s5267_s8 + $0x410] sm:$0xff] }
  0x9a   : > { %15386 = vst [vmem:[#allocation94_spill] sm:$0xff] %v5938_v36  ;;  %15387 = vst [vmem:[#allocation95_spill] sm:$0xff] %v5941_v51  ;;  %v5951_v49 = vld [vmem:[%s5267_s8 + $0x418] sm:$0xff]  ;;  %v5958_v29 = vld [vmem:[%s5267_s8 + $0x420] sm:$0xff] }
  0x9b   : > { %15388 = vst [vmem:[#allocation96_spill] sm:$0xff] %v5948_v31  ;;  %15389 = vst [vmem:[#allocation97_spill] sm:$0xff] %v5951_v49  ;;  %v5961_v45 = vld [vmem:[%s5267_s8 + $0x428] sm:$0xff]  ;;  %v5968_v25 = vld [vmem:[%s5267_s8 + $0x430] sm:$0xff] }
  0x9c   : > { %15390 = vst [vmem:[#allocation98_spill] sm:$0xff] %v5958_v29  ;;  %15391 = vst [vmem:[#allocation99_spill] sm:$0xff] %v5961_v45  ;;  %v5971_v43 = vld [vmem:[%s5267_s8 + $0x438] sm:$0xff]  ;;  %v5978_v23 = vld [vmem:[%s5267_s8 + $0x440] sm:$0xff] }
  0x9d   : > { %15392 = vst [vmem:[#allocation100_spill] sm:$0xff] %v5968_v25  ;;  %15393 = vst [vmem:[#allocation101_spill] sm:$0xff] %v5971_v43  ;;  %v5981_v38 = vld [vmem:[%s5267_s8 + $0x448] sm:$0xff]  ;;  %v5988_v37 = vld [vmem:[%s5267_s8 + $0x450] sm:$0xff] }
  0x9e   : > { %15394 = vst [vmem:[#allocation102_spill] sm:$0xff] %v5978_v23  ;;  %15395 = vst [vmem:[#allocation103_spill] sm:$0xff] %v5981_v38  ;;  %v5991_v36 = vld [vmem:[%s5267_s8 + $0x458] sm:$0xff]  ;;  %v5998_v35 = vld [vmem:[%s5267_s8 + $0x460] sm:$0xff] }
  0x9f   : > { %15396 = vst [vmem:[#allocation104_spill] sm:$0xff] %v5988_v37  ;;  %15397 = vst [vmem:[#allocation105_spill] sm:$0xff] %v5991_v36  ;;  %v6001_v31 = vld [vmem:[%s5267_s8 + $0x468] sm:$0xff]  ;;  %v6008_v30 = vld [vmem:[%s5267_s8 + $0x470] sm:$0xff] }
  0xa0   : > { %15398 = vst [vmem:[#allocation106_spill] sm:$0xff] %v5998_v35  ;;  %15399 = vst [vmem:[#allocation107_spill] sm:$0xff] %v6001_v31  ;;  %v6011_v29 = vld [vmem:[%s5267_s8 + $0x478] sm:$0xff]  ;;  %v6018_v28 = vld [vmem:[%s5267_s8 + $0x480] sm:$0xff] }
  0xa1   : > { %15400 = vst [vmem:[#allocation108_spill] sm:$0xff] %v6008_v30  ;;  %15401 = vst [vmem:[#allocation109_spill] sm:$0xff] %v6011_v29  ;;  %v6021_v25 = vld [vmem:[%s5267_s8 + $0x488] sm:$0xff]  ;;  %v6028_v24 = vld [vmem:[%s5267_s8 + $0x490] sm:$0xff] }
  0xa2   : > { %15402 = vst [vmem:[#allocation110_spill] sm:$0xff] %v6018_v28  ;;  %15403 = vst [vmem:[#allocation111_spill] sm:$0xff] %v6021_v25  ;;  %v6031_v23 = vld [vmem:[%s5267_s8 + $0x498] sm:$0xff]  ;;  %v6038_v22 = vld [vmem:[%s5267_s8 + $0x4a0] sm:$0xff] }
  0xa3   : > { %15404 = vst [vmem:[#allocation112_spill] sm:$0xff] %v6028_v24  ;;  %15405 = vst [vmem:[#allocation113_spill] sm:$0xff] %v6031_v23  ;;  %v6041_v37 = vld [vmem:[%s5267_s8 + $0x4a8] sm:$0xff]  ;;  %v6048_v55 = vld [vmem:[%s5267_s8 + $0x4b0] sm:$0xff] }
  0xa4   : > { %15406 = vst [vmem:[#allocation114_spill] sm:$0xff] %v6038_v22  ;;  %15407 = vst [vmem:[#allocation115_spill] sm:$0xff] %v6041_v37  ;;  %v6051_v35 = vld [vmem:[%s5267_s8 + $0x4b8] sm:$0xff]  ;;  %v6058_v51 = vld [vmem:[%s5267_s8 + $0x4c0] sm:$0xff] }
  0xa5   : > { %15408 = vst [vmem:[#allocation116_spill] sm:$0xff] %v6048_v55  ;;  %15409 = vst [vmem:[#allocation117_spill] sm:$0xff] %v6051_v35  ;;  %v6061_v30 = vld [vmem:[%s5267_s8 + $0x4c8] sm:$0xff]  ;;  %v6068_v49 = vld [vmem:[%s5267_s8 + $0x4d0] sm:$0xff] }
  0xa6   : > { %15410 = vst [vmem:[#allocation118_spill] sm:$0xff] %v6058_v51  ;;  %15411 = vst [vmem:[#allocation119_spill] sm:$0xff] %v6061_v30  ;;  %v6071_v28 = vld [vmem:[%s5267_s8 + $0x4d8] sm:$0xff]  ;;  %v6078_v45 = vld [vmem:[%s5267_s8 + $0x4e0] sm:$0xff] }
  0xa7   : > { %15412 = vst [vmem:[#allocation120_spill] sm:$0xff] %v6068_v49  ;;  %15413 = vst [vmem:[#allocation121_spill] sm:$0xff] %v6071_v28  ;;  %v6081_v24 = vld [vmem:[%s5267_s8 + $0x4e8] sm:$0xff]  ;;  %v6088_v43 = vld [vmem:[%s5267_s8 + $0x4f0] sm:$0xff] }
  0xa8   : > { %15414 = vst [vmem:[#allocation122_spill] sm:$0xff] %v6078_v45  ;;  %15415 = vst [vmem:[#allocation123_spill] sm:$0xff] %v6081_v24  ;;  %v6091_v22 = vld [vmem:[%s5267_s8 + $0x4f8] sm:$0xff]  ;;  %v6098_v38 = vld [vmem:[%s5267_s8 + $0x500] sm:$0xff] }
  0xa9   : > { %15416 = vst [vmem:[#allocation124_spill] sm:$0xff] %v6088_v43  ;;  %15417 = vst [vmem:[#allocation125_spill] sm:$0xff] %v6091_v22  ;;  %v6101_v55 = vld [vmem:[%s5267_s8 + $0x508] sm:$0xff]  ;;  %v6108_v36 = vld [vmem:[%s5267_s8 + $0x510] sm:$0xff] }
  0xaa   : > { %15418 = vst [vmem:[#allocation126_spill] sm:$0xff] %v6098_v38  ;;  %15419 = vst [vmem:[#allocation127_spill] sm:$0xff] %v6101_v55  ;;  %v6111_v51 = vld [vmem:[%s5267_s8 + $0x518] sm:$0xff]  ;;  %v6118_v31 = vld [vmem:[%s5267_s8 + $0x520] sm:$0xff] }
  0xab   : > { %15420 = vst [vmem:[#allocation128_spill] sm:$0xff] %v6108_v36  ;;  %15421 = vst [vmem:[#allocation129_spill] sm:$0xff] %v6111_v51  ;;  %v6121_v49 = vld [vmem:[%s5267_s8 + $0x528] sm:$0xff]  ;;  %v6128_v29 = vld [vmem:[%s5267_s8 + $0x530] sm:$0xff] }
  0xac   : > { %15422 = vst [vmem:[#allocation130_spill] sm:$0xff] %v6118_v31  ;;  %15423 = vst [vmem:[#allocation131_spill] sm:$0xff] %v6121_v49  ;;  %v6131_v45 = vld [vmem:[%s5267_s8 + $0x538] sm:$0xff]  ;;  %v6138_v25 = vld [vmem:[%s5267_s8 + $0x540] sm:$0xff] }
  0xad   : > { %15424 = vst [vmem:[#allocation132_spill] sm:$0xff] %v6128_v29  ;;  %15425 = vst [vmem:[#allocation133_spill] sm:$0xff] %v6131_v45  ;;  %v6141_v43 = vld [vmem:[%s5267_s8 + $0x548] sm:$0xff]  ;;  %v6148_v23 = vld [vmem:[%s5267_s8 + $0x550] sm:$0xff] }
  0xae   : > { %15426 = vst [vmem:[#allocation134_spill] sm:$0xff] %v6138_v25  ;;  %15427 = vst [vmem:[#allocation135_spill] sm:$0xff] %v6141_v43  ;;  %v6151_v38 = vld [vmem:[%s5267_s8 + $0x558] sm:$0xff]  ;;  %v6158_v37 = vld [vmem:[%s5267_s8 + $0x560] sm:$0xff] }
  0xaf   : > { %15428 = vst [vmem:[#allocation136_spill] sm:$0xff] %v6148_v23  ;;  %15429 = vst [vmem:[#allocation137_spill] sm:$0xff] %v6151_v38  ;;  %v6161_v36 = vld [vmem:[%s5267_s8 + $0x568] sm:$0xff]  ;;  %v6168_v35 = vld [vmem:[%s5267_s8 + $0x570] sm:$0xff] }
  0xb0   : > { %15430 = vst [vmem:[#allocation138_spill] sm:$0xff] %v6158_v37  ;;  %15431 = vst [vmem:[#allocation139_spill] sm:$0xff] %v6161_v36  ;;  %v6171_v31 = vld [vmem:[%s5267_s8 + $0x578] sm:$0xff]  ;;  %v6178_v30 = vld [vmem:[%s5267_s8 + $0x580] sm:$0xff] }
  0xb1   : > { %15432 = vst [vmem:[#allocation140_spill] sm:$0xff] %v6168_v35  ;;  %15433 = vst [vmem:[#allocation141_spill] sm:$0xff] %v6171_v31  ;;  %v6181_v29 = vld [vmem:[%s5267_s8 + $0x588] sm:$0xff]  ;;  %v6188_v28 = vld [vmem:[%s5267_s8 + $0x590] sm:$0xff] }
  0xb2   : > { %15434 = vst [vmem:[#allocation142_spill] sm:$0xff] %v6178_v30  ;;  %15435 = vst [vmem:[#allocation143_spill] sm:$0xff] %v6181_v29  ;;  %v6191_v25 = vld [vmem:[%s5267_s8 + $0x598] sm:$0xff]  ;;  %v6198_v24 = vld [vmem:[%s5267_s8 + $0x5a0] sm:$0xff] }
  0xb3   : > { %15436 = vst [vmem:[#allocation144_spill] sm:$0xff] %v6188_v28  ;;  %15437 = vst [vmem:[#allocation145_spill] sm:$0xff] %v6191_v25  ;;  %v6201_v23 = vld [vmem:[%s5267_s8 + $0x5a8] sm:$0xff]  ;;  %v6208_v22 = vld [vmem:[%s5267_s8 + $0x5b0] sm:$0xff] }
  0xb4   : > { %15438 = vst [vmem:[#allocation146_spill] sm:$0xff] %v6198_v24  ;;  %15439 = vst [vmem:[#allocation147_spill] sm:$0xff] %v6201_v23  ;;  %v6211_v37 = vld [vmem:[%s5267_s8 + $0x5b8] sm:$0xff]  ;;  %v6218_v55 = vld [vmem:[%s5267_s8 + $0x5c0] sm:$0xff] }
  0xb5   : > { %15440 = vst [vmem:[#allocation148_spill] sm:$0xff] %v6208_v22  ;;  %15441 = vst [vmem:[#allocation149_spill] sm:$0xff] %v6211_v37  ;;  %v6221_v35 = vld [vmem:[%s5267_s8 + $0x5c8] sm:$0xff]  ;;  %v6228_v51 = vld [vmem:[%s5267_s8 + $0x5d0] sm:$0xff] }
  0xb6   : > { %15442 = vst [vmem:[#allocation150_spill] sm:$0xff] %v6218_v55  ;;  %15443 = vst [vmem:[#allocation151_spill] sm:$0xff] %v6221_v35  ;;  %v6231_v30 = vld [vmem:[%s5267_s8 + $0x5d8] sm:$0xff]  ;;  %v6238_v49 = vld [vmem:[%s5267_s8 + $0x5e0] sm:$0xff] }
  0xb7   : > { %15444 = vst [vmem:[#allocation152_spill] sm:$0xff] %v6228_v51  ;;  %15445 = vst [vmem:[#allocation153_spill] sm:$0xff] %v6231_v30  ;;  %v6241_v28 = vld [vmem:[%s5267_s8 + $0x5e8] sm:$0xff]  ;;  %v6248_v45 = vld [vmem:[%s5267_s8 + $0x5f0] sm:$0xff] }
  0xb8   : > { %15446 = vst [vmem:[#allocation154_spill] sm:$0xff] %v6238_v49  ;;  %15447 = vst [vmem:[#allocation155_spill] sm:$0xff] %v6241_v28  ;;  %v6251_v24 = vld [vmem:[%s5267_s8 + $0x5f8] sm:$0xff]  ;;  %v6258_v43 = vld [vmem:[%s5267_s8 + $0x600] sm:$0xff] }
  0xb9   : > { %15448 = vst [vmem:[#allocation156_spill] sm:$0xff] %v6248_v45  ;;  %15449 = vst [vmem:[#allocation157_spill] sm:$0xff] %v6251_v24  ;;  %v6261_v22 = vld [vmem:[%s5267_s8 + $0x608] sm:$0xff]  ;;  %v6268_v38 = vld [vmem:[%s5267_s8 + $0x610] sm:$0xff] }
  0xba   : > { %15450 = vst [vmem:[#allocation158_spill] sm:$0xff] %v6258_v43  ;;  %15451 = vst [vmem:[#allocation159_spill] sm:$0xff] %v6261_v22  ;;  %v6271_v55 = vld [vmem:[%s5267_s8 + $0x618] sm:$0xff]  ;;  %v6278_v36 = vld [vmem:[%s5267_s8 + $0x620] sm:$0xff] }
  0xbb   : > { %15452 = vst [vmem:[#allocation160_spill] sm:$0xff] %v6268_v38  ;;  %15453 = vst [vmem:[#allocation161_spill] sm:$0xff] %v6271_v55  ;;  %v6281_v51 = vld [vmem:[%s5267_s8 + $0x628] sm:$0xff]  ;;  %v6288_v31 = vld [vmem:[%s5267_s8 + $0x630] sm:$0xff] }
  0xbc   : > { %15454 = vst [vmem:[#allocation162_spill] sm:$0xff] %v6278_v36  ;;  %15455 = vst [vmem:[#allocation163_spill] sm:$0xff] %v6281_v51  ;;  %v6291_v49 = vld [vmem:[%s5267_s8 + $0x638] sm:$0xff]  ;;  %v6298_v29 = vld [vmem:[%s5267_s8 + $0x640] sm:$0xff] }
  0xbd   : > { %15456 = vst [vmem:[#allocation164_spill] sm:$0xff] %v6288_v31  ;;  %15457 = vst [vmem:[#allocation165_spill] sm:$0xff] %v6291_v49  ;;  %v6301_v45 = vld [vmem:[%s5267_s8 + $0x648] sm:$0xff]  ;;  %v6308_v25 = vld [vmem:[%s5267_s8 + $0x650] sm:$0xff] }
  0xbe   : > { %15458 = vst [vmem:[#allocation166_spill] sm:$0xff] %v6298_v29  ;;  %15459 = vst [vmem:[#allocation167_spill] sm:$0xff] %v6301_v45  ;;  %v6311_v43 = vld [vmem:[%s5267_s8 + $0x658] sm:$0xff]  ;;  %v6318_v23 = vld [vmem:[%s5267_s8 + $0x660] sm:$0xff] }
  0xbf   : > { %15460 = vst [vmem:[#allocation168_spill] sm:$0xff] %v6308_v25  ;;  %15461 = vst [vmem:[#allocation169_spill] sm:$0xff] %v6311_v43  ;;  %v6321_v38 = vld [vmem:[%s5267_s8 + $0x668] sm:$0xff]  ;;  %v6328_v37 = vld [vmem:[%s5267_s8 + $0x670] sm:$0xff] }
  0xc0   : > { %15462 = vst [vmem:[#allocation170_spill] sm:$0xff] %v6318_v23  ;;  %15463 = vst [vmem:[#allocation171_spill] sm:$0xff] %v6321_v38  ;;  %v6331_v36 = vld [vmem:[%s5267_s8 + $0x678] sm:$0xff]  ;;  %v6338_v35 = vld [vmem:[%s5267_s8 + $0x680] sm:$0xff] }
  0xc1   : > { %15464 = vst [vmem:[#allocation172_spill] sm:$0xff] %v6328_v37  ;;  %15465 = vst [vmem:[#allocation173_spill] sm:$0xff] %v6331_v36  ;;  %v6341_v31 = vld [vmem:[%s5267_s8 + $0x688] sm:$0xff]  ;;  %v6348_v30 = vld [vmem:[%s5267_s8 + $0x690] sm:$0xff] }
  0xc2   : > { %15466 = vst [vmem:[#allocation174_spill] sm:$0xff] %v6338_v35  ;;  %15467 = vst [vmem:[#allocation175_spill] sm:$0xff] %v6341_v31  ;;  %v6351_v29 = vld [vmem:[%s5267_s8 + $0x698] sm:$0xff]  ;;  %v6358_v28 = vld [vmem:[%s5267_s8 + $0x6a0] sm:$0xff] }
  0xc3   : > { %15468 = vst [vmem:[#allocation176_spill] sm:$0xff] %v6348_v30  ;;  %15469 = vst [vmem:[#allocation177_spill] sm:$0xff] %v6351_v29  ;;  %v6361_v25 = vld [vmem:[%s5267_s8 + $0x6a8] sm:$0xff]  ;;  %v6368_v24 = vld [vmem:[%s5267_s8 + $0x6b0] sm:$0xff] }
  0xc4   : > { %15470 = vst [vmem:[#allocation178_spill] sm:$0xff] %v6358_v28  ;;  %15471 = vst [vmem:[#allocation179_spill] sm:$0xff] %v6361_v25  ;;  %v6371_v23 = vld [vmem:[%s5267_s8 + $0x6b8] sm:$0xff]  ;;  %v6378_v22 = vld [vmem:[%s5267_s8 + $0x6c0] sm:$0xff] }
  0xc5   : > { %15472 = vst [vmem:[#allocation180_spill] sm:$0xff] %v6368_v24  ;;  %15473 = vst [vmem:[#allocation181_spill] sm:$0xff] %v6371_v23  ;;  %v6381_v37 = vld [vmem:[%s5267_s8 + $0x6c8] sm:$0xff]  ;;  %v6388_v55 = vld [vmem:[%s5267_s8 + $0x6d0] sm:$0xff] }
  0xc6   : > { %15474 = vst [vmem:[#allocation182_spill] sm:$0xff] %v6378_v22  ;;  %15475 = vst [vmem:[#allocation183_spill] sm:$0xff] %v6381_v37  ;;  %v6391_v35 = vld [vmem:[%s5267_s8 + $0x6d8] sm:$0xff]  ;;  %v6398_v51 = vld [vmem:[%s5267_s8 + $0x6e0] sm:$0xff] }
  0xc7   : > { %15476 = vst [vmem:[#allocation184_spill] sm:$0xff] %v6388_v55  ;;  %15477 = vst [vmem:[#allocation185_spill] sm:$0xff] %v6391_v35  ;;  %v6401_v30 = vld [vmem:[%s5267_s8 + $0x6e8] sm:$0xff]  ;;  %v6408_v49 = vld [vmem:[%s5267_s8 + $0x6f0] sm:$0xff] }
  0xc8   : > { %15478 = vst [vmem:[#allocation186_spill] sm:$0xff] %v6398_v51  ;;  %15479 = vst [vmem:[#allocation187_spill] sm:$0xff] %v6401_v30  ;;  %v6411_v28 = vld [vmem:[%s5267_s8 + $0x6f8] sm:$0xff]  ;;  %v6418_v45 = vld [vmem:[%s5267_s8 + $0x700] sm:$0xff] }
  0xc9   : > { %15480 = vst [vmem:[#allocation188_spill] sm:$0xff] %v6408_v49  ;;  %15481 = vst [vmem:[#allocation189_spill] sm:$0xff] %v6411_v28  ;;  %v6421_v24 = vld [vmem:[%s5267_s8 + $0x708] sm:$0xff]  ;;  %v6428_v43 = vld [vmem:[%s5267_s8 + $0x710] sm:$0xff] }
  0xca   : > { %15482 = vst [vmem:[#allocation190_spill] sm:$0xff] %v6418_v45  ;;  %15483 = vst [vmem:[#allocation191_spill] sm:$0xff] %v6421_v24  ;;  %v6431_v22 = vld [vmem:[%s5267_s8 + $0x718] sm:$0xff]  ;;  %v6438_v38 = vld [vmem:[%s5267_s8 + $0x720] sm:$0xff] }
  0xcb   : > { %15484 = vst [vmem:[#allocation192_spill] sm:$0xff] %v6428_v43  ;;  %15485 = vst [vmem:[#allocation193_spill] sm:$0xff] %v6431_v22  ;;  %v6441_v55 = vld [vmem:[%s5267_s8 + $0x728] sm:$0xff]  ;;  %v6448_v36 = vld [vmem:[%s5267_s8 + $0x730] sm:$0xff] }
  0xcc   : > { %15486 = vst [vmem:[#allocation194_spill] sm:$0xff] %v6438_v38  ;;  %15487 = vst [vmem:[#allocation195_spill] sm:$0xff] %v6441_v55  ;;  %v6451_v51 = vld [vmem:[%s5267_s8 + $0x738] sm:$0xff]  ;;  %v6458_v31 = vld [vmem:[%s5267_s8 + $0x740] sm:$0xff] }
  0xcd   : > { %15488 = vst [vmem:[#allocation196_spill] sm:$0xff] %v6448_v36  ;;  %15489 = vst [vmem:[#allocation197_spill] sm:$0xff] %v6451_v51  ;;  %v6461_v49 = vld [vmem:[%s5267_s8 + $0x748] sm:$0xff]  ;;  %v6468_v29 = vld [vmem:[%s5267_s8 + $0x750] sm:$0xff] }
  0xce   : > { %15490 = vst [vmem:[#allocation198_spill] sm:$0xff] %v6458_v31  ;;  %15491 = vst [vmem:[#allocation199_spill] sm:$0xff] %v6461_v49  ;;  %v6471_v45 = vld [vmem:[%s5267_s8 + $0x758] sm:$0xff]  ;;  %v6478_v25 = vld [vmem:[%s5267_s8 + $0x760] sm:$0xff] }
  0xcf   : > { %15492 = vst [vmem:[#allocation200_spill] sm:$0xff] %v6468_v29  ;;  %15493 = vst [vmem:[#allocation201_spill] sm:$0xff] %v6471_v45  ;;  %v6481_v43 = vld [vmem:[%s5267_s8 + $0x768] sm:$0xff]  ;;  %v6488_v23 = vld [vmem:[%s5267_s8 + $0x770] sm:$0xff] }
  0xd0   : > { %15494 = vst [vmem:[#allocation202_spill] sm:$0xff] %v6478_v25  ;;  %15495 = vst [vmem:[#allocation203_spill] sm:$0xff] %v6481_v43  ;;  %v6491_v38 = vld [vmem:[%s5267_s8 + $0x778] sm:$0xff]  ;;  %v6498_v37 = vld [vmem:[%s5267_s8 + $0x780] sm:$0xff] }
  0xd1   : > { %15496 = vst [vmem:[#allocation204_spill] sm:$0xff] %v6488_v23  ;;  %15497 = vst [vmem:[#allocation205_spill] sm:$0xff] %v6491_v38  ;;  %v6501_v36 = vld [vmem:[%s5267_s8 + $0x788] sm:$0xff]  ;;  %v6508_v35 = vld [vmem:[%s5267_s8 + $0x790] sm:$0xff] }
  0xd2   : > { %15498 = vst [vmem:[#allocation206_spill] sm:$0xff] %v6498_v37  ;;  %15499 = vst [vmem:[#allocation207_spill] sm:$0xff] %v6501_v36  ;;  %v6511_v31 = vld [vmem:[%s5267_s8 + $0x798] sm:$0xff]  ;;  %v6518_v30 = vld [vmem:[%s5267_s8 + $0x7a0] sm:$0xff] }
  0xd3   : > { %15500 = vst [vmem:[#allocation208_spill] sm:$0xff] %v6508_v35  ;;  %15501 = vst [vmem:[#allocation209_spill] sm:$0xff] %v6511_v31  ;;  %v6521_v29 = vld [vmem:[%s5267_s8 + $0x7a8] sm:$0xff]  ;;  %v6528_v28 = vld [vmem:[%s5267_s8 + $0x7b0] sm:$0xff] }
  0xd4   : > { %15502 = vst [vmem:[#allocation210_spill] sm:$0xff] %v6518_v30  ;;  %15503 = vst [vmem:[#allocation211_spill] sm:$0xff] %v6521_v29  ;;  %v6531_v25 = vld [vmem:[%s5267_s8 + $0x7b8] sm:$0xff]  ;;  %v6538_v24 = vld [vmem:[%s5267_s8 + $0x7c0] sm:$0xff] }
  0xd5   : > { %15504 = vst [vmem:[#allocation212_spill] sm:$0xff] %v6528_v28  ;;  %15505 = vst [vmem:[#allocation213_spill] sm:$0xff] %v6531_v25  ;;  %v6541_v23 = vld [vmem:[%s5267_s8 + $0x7c8] sm:$0xff]  ;;  %v6548_v22 = vld [vmem:[%s5267_s8 + $0x7d0] sm:$0xff] }
  0xd6   : > { %15506 = vst [vmem:[#allocation214_spill] sm:$0xff] %v6538_v24  ;;  %15507 = vst [vmem:[#allocation215_spill] sm:$0xff] %v6541_v23  ;;  %v6551_v37 = vld [vmem:[%s5267_s8 + $0x7d8] sm:$0xff]  ;;  %v6558_v55 = vld [vmem:[%s5267_s8 + $0x7e0] sm:$0xff] }
  0xd7   : > { %15508 = vst [vmem:[#allocation216_spill] sm:$0xff] %v6548_v22  ;;  %15509 = vst [vmem:[#allocation217_spill] sm:$0xff] %v6551_v37  ;;  %v6561_v35 = vld [vmem:[%s5267_s8 + $0x7e8] sm:$0xff]  ;;  %v6568_v51 = vld [vmem:[%s5267_s8 + $0x7f0] sm:$0xff] }
  0xd8   : > { %15510 = vst [vmem:[#allocation218_spill] sm:$0xff] %v6558_v55  ;;  %15511 = vst [vmem:[#allocation219_spill] sm:$0xff] %v6561_v35  ;;  %v6571_v30 = vld [vmem:[%s5267_s8 + $0x7f8] sm:$0xff]  ;;  %v6578_v49 = vld [vmem:[%s5267_s8 + $0x800] sm:$0xff] }
  0xd9   : > { %15512 = vst [vmem:[#allocation220_spill] sm:$0xff] %v6568_v51  ;;  %15513 = vst [vmem:[#allocation221_spill] sm:$0xff] %v6571_v30  ;;  %v6581_v28 = vld [vmem:[%s5267_s8 + $0x808] sm:$0xff]  ;;  %v6588_v45 = vld [vmem:[%s5267_s8 + $0x810] sm:$0xff] }
  0xda   : > { %15514 = vst [vmem:[#allocation222_spill] sm:$0xff] %v6578_v49  ;;  %15515 = vst [vmem:[#allocation223_spill] sm:$0xff] %v6581_v28  ;;  %v6591_v24 = vld [vmem:[%s5267_s8 + $0x818] sm:$0xff]  ;;  %v6598_v43 = vld [vmem:[%s5267_s8 + $0x820] sm:$0xff] }
  0xdb   : > { %15516 = vst [vmem:[#allocation224_spill] sm:$0xff] %v6588_v45  ;;  %15517 = vst [vmem:[#allocation225_spill] sm:$0xff] %v6591_v24  ;;  %v6601_v22 = vld [vmem:[%s5267_s8 + $0x828] sm:$0xff]  ;;  %v6608_v38 = vld [vmem:[%s5267_s8 + $0x830] sm:$0xff] }
  0xdc   : > { %15518 = vst [vmem:[#allocation226_spill] sm:$0xff] %v6598_v43  ;;  %15519 = vst [vmem:[#allocation227_spill] sm:$0xff] %v6601_v22  ;;  %v6611_v55 = vld [vmem:[%s5267_s8 + $0x838] sm:$0xff]  ;;  %v6618_v36 = vld [vmem:[%s5267_s8 + $0x840] sm:$0xff] }
  0xdd   : > { %15520 = vst [vmem:[#allocation228_spill] sm:$0xff] %v6608_v38  ;;  %15521 = vst [vmem:[#allocation229_spill] sm:$0xff] %v6611_v55  ;;  %v6621_v51 = vld [vmem:[%s5267_s8 + $0x848] sm:$0xff]  ;;  %v6628_v31 = vld [vmem:[%s5267_s8 + $0x850] sm:$0xff] }
  0xde   : > { %15522 = vst [vmem:[#allocation230_spill] sm:$0xff] %v6618_v36  ;;  %15523 = vst [vmem:[#allocation231_spill] sm:$0xff] %v6621_v51  ;;  %v6631_v49 = vld [vmem:[%s5267_s8 + $0x858] sm:$0xff]  ;;  %v6638_v29 = vld [vmem:[%s5267_s8 + $0x860] sm:$0xff] }
  0xdf   : > { %15524 = vst [vmem:[#allocation232_spill] sm:$0xff] %v6628_v31  ;;  %15525 = vst [vmem:[#allocation233_spill] sm:$0xff] %v6631_v49  ;;  %v6641_v45 = vld [vmem:[%s5267_s8 + $0x868] sm:$0xff]  ;;  %v6648_v25 = vld [vmem:[%s5267_s8 + $0x870] sm:$0xff] }
  0xe0   : > { %15526 = vst [vmem:[#allocation234_spill] sm:$0xff] %v6638_v29  ;;  %15527 = vst [vmem:[#allocation235_spill] sm:$0xff] %v6641_v45  ;;  %v6651_v43 = vld [vmem:[%s5267_s8 + $0x878] sm:$0xff]  ;;  %v6658_v23 = vld [vmem:[%s5267_s8 + $0x880] sm:$0xff] }
  0xe1   : > { %15528 = vst [vmem:[#allocation236_spill] sm:$0xff] %v6648_v25  ;;  %15529 = vst [vmem:[#allocation237_spill] sm:$0xff] %v6651_v43  ;;  %v6661_v38 = vld [vmem:[%s5267_s8 + $0x888] sm:$0xff]  ;;  %v6668_v37 = vld [vmem:[%s5267_s8 + $0x890] sm:$0xff] }
  0xe2   : > { %15530 = vst [vmem:[#allocation238_spill] sm:$0xff] %v6658_v23  ;;  %15531 = vst [vmem:[#allocation239_spill] sm:$0xff] %v6661_v38  ;;  %v6671_v36 = vld [vmem:[%s5267_s8 + $0x898] sm:$0xff]  ;;  %v6678_v35 = vld [vmem:[%s5267_s8 + $0x8a0] sm:$0xff] }
  0xe3   : > { %15532 = vst [vmem:[#allocation240_spill] sm:$0xff] %v6668_v37  ;;  %15533 = vst [vmem:[#allocation241_spill] sm:$0xff] %v6671_v36  ;;  %v6681_v31 = vld [vmem:[%s5267_s8 + $0x8a8] sm:$0xff]  ;;  %v6688_v30 = vld [vmem:[%s5267_s8 + $0x8b0] sm:$0xff] }
  0xe4   : > { %15534 = vst [vmem:[#allocation242_spill] sm:$0xff] %v6678_v35  ;;  %15535 = vst [vmem:[#allocation243_spill] sm:$0xff] %v6681_v31  ;;  %v6691_v29 = vld [vmem:[%s5267_s8 + $0x8b8] sm:$0xff]  ;;  %v6698_v28 = vld [vmem:[%s5267_s8 + $0x8c0] sm:$0xff] }
  0xe5   : > { %15536 = vst [vmem:[#allocation244_spill] sm:$0xff] %v6688_v30  ;;  %15537 = vst [vmem:[#allocation245_spill] sm:$0xff] %v6691_v29  ;;  %v6701_v25 = vld [vmem:[%s5267_s8 + $0x8c8] sm:$0xff]  ;;  %v6708_v24 = vld [vmem:[%s5267_s8 + $0x8d0] sm:$0xff] }
  0xe6   : > { %15538 = vst [vmem:[#allocation246_spill] sm:$0xff] %v6698_v28  ;;  %15539 = vst [vmem:[#allocation247_spill] sm:$0xff] %v6701_v25  ;;  %v6711_v23 = vld [vmem:[%s5267_s8 + $0x8d8] sm:$0xff]  ;;  %v6718_v22 = vld [vmem:[%s5267_s8 + $0x8e0] sm:$0xff] }
  0xe7   : > { %15540 = vst [vmem:[#allocation248_spill] sm:$0xff] %v6708_v24  ;;  %15541 = vst [vmem:[#allocation249_spill] sm:$0xff] %v6711_v23  ;;  %v6721_v37 = vld [vmem:[%s5267_s8 + $0x8e8] sm:$0xff]  ;;  %v6728_v55 = vld [vmem:[%s5267_s8 + $0x8f0] sm:$0xff] }
  0xe8   : > { %15542 = vst [vmem:[#allocation250_spill] sm:$0xff] %v6718_v22  ;;  %15543 = vst [vmem:[#allocation251_spill] sm:$0xff] %v6721_v37  ;;  %v6731_v35 = vld [vmem:[%s5267_s8 + $0x8f8] sm:$0xff]  ;;  %v6738_v51 = vld [vmem:[%s5267_s8 + $0x900] sm:$0xff] }
  0xe9   : > { %15544 = vst [vmem:[#allocation252_spill] sm:$0xff] %v6728_v55  ;;  %15545 = vst [vmem:[#allocation253_spill] sm:$0xff] %v6731_v35  ;;  %v6741_v30 = vld [vmem:[%s5267_s8 + $0x908] sm:$0xff]  ;;  %v6748_v49 = vld [vmem:[%s5267_s8 + $0x910] sm:$0xff] }
  0xea   : > { %15546 = vst [vmem:[#allocation254_spill] sm:$0xff] %v6738_v51  ;;  %15547 = vst [vmem:[#allocation255_spill] sm:$0xff] %v6741_v30  ;;  %v6751_v28 = vld [vmem:[%s5267_s8 + $0x918] sm:$0xff]  ;;  %v6758_v45 = vld [vmem:[%s5267_s8 + $0x920] sm:$0xff] }
  0xeb   : > { %15548 = vst [vmem:[#allocation256_spill] sm:$0xff] %v6748_v49  ;;  %15549 = vst [vmem:[#allocation257_spill] sm:$0xff] %v6751_v28  ;;  %v6761_v24 = vld [vmem:[%s5267_s8 + $0x928] sm:$0xff]  ;;  %v6768_v43 = vld [vmem:[%s5267_s8 + $0x930] sm:$0xff] }
  0xec   : > { %15550 = vst [vmem:[#allocation258_spill] sm:$0xff] %v6758_v45  ;;  %15551 = vst [vmem:[#allocation259_spill] sm:$0xff] %v6761_v24  ;;  %v6771_v22 = vld [vmem:[%s5267_s8 + $0x938] sm:$0xff]  ;;  %v6778_v38 = vld [vmem:[%s5267_s8 + $0x940] sm:$0xff] }
  0xed   : > { %15552 = vst [vmem:[#allocation260_spill] sm:$0xff] %v6768_v43  ;;  %15553 = vst [vmem:[#allocation261_spill] sm:$0xff] %v6771_v22  ;;  %v6781_v55 = vld [vmem:[%s5267_s8 + $0x948] sm:$0xff]  ;;  %v6788_v36 = vld [vmem:[%s5267_s8 + $0x950] sm:$0xff] }
  0xee   : > { %15554 = vst [vmem:[#allocation262_spill] sm:$0xff] %v6778_v38  ;;  %15555 = vst [vmem:[#allocation263_spill] sm:$0xff] %v6781_v55  ;;  %v6791_v51 = vld [vmem:[%s5267_s8 + $0x958] sm:$0xff]  ;;  %v6798_v31 = vld [vmem:[%s5267_s8 + $0x960] sm:$0xff] }
  0xef   : > { %15556 = vst [vmem:[#allocation264_spill] sm:$0xff] %v6788_v36  ;;  %15557 = vst [vmem:[#allocation265_spill] sm:$0xff] %v6791_v51  ;;  %v6801_v49 = vld [vmem:[%s5267_s8 + $0x968] sm:$0xff]  ;;  %v6808_v29 = vld [vmem:[%s5267_s8 + $0x970] sm:$0xff] }
  0xf0   : > { %15558 = vst [vmem:[#allocation266_spill] sm:$0xff] %v6798_v31  ;;  %15559 = vst [vmem:[#allocation267_spill] sm:$0xff] %v6801_v49  ;;  %v6811_v45 = vld [vmem:[%s5267_s8 + $0x978] sm:$0xff]  ;;  %v6818_v25 = vld [vmem:[%s5267_s8 + $0x980] sm:$0xff] }
  0xf1   : > { %15560 = vst [vmem:[#allocation268_spill] sm:$0xff] %v6808_v29  ;;  %15561 = vst [vmem:[#allocation269_spill] sm:$0xff] %v6811_v45  ;;  %v6821_v43 = vld [vmem:[%s5267_s8 + $0x988] sm:$0xff]  ;;  %v6828_v23 = vld [vmem:[%s5267_s8 + $0x990] sm:$0xff] }
  0xf2   : > { %15562 = vst [vmem:[#allocation270_spill] sm:$0xff] %v6818_v25  ;;  %15563 = vst [vmem:[#allocation271_spill] sm:$0xff] %v6821_v43  ;;  %v6831_v38 = vld [vmem:[%s5267_s8 + $0x998] sm:$0xff]  ;;  %v6838_v37 = vld [vmem:[%s5267_s8 + $0x9a0] sm:$0xff] }
  0xf3   : > { %15564 = vst [vmem:[#allocation272_spill] sm:$0xff] %v6828_v23  ;;  %15565 = vst [vmem:[#allocation273_spill] sm:$0xff] %v6831_v38  ;;  %v6841_v36 = vld [vmem:[%s5267_s8 + $0x9a8] sm:$0xff]  ;;  %v6848_v35 = vld [vmem:[%s5267_s8 + $0x9b0] sm:$0xff] }
  0xf4   : > { %15566 = vst [vmem:[#allocation274_spill] sm:$0xff] %v6838_v37  ;;  %15567 = vst [vmem:[#allocation275_spill] sm:$0xff] %v6841_v36  ;;  %v6851_v31 = vld [vmem:[%s5267_s8 + $0x9b8] sm:$0xff]  ;;  %v6858_v30 = vld [vmem:[%s5267_s8 + $0x9c0] sm:$0xff] }
  0xf5   : > { %15568 = vst [vmem:[#allocation276_spill] sm:$0xff] %v6848_v35  ;;  %15569 = vst [vmem:[#allocation277_spill] sm:$0xff] %v6851_v31  ;;  %v6861_v29 = vld [vmem:[%s5267_s8 + $0x9c8] sm:$0xff]  ;;  %v6868_v28 = vld [vmem:[%s5267_s8 + $0x9d0] sm:$0xff] }
  0xf6   : > { %15570 = vst [vmem:[#allocation278_spill] sm:$0xff] %v6858_v30  ;;  %15571 = vst [vmem:[#allocation279_spill] sm:$0xff] %v6861_v29  ;;  %v6871_v25 = vld [vmem:[%s5267_s8 + $0x9d8] sm:$0xff]  ;;  %v6878_v24 = vld [vmem:[%s5267_s8 + $0x9e0] sm:$0xff] }
  0xf7   : > { %15572 = vst [vmem:[#allocation280_spill] sm:$0xff] %v6868_v28  ;;  %15573 = vst [vmem:[#allocation281_spill] sm:$0xff] %v6871_v25  ;;  %v6881_v23 = vld [vmem:[%s5267_s8 + $0x9e8] sm:$0xff]  ;;  %v6888_v22 = vld [vmem:[%s5267_s8 + $0x9f0] sm:$0xff] }
  0xf8   : > { %15574 = vst [vmem:[#allocation282_spill] sm:$0xff] %v6878_v24  ;;  %15575 = vst [vmem:[#allocation283_spill] sm:$0xff] %v6881_v23  ;;  %v6891_v37 = vld [vmem:[%s5267_s8 + $0x9f8] sm:$0xff]  ;;  %v6898_v55 = vld [vmem:[%s5267_s8 + $0xa00] sm:$0xff] }
  0xf9   : > { %15576 = vst [vmem:[#allocation284_spill] sm:$0xff] %v6888_v22  ;;  %15577 = vst [vmem:[#allocation285_spill] sm:$0xff] %v6891_v37  ;;  %v6901_v35 = vld [vmem:[%s5267_s8 + $0xa08] sm:$0xff]  ;;  %v6908_v51 = vld [vmem:[%s5267_s8 + $0xa10] sm:$0xff] }
  0xfa   : > { %15578 = vst [vmem:[#allocation286_spill] sm:$0xff] %v6898_v55  ;;  %15579 = vst [vmem:[#allocation287_spill] sm:$0xff] %v6901_v35  ;;  %v6911_v30 = vld [vmem:[%s5267_s8 + $0xa18] sm:$0xff]  ;;  %v6918_v49 = vld [vmem:[%s5267_s8 + $0xa20] sm:$0xff] }
  0xfb   : > { %15580 = vst [vmem:[#allocation288_spill] sm:$0xff] %v6908_v51  ;;  %15581 = vst [vmem:[#allocation289_spill] sm:$0xff] %v6911_v30  ;;  %v6921_v28 = vld [vmem:[%s5267_s8 + $0xa28] sm:$0xff]  ;;  %v6928_v45 = vld [vmem:[%s5267_s8 + $0xa30] sm:$0xff] }
  0xfc   : > { %15582 = vst [vmem:[#allocation290_spill] sm:$0xff] %v6918_v49  ;;  %15583 = vst [vmem:[#allocation291_spill] sm:$0xff] %v6921_v28  ;;  %v6931_v24 = vld [vmem:[%s5267_s8 + $0xa38] sm:$0xff]  ;;  %v6938_v43 = vld [vmem:[%s5267_s8 + $0xa40] sm:$0xff] }
  0xfd   : > { %15584 = vst [vmem:[#allocation292_spill] sm:$0xff] %v6928_v45  ;;  %15585 = vst [vmem:[#allocation293_spill] sm:$0xff] %v6931_v24  ;;  %v6941_v22 = vld [vmem:[%s5267_s8 + $0xa48] sm:$0xff]  ;;  %v6948_v38 = vld [vmem:[%s5267_s8 + $0xa50] sm:$0xff] }
  0xfe   : > { %15586 = vst [vmem:[#allocation294_spill] sm:$0xff] %v6938_v43  ;;  %15587 = vst [vmem:[#allocation295_spill] sm:$0xff] %v6941_v22  ;;  %v6951_v55 = vld [vmem:[%s5267_s8 + $0xa58] sm:$0xff]  ;;  %v6958_v36 = vld [vmem:[%s5267_s8 + $0xa60] sm:$0xff] }
  0xff   : > { %15588 = vst [vmem:[#allocation296_spill] sm:$0xff] %v6948_v38  ;;  %15589 = vst [vmem:[#allocation297_spill] sm:$0xff] %v6951_v55  ;;  %v6961_v51 = vld [vmem:[%s5267_s8 + $0xa68] sm:$0xff]  ;;  %v6968_v31 = vld [vmem:[%s5267_s8 + $0xa70] sm:$0xff] }
 0x100   : > { %15590 = vst [vmem:[#allocation298_spill] sm:$0xff] %v6958_v36  ;;  %15591 = vst [vmem:[#allocation299_spill] sm:$0xff] %v6961_v51  ;;  %v6971_v49 = vld [vmem:[%s5267_s8 + $0xa78] sm:$0xff]  ;;  %v6978_v29 = vld [vmem:[%s5267_s8 + $0xa80] sm:$0xff] }
 0x101   : > { %15592 = vst [vmem:[#allocation300_spill] sm:$0xff] %v6968_v31  ;;  %15593 = vst [vmem:[#allocation301_spill] sm:$0xff] %v6971_v49  ;;  %v6981_v45 = vld [vmem:[%s5267_s8 + $0xa88] sm:$0xff]  ;;  %v6988_v25 = vld [vmem:[%s5267_s8 + $0xa90] sm:$0xff] }
 0x102   : > { %15594 = vst [vmem:[#allocation302_spill] sm:$0xff] %v6978_v29  ;;  %15595 = vst [vmem:[#allocation303_spill] sm:$0xff] %v6981_v45  ;;  %v6991_v43 = vld [vmem:[%s5267_s8 + $0xa98] sm:$0xff]  ;;  %v6998_v23 = vld [vmem:[%s5267_s8 + $0xaa0] sm:$0xff] }
 0x103   : > { %15596 = vst [vmem:[#allocation304_spill] sm:$0xff] %v6988_v25  ;;  %15597 = vst [vmem:[#allocation305_spill] sm:$0xff] %v6991_v43  ;;  %v7001_v38 = vld [vmem:[%s5267_s8 + $0xaa8] sm:$0xff]  ;;  %v7008_v37 = vld [vmem:[%s5267_s8 + $0xab0] sm:$0xff] }
 0x104   : > { %15598 = vst [vmem:[#allocation306_spill] sm:$0xff] %v6998_v23  ;;  %15599 = vst [vmem:[#allocation307_spill] sm:$0xff] %v7001_v38  ;;  %v7011_v36 = vld [vmem:[%s5267_s8 + $0xab8] sm:$0xff]  ;;  %v7018_v35 = vld [vmem:[%s5267_s8 + $0xac0] sm:$0xff] }
 0x105   : > { %15600 = vst [vmem:[#allocation308_spill] sm:$0xff] %v7008_v37  ;;  %15601 = vst [vmem:[#allocation309_spill] sm:$0xff] %v7011_v36  ;;  %v7021_v31 = vld [vmem:[%s5267_s8 + $0xac8] sm:$0xff]  ;;  %v7028_v30 = vld [vmem:[%s5267_s8 + $0xad0] sm:$0xff] }
 0x106   : > { %15602 = vst [vmem:[#allocation310_spill] sm:$0xff] %v7018_v35  ;;  %15603 = vst [vmem:[#allocation311_spill] sm:$0xff] %v7021_v31  ;;  %v7031_v29 = vld [vmem:[%s5267_s8 + $0xad8] sm:$0xff]  ;;  %v7038_v28 = vld [vmem:[%s5267_s8 + $0xae0] sm:$0xff] }
 0x107   : > { %15604 = vst [vmem:[#allocation312_spill] sm:$0xff] %v7028_v30  ;;  %15605 = vst [vmem:[#allocation313_spill] sm:$0xff] %v7031_v29  ;;  %v7041_v25 = vld [vmem:[%s5267_s8 + $0xae8] sm:$0xff]  ;;  %v7048_v24 = vld [vmem:[%s5267_s8 + $0xaf0] sm:$0xff] }
 0x108   : > { %15606 = vst [vmem:[#allocation314_spill] sm:$0xff] %v7038_v28  ;;  %15607 = vst [vmem:[#allocation315_spill] sm:$0xff] %v7041_v25  ;;  %v7051_v23 = vld [vmem:[%s5267_s8 + $0xaf8] sm:$0xff]  ;;  %v7058_v22 = vld [vmem:[%s5267_s8 + $0xb00] sm:$0xff] }
 0x109   : > { %15608 = vst [vmem:[#allocation316_spill] sm:$0xff] %v7048_v24  ;;  %15609 = vst [vmem:[#allocation317_spill] sm:$0xff] %v7051_v23  ;;  %v7061_v37 = vld [vmem:[%s5267_s8 + $0xb08] sm:$0xff]  ;;  %v7068_v55 = vld [vmem:[%s5267_s8 + $0xb10] sm:$0xff] }
 0x10a   : > { %15610 = vst [vmem:[#allocation318_spill] sm:$0xff] %v7058_v22  ;;  %15611 = vst [vmem:[#allocation319_spill] sm:$0xff] %v7061_v37  ;;  %v7071_v35 = vld [vmem:[%s5267_s8 + $0xb18] sm:$0xff]  ;;  %v7078_v51 = vld [vmem:[%s5267_s8 + $0xb20] sm:$0xff] }
 0x10b   : > { %15612 = vst [vmem:[#allocation320_spill] sm:$0xff] %v7068_v55  ;;  %15613 = vst [vmem:[#allocation321_spill] sm:$0xff] %v7071_v35  ;;  %v7081_v30 = vld [vmem:[%s5267_s8 + $0xb28] sm:$0xff]  ;;  %v7088_v49 = vld [vmem:[%s5267_s8 + $0xb30] sm:$0xff] }
 0x10c   : > { %15614 = vst [vmem:[#allocation322_spill] sm:$0xff] %v7078_v51  ;;  %15615 = vst [vmem:[#allocation323_spill] sm:$0xff] %v7081_v30  ;;  %v7091_v28 = vld [vmem:[%s5267_s8 + $0xb38] sm:$0xff]  ;;  %v7098_v45 = vld [vmem:[%s5267_s8 + $0xb40] sm:$0xff] }
 0x10d   : > { %15616 = vst [vmem:[#allocation324_spill] sm:$0xff] %v7088_v49  ;;  %15617 = vst [vmem:[#allocation325_spill] sm:$0xff] %v7091_v28  ;;  %v7101_v24 = vld [vmem:[%s5267_s8 + $0xb48] sm:$0xff]  ;;  %v7108_v43 = vld [vmem:[%s5267_s8 + $0xb50] sm:$0xff] }
 0x10e   : > { %15618 = vst [vmem:[#allocation326_spill] sm:$0xff] %v7098_v45  ;;  %15619 = vst [vmem:[#allocation327_spill] sm:$0xff] %v7101_v24  ;;  %v7111_v22 = vld [vmem:[%s5267_s8 + $0xb58] sm:$0xff]  ;;  %v7118_v38 = vld [vmem:[%s5267_s8 + $0xb60] sm:$0xff] }
 0x10f   : > { %15620 = vst [vmem:[#allocation328_spill] sm:$0xff] %v7108_v43  ;;  %15621 = vst [vmem:[#allocation329_spill] sm:$0xff] %v7111_v22  ;;  %v7121_v55 = vld [vmem:[%s5267_s8 + $0xb68] sm:$0xff]  ;;  %v7128_v36 = vld [vmem:[%s5267_s8 + $0xb70] sm:$0xff] }
 0x110   : > { %15622 = vst [vmem:[#allocation330_spill] sm:$0xff] %v7118_v38  ;;  %15623 = vst [vmem:[#allocation331_spill] sm:$0xff] %v7121_v55  ;;  %v7131_v51 = vld [vmem:[%s5267_s8 + $0xb78] sm:$0xff]  ;;  %v7138_v31 = vld [vmem:[%s5267_s8 + $0xb80] sm:$0xff] }
 0x111   : > { %15624 = vst [vmem:[#allocation332_spill] sm:$0xff] %v7128_v36  ;;  %15625 = vst [vmem:[#allocation333_spill] sm:$0xff] %v7131_v51  ;;  %v7141_v49 = vld [vmem:[%s5267_s8 + $0xb88] sm:$0xff]  ;;  %v7148_v29 = vld [vmem:[%s5267_s8 + $0xb90] sm:$0xff] }
 0x112   : > { %15626 = vst [vmem:[#allocation334_spill] sm:$0xff] %v7138_v31  ;;  %15627 = vst [vmem:[#allocation335_spill] sm:$0xff] %v7141_v49  ;;  %v7151_v45 = vld [vmem:[%s5267_s8 + $0xb98] sm:$0xff]  ;;  %v7158_v25 = vld [vmem:[%s5267_s8 + $0xba0] sm:$0xff] }
 0x113   : > { %15628 = vst [vmem:[#allocation336_spill] sm:$0xff] %v7148_v29  ;;  %15629 = vst [vmem:[#allocation337_spill] sm:$0xff] %v7151_v45  ;;  %v7161_v43 = vld [vmem:[%s5267_s8 + $0xba8] sm:$0xff]  ;;  %v7168_v23 = vld [vmem:[%s5267_s8 + $0xbb0] sm:$0xff] }
 0x114   : > { %15630 = vst [vmem:[#allocation338_spill] sm:$0xff] %v7158_v25  ;;  %15631 = vst [vmem:[#allocation339_spill] sm:$0xff] %v7161_v43  ;;  %v7171_v38 = vld [vmem:[%s5267_s8 + $0xbb8] sm:$0xff]  ;;  %v7178_v37 = vld [vmem:[%s5267_s8 + $0xbc0] sm:$0xff] }
 0x115   : > { %15632 = vst [vmem:[#allocation340_spill] sm:$0xff] %v7168_v23  ;;  %15633 = vst [vmem:[#allocation341_spill] sm:$0xff] %v7171_v38  ;;  %v7181_v36 = vld [vmem:[%s5267_s8 + $0xbc8] sm:$0xff]  ;;  %v7188_v35 = vld [vmem:[%s5267_s8 + $0xbd0] sm:$0xff] }
 0x116   : > { %15634 = vst [vmem:[#allocation342_spill] sm:$0xff] %v7178_v37  ;;  %15635 = vst [vmem:[#allocation343_spill] sm:$0xff] %v7181_v36  ;;  %v7191_v31 = vld [vmem:[%s5267_s8 + $0xbd8] sm:$0xff]  ;;  %v7198_v30 = vld [vmem:[%s5267_s8 + $0xbe0] sm:$0xff] }
 0x117   : > { %15636 = vst [vmem:[#allocation344_spill] sm:$0xff] %v7188_v35  ;;  %15637 = vst [vmem:[#allocation345_spill] sm:$0xff] %v7191_v31  ;;  %v7201_v29 = vld [vmem:[%s5267_s8 + $0xbe8] sm:$0xff]  ;;  %v7208_v28 = vld [vmem:[%s5267_s8 + $0xbf0] sm:$0xff] }
 0x118   : > { %15638 = vst [vmem:[#allocation346_spill] sm:$0xff] %v7198_v30  ;;  %15639 = vst [vmem:[#allocation347_spill] sm:$0xff] %v7201_v29  ;;  %v7211_v25 = vld [vmem:[%s5267_s8 + $0xbf8] sm:$0xff]  ;;  %v7218_v24 = vld [vmem:[%s5267_s8 + $0xc00] sm:$0xff] }
 0x119   : > { %15640 = vst [vmem:[#allocation348_spill] sm:$0xff] %v7208_v28  ;;  %15641 = vst [vmem:[#allocation349_spill] sm:$0xff] %v7211_v25  ;;  %v7221_v23 = vld [vmem:[%s5267_s8 + $0xc08] sm:$0xff]  ;;  %v7228_v22 = vld [vmem:[%s5267_s8 + $0xc10] sm:$0xff] }
 0x11a   : > { %15642 = vst [vmem:[#allocation350_spill] sm:$0xff] %v7218_v24  ;;  %15643 = vst [vmem:[#allocation351_spill] sm:$0xff] %v7221_v23  ;;  %v7231_v37 = vld [vmem:[%s5267_s8 + $0xc18] sm:$0xff]  ;;  %v7238_v55 = vld [vmem:[%s5267_s8 + $0xc20] sm:$0xff] }
 0x11b   : > { %15644 = vst [vmem:[#allocation352_spill] sm:$0xff] %v7228_v22  ;;  %15645 = vst [vmem:[#allocation353_spill] sm:$0xff] %v7231_v37  ;;  %v7241_v35 = vld [vmem:[%s5267_s8 + $0xc28] sm:$0xff]  ;;  %v7248_v51 = vld [vmem:[%s5267_s8 + $0xc30] sm:$0xff] }
 0x11c   : > { %15646 = vst [vmem:[#allocation354_spill] sm:$0xff] %v7238_v55  ;;  %15647 = vst [vmem:[#allocation355_spill] sm:$0xff] %v7241_v35  ;;  %v7251_v30 = vld [vmem:[%s5267_s8 + $0xc38] sm:$0xff]  ;;  %v7258_v49 = vld [vmem:[%s5267_s8 + $0xc40] sm:$0xff] }
 0x11d   : > { %15648 = vst [vmem:[#allocation356_spill] sm:$0xff] %v7248_v51  ;;  %15649 = vst [vmem:[#allocation357_spill] sm:$0xff] %v7251_v30  ;;  %v7261_v28 = vld [vmem:[%s5267_s8 + $0xc48] sm:$0xff]  ;;  %v7268_v45 = vld [vmem:[%s5267_s8 + $0xc50] sm:$0xff] }
 0x11e   : > { %15650 = vst [vmem:[#allocation358_spill] sm:$0xff] %v7258_v49  ;;  %15651 = vst [vmem:[#allocation359_spill] sm:$0xff] %v7261_v28  ;;  %v7271_v24 = vld [vmem:[%s5267_s8 + $0xc58] sm:$0xff]  ;;  %v7278_v43 = vld [vmem:[%s5267_s8 + $0xc60] sm:$0xff] }
 0x11f   : > { %15652 = vst [vmem:[#allocation360_spill] sm:$0xff] %v7268_v45  ;;  %15653 = vst [vmem:[#allocation361_spill] sm:$0xff] %v7271_v24  ;;  %v7281_v22 = vld [vmem:[%s5267_s8 + $0xc68] sm:$0xff]  ;;  %v7288_v38 = vld [vmem:[%s5267_s8 + $0xc70] sm:$0xff] }
 0x120   : > { %15654 = vst [vmem:[#allocation362_spill] sm:$0xff] %v7278_v43  ;;  %15655 = vst [vmem:[#allocation363_spill] sm:$0xff] %v7281_v22  ;;  %v7291_v55 = vld [vmem:[%s5267_s8 + $0xc78] sm:$0xff]  ;;  %v7298_v36 = vld [vmem:[%s5267_s8 + $0xc80] sm:$0xff] }
 0x121   : > { %15656 = vst [vmem:[#allocation364_spill] sm:$0xff] %v7288_v38  ;;  %15657 = vst [vmem:[#allocation365_spill] sm:$0xff] %v7291_v55  ;;  %v7301_v51 = vld [vmem:[%s5267_s8 + $0xc88] sm:$0xff]  ;;  %v7308_v31 = vld [vmem:[%s5267_s8 + $0xc90] sm:$0xff] }
 0x122   : > { %15658 = vst [vmem:[#allocation366_spill] sm:$0xff] %v7298_v36  ;;  %15659 = vst [vmem:[#allocation367_spill] sm:$0xff] %v7301_v51  ;;  %v7311_v49 = vld [vmem:[%s5267_s8 + $0xc98] sm:$0xff]  ;;  %v7318_v29 = vld [vmem:[%s5267_s8 + $0xca0] sm:$0xff] }
 0x123   : > { %15660 = vst [vmem:[#allocation368_spill] sm:$0xff] %v7308_v31  ;;  %15661 = vst [vmem:[#allocation369_spill] sm:$0xff] %v7311_v49  ;;  %v7321_v45 = vld [vmem:[%s5267_s8 + $0xca8] sm:$0xff]  ;;  %v7328_v25 = vld [vmem:[%s5267_s8 + $0xcb0] sm:$0xff] }
 0x124   : > { %15662 = vst [vmem:[#allocation370_spill] sm:$0xff] %v7318_v29  ;;  %15663 = vst [vmem:[#allocation371_spill] sm:$0xff] %v7321_v45  ;;  %v7331_v43 = vld [vmem:[%s5267_s8 + $0xcb8] sm:$0xff]  ;;  %v7338_v23 = vld [vmem:[%s5267_s8 + $0xcc0] sm:$0xff] }
 0x125   : > { %15664 = vst [vmem:[#allocation372_spill] sm:$0xff] %v7328_v25  ;;  %15665 = vst [vmem:[#allocation373_spill] sm:$0xff] %v7331_v43  ;;  %v7341_v38 = vld [vmem:[%s5267_s8 + $0xcc8] sm:$0xff]  ;;  %v7348_v37 = vld [vmem:[%s5267_s8 + $0xcd0] sm:$0xff] }
 0x126   : > { %15666 = vst [vmem:[#allocation374_spill] sm:$0xff] %v7338_v23  ;;  %15667 = vst [vmem:[#allocation375_spill] sm:$0xff] %v7341_v38  ;;  %v7351_v36 = vld [vmem:[%s5267_s8 + $0xcd8] sm:$0xff]  ;;  %v7358_v35 = vld [vmem:[%s5267_s8 + $0xce0] sm:$0xff] }
 0x127   : > { %15668 = vst [vmem:[#allocation376_spill] sm:$0xff] %v7348_v37  ;;  %15669 = vst [vmem:[#allocation377_spill] sm:$0xff] %v7351_v36  ;;  %v7361_v31 = vld [vmem:[%s5267_s8 + $0xce8] sm:$0xff]  ;;  %v7368_v30 = vld [vmem:[%s5267_s8 + $0xcf0] sm:$0xff] }
 0x128   : > { %15670 = vst [vmem:[#allocation378_spill] sm:$0xff] %v7358_v35  ;;  %15671 = vst [vmem:[#allocation379_spill] sm:$0xff] %v7361_v31  ;;  %v7371_v29 = vld [vmem:[%s5267_s8 + $0xcf8] sm:$0xff]  ;;  %v7378_v28 = vld [vmem:[%s5267_s8 + $0xd00] sm:$0xff] }
 0x129   : > { %15672 = vst [vmem:[#allocation380_spill] sm:$0xff] %v7368_v30  ;;  %15673 = vst [vmem:[#allocation381_spill] sm:$0xff] %v7371_v29  ;;  %v7381_v25 = vld [vmem:[%s5267_s8 + $0xd08] sm:$0xff]  ;;  %v7388_v24 = vld [vmem:[%s5267_s8 + $0xd10] sm:$0xff] }
 0x12a   : > { %15674 = vst [vmem:[#allocation382_spill] sm:$0xff] %v7378_v28  ;;  %15675 = vst [vmem:[#allocation383_spill] sm:$0xff] %v7381_v25  ;;  %v7391_v23 = vld [vmem:[%s5267_s8 + $0xd18] sm:$0xff]  ;;  %v7398_v22 = vld [vmem:[%s5267_s8 + $0xd20] sm:$0xff] }
 0x12b   : > { %15676 = vst [vmem:[#allocation384_spill] sm:$0xff] %v7388_v24  ;;  %15677 = vst [vmem:[#allocation385_spill] sm:$0xff] %v7391_v23  ;;  %v7401_v37 = vld [vmem:[%s5267_s8 + $0xd28] sm:$0xff]  ;;  %v7408_v55 = vld [vmem:[%s5267_s8 + $0xd30] sm:$0xff] }
 0x12c   : > { %15678 = vst [vmem:[#allocation386_spill] sm:$0xff] %v7398_v22  ;;  %15679 = vst [vmem:[#allocation387_spill] sm:$0xff] %v7401_v37  ;;  %v7411_v35 = vld [vmem:[%s5267_s8 + $0xd38] sm:$0xff]  ;;  %v7418_v51 = vld [vmem:[%s5267_s8 + $0xd40] sm:$0xff] }
 0x12d   : > { %15680 = vst [vmem:[#allocation388_spill] sm:$0xff] %v7408_v55  ;;  %15681 = vst [vmem:[#allocation389_spill] sm:$0xff] %v7411_v35  ;;  %v7421_v30 = vld [vmem:[%s5267_s8 + $0xd48] sm:$0xff]  ;;  %v7428_v49 = vld [vmem:[%s5267_s8 + $0xd50] sm:$0xff] }
 0x12e   : > { %15682 = vst [vmem:[#allocation390_spill] sm:$0xff] %v7418_v51  ;;  %15683 = vst [vmem:[#allocation391_spill] sm:$0xff] %v7421_v30  ;;  %v7431_v28 = vld [vmem:[%s5267_s8 + $0xd58] sm:$0xff]  ;;  %v7438_v45 = vld [vmem:[%s5267_s8 + $0xd60] sm:$0xff] }
 0x12f   : > { %15684 = vst [vmem:[#allocation392_spill] sm:$0xff] %v7428_v49  ;;  %15685 = vst [vmem:[#allocation393_spill] sm:$0xff] %v7431_v28  ;;  %v7441_v24 = vld [vmem:[%s5267_s8 + $0xd68] sm:$0xff]  ;;  %v7448_v43 = vld [vmem:[%s5267_s8 + $0xd70] sm:$0xff] }
 0x130   : > { %15686 = vst [vmem:[#allocation394_spill] sm:$0xff] %v7438_v45  ;;  %15687 = vst [vmem:[#allocation395_spill] sm:$0xff] %v7441_v24  ;;  %v7451_v22 = vld [vmem:[%s5267_s8 + $0xd78] sm:$0xff]  ;;  %v7458_v38 = vld [vmem:[%s5267_s8 + $0xd80] sm:$0xff] }
 0x131   : > { %15688 = vst [vmem:[#allocation396_spill] sm:$0xff] %v7448_v43  ;;  %15689 = vst [vmem:[#allocation397_spill] sm:$0xff] %v7451_v22  ;;  %v7461_v55 = vld [vmem:[%s5267_s8 + $0xd88] sm:$0xff]  ;;  %v7468_v36 = vld [vmem:[%s5267_s8 + $0xd90] sm:$0xff] }
 0x132   : > { %15690 = vst [vmem:[#allocation398_spill] sm:$0xff] %v7458_v38  ;;  %15691 = vst [vmem:[#allocation399_spill] sm:$0xff] %v7461_v55  ;;  %v7471_v51 = vld [vmem:[%s5267_s8 + $0xd98] sm:$0xff]  ;;  %v7478_v31 = vld [vmem:[%s5267_s8 + $0xda0] sm:$0xff] }
 0x133   : > { %15692 = vst [vmem:[#allocation400_spill] sm:$0xff] %v7468_v36  ;;  %15693 = vst [vmem:[#allocation401_spill] sm:$0xff] %v7471_v51  ;;  %v7481_v49 = vld [vmem:[%s5267_s8 + $0xda8] sm:$0xff]  ;;  %v7488_v29 = vld [vmem:[%s5267_s8 + $0xdb0] sm:$0xff] }
 0x134   : > { %15694 = vst [vmem:[#allocation402_spill] sm:$0xff] %v7478_v31  ;;  %15695 = vst [vmem:[#allocation403_spill] sm:$0xff] %v7481_v49  ;;  %v7491_v45 = vld [vmem:[%s5267_s8 + $0xdb8] sm:$0xff]  ;;  %v7498_v25 = vld [vmem:[%s5267_s8 + $0xdc0] sm:$0xff] }
 0x135   : > { %15696 = vst [vmem:[#allocation404_spill] sm:$0xff] %v7488_v29  ;;  %15697 = vst [vmem:[#allocation405_spill] sm:$0xff] %v7491_v45  ;;  %v7501_v43 = vld [vmem:[%s5267_s8 + $0xdc8] sm:$0xff]  ;;  %v7508_v23 = vld [vmem:[%s5267_s8 + $0xdd0] sm:$0xff] }
 0x136   : > { %15698 = vst [vmem:[#allocation406_spill] sm:$0xff] %v7498_v25  ;;  %15699 = vst [vmem:[#allocation407_spill] sm:$0xff] %v7501_v43  ;;  %v7511_v38 = vld [vmem:[%s5267_s8 + $0xdd8] sm:$0xff]  ;;  %v7518_v37 = vld [vmem:[%s5267_s8 + $0xde0] sm:$0xff] }
 0x137   : > { %15700 = vst [vmem:[#allocation408_spill] sm:$0xff] %v7508_v23  ;;  %15701 = vst [vmem:[#allocation409_spill] sm:$0xff] %v7511_v38  ;;  %v7521_v36 = vld [vmem:[%s5267_s8 + $0xde8] sm:$0xff]  ;;  %v7528_v35 = vld [vmem:[%s5267_s8 + $0xdf0] sm:$0xff] }
 0x138   : > { %15702 = vst [vmem:[#allocation410_spill] sm:$0xff] %v7518_v37  ;;  %15703 = vst [vmem:[#allocation411_spill] sm:$0xff] %v7521_v36  ;;  %v7531_v31 = vld [vmem:[%s5267_s8 + $0xdf8] sm:$0xff]  ;;  %v7538_v30 = vld [vmem:[%s5267_s8 + $0xe00] sm:$0xff] }
 0x139   : > { %15704 = vst [vmem:[#allocation412_spill] sm:$0xff] %v7528_v35  ;;  %15705 = vst [vmem:[#allocation413_spill] sm:$0xff] %v7531_v31  ;;  %v7541_v29 = vld [vmem:[%s5267_s8 + $0xe08] sm:$0xff]  ;;  %v7548_v28 = vld [vmem:[%s5267_s8 + $0xe10] sm:$0xff] }
 0x13a   : > { %15706 = vst [vmem:[#allocation414_spill] sm:$0xff] %v7538_v30  ;;  %15707 = vst [vmem:[#allocation415_spill] sm:$0xff] %v7541_v29  ;;  %v7551_v25 = vld [vmem:[%s5267_s8 + $0xe18] sm:$0xff]  ;;  %v7558_v24 = vld [vmem:[%s5267_s8 + $0xe20] sm:$0xff] }
 0x13b   : > { %15708 = vst [vmem:[#allocation416_spill] sm:$0xff] %v7548_v28  ;;  %15709 = vst [vmem:[#allocation417_spill] sm:$0xff] %v7551_v25  ;;  %v7561_v23 = vld [vmem:[%s5267_s8 + $0xe28] sm:$0xff]  ;;  %v7568_v22 = vld [vmem:[%s5267_s8 + $0xe30] sm:$0xff] }
 0x13c   : > { %15710 = vst [vmem:[#allocation418_spill] sm:$0xff] %v7558_v24  ;;  %15711 = vst [vmem:[#allocation419_spill] sm:$0xff] %v7561_v23  ;;  %v7571_v37 = vld [vmem:[%s5267_s8 + $0xe38] sm:$0xff]  ;;  %v7578_v55 = vld [vmem:[%s5267_s8 + $0xe40] sm:$0xff] }
 0x13d   : > { %15712 = vst [vmem:[#allocation420_spill] sm:$0xff] %v7568_v22  ;;  %15713 = vst [vmem:[#allocation421_spill] sm:$0xff] %v7571_v37  ;;  %v7581_v35 = vld [vmem:[%s5267_s8 + $0xe48] sm:$0xff]  ;;  %v7588_v51 = vld [vmem:[%s5267_s8 + $0xe50] sm:$0xff] }
 0x13e   : > { %15714 = vst [vmem:[#allocation422_spill] sm:$0xff] %v7578_v55  ;;  %15715 = vst [vmem:[#allocation423_spill] sm:$0xff] %v7581_v35  ;;  %v7591_v30 = vld [vmem:[%s5267_s8 + $0xe58] sm:$0xff]  ;;  %v7598_v49 = vld [vmem:[%s5267_s8 + $0xe60] sm:$0xff] }
 0x13f   : > { %15716 = vst [vmem:[#allocation424_spill] sm:$0xff] %v7588_v51  ;;  %15717 = vst [vmem:[#allocation425_spill] sm:$0xff] %v7591_v30  ;;  %v7601_v28 = vld [vmem:[%s5267_s8 + $0xe68] sm:$0xff]  ;;  %v7608_v45 = vld [vmem:[%s5267_s8 + $0xe70] sm:$0xff] }
 0x140   : > { %15718 = vst [vmem:[#allocation426_spill] sm:$0xff] %v7598_v49  ;;  %15719 = vst [vmem:[#allocation427_spill] sm:$0xff] %v7601_v28  ;;  %v7611_v24 = vld [vmem:[%s5267_s8 + $0xe78] sm:$0xff]  ;;  %v7618_v43 = vld [vmem:[%s5267_s8 + $0xe80] sm:$0xff] }
 0x141   : > { %15720 = vst [vmem:[#allocation428_spill] sm:$0xff] %v7608_v45  ;;  %15721 = vst [vmem:[#allocation429_spill] sm:$0xff] %v7611_v24  ;;  %v7621_v22 = vld [vmem:[%s5267_s8 + $0xe88] sm:$0xff]  ;;  %v7628_v38 = vld [vmem:[%s5267_s8 + $0xe90] sm:$0xff] }
 0x142   : > { %15722 = vst [vmem:[#allocation430_spill] sm:$0xff] %v7618_v43  ;;  %15723 = vst [vmem:[#allocation431_spill] sm:$0xff] %v7621_v22  ;;  %v7631_v55 = vld [vmem:[%s5267_s8 + $0xe98] sm:$0xff]  ;;  %v7638_v36 = vld [vmem:[%s5267_s8 + $0xea0] sm:$0xff] }
 0x143   : > { %15724 = vst [vmem:[#allocation432_spill] sm:$0xff] %v7628_v38  ;;  %15725 = vst [vmem:[#allocation433_spill] sm:$0xff] %v7631_v55  ;;  %v7641_v51 = vld [vmem:[%s5267_s8 + $0xea8] sm:$0xff]  ;;  %v7648_v31 = vld [vmem:[%s5267_s8 + $0xeb0] sm:$0xff] }
 0x144   : > { %15726 = vst [vmem:[#allocation434_spill] sm:$0xff] %v7638_v36  ;;  %15727 = vst [vmem:[#allocation435_spill] sm:$0xff] %v7641_v51  ;;  %v7651_v49 = vld [vmem:[%s5267_s8 + $0xeb8] sm:$0xff]  ;;  %v7658_v29 = vld [vmem:[%s5267_s8 + $0xec0] sm:$0xff] }
 0x145   : > { %15728 = vst [vmem:[#allocation436_spill] sm:$0xff] %v7648_v31  ;;  %15729 = vst [vmem:[#allocation437_spill] sm:$0xff] %v7651_v49  ;;  %v7661_v45 = vld [vmem:[%s5267_s8 + $0xec8] sm:$0xff]  ;;  %v7668_v25 = vld [vmem:[%s5267_s8 + $0xed0] sm:$0xff] }
 0x146   : > { %15730 = vst [vmem:[#allocation438_spill] sm:$0xff] %v7658_v29  ;;  %15731 = vst [vmem:[#allocation439_spill] sm:$0xff] %v7661_v45  ;;  %v7671_v43 = vld [vmem:[%s5267_s8 + $0xed8] sm:$0xff]  ;;  %v7678_v23 = vld [vmem:[%s5267_s8 + $0xee0] sm:$0xff] }
 0x147   : > { %15732 = vst [vmem:[#allocation440_spill] sm:$0xff] %v7668_v25  ;;  %15733 = vst [vmem:[#allocation441_spill] sm:$0xff] %v7671_v43  ;;  %v7681_v38 = vld [vmem:[%s5267_s8 + $0xee8] sm:$0xff]  ;;  %v7688_v37 = vld [vmem:[%s5267_s8 + $0xef0] sm:$0xff] }
 0x148   : > { %15734 = vst [vmem:[#allocation442_spill] sm:$0xff] %v7678_v23  ;;  %15735 = vst [vmem:[#allocation443_spill] sm:$0xff] %v7681_v38  ;;  %v7691_v36 = vld [vmem:[%s5267_s8 + $0xef8] sm:$0xff]  ;;  %v7698_v35 = vld [vmem:[%s5267_s8 + $0xf00] sm:$0xff] }
 0x149   : > { %15736 = vst [vmem:[#allocation444_spill] sm:$0xff] %v7688_v37  ;;  %15737 = vst [vmem:[#allocation445_spill] sm:$0xff] %v7691_v36  ;;  %v7701_v31 = vld [vmem:[%s5267_s8 + $0xf08] sm:$0xff]  ;;  %v7708_v30 = vld [vmem:[%s5267_s8 + $0xf10] sm:$0xff] }
 0x14a   : > { %15738 = vst [vmem:[#allocation446_spill] sm:$0xff] %v7698_v35  ;;  %15739 = vst [vmem:[#allocation447_spill] sm:$0xff] %v7701_v31  ;;  %v7711_v29 = vld [vmem:[%s5267_s8 + $0xf18] sm:$0xff]  ;;  %v7718_v28 = vld [vmem:[%s5267_s8 + $0xf20] sm:$0xff] }
 0x14b   : > { %15740 = vst [vmem:[#allocation448_spill] sm:$0xff] %v7708_v30  ;;  %15741 = vst [vmem:[#allocation449_spill] sm:$0xff] %v7711_v29  ;;  %v7721_v25 = vld [vmem:[%s5267_s8 + $0xf28] sm:$0xff]  ;;  %v7728_v24 = vld [vmem:[%s5267_s8 + $0xf30] sm:$0xff] }
 0x14c   : > { %15742 = vst [vmem:[#allocation450_spill] sm:$0xff] %v7718_v28  ;;  %15743 = vst [vmem:[#allocation451_spill] sm:$0xff] %v7721_v25  ;;  %v7731_v23 = vld [vmem:[%s5267_s8 + $0xf38] sm:$0xff]  ;;  %v7738_v22 = vld [vmem:[%s5267_s8 + $0xf40] sm:$0xff] }
 0x14d   : > { %15744 = vst [vmem:[#allocation452_spill] sm:$0xff] %v7728_v24  ;;  %15745 = vst [vmem:[#allocation453_spill] sm:$0xff] %v7731_v23  ;;  %v7741_v37 = vld [vmem:[%s5267_s8 + $0xf48] sm:$0xff]  ;;  %v7748_v55 = vld [vmem:[%s5267_s8 + $0xf50] sm:$0xff]  ;;  %v15764_v23 = vunpack.c.l.bf16 %v5307_v13 }
 0x14e   : > { %15746 = vst [vmem:[#allocation454_spill] sm:$0xff] %v7738_v22  ;;  %15747 = vst [vmem:[#allocation455_spill] sm:$0xff] %v7741_v37  ;;  %v7751_v35 = vld [vmem:[%s5267_s8 + $0xf58] sm:$0xff]  ;;  %v7758_v51 = vld [vmem:[%s5267_s8 + $0xf60] sm:$0xff] }
 0x14f   : > { %15748 = vst [vmem:[#allocation456_spill] sm:$0xff] %v7748_v55  ;;  %15749 = vst [vmem:[#allocation457_spill] sm:$0xff] %v7751_v35  ;;  %v7761_v30 = vld [vmem:[%s5267_s8 + $0xf68] sm:$0xff]  ;;  %v7768_v49 = vld [vmem:[%s5267_s8 + $0xf70] sm:$0xff]  ;;  %v15770_v35 = vunpack.c.l.bf16 %v5314_v16 }
 0x150   : > { %15750 = vst [vmem:[#allocation458_spill] sm:$0xff] %v7758_v51  ;;  %15751 = vst [vmem:[#allocation459_spill] sm:$0xff] %v7761_v30  ;;  %v7771_v28 = vld [vmem:[%s5267_s8 + $0xf78] sm:$0xff]  ;;  %v7778_v45 = vld [vmem:[%s5267_s8 + $0xf80] sm:$0xff] }
 0x151   : > { %15752 = vst [vmem:[#allocation460_spill] sm:$0xff] %v7768_v49  ;;  %15753 = vst [vmem:[#allocation461_spill] sm:$0xff] %v7771_v28  ;;  %v7781_v24 = vld [vmem:[%s5267_s8 + $0xf88] sm:$0xff]  ;;  %v7788_v43 = vld [vmem:[%s5267_s8 + $0xf90] sm:$0xff] }
 0x152   : > { %15754 = vst [vmem:[#allocation462_spill] sm:$0xff] %v7778_v45  ;;  %15755 = vst [vmem:[#allocation463_spill] sm:$0xff] %v7781_v24  ;;  %v7791_v22 = vld [vmem:[%s5267_s8 + $0xf98] sm:$0xff]  ;;  %v7798_v38 = vld [vmem:[%s5267_s8 + $0xfa0] sm:$0xff] }
 0x153   : > { %15756 = vst [vmem:[#allocation464_spill] sm:$0xff] %v7788_v43  ;;  %15757 = vst [vmem:[#allocation465_spill] sm:$0xff] %v7791_v22  ;;  %v7801_v55 = vld [vmem:[%s5267_s8 + $0xfa8] sm:$0xff]  ;;  %v7808_v36 = vld [vmem:[%s5267_s8 + $0xfb0] sm:$0xff]  ;;  %v15762_v43 = vunpack.c.l.bf16 %v5304_v12  ;;  %v15767_v22 = vunpack.c.l.bf16 %v5311_v15 }
 0x154   : > { %15758 = vst [vmem:[#allocation466_spill] sm:$0xff] %v7798_v38  ;;  %15759 = vst [vmem:[#allocation467_spill] sm:$0xff] %v7801_v55  ;;  %v7811_v51 = vld [vmem:[%s5267_s8 + $0xfb8] sm:$0xff]  ;;  %v7818_v31 = vld [vmem:[%s5267_s8 + $0xfc0] sm:$0xff]  ;;  %v7857_v38 = vpop.permute.xlu0 %1789 }
 0x155   : > { %15760 = vst [vmem:[#allocation468_spill] sm:$0xff] %v7811_v51  ;;  %v7821_v49 = vld [vmem:[%s5267_s8 + $0xfc8] sm:$0xff]  ;;  %v7828_v29 = vld [vmem:[%s5267_s8 + $0xfd0] sm:$0xff]  ;;  %v7831_v45 = vld [vmem:[%s5267_s8 + $0xfd8] sm:$0xff]  ;;  %v7874_v37 = vmul.f32 %v7857_v38, %v15762_v43  ;;  %v15763_v51 = vunpack.c.h.bf16 %v5304_v12  ;;  %v7884_v55 = vmul.f32 %v7857_v38, %v15764_v23  ;;  %v7894_v43 = vmul.f32 %v7857_v38, %v15767_v22 }
 0x156   : > { %15761 = vst [vmem:[#allocation469_spill] sm:$0xff] %v7821_v49  ;;  %v7838_v57 = vld [vmem:[%s5267_s8 + $0xfe0] sm:$0xff]  ;;  %v7841_v25 = vld [vmem:[%s5267_s8 + $0xfe8] sm:$0xff]  ;;  %v7848_v42 = vld [vmem:[%s5267_s8 + $0xff0] sm:$0xff]  ;;  %v15765_v49 = vunpack.c.h.bf16 %v5307_v13  ;;  %v15768_v12 = vunpack.c.h.bf16 %v5311_v15  ;;  %v7904_v23 = vmul.f32 %v7857_v38, %v15770_v35  ;;  %v15771_v13 = vunpack.c.h.bf16 %v5314_v16 }
 0x157   : > { %v7851_v30 = vld [vmem:[%s5267_s8 + $0xff8] sm:$0xff]  ;;  %v7879_v24 = vmul.f32 %v7857_v38, %v15763_v51  ;;  %v15775_v15 = vunpack.c.h.bf16 %v5318_v18  ;;  %v15779_v16 = vunpack.c.h.bf16 %v5321_v19  ;;  %s4990_s8 = sshll.u32 %s5119_s16, 4  ;;  %s4991_s8 = int_to_ptr.vmem [resolvable:$false] %s4990_s8 }
 0x158   : > { %v7889_v28 = vmul.f32 %v7857_v38, %v15765_v49  ;;  %v7899_v51 = vmul.f32 %v7857_v38, %v15768_v12  ;;  %v7909_v49 = vmul.f32 %v7857_v38, %v15771_v13  ;;  %s4992_s25 = scalar_lea.vmem %s4991_s8, 2048  ;;  %p4993_p10 = scmp.lt.s32.totalorder %s14309_s28, %s4991_s8 }
 0x159   : > { %v7919_v12 = vmul.f32 %v7857_v38, %v15775_v15  ;;  %v7929_v13 = vmul.f32 %v7857_v38, %v15779_v16  ;;  %p4994_p11 = scmp.lt.s32.totalorder %s4992_s25, %s4986_s24 }
 0x15a   : > { %15766 = vst [vmem:[#allocation470_spill] sm:$0xff] %v7889_v28  ;;  %15769 = vst [vmem:[#allocation471_spill] sm:$0xff] %v7899_v51  ;;  %v15773_v28 = vunpack.c.l.bf16 %v5318_v18  ;;  %v15777_v51 = vunpack.c.l.bf16 %v5321_v19  ;;  %v15783_v18 = vunpack.c.h.bf16 %v5324_v20  ;;  %v15787_v19 = vunpack.c.h.bf16 %v5327_v21 }
 0x15b   : > { %15772 = vst [vmem:[#allocation472_spill] sm:$0xff] %v7909_v49  ;;  %15776 = vst [vmem:[#allocation474_spill] sm:$0xff] %v7919_v12  ;;  %v15781_v49 = vunpack.c.l.bf16 %v5324_v20  ;;  %v15785_v12 = vunpack.c.l.bf16 %v5327_v21  ;;  %v15791_v20 = vunpack.c.h.bf16 %v5334_v26  ;;  %v15795_v21 = vunpack.c.h.bf16 %v5337_v27  ;;  %p4995_p13 = por %p4994_p11, %p4993_p10 }
 0x15c   : > { %v7914_v22 = vmul.f32 %v7857_v38, %v15773_v28  ;;  %v7924_v35 = vmul.f32 %v7857_v38, %v15777_v51  ;;  %15780 = vst [vmem:[#allocation476_spill] sm:$0xff] %v7929_v13  ;;  %v7939_v15 = vmul.f32 %v7857_v38, %v15783_v18  ;;  %v7949_v16 = vmul.f32 %v7857_v38, %v15787_v19 }
 0x15d   : > { %v7934_v28 = vmul.f32 %v7857_v38, %v15781_v49  ;;  %v7944_v51 = vmul.f32 %v7857_v38, %v15785_v12  ;;  %v15789_v13 = vunpack.c.l.bf16 %v5334_v26  ;;  %v7959_v18 = vmul.f32 %v7857_v38, %v15791_v20  ;;  %p4996_p0 = pnand %p4995_p13, %p4989_p9 }
 0x15e   : > { %15774 = vst [vmem:[#allocation473_spill] sm:$0xff] %v7914_v22  ;;  %15778 = vst [vmem:[#allocation475_spill] sm:$0xff] %v7924_v35  ;;  %v7969_v19 = vmul.f32 %v7857_v38, %v15795_v21  ;;  %v15799_v26 = vunpack.c.h.bf16 %v5345_v33  ;;  %v16495_v35 = vld [vmem:[#allocation130_spill] sm:$0xff] }
 0x15f   : > { %15782 = vst [vmem:[#allocation477_spill] sm:$0xff] %v7934_v28  ;;  %15784 = vst [vmem:[#allocation478_spill] sm:$0xff] %v7939_v15  ;;  %v7954_v49 = vmul.f32 %v7857_v38, %v15789_v13  ;;  %v15793_v15 = vunpack.c.l.bf16 %v5337_v27  ;;  %v15803_v27 = vunpack.c.h.bf16 %v5348_v34 }
 0x160   : > { %15786 = vst [vmem:[#allocation479_spill] sm:$0xff] %v7944_v51  ;;  %15788 = vst [vmem:[#allocation480_spill] sm:$0xff] %v7949_v16  ;;  %v15797_v16 = vunpack.c.l.bf16 %v5345_v33  ;;  %v7979_v20 = vmul.f32 %v7857_v38, %v15799_v26  ;;  %v15807_v33 = vunpack.c.h.bf16 %v5356_v40  ;;  %v16345_v51 = vld [vmem:[#allocation99_spill] sm:$0xff] }
 0x161   : > { %15790 = vst [vmem:[#allocation481_spill] sm:$0xff] %v7954_v49  ;;  %15792 = vst [vmem:[#allocation482_spill] sm:$0xff] %v7959_v18  ;;  %v7964_v12 = vmul.f32 %v7857_v38, %v15793_v15  ;;  %v15801_v18 = vunpack.c.l.bf16 %v5348_v34  ;;  %v7989_v21 = vmul.f32 %v7857_v38, %v15803_v27  ;;  %v15811_v34 = vunpack.c.h.bf16 %v5359_v41 }
 0x162   : > { %15796 = vst [vmem:[#allocation484_spill] sm:$0xff] %v7969_v19  ;;  %v7974_v13 = vmul.f32 %v7857_v38, %v15797_v16  ;;  %15800 = vst [vmem:[#allocation486_spill] sm:$0xff] %v7979_v20  ;;  %v15805_v19 = vunpack.c.l.bf16 %v5356_v40  ;;  %v7999_v26 = vmul.f32 %v7857_v38, %v15807_v33  ;;  %v15809_v20 = vunpack.c.l.bf16 %v5359_v41 }
 0x163   : > { %15794 = vst [vmem:[#allocation483_spill] sm:$0xff] %v7964_v12  ;;  %v7984_v15 = vmul.f32 %v7857_v38, %v15801_v18  ;;  %15804 = vst [vmem:[#allocation488_spill] sm:$0xff] %v7989_v21  ;;  %v8009_v27 = vmul.f32 %v7857_v38, %v15811_v34  ;;  %v15813_v21 = vunpack.c.l.bf16 %v5366_v46  ;;  %v15815_v40 = vunpack.c.h.bf16 %v5366_v46  ;;  %v16066_v12 = vld [vmem:[#allocation40_spill] sm:$0xff] }
 0x164   : > { %15798 = vst [vmem:[#allocation485_spill] sm:$0xff] %v7974_v13  ;;  %v7994_v16 = vmul.f32 %v7857_v38, %v15805_v19  ;;  %15808 = vst [vmem:[#allocation490_spill] sm:$0xff] %v7999_v26  ;;  %v8004_v18 = vmul.f32 %v7857_v38, %v15809_v20  ;;  %v15817_v26 = vunpack.c.l.bf16 %v5369_v47  ;;  %v15819_v41 = vunpack.c.h.bf16 %v5369_v47 }
 0x165   : > { %15802 = vst [vmem:[#allocation487_spill] sm:$0xff] %v7984_v15  ;;  %15812 = vst [vmem:[#allocation492_spill] sm:$0xff] %v8009_v27  ;;  %v8014_v19 = vmul.f32 %v7857_v38, %v15813_v21  ;;  %v8019_v33 = vmul.f32 %v7857_v38, %v15815_v40  ;;  %v15821_v27 = vunpack.c.l.bf16 %v5376_v52  ;;  %v15823_v46 = vunpack.c.h.bf16 %v5376_v52  ;;  %v16051_v15 = vld [vmem:[#allocation37_spill] sm:$0xff] }
 0x166   : > { %15806 = vst [vmem:[#allocation489_spill] sm:$0xff] %v7994_v16  ;;  %15810 = vst [vmem:[#allocation491_spill] sm:$0xff] %v8004_v18  ;;  %v8024_v20 = vmul.f32 %v7857_v38, %v15817_v26  ;;  %v8029_v34 = vmul.f32 %v7857_v38, %v15819_v41  ;;  %v15827_v47 = vunpack.c.h.bf16 %v5379_v53  ;;  %v15831_v52 = vunpack.c.h.bf16 %v5387_v59  ;;  %v16036_v18 = vld [vmem:[#allocation34_spill] sm:$0xff] }
 0x167   : > { %15814 = vst [vmem:[#allocation493_spill] sm:$0xff] %v8014_v19  ;;  %15816 = vst [vmem:[#allocation494_spill] sm:$0xff] %v8019_v33  ;;  %v8034_v21 = vmul.f32 %v7857_v38, %v15821_v27  ;;  %v8039_v40 = vmul.f32 %v7857_v38, %v15823_v46  ;;  %v15825_v33 = vunpack.c.l.bf16 %v5379_v53  ;;  %v15835_v53 = vunpack.c.h.bf16 %v5390_v60 }
 0x168   : > { %15818 = vst [vmem:[#allocation495_spill] sm:$0xff] %v8024_v20  ;;  %15820 = vst [vmem:[#allocation496_spill] sm:$0xff] %v8029_v34  ;;  %v8049_v41 = vmul.f32 %v7857_v38, %v15827_v47  ;;  %v15829_v34 = vunpack.c.l.bf16 %v5387_v59  ;;  %v8059_v46 = vmul.f32 %v7857_v38, %v15831_v52  ;;  %v15839_v59 = vunpack.c.h.bf16 %v5398_v2  ;;  %v15944_v20 = vld [vmem:[#allocation14_spill] sm:$0xff] }
 0x169   : > { %15822 = vst [vmem:[#allocation497_spill] sm:$0xff] %v8034_v21  ;;  %15824 = vst [vmem:[#allocation498_spill] sm:$0xff] %v8039_v40  ;;  %v8044_v26 = vmul.f32 %v7857_v38, %v15825_v33  ;;  %v15833_v40 = vunpack.c.l.bf16 %v5390_v60  ;;  %v8069_v47 = vmul.f32 %v7857_v38, %v15835_v53  ;;  %v15843_v60 = vunpack.c.h.bf16 %v5401_v3 }
 0x16a   : > { %15828 = vst [vmem:[#allocation500_spill] sm:$0xff] %v8049_v41  ;;  %v8054_v27 = vmul.f32 %v7857_v38, %v15829_v34  ;;  %15832 = vst [vmem:[#allocation502_spill] sm:$0xff] %v8059_v46  ;;  %v15837_v41 = vunpack.c.l.bf16 %v5398_v2  ;;  %v8079_v52 = vmul.f32 %v7857_v38, %v15839_v59  ;;  %v15841_v46 = vunpack.c.l.bf16 %v5401_v3 }
 0x16b   : > { %15826 = vst [vmem:[#allocation499_spill] sm:$0xff] %v8044_v26  ;;  %v8064_v33 = vmul.f32 %v7857_v38, %v15833_v40  ;;  %15836 = vst [vmem:[#allocation504_spill] sm:$0xff] %v8069_v47  ;;  %v8089_v53 = vmul.f32 %v7857_v38, %v15843_v60  ;;  %v15845_v47 = vunpack.c.l.bf16 %v5408_v8  ;;  %v15847_v2 = vunpack.c.h.bf16 %v5408_v8  ;;  %v15939_v26 = vld [vmem:[#allocation13_spill] sm:$0xff] }
 0x16c   : > { %15830 = vst [vmem:[#allocation501_spill] sm:$0xff] %v8054_v27  ;;  %v8074_v34 = vmul.f32 %v7857_v38, %v15837_v41  ;;  %15840 = vst [vmem:[#allocation506_spill] sm:$0xff] %v8079_v52  ;;  %v8084_v40 = vmul.f32 %v7857_v38, %v15841_v46  ;;  %v15849_v52 = vunpack.c.l.bf16 %v5411_v9  ;;  %v15851_v3 = vunpack.c.h.bf16 %v5411_v9 }
 0x16d   : > { %15834 = vst [vmem:[#allocation503_spill] sm:$0xff] %v8064_v33  ;;  %15844 = vst [vmem:[#allocation508_spill] sm:$0xff] %v8089_v53  ;;  %v8094_v41 = vmul.f32 %v7857_v38, %v15845_v47  ;;  %v8099_v59 = vmul.f32 %v7857_v38, %v15847_v2  ;;  %v15853_v53 = vunpack.c.l.bf16 %v5418_v32  ;;  %v15855_v8 = vunpack.c.h.bf16 %v5418_v32  ;;  %v15934_v33 = vld [vmem:[#allocation12_spill] sm:$0xff] }
 0x16e   : > { %15838 = vst [vmem:[#allocation505_spill] sm:$0xff] %v8074_v34  ;;  %15842 = vst [vmem:[#allocation507_spill] sm:$0xff] %v8084_v40  ;;  %v8104_v46 = vmul.f32 %v7857_v38, %v15849_v52  ;;  %v8109_v60 = vmul.f32 %v7857_v38, %v15851_v3  ;;  %v15859_v9 = vunpack.c.h.bf16 %v5421_v39  ;;  %v15863_v32 = vunpack.c.h.bf16 %v5428_v14  ;;  %v15929_v40 = vld [vmem:[#allocation11_spill] sm:$0xff] }
 0x16f   : > { %15846 = vst [vmem:[#allocation509_spill] sm:$0xff] %v8094_v41  ;;  %15848 = vst [vmem:[#allocation510_spill] sm:$0xff] %v8099_v59  ;;  %v8114_v47 = vmul.f32 %v7857_v38, %v15853_v53  ;;  %v8119_v2 = vmul.f32 %v7857_v38, %v15855_v8  ;;  %v15857_v59 = vunpack.c.l.bf16 %v5421_v39  ;;  %v15861_v53 = vunpack.c.l.bf16 %v5428_v14 }
 0x170   : > { %15850 = vst [vmem:[#allocation511_spill] sm:$0xff] %v8104_v46  ;;  %15852 = vst [vmem:[#allocation512_spill] sm:$0xff] %v8109_v60  ;;  %v8129_v3 = vmul.f32 %v7857_v38, %v15859_v9  ;;  %v8131_v60 = vpop.permute.xlu0 %1794  ;;  %v8141_v8 = vmul.f32 %v7857_v38, %v15863_v32  ;;  %v15867_v39 = vunpack.c.h.bf16 %v5431_v17  ;;  %v15871_v14 = vunpack.c.h.bf16 %v5438_v7 }
 0x171   : > { %15854 = vst [vmem:[#allocation513_spill] sm:$0xff] %v8114_v47  ;;  %15856 = vst [vmem:[#allocation514_spill] sm:$0xff] %v8119_v2  ;;  %v8124_v52 = vmul.f32 %v7857_v38, %v15857_v59  ;;  %v8136_v47 = vmul.f32 %v7857_v38, %v15861_v53  ;;  %v15865_v59 = vunpack.c.l.bf16 %v5431_v17  ;;  %v15875_v17 = vunpack.c.h.bf16 %v5441_v10 }
 0x172   : > { %15860 = vst [vmem:[#allocation516_spill] sm:$0xff] %v8129_v3  ;;  %15864 = vst [vmem:[#allocation518_spill] sm:$0xff] %v8141_v8  ;;  %v8151_v9 = vmul.f32 %v7857_v38, %v15867_v39  ;;  %v15869_v3 = vunpack.c.l.bf16 %v5438_v7  ;;  %v8161_v32 = vmul.f32 %v7857_v38, %v15871_v14  ;;  %v15873_v8 = vunpack.c.l.bf16 %v5441_v10 }
 0x173   : > { %15858 = vst [vmem:[#allocation515_spill] sm:$0xff] %v8124_v52  ;;  %15862 = vst [vmem:[#allocation517_spill] sm:$0xff] %v8136_v47  ;;  %v8146_v52 = vmul.f32 %v7857_v38, %v15865_v59  ;;  %v8171_v39 = vmul.f32 %v7857_v38, %v15875_v17  ;;  %v15879_v7 = vunpack.c.h.bf16 %v5448_v4  ;;  %v15883_v10 = vunpack.c.h.bf16 %v5451_v63 }
 0x174   : > { %15868 = vst [vmem:[#allocation520_spill] sm:$0xff] %v8151_v9  ;;  %v8156_v53 = vmul.f32 %v7857_v38, %v15869_v3  ;;  %15872 = vst [vmem:[#allocation522_spill] sm:$0xff] %v8161_v32  ;;  %v8166_v59 = vmul.f32 %v7857_v38, %v15873_v8  ;;  %v15877_v9 = vunpack.c.l.bf16 %v5448_v4  ;;  %v15881_v32 = vunpack.c.l.bf16 %v5451_v63 }
 0x175   : > { %15866 = vst [vmem:[#allocation519_spill] sm:$0xff] %v8146_v52  ;;  %15876 = vst [vmem:[#allocation524_spill] sm:$0xff] %v8171_v39  ;;  %v8181_v14 = vmul.f32 %v7857_v38, %v15879_v7  ;;  %v8191_v17 = vmul.f32 %v7857_v38, %v15883_v10  ;;  %v15885_v39 = vunpack.c.l.bf16 %v5458_v1  ;;  %v15886_v4 = vunpack.c.h.bf16 %v5458_v1 }
 0x176   : > { %15870 = vst [vmem:[#allocation521_spill] sm:$0xff] %v8156_v53  ;;  %15874 = vst [vmem:[#allocation523_spill] sm:$0xff] %v8166_v59  ;;  %v8176_v3 = vmul.f32 %v7857_v38, %v15877_v9  ;;  %v8186_v8 = vmul.f32 %v7857_v38, %v15881_v32  ;;  %v15888_v63 = vunpack.c.h.bf16 %v5461_v61  ;;  %v15889_v10 = vunpack.c.l.bf16 %v5468_v6 }
 0x177   : > { %15880 = vst [vmem:[#allocation526_spill] sm:$0xff] %v8181_v14  ;;  %15884 = vst [vmem:[#allocation528_spill] sm:$0xff] %v8191_v17  ;;  %v8196_v9 = vmul.f32 %v8131_v60, %v15885_v39  ;;  %v8201_v7 = vmul.f32 %v8131_v60, %v15886_v4  ;;  %v15887_v14 = vunpack.c.l.bf16 %v5461_v61  ;;  %v15890_v1 = vunpack.c.h.bf16 %v5468_v6 }
 0x178   : > { %15878 = vst [vmem:[#allocation525_spill] sm:$0xff] %v8176_v3  ;;  %15882 = vst [vmem:[#allocation527_spill] sm:$0xff] %v8186_v8  ;;  %v8211_v38 = vmul.f32 %v8131_v60, %v15888_v63  ;;  %v8216_v39 = vmul.f32 %v8131_v60, %v15889_v10  ;;  %v15891_v17 = vunpack.c.l.bf16 %v5471_v56  ;;  %v15892_v61 = vunpack.c.h.bf16 %v5471_v56 }
 0x179   : > { %v8206_v32 = vmul.f32 %v8131_v60, %v15887_v14  ;;  %v8221_v4 = vmul.f32 %v8131_v60, %v15890_v1  ;;  %v15893_v8 = vunpack.c.l.bf16 %v5478_v11  ;;  %v15895_v6 = vunpack.c.h.bf16 %v5478_v11 }
 0x17a   : > { %v8226_v14 = vmul.f32 %v8131_v60, %v15891_v17  ;;  %v8231_v63 = vmul.f32 %v8131_v60, %v15892_v61  ;;  %v15897_v3 = vunpack.c.l.bf16 %v5481_v54  ;;  %v15899_v56 = vunpack.c.h.bf16 %v5481_v54 }
 0x17b   : > { %v8236_v10 = vmul.f32 %v8131_v60, %v15893_v8  ;;  %v8241_v1 = vmul.f32 %v8131_v60, %v15895_v6  ;;  %v15901_v59 = vunpack.c.l.bf16 %v5488_v58  ;;  %v15903_v11 = vunpack.c.h.bf16 %v5488_v58 }
 0x17c   : > { %v8246_v17 = vmul.f32 %v8131_v60, %v15897_v3  ;;  %v8251_v61 = vmul.f32 %v8131_v60, %v15899_v56  ;;  %v15905_v53 = vunpack.c.l.bf16 %v5491_v50  ;;  %v15907_v54 = vunpack.c.h.bf16 %v5491_v50 }
 0x17d   : > { %15894 = vst [vmem:[#allocation529_spill] sm:$0xff] %v8236_v10  ;;  %15896 = vst [vmem:[#allocation530_spill] sm:$0xff] %v8241_v1  ;;  %v8256_v8 = vmul.f32 %v8131_v60, %v15901_v59  ;;  %v8261_v6 = vmul.f32 %v8131_v60, %v15903_v11  ;;  %v15909_v52 = vunpack.c.l.bf16 %v5498_v5  ;;  %v15911_v58 = vunpack.c.h.bf16 %v5498_v5  ;;  %v16500_v10 = vld [vmem:[#allocation131_spill] sm:$0xff] }
 0x17e   : > { %15898 = vst [vmem:[#allocation531_spill] sm:$0xff] %v8246_v17  ;;  %15900 = vst [vmem:[#allocation532_spill] sm:$0xff] %v8251_v61  ;;  %v8266_v3 = vmul.f32 %v8131_v60, %v15905_v53  ;;  %v8271_v56 = vmul.f32 %v8131_v60, %v15907_v54  ;;  %v15913_v47 = vunpack.c.l.bf16 %v5501_v48  ;;  %v15915_v50 = vunpack.c.h.bf16 %v5501_v48 }
 0x17f   : > { %15902 = vst [vmem:[#allocation533_spill] sm:$0xff] %v8256_v8  ;;  %15904 = vst [vmem:[#allocation534_spill] sm:$0xff] %v8261_v6  ;;  %v8276_v59 = vmul.f32 %v8131_v60, %v15909_v52  ;;  %v8281_v11 = vmul.f32 %v8131_v60, %v15911_v58  ;;  %v15917_v2 = vunpack.c.l.bf16 %v5508_v0  ;;  %v15919_v5 = vunpack.c.h.bf16 %v5508_v0  ;;  %v16350_v8 = vld [vmem:[#allocation100_spill] sm:$0xff] }
 0x180   : > { %15906 = vst [vmem:[#allocation535_spill] sm:$0xff] %v8266_v3  ;;  %15908 = vst [vmem:[#allocation536_spill] sm:$0xff] %v8271_v56  ;;  %v8286_v53 = vmul.f32 %v8131_v60, %v15913_v47  ;;  %v8291_v54 = vmul.f32 %v8131_v60, %v15915_v50  ;;  %v15921_v46 = vunpack.c.l.bf16 %v5511_v44  ;;  %v15923_v48 = vunpack.c.h.bf16 %v5511_v44  ;;  %v16340_v56 = vld [vmem:[#allocation98_spill] sm:$0xff] }
 0x181   : > { %15910 = vst [vmem:[#allocation537_spill] sm:$0xff] %v8276_v59  ;;  %15912 = vst [vmem:[#allocation538_spill] sm:$0xff] %v8281_v11  ;;  %v8296_v52 = vmul.f32 %v8131_v60, %v15917_v2  ;;  %v8301_v58 = vmul.f32 %v8131_v60, %v15919_v5  ;;  %v15925_v41 = vunpack.c.l.bf16 %v5518_v62  ;;  %v15927_v0 = vunpack.c.h.bf16 %v5518_v62 }
 0x182   : > { %15914 = vst [vmem:[#allocation539_spill] sm:$0xff] %v8286_v53  ;;  %15916 = vst [vmem:[#allocation540_spill] sm:$0xff] %v8291_v54  ;;  %v8306_v47 = vmul.f32 %v8131_v60, %v15921_v46  ;;  %v8311_v50 = vmul.f32 %v8131_v60, %v15923_v48  ;;  %v15930_v34 = vunpack.c.l.bf16 %v15929_v40  ;;  %v15932_v44 = vunpack.c.h.bf16 %v15929_v40  ;;  %v16061_v54 = vld [vmem:[#allocation39_spill] sm:$0xff] }
 0x183   : > { %15918 = vst [vmem:[#allocation541_spill] sm:$0xff] %v8296_v52  ;;  %15920 = vst [vmem:[#allocation542_spill] sm:$0xff] %v8301_v58  ;;  %v8316_v2 = vmul.f32 %v8131_v60, %v15925_v41  ;;  %v8321_v5 = vmul.f32 %v8131_v60, %v15927_v0  ;;  %v15935_v27 = vunpack.c.l.bf16 %v15934_v33  ;;  %v15937_v62 = vunpack.c.h.bf16 %v15934_v33  ;;  %v16056_v52 = vld [vmem:[#allocation38_spill] sm:$0xff] }
 0x184   : > { %15922 = vst [vmem:[#allocation543_spill] sm:$0xff] %v8306_v47  ;;  %15924 = vst [vmem:[#allocation544_spill] sm:$0xff] %v8311_v50  ;;  %v8326_v46 = vmul.f32 %v8131_v60, %v15930_v34  ;;  %v8331_v48 = vmul.f32 %v8131_v60, %v15932_v44  ;;  %v15940_v21 = vunpack.c.l.bf16 %v15939_v26  ;;  %v15942_v40 = vunpack.c.h.bf16 %v15939_v26  ;;  %v16046_v50 = vld [vmem:[#allocation36_spill] sm:$0xff] }
 0x185   : > { %15926 = vst [vmem:[#allocation545_spill] sm:$0xff] %v8316_v2  ;;  %15928 = vst [vmem:[#allocation546_spill] sm:$0xff] %v8321_v5  ;;  %v8336_v41 = vmul.f32 %v8131_v60, %v15935_v27  ;;  %v8341_v0 = vmul.f32 %v8131_v60, %v15937_v62  ;;  %v15945_v19 = vunpack.c.l.bf16 %v15944_v20  ;;  %v15947_v33 = vunpack.c.h.bf16 %v15944_v20  ;;  %v16041_v2 = vld [vmem:[#allocation35_spill] sm:$0xff] }
 0x186   : > { %15931 = vst [vmem:[#allocation11_spill] sm:$0xff] %v8326_v46  ;;  %15933 = vst [vmem:[#allocation547_spill] sm:$0xff] %v8331_v48  ;;  %v8346_v34 = vmul.f32 %v8131_v60, %v15940_v21  ;;  %v8351_v44 = vmul.f32 %v8131_v60, %v15942_v40  ;;  %v16037_v5 = vunpack.c.l.bf16 %v16036_v18  ;;  %v16042_v16 = vunpack.c.l.bf16 %v16041_v2 }
 0x187   : > { %15936 = vst [vmem:[#allocation12_spill] sm:$0xff] %v8336_v41  ;;  %15938 = vst [vmem:[#allocation548_spill] sm:$0xff] %v8341_v0  ;;  %v8356_v27 = vmul.f32 %v8131_v60, %v15945_v19  ;;  %v8361_v62 = vmul.f32 %v8131_v60, %v15947_v33  ;;  %v15949_v0 = vld [vmem:[#allocation15_spill] sm:$0xff]  ;;  %v16047_v47 = vunpack.c.l.bf16 %v16046_v50  ;;  %v16052_v58 = vunpack.c.l.bf16 %v16051_v15 }
 0x188   : > { %15941 = vst [vmem:[#allocation13_spill] sm:$0xff] %v8346_v34  ;;  %15943 = vst [vmem:[#allocation549_spill] sm:$0xff] %v8351_v44  ;;  %v15950_v41 = vunpack.c.l.bf16 %v15949_v0  ;;  %v15952_v26 = vunpack.c.h.bf16 %v15949_v0  ;;  %v15954_v44 = vld [vmem:[#allocation16_spill] sm:$0xff]  ;;  %v16057_v13 = vunpack.c.l.bf16 %v16056_v52  ;;  %v16062_v53 = vunpack.c.l.bf16 %v16061_v54 }
 0x189   : > { %15946 = vst [vmem:[#allocation14_spill] sm:$0xff] %v8356_v27  ;;  %15948 = vst [vmem:[#allocation550_spill] sm:$0xff] %v8361_v62  ;;  %v15955_v34 = vunpack.c.l.bf16 %v15954_v44  ;;  %v15957_v20 = vunpack.c.h.bf16 %v15954_v44  ;;  %v15959_v62 = vld [vmem:[#allocation17_spill] sm:$0xff]  ;;  %v16067_v11 = vunpack.c.l.bf16 %v16066_v12  ;;  %v16341_v3 = vunpack.c.l.bf16 %v16340_v56 }
 0x18a   : > { %v8366_v21 = vmul.f32 %v8131_v60, %v15950_v41  ;;  %v8371_v40 = vmul.f32 %v8131_v60, %v15952_v26  ;;  %v15960_v27 = vunpack.c.l.bf16 %v15959_v62  ;;  %v15962_v0 = vunpack.c.h.bf16 %v15959_v62 }
 0x18b   : > { %v8376_v19 = vmul.f32 %v8131_v60, %v15955_v34  ;;  %v8381_v33 = vmul.f32 %v8131_v60, %v15957_v20  ;;  %v16346_v6 = vunpack.c.l.bf16 %v16345_v51  ;;  %v16351_v28 = vunpack.c.l.bf16 %v16350_v8 }
 0x18c   : > { %15951 = vst [vmem:[#allocation15_spill] sm:$0xff] %v8366_v21  ;;  %15953 = vst [vmem:[#allocation551_spill] sm:$0xff] %v8371_v40  ;;  %v8386_v41 = vmul.f32 %v8131_v60, %v15960_v27  ;;  %v8391_v26 = vmul.f32 %v8131_v60, %v15962_v0  ;;  %v15964_v40 = vld [vmem:[#allocation18_spill] sm:$0xff]  ;;  %v16496_v1 = vunpack.c.l.bf16 %v16495_v35  ;;  %v16501_v22 = vunpack.c.l.bf16 %v16500_v10 }
 0x18d   : > { %15956 = vst [vmem:[#allocation16_spill] sm:$0xff] %v8376_v19  ;;  %15958 = vst [vmem:[#allocation552_spill] sm:$0xff] %v8381_v33  ;;  %v15965_v21 = vunpack.c.l.bf16 %v15964_v40  ;;  %v15967_v44 = vunpack.c.h.bf16 %v15964_v40  ;;  %v15969_v33 = vld [vmem:[#allocation19_spill] sm:$0xff] }
 0x18e   : > { %15961 = vst [vmem:[#allocation17_spill] sm:$0xff] %v8386_v41  ;;  %15963 = vst [vmem:[#allocation553_spill] sm:$0xff] %v8391_v26  ;;  %v15970_v19 = vunpack.c.l.bf16 %v15969_v33  ;;  %v15972_v62 = vunpack.c.h.bf16 %v15969_v33  ;;  %v15974_v26 = vld [vmem:[#allocation20_spill] sm:$0xff] }
 0x18f   : > { %v8396_v34 = vmul.f32 %v8131_v60, %v15965_v21  ;;  %v8401_v20 = vmul.f32 %v8131_v60, %v15967_v44  ;;  %v15975_v41 = vunpack.c.l.bf16 %v15974_v26  ;;  %v15977_v40 = vunpack.c.h.bf16 %v15974_v26 }
 0x190   : > { %v8406_v27 = vmul.f32 %v8131_v60, %v15970_v19  ;;  %v8411_v0 = vmul.f32 %v8131_v60, %v15972_v62 }
 0x191   : > { %15966 = vst [vmem:[#allocation18_spill] sm:$0xff] %v8396_v34  ;;  %15968 = vst [vmem:[#allocation554_spill] sm:$0xff] %v8401_v20  ;;  %v8416_v21 = vmul.f32 %v8131_v60, %v15975_v41  ;;  %v8421_v44 = vmul.f32 %v8131_v60, %v15977_v40  ;;  %v15979_v20 = vld [vmem:[#allocation21_spill] sm:$0xff] }
 0x192   : > { %15971 = vst [vmem:[#allocation19_spill] sm:$0xff] %v8406_v27  ;;  %15973 = vst [vmem:[#allocation555_spill] sm:$0xff] %v8411_v0  ;;  %v15980_v34 = vunpack.c.l.bf16 %v15979_v20  ;;  %v15982_v33 = vunpack.c.h.bf16 %v15979_v20  ;;  %v15984_v0 = vld [vmem:[#allocation22_spill] sm:$0xff] }
 0x193   : > { %15976 = vst [vmem:[#allocation20_spill] sm:$0xff] %v8416_v21  ;;  %15978 = vst [vmem:[#allocation556_spill] sm:$0xff] %v8421_v44  ;;  %v15985_v27 = vunpack.c.l.bf16 %v15984_v0  ;;  %v15987_v26 = vunpack.c.h.bf16 %v15984_v0  ;;  %v15989_v44 = vld [vmem:[#allocation23_spill] sm:$0xff] }
 0x194   : > { %v8426_v19 = vmul.f32 %v8131_v60, %v15980_v34  ;;  %v8431_v62 = vmul.f32 %v8131_v60, %v15982_v33  ;;  %v15990_v21 = vunpack.c.l.bf16 %v15989_v44  ;;  %v15992_v20 = vunpack.c.h.bf16 %v15989_v44 }
 0x195   : > { %v8436_v41 = vmul.f32 %v8131_v60, %v15985_v27  ;;  %v8441_v40 = vmul.f32 %v8131_v60, %v15987_v26 }
 0x196   : > { %15981 = vst [vmem:[#allocation21_spill] sm:$0xff] %v8426_v19  ;;  %15983 = vst [vmem:[#allocation557_spill] sm:$0xff] %v8431_v62  ;;  %v8446_v34 = vmul.f32 %v8131_v60, %v15990_v21  ;;  %v8451_v33 = vmul.f32 %v8131_v60, %v15992_v20  ;;  %v15994_v62 = vld [vmem:[#allocation24_spill] sm:$0xff] }
 0x197   : > { %15986 = vst [vmem:[#allocation22_spill] sm:$0xff] %v8436_v41  ;;  %15988 = vst [vmem:[#allocation558_spill] sm:$0xff] %v8441_v40  ;;  %v15995_v19 = vunpack.c.l.bf16 %v15994_v62  ;;  %v15997_v0 = vunpack.c.h.bf16 %v15994_v62  ;;  %v15999_v40 = vld [vmem:[#allocation25_spill] sm:$0xff] }
 0x198   : > { %15991 = vst [vmem:[#allocation23_spill] sm:$0xff] %v8446_v34  ;;  %15993 = vst [vmem:[#allocation559_spill] sm:$0xff] %v8451_v33  ;;  %v16000_v41 = vunpack.c.l.bf16 %v15999_v40  ;;  %v16002_v44 = vunpack.c.h.bf16 %v15999_v40  ;;  %v16004_v33 = vld [vmem:[#allocation26_spill] sm:$0xff] }
 0x199   : > { %v8456_v27 = vmul.f32 %v8131_v60, %v15995_v19  ;;  %v8461_v26 = vmul.f32 %v8131_v60, %v15997_v0  ;;  %v16005_v34 = vunpack.c.l.bf16 %v16004_v33  ;;  %v16007_v62 = vunpack.c.h.bf16 %v16004_v33 }
 0x19a   : > { %v8466_v21 = vmul.f32 %v8131_v60, %v16000_v41  ;;  %v8471_v20 = vmul.f32 %v8131_v60, %v16002_v44 }
 0x19b   : > { %15996 = vst [vmem:[#allocation24_spill] sm:$0xff] %v8456_v27  ;;  %15998 = vst [vmem:[#allocation560_spill] sm:$0xff] %v8461_v26  ;;  %v8476_v19 = vmul.f32 %v8131_v60, %v16005_v34  ;;  %v8481_v0 = vmul.f32 %v8131_v60, %v16007_v62  ;;  %v16009_v26 = vld [vmem:[#allocation27_spill] sm:$0xff] }
 0x19c   : > { %16001 = vst [vmem:[#allocation25_spill] sm:$0xff] %v8466_v21  ;;  %16003 = vst [vmem:[#allocation561_spill] sm:$0xff] %v8471_v20  ;;  %v16010_v27 = vunpack.c.l.bf16 %v16009_v26  ;;  %v16012_v40 = vunpack.c.h.bf16 %v16009_v26  ;;  %v8493_v20 = vpop.permute.xlu1 %1799  ;;  %v16014_v21 = vld [vmem:[#allocation28_spill] sm:$0xff] }
 0x19d   : > { %16006 = vst [vmem:[#allocation26_spill] sm:$0xff] %v8476_v19  ;;  %16008 = vst [vmem:[#allocation562_spill] sm:$0xff] %v8481_v0  ;;  %v16015_v34 = vunpack.c.l.bf16 %v16014_v21  ;;  %v16017_v33 = vunpack.c.h.bf16 %v16014_v21  ;;  %v16019_v0 = vld [vmem:[#allocation29_spill] sm:$0xff] }
 0x19e   : > { %v8486_v41 = vmul.f32 %v8131_v60, %v16010_v27  ;;  %v8491_v44 = vmul.f32 %v8131_v60, %v16012_v40  ;;  %v16020_v27 = vunpack.c.l.bf16 %v16019_v0  ;;  %v16022_v26 = vunpack.c.h.bf16 %v16019_v0 }
 0x19f   : > { %v8498_v19 = vmul.f32 %v8131_v60, %v16015_v34  ;;  %v8503_v62 = vmul.f32 %v8131_v60, %v16017_v33 }
 0x1a0   : > { %16011 = vst [vmem:[#allocation27_spill] sm:$0xff] %v8486_v41  ;;  %16013 = vst [vmem:[#allocation563_spill] sm:$0xff] %v8491_v44  ;;  %v8508_v41 = vmul.f32 %v8131_v60, %v16020_v27  ;;  %v8513_v40 = vmul.f32 %v8131_v60, %v16022_v26  ;;  %v16024_v44 = vld [vmem:[#allocation30_spill] sm:$0xff]  ;;  %v16030_v26 = vld [vmem:[#allocation32_spill] sm:$0xff] }
 0x1a1   : > { %16016 = vst [vmem:[#allocation28_spill] sm:$0xff] %v8498_v19  ;;  %16018 = vst [vmem:[#allocation564_spill] sm:$0xff] %v8503_v62  ;;  %v16025_v48 = vunpack.c.l.bf16 %v16024_v44  ;;  %v16026_v21 = vunpack.c.h.bf16 %v16024_v44  ;;  %v16027_v62 = vld [vmem:[#allocation31_spill] sm:$0xff]  ;;  %v16032_v44 = vunpack.c.h.bf16 %v16030_v26 }
 0x1a2   : > { %16021 = vst [vmem:[#allocation29_spill] sm:$0xff] %v8508_v41  ;;  %16023 = vst [vmem:[#allocation565_spill] sm:$0xff] %v8513_v40  ;;  %v16028_v19 = vunpack.c.l.bf16 %v16027_v62  ;;  %v16029_v0 = vunpack.c.h.bf16 %v16027_v62  ;;  %v16031_v40 = vunpack.c.l.bf16 %v16030_v26  ;;  %v16033_v41 = vld [vmem:[#allocation33_spill] sm:$0xff]  ;;  %v16039_v26 = vunpack.c.h.bf16 %v16036_v18 }
 0x1a3   : > { %v8518_v34 = vmul.f32 %v8493_v20, %v16025_v48  ;;  %v8523_v33 = vmul.f32 %v8493_v20, %v16026_v21  ;;  %v8543_v21 = vmul.f32 %v8493_v20, %v16032_v44  ;;  %v16034_v46 = vunpack.c.l.bf16 %v16033_v41 }
 0x1a4   : > { %v8528_v27 = vmul.f32 %v8493_v20, %v16028_v19  ;;  %v8533_v60 = vmul.f32 %v8493_v20, %v16029_v0  ;;  %v8538_v48 = vmul.f32 %v8493_v20, %v16031_v40  ;;  %v16035_v62 = vunpack.c.h.bf16 %v16033_v41 }
 0x1a5   : > { %v8548_v19 = vmul.f32 %v8493_v20, %v16034_v46  ;;  %v8558_v40 = vmul.f32 %v8493_v20, %v16037_v5  ;;  %v8563_v44 = vmul.f32 %v8493_v20, %v16039_v26  ;;  %v8568_v46 = vmul.f32 %v8493_v20, %v16042_v16 }
 0x1a6   : > { %v8553_v0 = vmul.f32 %v8493_v20, %v16035_v62  ;;  %v16044_v41 = vunpack.c.h.bf16 %v16041_v2  ;;  %v8578_v5 = vmul.f32 %v8493_v20, %v16047_v47  ;;  %v16049_v18 = vunpack.c.h.bf16 %v16046_v50 }
 0x1a7   : > { %16038 = vst [vmem:[#allocation30_spill] sm:$0xff] %v8558_v40  ;;  %16040 = vst [vmem:[#allocation31_spill] sm:$0xff] %v8563_v44  ;;  %v8588_v16 = vmul.f32 %v8493_v20, %v16052_v58  ;;  %v16054_v2 = vunpack.c.h.bf16 %v16051_v15  ;;  %v8598_v47 = vmul.f32 %v8493_v20, %v16057_v13  ;;  %v16059_v50 = vunpack.c.h.bf16 %v16056_v52 }
 0x1a8   : > { %16043 = vst [vmem:[#allocation32_spill] sm:$0xff] %v8568_v46  ;;  %v8573_v62 = vmul.f32 %v8493_v20, %v16044_v41  ;;  %16048 = vst [vmem:[#allocation34_spill] sm:$0xff] %v8578_v5  ;;  %v8583_v26 = vmul.f32 %v8493_v20, %v16049_v18  ;;  %v8608_v58 = vmul.f32 %v8493_v20, %v16062_v53  ;;  %v16064_v15 = vunpack.c.h.bf16 %v16061_v54 }
 0x1a9   : > { %16053 = vst [vmem:[#allocation36_spill] sm:$0xff] %v8588_v16  ;;  %v8593_v41 = vmul.f32 %v8493_v20, %v16054_v2  ;;  %16058 = vst [vmem:[#allocation38_spill] sm:$0xff] %v8598_v47  ;;  %v8603_v18 = vmul.f32 %v8493_v20, %v16059_v50  ;;  %v8618_v13 = vmul.f32 %v8493_v20, %v16067_v11  ;;  %v16069_v52 = vunpack.c.h.bf16 %v16066_v12 }
 0x1aa   : > { %16045 = vst [vmem:[#allocation33_spill] sm:$0xff] %v8573_v62  ;;  %16050 = vst [vmem:[#allocation35_spill] sm:$0xff] %v8583_v26  ;;  %v8613_v2 = vmul.f32 %v8493_v20, %v16064_v15  ;;  %v16193_v26 = vld [vmem:[#allocation67_spill] sm:$0xff]  ;;  %v16198_v62 = vld [vmem:[#allocation68_spill] sm:$0xff] }
 0x1ab   : > { %16055 = vst [vmem:[#allocation37_spill] sm:$0xff] %v8593_v41  ;;  %16060 = vst [vmem:[#allocation566_spill] sm:$0xff] %v8603_v18  ;;  %v8623_v50 = vmul.f32 %v8493_v20, %v16069_v52  ;;  %v16071_v18 = vld [vmem:[#allocation41_spill] sm:$0xff]  ;;  %v16188_v41 = vld [vmem:[#allocation66_spill] sm:$0xff]  ;;  %v16194_v5 = vunpack.c.l.bf16 %v16193_v26  ;;  %v16199_v46 = vunpack.c.l.bf16 %v16198_v62 }
 0x1ac   : > { %16063 = vst [vmem:[#allocation39_spill] sm:$0xff] %v8608_v58  ;;  %16065 = vst [vmem:[#allocation567_spill] sm:$0xff] %v8613_v2  ;;  %v16072_v47 = vunpack.c.l.bf16 %v16071_v18  ;;  %v16074_v54 = vunpack.c.h.bf16 %v16071_v18  ;;  %v16076_v2 = vld [vmem:[#allocation42_spill] sm:$0xff]  ;;  %v16189_v16 = vunpack.c.l.bf16 %v16188_v41 }
 0x1ad   : > { %16068 = vst [vmem:[#allocation40_spill] sm:$0xff] %v8618_v13  ;;  %16070 = vst [vmem:[#allocation568_spill] sm:$0xff] %v8623_v50  ;;  %v16077_v58 = vunpack.c.l.bf16 %v16076_v2  ;;  %v16079_v12 = vunpack.c.h.bf16 %v16076_v2  ;;  %v16081_v50 = vld [vmem:[#allocation43_spill] sm:$0xff] }
 0x1ae   : > { %v8628_v53 = vmul.f32 %v8493_v20, %v16072_v47  ;;  %v8633_v15 = vmul.f32 %v8493_v20, %v16074_v54  ;;  %v16082_v13 = vunpack.c.l.bf16 %v16081_v50  ;;  %v16084_v18 = vunpack.c.h.bf16 %v16081_v50 }
 0x1af   : > { %v8638_v11 = vmul.f32 %v8493_v20, %v16077_v58  ;;  %v8643_v52 = vmul.f32 %v8493_v20, %v16079_v12 }
 0x1b0   : > { %16073 = vst [vmem:[#allocation41_spill] sm:$0xff] %v8628_v53  ;;  %16075 = vst [vmem:[#allocation569_spill] sm:$0xff] %v8633_v15  ;;  %v8648_v47 = vmul.f32 %v8493_v20, %v16082_v13  ;;  %v8653_v54 = vmul.f32 %v8493_v20, %v16084_v18  ;;  %v16086_v15 = vld [vmem:[#allocation44_spill] sm:$0xff] }
 0x1b1   : > { %16078 = vst [vmem:[#allocation42_spill] sm:$0xff] %v8638_v11  ;;  %16080 = vst [vmem:[#allocation570_spill] sm:$0xff] %v8643_v52  ;;  %v16087_v53 = vunpack.c.l.bf16 %v16086_v15  ;;  %v16089_v2 = vunpack.c.h.bf16 %v16086_v15  ;;  %v16091_v52 = vld [vmem:[#allocation45_spill] sm:$0xff] }
 0x1b2   : > { %16083 = vst [vmem:[#allocation43_spill] sm:$0xff] %v8648_v47  ;;  %16085 = vst [vmem:[#allocation571_spill] sm:$0xff] %v8653_v54  ;;  %v16092_v11 = vunpack.c.l.bf16 %v16091_v52  ;;  %v16094_v50 = vunpack.c.h.bf16 %v16091_v52  ;;  %v16096_v54 = vld [vmem:[#allocation46_spill] sm:$0xff] }
 0x1b3   : > { %v8658_v58 = vmul.f32 %v8493_v20, %v16087_v53  ;;  %v8663_v12 = vmul.f32 %v8493_v20, %v16089_v2  ;;  %v16097_v47 = vunpack.c.l.bf16 %v16096_v54  ;;  %v16099_v15 = vunpack.c.h.bf16 %v16096_v54 }
 0x1b4   : > { %v8668_v13 = vmul.f32 %v8493_v20, %v16092_v11  ;;  %v8673_v18 = vmul.f32 %v8493_v20, %v16094_v50 }
 0x1b5   : > { %16088 = vst [vmem:[#allocation44_spill] sm:$0xff] %v8658_v58  ;;  %16090 = vst [vmem:[#allocation572_spill] sm:$0xff] %v8663_v12  ;;  %v8678_v53 = vmul.f32 %v8493_v20, %v16097_v47  ;;  %v8683_v2 = vmul.f32 %v8493_v20, %v16099_v15  ;;  %v16101_v12 = vld [vmem:[#allocation47_spill] sm:$0xff] }
 0x1b6   : > { %16093 = vst [vmem:[#allocation45_spill] sm:$0xff] %v8668_v13  ;;  %16095 = vst [vmem:[#allocation573_spill] sm:$0xff] %v8673_v18  ;;  %v16102_v58 = vunpack.c.l.bf16 %v16101_v12  ;;  %v16104_v52 = vunpack.c.h.bf16 %v16101_v12  ;;  %v16106_v18 = vld [vmem:[#allocation48_spill] sm:$0xff] }
 0x1b7   : > { %16098 = vst [vmem:[#allocation46_spill] sm:$0xff] %v8678_v53  ;;  %16100 = vst [vmem:[#allocation574_spill] sm:$0xff] %v8683_v2  ;;  %v16107_v13 = vunpack.c.l.bf16 %v16106_v18  ;;  %v16109_v54 = vunpack.c.h.bf16 %v16106_v18  ;;  %v16111_v2 = vld [vmem:[#allocation49_spill] sm:$0xff] }
 0x1b8   : > { %v8688_v11 = vmul.f32 %v8493_v20, %v16102_v58  ;;  %v8693_v50 = vmul.f32 %v8493_v20, %v16104_v52  ;;  %v16112_v53 = vunpack.c.l.bf16 %v16111_v2  ;;  %v16114_v12 = vunpack.c.h.bf16 %v16111_v2 }
 0x1b9   : > { %v8698_v47 = vmul.f32 %v8493_v20, %v16107_v13  ;;  %v8703_v15 = vmul.f32 %v8493_v20, %v16109_v54 }
 0x1ba   : > { %16103 = vst [vmem:[#allocation47_spill] sm:$0xff] %v8688_v11  ;;  %16105 = vst [vmem:[#allocation575_spill] sm:$0xff] %v8693_v50  ;;  %v8708_v58 = vmul.f32 %v8493_v20, %v16112_v53  ;;  %v8713_v52 = vmul.f32 %v8493_v20, %v16114_v12  ;;  %v16116_v50 = vld [vmem:[#allocation50_spill] sm:$0xff] }
 0x1bb   : > { %16108 = vst [vmem:[#allocation48_spill] sm:$0xff] %v8698_v47  ;;  %16110 = vst [vmem:[#allocation576_spill] sm:$0xff] %v8703_v15  ;;  %v16117_v11 = vunpack.c.l.bf16 %v16116_v50  ;;  %v16119_v18 = vunpack.c.h.bf16 %v16116_v50  ;;  %v16121_v15 = vld [vmem:[#allocation51_spill] sm:$0xff] }
 0x1bc   : > { %16113 = vst [vmem:[#allocation49_spill] sm:$0xff] %v8708_v58  ;;  %16115 = vst [vmem:[#allocation577_spill] sm:$0xff] %v8713_v52  ;;  %v16122_v47 = vunpack.c.l.bf16 %v16121_v15  ;;  %v16124_v2 = vunpack.c.h.bf16 %v16121_v15  ;;  %v16126_v52 = vld [vmem:[#allocation52_spill] sm:$0xff] }
 0x1bd   : > { %v8718_v13 = vmul.f32 %v8493_v20, %v16117_v11  ;;  %v8723_v54 = vmul.f32 %v8493_v20, %v16119_v18  ;;  %v16127_v58 = vunpack.c.l.bf16 %v16126_v52  ;;  %v16129_v50 = vunpack.c.h.bf16 %v16126_v52 }
 0x1be   : > { %v8728_v53 = vmul.f32 %v8493_v20, %v16122_v47  ;;  %v8733_v12 = vmul.f32 %v8493_v20, %v16124_v2 }
 0x1bf   : > { %16118 = vst [vmem:[#allocation50_spill] sm:$0xff] %v8718_v13  ;;  %16120 = vst [vmem:[#allocation578_spill] sm:$0xff] %v8723_v54  ;;  %v8738_v11 = vmul.f32 %v8493_v20, %v16127_v58  ;;  %v8743_v18 = vmul.f32 %v8493_v20, %v16129_v50  ;;  %v16131_v54 = vld [vmem:[#allocation53_spill] sm:$0xff] }
 0x1c0   : > { %16123 = vst [vmem:[#allocation51_spill] sm:$0xff] %v8728_v53  ;;  %16125 = vst [vmem:[#allocation579_spill] sm:$0xff] %v8733_v12  ;;  %v16132_v13 = vunpack.c.l.bf16 %v16131_v54  ;;  %v16134_v15 = vunpack.c.h.bf16 %v16131_v54  ;;  %v16136_v12 = vld [vmem:[#allocation54_spill] sm:$0xff] }
 0x1c1   : > { %16128 = vst [vmem:[#allocation52_spill] sm:$0xff] %v8738_v11  ;;  %16130 = vst [vmem:[#allocation580_spill] sm:$0xff] %v8743_v18  ;;  %v16137_v53 = vunpack.c.l.bf16 %v16136_v12  ;;  %v16139_v52 = vunpack.c.h.bf16 %v16136_v12  ;;  %v16141_v18 = vld [vmem:[#allocation55_spill] sm:$0xff] }
 0x1c2   : > { %v8748_v47 = vmul.f32 %v8493_v20, %v16132_v13  ;;  %v8753_v2 = vmul.f32 %v8493_v20, %v16134_v15  ;;  %v16142_v11 = vunpack.c.l.bf16 %v16141_v18  ;;  %v16144_v54 = vunpack.c.h.bf16 %v16141_v18 }
 0x1c3   : > { %v8758_v58 = vmul.f32 %v8493_v20, %v16137_v53  ;;  %v8763_v50 = vmul.f32 %v8493_v20, %v16139_v52 }
 0x1c4   : > { %16133 = vst [vmem:[#allocation53_spill] sm:$0xff] %v8748_v47  ;;  %16135 = vst [vmem:[#allocation581_spill] sm:$0xff] %v8753_v2  ;;  %v8768_v13 = vmul.f32 %v8493_v20, %v16142_v11  ;;  %v8773_v15 = vmul.f32 %v8493_v20, %v16144_v54  ;;  %v8775_v2 = vpop.permute.xlu1 %1804  ;;  %v16146_v47 = vld [vmem:[#allocation56_spill] sm:$0xff] }
 0x1c5   : > { %16138 = vst [vmem:[#allocation54_spill] sm:$0xff] %v8758_v58  ;;  %16140 = vst [vmem:[#allocation582_spill] sm:$0xff] %v8763_v50  ;;  %v16147_v53 = vunpack.c.l.bf16 %v16146_v47  ;;  %v16149_v12 = vunpack.c.h.bf16 %v16146_v47  ;;  %v16151_v50 = vld [vmem:[#allocation57_spill] sm:$0xff] }
 0x1c6   : > { %16143 = vst [vmem:[#allocation55_spill] sm:$0xff] %v8768_v13  ;;  %16145 = vst [vmem:[#allocation583_spill] sm:$0xff] %v8773_v15  ;;  %v16152_v11 = vunpack.c.l.bf16 %v16151_v50  ;;  %v16154_v18 = vunpack.c.h.bf16 %v16151_v50  ;;  %v16156_v15 = vld [vmem:[#allocation58_spill] sm:$0xff] }
 0x1c7   : > { %v8780_v58 = vmul.f32 %v8493_v20, %v16147_v53  ;;  %v8785_v52 = vmul.f32 %v8493_v20, %v16149_v12  ;;  %v16157_v59 = vunpack.c.l.bf16 %v16156_v15  ;;  %v16159_v47 = vunpack.c.h.bf16 %v16156_v15 }
 0x1c8   : > { %v8790_v13 = vmul.f32 %v8493_v20, %v16152_v11  ;;  %v8795_v54 = vmul.f32 %v8493_v20, %v16154_v18 }
 0x1c9   : > { %16148 = vst [vmem:[#allocation56_spill] sm:$0xff] %v8780_v58  ;;  %16150 = vst [vmem:[#allocation584_spill] sm:$0xff] %v8785_v52  ;;  %v8800_v53 = vmul.f32 %v8493_v20, %v16157_v59  ;;  %v8805_v12 = vmul.f32 %v8493_v20, %v16159_v47  ;;  %v16161_v52 = vld [vmem:[#allocation59_spill] sm:$0xff] }
 0x1ca   : > { %16153 = vst [vmem:[#allocation57_spill] sm:$0xff] %v8790_v13  ;;  %16155 = vst [vmem:[#allocation585_spill] sm:$0xff] %v8795_v54  ;;  %v16162_v58 = vunpack.c.l.bf16 %v16161_v52  ;;  %v16164_v50 = vunpack.c.h.bf16 %v16161_v52  ;;  %v16166_v54 = vld [vmem:[#allocation60_spill] sm:$0xff] }
 0x1cb   : > { %16158 = vst [vmem:[#allocation58_spill] sm:$0xff] %v8800_v53  ;;  %16160 = vst [vmem:[#allocation586_spill] sm:$0xff] %v8805_v12  ;;  %v16167_v13 = vunpack.c.l.bf16 %v16166_v54  ;;  %v16169_v15 = vunpack.c.h.bf16 %v16166_v54  ;;  %v16171_v12 = vld [vmem:[#allocation61_spill] sm:$0xff] }
 0x1cc   : > { %v8810_v11 = vmul.f32 %v8493_v20, %v16162_v58  ;;  %v8815_v18 = vmul.f32 %v8493_v20, %v16164_v50  ;;  %v16172_v53 = vunpack.c.l.bf16 %v16171_v12  ;;  %v16174_v52 = vunpack.c.h.bf16 %v16171_v12 }
 0x1cd   : > { %v8820_v59 = vmul.f32 %v8493_v20, %v16167_v13  ;;  %v8825_v47 = vmul.f32 %v8493_v20, %v16169_v15 }
 0x1ce   : > { %16163 = vst [vmem:[#allocation59_spill] sm:$0xff] %v8810_v11  ;;  %16165 = vst [vmem:[#allocation587_spill] sm:$0xff] %v8815_v18  ;;  %v8830_v58 = vmul.f32 %v8493_v20, %v16172_v53  ;;  %v8835_v50 = vmul.f32 %v8493_v20, %v16174_v52  ;;  %v16176_v18 = vld [vmem:[#allocation62_spill] sm:$0xff]  ;;  %v16182_v52 = vld [vmem:[#allocation64_spill] sm:$0xff] }
 0x1cf   : > { %16168 = vst [vmem:[#allocation60_spill] sm:$0xff] %v8820_v59  ;;  %16170 = vst [vmem:[#allocation588_spill] sm:$0xff] %v8825_v47  ;;  %v16177_v11 = vunpack.c.l.bf16 %v16176_v18  ;;  %v16178_v54 = vunpack.c.h.bf16 %v16176_v18  ;;  %v16179_v47 = vld [vmem:[#allocation63_spill] sm:$0xff]  ;;  %v16184_v18 = vunpack.c.h.bf16 %v16182_v52 }
 0x1d0   : > { %16173 = vst [vmem:[#allocation61_spill] sm:$0xff] %v8830_v58  ;;  %16175 = vst [vmem:[#allocation589_spill] sm:$0xff] %v8835_v50  ;;  %v16180_v59 = vunpack.c.l.bf16 %v16179_v47  ;;  %v16181_v12 = vunpack.c.h.bf16 %v16179_v47  ;;  %v16183_v50 = vunpack.c.l.bf16 %v16182_v52  ;;  %v16185_v58 = vld [vmem:[#allocation65_spill] sm:$0xff]  ;;  %v16191_v52 = vunpack.c.h.bf16 %v16188_v41 }
 0x1d1   : > { %v8840_v13 = vmul.f32 %v8775_v2, %v16177_v11  ;;  %v8845_v15 = vmul.f32 %v8775_v2, %v16178_v54  ;;  %v8865_v54 = vmul.f32 %v8775_v2, %v16184_v18  ;;  %v16186_v49 = vunpack.c.l.bf16 %v16185_v58 }
 0x1d2   : > { %v8850_v53 = vmul.f32 %v8775_v2, %v16180_v59  ;;  %v8855_v20 = vmul.f32 %v8775_v2, %v16181_v12  ;;  %v8860_v11 = vmul.f32 %v8775_v2, %v16183_v50  ;;  %v16187_v47 = vunpack.c.h.bf16 %v16185_v58 }
 0x1d3   : > { %v8870_v59 = vmul.f32 %v8775_v2, %v16186_v49  ;;  %v8880_v50 = vmul.f32 %v8775_v2, %v16189_v16  ;;  %v8885_v18 = vmul.f32 %v8775_v2, %v16191_v52  ;;  %v8890_v49 = vmul.f32 %v8775_v2, %v16194_v5 }
 0x1d4   : > { %v8875_v12 = vmul.f32 %v8775_v2, %v16187_v47  ;;  %v16196_v58 = vunpack.c.h.bf16 %v16193_v26  ;;  %v8900_v16 = vmul.f32 %v8775_v2, %v16199_v46  ;;  %v16201_v41 = vunpack.c.h.bf16 %v16198_v62 }
 0x1d5   : > { %16190 = vst [vmem:[#allocation62_spill] sm:$0xff] %v8880_v50  ;;  %16192 = vst [vmem:[#allocation63_spill] sm:$0xff] %v8885_v18  ;;  %v16203_v18 = vld [vmem:[#allocation69_spill] sm:$0xff] }
 0x1d6   : > { %16195 = vst [vmem:[#allocation64_spill] sm:$0xff] %v8890_v49  ;;  %v8895_v47 = vmul.f32 %v8775_v2, %v16196_v58  ;;  %16200 = vst [vmem:[#allocation66_spill] sm:$0xff] %v8900_v16  ;;  %v8905_v52 = vmul.f32 %v8775_v2, %v16201_v41  ;;  %v16204_v50 = vunpack.c.l.bf16 %v16203_v18  ;;  %v16206_v26 = vunpack.c.h.bf16 %v16203_v18 }
 0x1d8   : > { %16197 = vst [vmem:[#allocation65_spill] sm:$0xff] %v8895_v47  ;;  %16202 = vst [vmem:[#allocation67_spill] sm:$0xff] %v8905_v52  ;;  %v8910_v5 = vmul.f32 %v8775_v2, %v16204_v50  ;;  %v8915_v58 = vmul.f32 %v8775_v2, %v16206_v26  ;;  %v16208_v47 = vld [vmem:[#allocation70_spill] sm:$0xff]  ;;  %v16213_v52 = vld [vmem:[#allocation71_spill] sm:$0xff] }
 0x1d9   : > { %v16209_v49 = vunpack.c.l.bf16 %v16208_v47  ;;  %v16211_v62 = vunpack.c.h.bf16 %v16208_v47  ;;  %v16214_v16 = vunpack.c.l.bf16 %v16213_v52  ;;  %v16216_v18 = vunpack.c.h.bf16 %v16213_v52 }
 0x1da   : > { %16205 = vst [vmem:[#allocation68_spill] sm:$0xff] %v8910_v5  ;;  %16207 = vst [vmem:[#allocation69_spill] sm:$0xff] %v8915_v58  ;;  %v16218_v58 = vld [vmem:[#allocation72_spill] sm:$0xff] }
 0x1db   : > { %v8920_v46 = vmul.f32 %v8775_v2, %v16209_v49  ;;  %v8925_v41 = vmul.f32 %v8775_v2, %v16211_v62  ;;  %v8930_v50 = vmul.f32 %v8775_v2, %v16214_v16  ;;  %v8935_v26 = vmul.f32 %v8775_v2, %v16216_v18 }
 0x1dc   : > { %v16219_v5 = vunpack.c.l.bf16 %v16218_v58  ;;  %v16221_v47 = vunpack.c.h.bf16 %v16218_v58 }
 0x1dd   : > { %16210 = vst [vmem:[#allocation70_spill] sm:$0xff] %v8920_v46  ;;  %16212 = vst [vmem:[#allocation590_spill] sm:$0xff] %v8925_v41  ;;  %v16223_v41 = vld [vmem:[#allocation73_spill] sm:$0xff] }
 0x1de   : > { %16215 = vst [vmem:[#allocation71_spill] sm:$0xff] %v8930_v50  ;;  %16217 = vst [vmem:[#allocation591_spill] sm:$0xff] %v8935_v26  ;;  %v8940_v49 = vmul.f32 %v8775_v2, %v16219_v5  ;;  %v8945_v62 = vmul.f32 %v8775_v2, %v16221_v47  ;;  %v16224_v46 = vunpack.c.l.bf16 %v16223_v41  ;;  %v16226_v52 = vunpack.c.h.bf16 %v16223_v41  ;;  %v16228_v26 = vld [vmem:[#allocation74_spill] sm:$0xff] }
 0x1df   : > { %v16229_v50 = vunpack.c.l.bf16 %v16228_v26  ;;  %v16231_v58 = vunpack.c.h.bf16 %v16228_v26 }
 0x1e0   : > { %16220 = vst [vmem:[#allocation72_spill] sm:$0xff] %v8940_v49  ;;  %16222 = vst [vmem:[#allocation592_spill] sm:$0xff] %v8945_v62  ;;  %v8950_v16 = vmul.f32 %v8775_v2, %v16224_v46  ;;  %v8955_v18 = vmul.f32 %v8775_v2, %v16226_v52  ;;  %v16233_v62 = vld [vmem:[#allocation75_spill] sm:$0xff] }
 0x1e1   : > { %v8960_v5 = vmul.f32 %v8775_v2, %v16229_v50  ;;  %v8965_v47 = vmul.f32 %v8775_v2, %v16231_v58  ;;  %v16234_v49 = vunpack.c.l.bf16 %v16233_v62  ;;  %v16236_v41 = vunpack.c.h.bf16 %v16233_v62 }
 0x1e2   : > { %16225 = vst [vmem:[#allocation73_spill] sm:$0xff] %v8950_v16  ;;  %16227 = vst [vmem:[#allocation593_spill] sm:$0xff] %v8955_v18  ;;  %v16238_v18 = vld [vmem:[#allocation76_spill] sm:$0xff] }
 0x1e3   : > { %16230 = vst [vmem:[#allocation74_spill] sm:$0xff] %v8960_v5  ;;  %16232 = vst [vmem:[#allocation594_spill] sm:$0xff] %v8965_v47  ;;  %v8970_v46 = vmul.f32 %v8775_v2, %v16234_v49  ;;  %v8975_v52 = vmul.f32 %v8775_v2, %v16236_v41  ;;  %v16239_v16 = vunpack.c.l.bf16 %v16238_v18  ;;  %v16241_v26 = vunpack.c.h.bf16 %v16238_v18  ;;  %v16243_v47 = vld [vmem:[#allocation77_spill] sm:$0xff] }
 0x1e4   : > { %v16244_v5 = vunpack.c.l.bf16 %v16243_v47  ;;  %v16246_v62 = vunpack.c.h.bf16 %v16243_v47 }
 0x1e5   : > { %16235 = vst [vmem:[#allocation75_spill] sm:$0xff] %v8970_v46  ;;  %16237 = vst [vmem:[#allocation595_spill] sm:$0xff] %v8975_v52  ;;  %v8980_v50 = vmul.f32 %v8775_v2, %v16239_v16  ;;  %v8985_v58 = vmul.f32 %v8775_v2, %v16241_v26  ;;  %v16248_v52 = vld [vmem:[#allocation78_spill] sm:$0xff] }
 0x1e6   : > { %v8990_v49 = vmul.f32 %v8775_v2, %v16244_v5  ;;  %v8995_v41 = vmul.f32 %v8775_v2, %v16246_v62  ;;  %v16249_v46 = vunpack.c.l.bf16 %v16248_v52  ;;  %v16251_v18 = vunpack.c.h.bf16 %v16248_v52 }
 0x1e7   : > { %16240 = vst [vmem:[#allocation76_spill] sm:$0xff] %v8980_v50  ;;  %16242 = vst [vmem:[#allocation596_spill] sm:$0xff] %v8985_v58  ;;  %v16253_v58 = vld [vmem:[#allocation79_spill] sm:$0xff] }
 0x1e8   : > { %16245 = vst [vmem:[#allocation77_spill] sm:$0xff] %v8990_v49  ;;  %16247 = vst [vmem:[#allocation597_spill] sm:$0xff] %v8995_v41  ;;  %v9000_v16 = vmul.f32 %v8775_v2, %v16249_v46  ;;  %v9005_v26 = vmul.f32 %v8775_v2, %v16251_v18  ;;  %v16254_v50 = vunpack.c.l.bf16 %v16253_v58  ;;  %v16256_v47 = vunpack.c.h.bf16 %v16253_v58  ;;  %v16258_v41 = vld [vmem:[#allocation80_spill] sm:$0xff] }
 0x1e9   : > { %v16259_v49 = vunpack.c.l.bf16 %v16258_v41  ;;  %v16261_v52 = vunpack.c.h.bf16 %v16258_v41 }
 0x1ea   : > { %16250 = vst [vmem:[#allocation78_spill] sm:$0xff] %v9000_v16  ;;  %16252 = vst [vmem:[#allocation598_spill] sm:$0xff] %v9005_v26  ;;  %v9010_v5 = vmul.f32 %v8775_v2, %v16254_v50  ;;  %v9015_v62 = vmul.f32 %v8775_v2, %v16256_v47  ;;  %v16263_v26 = vld [vmem:[#allocation81_spill] sm:$0xff] }
 0x1eb   : > { %v9020_v46 = vmul.f32 %v8775_v2, %v16259_v49  ;;  %v9025_v18 = vmul.f32 %v8775_v2, %v16261_v52  ;;  %v16264_v16 = vunpack.c.l.bf16 %v16263_v26  ;;  %v16266_v58 = vunpack.c.h.bf16 %v16263_v26 }
 0x1ec   : > { %16255 = vst [vmem:[#allocation79_spill] sm:$0xff] %v9010_v5  ;;  %16257 = vst [vmem:[#allocation599_spill] sm:$0xff] %v9015_v62  ;;  %v16268_v62 = vld [vmem:[#allocation82_spill] sm:$0xff] }
 0x1ed   : > { %16260 = vst [vmem:[#allocation80_spill] sm:$0xff] %v9020_v46  ;;  %16262 = vst [vmem:[#allocation600_spill] sm:$0xff] %v9025_v18  ;;  %v9030_v50 = vmul.f32 %v8775_v2, %v16264_v16  ;;  %v9035_v47 = vmul.f32 %v8775_v2, %v16266_v58  ;;  %v16269_v5 = vunpack.c.l.bf16 %v16268_v62  ;;  %v16271_v41 = vunpack.c.h.bf16 %v16268_v62  ;;  %v16273_v18 = vld [vmem:[#allocation83_spill] sm:$0xff] }
 0x1ee   : > { %v16274_v46 = vunpack.c.l.bf16 %v16273_v18  ;;  %v16276_v26 = vunpack.c.h.bf16 %v16273_v18 }
 0x1ef   : > { %16265 = vst [vmem:[#allocation81_spill] sm:$0xff] %v9030_v50  ;;  %16267 = vst [vmem:[#allocation601_spill] sm:$0xff] %v9035_v47  ;;  %v9040_v49 = vmul.f32 %v8775_v2, %v16269_v5  ;;  %v9045_v52 = vmul.f32 %v8775_v2, %v16271_v41  ;;  %v16278_v47 = vld [vmem:[#allocation84_spill] sm:$0xff] }
 0x1f0   : > { %v9050_v16 = vmul.f32 %v8775_v2, %v16274_v46  ;;  %v9055_v58 = vmul.f32 %v8775_v2, %v16276_v26  ;;  %v16279_v50 = vunpack.c.l.bf16 %v16278_v47  ;;  %v16281_v62 = vunpack.c.h.bf16 %v16278_v47 }
 0x1f1   : > { %16270 = vst [vmem:[#allocation82_spill] sm:$0xff] %v9040_v49  ;;  %16272 = vst [vmem:[#allocation602_spill] sm:$0xff] %v9045_v52  ;;  %v16283_v52 = vld [vmem:[#allocation85_spill] sm:$0xff] }
 0x1f2   : > { %16275 = vst [vmem:[#allocation83_spill] sm:$0xff] %v9050_v16  ;;  %16277 = vst [vmem:[#allocation603_spill] sm:$0xff] %v9055_v58  ;;  %v9060_v5 = vmul.f32 %v8775_v2, %v16279_v50  ;;  %v9065_v41 = vmul.f32 %v8775_v2, %v16281_v62  ;;  %v16284_v49 = vunpack.c.l.bf16 %v16283_v52  ;;  %v16286_v18 = vunpack.c.h.bf16 %v16283_v52  ;;  %v16288_v58 = vld [vmem:[#allocation86_spill] sm:$0xff] }
 0x1f3   : > { %v16289_v16 = vunpack.c.l.bf16 %v16288_v58  ;;  %v16291_v47 = vunpack.c.h.bf16 %v16288_v58 }
 0x1f4   : > { %16280 = vst [vmem:[#allocation84_spill] sm:$0xff] %v9060_v5  ;;  %16282 = vst [vmem:[#allocation604_spill] sm:$0xff] %v9065_v41  ;;  %v9070_v46 = vmul.f32 %v8775_v2, %v16284_v49  ;;  %v9075_v26 = vmul.f32 %v8775_v2, %v16286_v18  ;;  %v16293_v41 = vld [vmem:[#allocation87_spill] sm:$0xff] }
 0x1f5   : > { %v9080_v50 = vmul.f32 %v8775_v2, %v16289_v16  ;;  %v9085_v62 = vmul.f32 %v8775_v2, %v16291_v47  ;;  %v16294_v5 = vunpack.c.l.bf16 %v16293_v41  ;;  %v16296_v52 = vunpack.c.h.bf16 %v16293_v41 }
 0x1f6   : > { %16285 = vst [vmem:[#allocation85_spill] sm:$0xff] %v9070_v46  ;;  %16287 = vst [vmem:[#allocation605_spill] sm:$0xff] %v9075_v26  ;;  %v9097_v26 = vpop.permute.xlu0 %1809  ;;  %v16298_v46 = vld [vmem:[#allocation88_spill] sm:$0xff] }
 0x1f7   : > { %16290 = vst [vmem:[#allocation86_spill] sm:$0xff] %v9080_v50  ;;  %16292 = vst [vmem:[#allocation606_spill] sm:$0xff] %v9085_v62  ;;  %v9090_v49 = vmul.f32 %v8775_v2, %v16294_v5  ;;  %v9095_v18 = vmul.f32 %v8775_v2, %v16296_v52  ;;  %v16299_v16 = vunpack.c.l.bf16 %v16298_v46  ;;  %v16301_v58 = vunpack.c.h.bf16 %v16298_v46  ;;  %v16303_v62 = vld [vmem:[#allocation89_spill] sm:$0xff] }
 0x1f8   : > { %v16304_v5 = vunpack.c.l.bf16 %v16303_v62  ;;  %v16306_v41 = vunpack.c.h.bf16 %v16303_v62 }
 0x1f9   : > { %16295 = vst [vmem:[#allocation87_spill] sm:$0xff] %v9090_v49  ;;  %16297 = vst [vmem:[#allocation607_spill] sm:$0xff] %v9095_v18  ;;  %v9102_v50 = vmul.f32 %v8775_v2, %v16299_v16  ;;  %v9107_v47 = vmul.f32 %v8775_v2, %v16301_v58  ;;  %v16308_v18 = vld [vmem:[#allocation90_spill] sm:$0xff] }
 0x1fa   : > { %v9112_v49 = vmul.f32 %v8775_v2, %v16304_v5  ;;  %v9117_v52 = vmul.f32 %v8775_v2, %v16306_v41  ;;  %v16309_v44 = vunpack.c.l.bf16 %v16308_v18  ;;  %v16311_v46 = vunpack.c.h.bf16 %v16308_v18 }
 0x1fb   : > { %16300 = vst [vmem:[#allocation88_spill] sm:$0xff] %v9102_v50  ;;  %16302 = vst [vmem:[#allocation608_spill] sm:$0xff] %v9107_v47  ;;  %v16313_v47 = vld [vmem:[#allocation91_spill] sm:$0xff] }
 0x1fc   : > { %16305 = vst [vmem:[#allocation89_spill] sm:$0xff] %v9112_v49  ;;  %16307 = vst [vmem:[#allocation609_spill] sm:$0xff] %v9117_v52  ;;  %v9122_v16 = vmul.f32 %v8775_v2, %v16309_v44  ;;  %v9127_v58 = vmul.f32 %v8775_v2, %v16311_v46  ;;  %v16314_v50 = vunpack.c.l.bf16 %v16313_v47  ;;  %v16316_v62 = vunpack.c.h.bf16 %v16313_v47  ;;  %v16318_v52 = vld [vmem:[#allocation92_spill] sm:$0xff] }
 0x1fd   : > { %v16319_v49 = vunpack.c.l.bf16 %v16318_v52  ;;  %v16321_v18 = vunpack.c.h.bf16 %v16318_v52 }
 0x1fe   : > { %16310 = vst [vmem:[#allocation90_spill] sm:$0xff] %v9122_v16  ;;  %16312 = vst [vmem:[#allocation610_spill] sm:$0xff] %v9127_v58  ;;  %v9132_v5 = vmul.f32 %v8775_v2, %v16314_v50  ;;  %v9137_v41 = vmul.f32 %v8775_v2, %v16316_v62  ;;  %v16323_v58 = vld [vmem:[#allocation93_spill] sm:$0xff] }
 0x1ff   : > { %v9142_v44 = vmul.f32 %v8775_v2, %v16319_v49  ;;  %v9147_v46 = vmul.f32 %v8775_v2, %v16321_v18  ;;  %v16324_v16 = vunpack.c.l.bf16 %v16323_v58  ;;  %v16326_v47 = vunpack.c.h.bf16 %v16323_v58 }
 0x200   : > { %16315 = vst [vmem:[#allocation91_spill] sm:$0xff] %v9132_v5  ;;  %16317 = vst [vmem:[#allocation611_spill] sm:$0xff] %v9137_v41  ;;  %v16328_v41 = vld [vmem:[#allocation94_spill] sm:$0xff] }
 0x201   : > { %16320 = vst [vmem:[#allocation92_spill] sm:$0xff] %v9142_v44  ;;  %16322 = vst [vmem:[#allocation612_spill] sm:$0xff] %v9147_v46  ;;  %v9152_v50 = vmul.f32 %v8775_v2, %v16324_v16  ;;  %v9157_v62 = vmul.f32 %v8775_v2, %v16326_v47  ;;  %v16329_v5 = vunpack.c.l.bf16 %v16328_v41  ;;  %v16330_v52 = vunpack.c.h.bf16 %v16328_v41  ;;  %v16331_v46 = vld [vmem:[#allocation95_spill] sm:$0xff]  ;;  %v16334_v47 = vld [vmem:[#allocation96_spill] sm:$0xff] }
 0x202   : > { %v16332_v44 = vunpack.c.l.bf16 %v16331_v46  ;;  %v16333_v58 = vunpack.c.h.bf16 %v16331_v46  ;;  %v16336_v41 = vunpack.c.h.bf16 %v16334_v47 }
 0x203   : > { %16325 = vst [vmem:[#allocation93_spill] sm:$0xff] %v9152_v50  ;;  %16327 = vst [vmem:[#allocation613_spill] sm:$0xff] %v9157_v62  ;;  %v9162_v49 = vmul.f32 %v9097_v26, %v16329_v5  ;;  %v9167_v18 = vmul.f32 %v9097_v26, %v16330_v52  ;;  %v16335_v62 = vunpack.c.l.bf16 %v16334_v47  ;;  %v16337_v50 = vld [vmem:[#allocation97_spill] sm:$0xff]  ;;  %v16343_v47 = vunpack.c.h.bf16 %v16340_v56 }
 0x204   : > { %v9172_v16 = vmul.f32 %v9097_v26, %v16332_v44  ;;  %v9177_v2 = vmul.f32 %v9097_v26, %v16333_v58  ;;  %v9187_v52 = vmul.f32 %v9097_v26, %v16336_v41  ;;  %v16338_v40 = vunpack.c.l.bf16 %v16337_v50 }
 0x205   : > { %v9182_v5 = vmul.f32 %v9097_v26, %v16335_v62  ;;  %v16339_v46 = vunpack.c.h.bf16 %v16337_v50  ;;  %v9202_v62 = vmul.f32 %v9097_v26, %v16341_v3  ;;  %v9207_v41 = vmul.f32 %v9097_v26, %v16343_v47 }
 0x206   : > { %v9192_v44 = vmul.f32 %v9097_v26, %v16338_v40  ;;  %v9212_v40 = vmul.f32 %v9097_v26, %v16346_v6  ;;  %v16348_v50 = vunpack.c.h.bf16 %v16345_v51  ;;  %v9222_v3 = vmul.f32 %v9097_v26, %v16351_v28 }
 0x207   : > { %v9197_v58 = vmul.f32 %v9097_v26, %v16339_v46  ;;  %16342 = vst [vmem:[#allocation94_spill] sm:$0xff] %v9202_v62  ;;  %16344 = vst [vmem:[#allocation95_spill] sm:$0xff] %v9207_v41  ;;  %v16353_v56 = vunpack.c.h.bf16 %v16350_v8  ;;  %v16355_v41 = vld [vmem:[#allocation101_spill] sm:$0xff] }
 0x208   : > { %16347 = vst [vmem:[#allocation96_spill] sm:$0xff] %v9212_v40  ;;  %v9217_v46 = vmul.f32 %v9097_v26, %v16348_v50  ;;  %16352 = vst [vmem:[#allocation98_spill] sm:$0xff] %v9222_v3  ;;  %v16356_v62 = vunpack.c.l.bf16 %v16355_v41  ;;  %v16358_v51 = vunpack.c.h.bf16 %v16355_v41 }
 0x209   : > { %v9227_v47 = vmul.f32 %v9097_v26, %v16353_v56 }
 0x20a   : > { %16349 = vst [vmem:[#allocation97_spill] sm:$0xff] %v9217_v46  ;;  %v9232_v6 = vmul.f32 %v9097_v26, %v16356_v62  ;;  %v9237_v50 = vmul.f32 %v9097_v26, %v16358_v51  ;;  %v16360_v46 = vld [vmem:[#allocation102_spill] sm:$0xff] }
 0x20b   : > { %16354 = vst [vmem:[#allocation99_spill] sm:$0xff] %v9227_v47  ;;  %v16361_v40 = vunpack.c.l.bf16 %v16360_v46  ;;  %v16363_v8 = vunpack.c.h.bf16 %v16360_v46  ;;  %v16365_v47 = vld [vmem:[#allocation103_spill] sm:$0xff] }
 0x20c   : > { %16357 = vst [vmem:[#allocation100_spill] sm:$0xff] %v9232_v6  ;;  %16359 = vst [vmem:[#allocation101_spill] sm:$0xff] %v9237_v50  ;;  %v16366_v3 = vunpack.c.l.bf16 %v16365_v47  ;;  %v16368_v41 = vunpack.c.h.bf16 %v16365_v47  ;;  %v16370_v50 = vld [vmem:[#allocation104_spill] sm:$0xff] }
 0x20d   : > { %v9242_v28 = vmul.f32 %v9097_v26, %v16361_v40  ;;  %v9247_v56 = vmul.f32 %v9097_v26, %v16363_v8  ;;  %v16371_v6 = vunpack.c.l.bf16 %v16370_v50  ;;  %v16373_v46 = vunpack.c.h.bf16 %v16370_v50 }
 0x20e   : > { %v9252_v62 = vmul.f32 %v9097_v26, %v16366_v3  ;;  %v9257_v51 = vmul.f32 %v9097_v26, %v16368_v41 }
 0x20f   : > { %16362 = vst [vmem:[#allocation102_spill] sm:$0xff] %v9242_v28  ;;  %16364 = vst [vmem:[#allocation614_spill] sm:$0xff] %v9247_v56  ;;  %v9262_v40 = vmul.f32 %v9097_v26, %v16371_v6  ;;  %v9267_v8 = vmul.f32 %v9097_v26, %v16373_v46  ;;  %v16375_v56 = vld [vmem:[#allocation105_spill] sm:$0xff] }
 0x210   : > { %16367 = vst [vmem:[#allocation103_spill] sm:$0xff] %v9252_v62  ;;  %16369 = vst [vmem:[#allocation615_spill] sm:$0xff] %v9257_v51  ;;  %v16376_v28 = vunpack.c.l.bf16 %v16375_v56  ;;  %v16378_v47 = vunpack.c.h.bf16 %v16375_v56  ;;  %v16380_v51 = vld [vmem:[#allocation106_spill] sm:$0xff] }
 0x211   : > { %16372 = vst [vmem:[#allocation104_spill] sm:$0xff] %v9262_v40  ;;  %16374 = vst [vmem:[#allocation616_spill] sm:$0xff] %v9267_v8  ;;  %v16381_v62 = vunpack.c.l.bf16 %v16380_v51  ;;  %v16383_v50 = vunpack.c.h.bf16 %v16380_v51  ;;  %v16385_v8 = vld [vmem:[#allocation107_spill] sm:$0xff] }
 0x212   : > { %v9272_v3 = vmul.f32 %v9097_v26, %v16376_v28  ;;  %v9277_v41 = vmul.f32 %v9097_v26, %v16378_v47  ;;  %v16386_v40 = vunpack.c.l.bf16 %v16385_v8  ;;  %v16388_v56 = vunpack.c.h.bf16 %v16385_v8 }
 0x213   : > { %v9282_v6 = vmul.f32 %v9097_v26, %v16381_v62  ;;  %v9287_v46 = vmul.f32 %v9097_v26, %v16383_v50 }
 0x214   : > { %16377 = vst [vmem:[#allocation105_spill] sm:$0xff] %v9272_v3  ;;  %16379 = vst [vmem:[#allocation617_spill] sm:$0xff] %v9277_v41  ;;  %v9292_v28 = vmul.f32 %v9097_v26, %v16386_v40  ;;  %v9297_v47 = vmul.f32 %v9097_v26, %v16388_v56  ;;  %v16390_v41 = vld [vmem:[#allocation108_spill] sm:$0xff] }
 0x215   : > { %16382 = vst [vmem:[#allocation106_spill] sm:$0xff] %v9282_v6  ;;  %16384 = vst [vmem:[#allocation618_spill] sm:$0xff] %v9287_v46  ;;  %v16391_v3 = vunpack.c.l.bf16 %v16390_v41  ;;  %v16393_v51 = vunpack.c.h.bf16 %v16390_v41  ;;  %v16395_v46 = vld [vmem:[#allocation109_spill] sm:$0xff] }
 0x216   : > { %16387 = vst [vmem:[#allocation107_spill] sm:$0xff] %v9292_v28  ;;  %16389 = vst [vmem:[#allocation619_spill] sm:$0xff] %v9297_v47  ;;  %v16396_v6 = vunpack.c.l.bf16 %v16395_v46  ;;  %v16398_v8 = vunpack.c.h.bf16 %v16395_v46  ;;  %v16400_v47 = vld [vmem:[#allocation110_spill] sm:$0xff] }
 0x217   : > { %v9302_v62 = vmul.f32 %v9097_v26, %v16391_v3  ;;  %v9307_v50 = vmul.f32 %v9097_v26, %v16393_v51  ;;  %v16401_v28 = vunpack.c.l.bf16 %v16400_v47  ;;  %v16403_v41 = vunpack.c.h.bf16 %v16400_v47 }
 0x218   : > { %v9312_v40 = vmul.f32 %v9097_v26, %v16396_v6  ;;  %v9317_v56 = vmul.f32 %v9097_v26, %v16398_v8 }
 0x219   : > { %16392 = vst [vmem:[#allocation108_spill] sm:$0xff] %v9302_v62  ;;  %16394 = vst [vmem:[#allocation620_spill] sm:$0xff] %v9307_v50  ;;  %v9322_v3 = vmul.f32 %v9097_v26, %v16401_v28  ;;  %v9327_v51 = vmul.f32 %v9097_v26, %v16403_v41  ;;  %v16405_v50 = vld [vmem:[#allocation111_spill] sm:$0xff] }
 0x21a   : > { %16397 = vst [vmem:[#allocation109_spill] sm:$0xff] %v9312_v40  ;;  %16399 = vst [vmem:[#allocation621_spill] sm:$0xff] %v9317_v56  ;;  %v16406_v62 = vunpack.c.l.bf16 %v16405_v50  ;;  %v16408_v46 = vunpack.c.h.bf16 %v16405_v50  ;;  %v16410_v56 = vld [vmem:[#allocation112_spill] sm:$0xff] }
 0x21b   : > { %16402 = vst [vmem:[#allocation110_spill] sm:$0xff] %v9322_v3  ;;  %16404 = vst [vmem:[#allocation622_spill] sm:$0xff] %v9327_v51  ;;  %v16411_v40 = vunpack.c.l.bf16 %v16410_v56  ;;  %v16413_v47 = vunpack.c.h.bf16 %v16410_v56  ;;  %v16415_v51 = vld [vmem:[#allocation113_spill] sm:$0xff] }
 0x21c   : > { %v9332_v6 = vmul.f32 %v9097_v26, %v16406_v62  ;;  %v9337_v8 = vmul.f32 %v9097_v26, %v16408_v46  ;;  %v16416_v3 = vunpack.c.l.bf16 %v16415_v51  ;;  %v16418_v50 = vunpack.c.h.bf16 %v16415_v51 }
 0x21d   : > { %v9342_v28 = vmul.f32 %v9097_v26, %v16411_v40  ;;  %v9347_v41 = vmul.f32 %v9097_v26, %v16413_v47 }
 0x21e   : > { %16407 = vst [vmem:[#allocation111_spill] sm:$0xff] %v9332_v6  ;;  %16409 = vst [vmem:[#allocation623_spill] sm:$0xff] %v9337_v8  ;;  %v9352_v62 = vmul.f32 %v9097_v26, %v16416_v3  ;;  %v9357_v46 = vmul.f32 %v9097_v26, %v16418_v50  ;;  %v16420_v8 = vld [vmem:[#allocation114_spill] sm:$0xff] }
 0x21f   : > { %16412 = vst [vmem:[#allocation112_spill] sm:$0xff] %v9342_v28  ;;  %16414 = vst [vmem:[#allocation624_spill] sm:$0xff] %v9347_v41  ;;  %v16421_v6 = vunpack.c.l.bf16 %v16420_v8  ;;  %v16423_v56 = vunpack.c.h.bf16 %v16420_v8  ;;  %v16425_v41 = vld [vmem:[#allocation115_spill] sm:$0xff] }
 0x220   : > { %16417 = vst [vmem:[#allocation113_spill] sm:$0xff] %v9352_v62  ;;  %16419 = vst [vmem:[#allocation625_spill] sm:$0xff] %v9357_v46  ;;  %v16426_v28 = vunpack.c.l.bf16 %v16425_v41  ;;  %v16428_v51 = vunpack.c.h.bf16 %v16425_v41  ;;  %v16430_v46 = vld [vmem:[#allocation116_spill] sm:$0xff] }
 0x221   : > { %v9362_v40 = vmul.f32 %v9097_v26, %v16421_v6  ;;  %v9367_v47 = vmul.f32 %v9097_v26, %v16423_v56  ;;  %v16431_v62 = vunpack.c.l.bf16 %v16430_v46  ;;  %v16433_v8 = vunpack.c.h.bf16 %v16430_v46 }
 0x222   : > { %v9372_v3 = vmul.f32 %v9097_v26, %v16426_v28  ;;  %v9377_v50 = vmul.f32 %v9097_v26, %v16428_v51 }
 0x223   : > { %16422 = vst [vmem:[#allocation114_spill] sm:$0xff] %v9362_v40  ;;  %16424 = vst [vmem:[#allocation626_spill] sm:$0xff] %v9367_v47  ;;  %v9382_v6 = vmul.f32 %v9097_v26, %v16431_v62  ;;  %v9387_v56 = vmul.f32 %v9097_v26, %v16433_v8  ;;  %v16435_v47 = vld [vmem:[#allocation117_spill] sm:$0xff] }
 0x224   : > { %16427 = vst [vmem:[#allocation115_spill] sm:$0xff] %v9372_v3  ;;  %16429 = vst [vmem:[#allocation627_spill] sm:$0xff] %v9377_v50  ;;  %v16436_v40 = vunpack.c.l.bf16 %v16435_v47  ;;  %v16438_v41 = vunpack.c.h.bf16 %v16435_v47  ;;  %v16440_v50 = vld [vmem:[#allocation118_spill] sm:$0xff] }
 0x225   : > { %16432 = vst [vmem:[#allocation116_spill] sm:$0xff] %v9382_v6  ;;  %16434 = vst [vmem:[#allocation628_spill] sm:$0xff] %v9387_v56  ;;  %v16441_v3 = vunpack.c.l.bf16 %v16440_v50  ;;  %v16443_v46 = vunpack.c.h.bf16 %v16440_v50  ;;  %v16445_v56 = vld [vmem:[#allocation119_spill] sm:$0xff] }
 0x226   : > { %v9392_v28 = vmul.f32 %v9097_v26, %v16436_v40  ;;  %v9397_v51 = vmul.f32 %v9097_v26, %v16438_v41  ;;  %v16446_v6 = vunpack.c.l.bf16 %v16445_v56  ;;  %v16448_v47 = vunpack.c.h.bf16 %v16445_v56 }
 0x227   : > { %v9402_v62 = vmul.f32 %v9097_v26, %v16441_v3  ;;  %v9407_v8 = vmul.f32 %v9097_v26, %v16443_v46 }
 0x228   : > { %16437 = vst [vmem:[#allocation117_spill] sm:$0xff] %v9392_v28  ;;  %16439 = vst [vmem:[#allocation629_spill] sm:$0xff] %v9397_v51  ;;  %v9412_v40 = vmul.f32 %v9097_v26, %v16446_v6  ;;  %v9417_v41 = vmul.f32 %v9097_v26, %v16448_v47  ;;  %v9419_v51 = vpop.permute.xlu1 %1814  ;;  %v16450_v28 = vld [vmem:[#allocation120_spill] sm:$0xff] }
 0x229   : > { %16442 = vst [vmem:[#allocation118_spill] sm:$0xff] %v9402_v62  ;;  %16444 = vst [vmem:[#allocation630_spill] sm:$0xff] %v9407_v8  ;;  %v16451_v3 = vunpack.c.l.bf16 %v16450_v28  ;;  %v16453_v50 = vunpack.c.h.bf16 %v16450_v28  ;;  %v16455_v8 = vld [vmem:[#allocation121_spill] sm:$0xff] }
 0x22a   : > { %16447 = vst [vmem:[#allocation119_spill] sm:$0xff] %v9412_v40  ;;  %16449 = vst [vmem:[#allocation631_spill] sm:$0xff] %v9417_v41  ;;  %v16456_v6 = vunpack.c.l.bf16 %v16455_v8  ;;  %v16458_v56 = vunpack.c.h.bf16 %v16455_v8  ;;  %v16460_v41 = vld [vmem:[#allocation122_spill] sm:$0xff] }
 0x22b   : > { %v9424_v62 = vmul.f32 %v9097_v26, %v16451_v3  ;;  %v9429_v46 = vmul.f32 %v9097_v26, %v16453_v50  ;;  %v16461_v61 = vunpack.c.l.bf16 %v16460_v41  ;;  %v16463_v28 = vunpack.c.h.bf16 %v16460_v41 }
 0x22c   : > { %v9434_v40 = vmul.f32 %v9097_v26, %v16456_v6  ;;  %v9439_v47 = vmul.f32 %v9097_v26, %v16458_v56 }
 0x22d   : > { %16452 = vst [vmem:[#allocation120_spill] sm:$0xff] %v9424_v62  ;;  %16454 = vst [vmem:[#allocation632_spill] sm:$0xff] %v9429_v46  ;;  %v9444_v3 = vmul.f32 %v9097_v26, %v16461_v61  ;;  %v9449_v50 = vmul.f32 %v9097_v26, %v16463_v28  ;;  %v16465_v46 = vld [vmem:[#allocation123_spill] sm:$0xff] }
 0x22e   : > { %16457 = vst [vmem:[#allocation121_spill] sm:$0xff] %v9434_v40  ;;  %16459 = vst [vmem:[#allocation633_spill] sm:$0xff] %v9439_v47  ;;  %v16466_v62 = vunpack.c.l.bf16 %v16465_v46  ;;  %v16468_v8 = vunpack.c.h.bf16 %v16465_v46  ;;  %v16470_v47 = vld [vmem:[#allocation124_spill] sm:$0xff] }
 0x22f   : > { %16462 = vst [vmem:[#allocation122_spill] sm:$0xff] %v9444_v3  ;;  %16464 = vst [vmem:[#allocation634_spill] sm:$0xff] %v9449_v50  ;;  %v16471_v40 = vunpack.c.l.bf16 %v16470_v47  ;;  %v16473_v41 = vunpack.c.h.bf16 %v16470_v47  ;;  %v16475_v50 = vld [vmem:[#allocation125_spill] sm:$0xff] }
 0x230   : > { %v9454_v6 = vmul.f32 %v9097_v26, %v16466_v62  ;;  %v9459_v56 = vmul.f32 %v9097_v26, %v16468_v8  ;;  %v16476_v3 = vunpack.c.l.bf16 %v16475_v50  ;;  %v16478_v46 = vunpack.c.h.bf16 %v16475_v50 }
 0x231   : > { %v9464_v61 = vmul.f32 %v9097_v26, %v16471_v40  ;;  %v9469_v28 = vmul.f32 %v9097_v26, %v16473_v41 }
 0x232   : > { %16467 = vst [vmem:[#allocation123_spill] sm:$0xff] %v9454_v6  ;;  %16469 = vst [vmem:[#allocation635_spill] sm:$0xff] %v9459_v56  ;;  %v9474_v62 = vmul.f32 %v9097_v26, %v16476_v3  ;;  %v9479_v8 = vmul.f32 %v9097_v26, %v16478_v46  ;;  %v16480_v56 = vld [vmem:[#allocation126_spill] sm:$0xff]  ;;  %v16486_v46 = vld [vmem:[#allocation128_spill] sm:$0xff] }
 0x233   : > { %16472 = vst [vmem:[#allocation124_spill] sm:$0xff] %v9464_v61  ;;  %16474 = vst [vmem:[#allocation636_spill] sm:$0xff] %v9469_v28  ;;  %v16481_v6 = vunpack.c.l.bf16 %v16480_v56  ;;  %v16482_v47 = vunpack.c.h.bf16 %v16480_v56  ;;  %v16483_v28 = vld [vmem:[#allocation127_spill] sm:$0xff]  ;;  %v16488_v56 = vunpack.c.h.bf16 %v16486_v46 }
 0x234   : > { %16477 = vst [vmem:[#allocation125_spill] sm:$0xff] %v9474_v62  ;;  %16479 = vst [vmem:[#allocation637_spill] sm:$0xff] %v9479_v8  ;;  %v16484_v61 = vunpack.c.l.bf16 %v16483_v28  ;;  %v16485_v50 = vunpack.c.h.bf16 %v16483_v28  ;;  %v16487_v8 = vunpack.c.l.bf16 %v16486_v46  ;;  %v16490_v62 = vld [vmem:[#allocation129_spill] sm:$0xff]  ;;  %v16498_v46 = vunpack.c.h.bf16 %v16495_v35 }
 0x235   : > { %v9484_v40 = vmul.f32 %v9419_v51, %v16481_v6  ;;  %v9489_v41 = vmul.f32 %v9419_v51, %v16482_v47  ;;  %v9509_v47 = vmul.f32 %v9419_v51, %v16488_v56  ;;  %v16491_v17 = vunpack.c.l.bf16 %v16490_v62 }
 0x236   : > { %v9494_v3 = vmul.f32 %v9419_v51, %v16484_v61  ;;  %v9499_v26 = vmul.f32 %v9419_v51, %v16485_v50  ;;  %v9504_v6 = vmul.f32 %v9419_v51, %v16487_v8  ;;  %v16493_v28 = vunpack.c.h.bf16 %v16490_v62 }
 0x237   : > { %16489 = vst [vmem:[#allocation126_spill] sm:$0xff] %v9509_v47  ;;  %v9514_v61 = vmul.f32 %v9419_v51, %v16491_v17  ;;  %v9524_v8 = vmul.f32 %v9419_v51, %v16496_v1  ;;  %v9529_v56 = vmul.f32 %v9419_v51, %v16498_v46  ;;  %v9534_v17 = vmul.f32 %v9419_v51, %v16501_v22 }
 0x238   : > { %v9519_v50 = vmul.f32 %v9419_v51, %v16493_v28  ;;  %v16503_v62 = vunpack.c.h.bf16 %v16500_v10 }
 0x239   : > { %16492 = vst [vmem:[#allocation127_spill] sm:$0xff] %v9514_v61  ;;  %16497 = vst [vmem:[#allocation129_spill] sm:$0xff] %v9524_v8 }
 0x23a   : > { %16494 = vst [vmem:[#allocation128_spill] sm:$0xff] %v9519_v50  ;;  %16499 = vst [vmem:[#allocation130_spill] sm:$0xff] %v9529_v56  ;;  %v9539_v28 = vmul.f32 %v9419_v51, %v16503_v62  ;;  %v16505_v50 = vld [vmem:[#allocation132_spill] sm:$0xff]  ;;  %v16510_v56 = vld [vmem:[#allocation133_spill] sm:$0xff] }
 0x23b   : > { %16502 = vst [vmem:[#allocation131_spill] sm:$0xff] %v9534_v17  ;;  %v16506_v61 = vunpack.c.l.bf16 %v16505_v50  ;;  %v16508_v35 = vunpack.c.h.bf16 %v16505_v50  ;;  %v16511_v8 = vunpack.c.l.bf16 %v16510_v56  ;;  %v16513_v10 = vunpack.c.h.bf16 %v16510_v56 }
 0x23c   : > { %16504 = vst [vmem:[#allocation638_spill] sm:$0xff] %v9539_v28  ;;  %v16515_v28 = vld [vmem:[#allocation134_spill] sm:$0xff] }
 0x23d   : > { %v9544_v1 = vmul.f32 %v9419_v51, %v16506_v61  ;;  %v9549_v46 = vmul.f32 %v9419_v51, %v16508_v35  ;;  %v9554_v22 = vmul.f32 %v9419_v51, %v16511_v8  ;;  %v9559_v62 = vmul.f32 %v9419_v51, %v16513_v10 }
 0x23e   : > { %v16516_v17 = vunpack.c.l.bf16 %v16515_v28  ;;  %v16518_v50 = vunpack.c.h.bf16 %v16515_v28 }
 0x23f   : > { %16507 = vst [vmem:[#allocation132_spill] sm:$0xff] %v9544_v1  ;;  %16509 = vst [vmem:[#allocation639_spill] sm:$0xff] %v9549_v46  ;;  %v16520_v46 = vld [vmem:[#allocation135_spill] sm:$0xff] }
 0x240   : > { %16512 = vst [vmem:[#allocation133_spill] sm:$0xff] %v9554_v22  ;;  %16514 = vst [vmem:[#allocation640_spill] sm:$0xff] %v9559_v62  ;;  %v9564_v61 = vmul.f32 %v9419_v51, %v16516_v17  ;;  %v9569_v35 = vmul.f32 %v9419_v51, %v16518_v50  ;;  %v16521_v1 = vunpack.c.l.bf16 %v16520_v46  ;;  %v16523_v56 = vunpack.c.h.bf16 %v16520_v46  ;;  %v16525_v62 = vld [vmem:[#allocation136_spill] sm:$0xff] }
 0x241   : > { %v16526_v22 = vunpack.c.l.bf16 %v16525_v62  ;;  %v16528_v28 = vunpack.c.h.bf16 %v16525_v62 }
 0x242   : > { %16517 = vst [vmem:[#allocation134_spill] sm:$0xff] %v9564_v61  ;;  %16519 = vst [vmem:[#allocation641_spill] sm:$0xff] %v9569_v35  ;;  %v9574_v8 = vmul.f32 %v9419_v51, %v16521_v1  ;;  %v9579_v10 = vmul.f32 %v9419_v51, %v16523_v56  ;;  %v16530_v35 = vld [vmem:[#allocation137_spill] sm:$0xff] }
 0x243   : > { %v9584_v17 = vmul.f32 %v9419_v51, %v16526_v22  ;;  %v9589_v50 = vmul.f32 %v9419_v51, %v16528_v28  ;;  %v16531_v61 = vunpack.c.l.bf16 %v16530_v35  ;;  %v16533_v46 = vunpack.c.h.bf16 %v16530_v35 }
 0x244   : > { %16522 = vst [vmem:[#allocation135_spill] sm:$0xff] %v9574_v8  ;;  %16524 = vst [vmem:[#allocation642_spill] sm:$0xff] %v9579_v10  ;;  %v16535_v10 = vld [vmem:[#allocation138_spill] sm:$0xff] }
 0x245   : > { %16527 = vst [vmem:[#allocation136_spill] sm:$0xff] %v9584_v17  ;;  %16529 = vst [vmem:[#allocation643_spill] sm:$0xff] %v9589_v50  ;;  %v9594_v1 = vmul.f32 %v9419_v51, %v16531_v61  ;;  %v9599_v56 = vmul.f32 %v9419_v51, %v16533_v46  ;;  %v16536_v8 = vunpack.c.l.bf16 %v16535_v10  ;;  %v16538_v62 = vunpack.c.h.bf16 %v16535_v10  ;;  %v16540_v50 = vld [vmem:[#allocation139_spill] sm:$0xff] }
 0x246   : > { %v16541_v17 = vunpack.c.l.bf16 %v16540_v50  ;;  %v16543_v35 = vunpack.c.h.bf16 %v16540_v50 }
 0x247   : > { %16532 = vst [vmem:[#allocation137_spill] sm:$0xff] %v9594_v1  ;;  %16534 = vst [vmem:[#allocation644_spill] sm:$0xff] %v9599_v56  ;;  %v9604_v22 = vmul.f32 %v9419_v51, %v16536_v8  ;;  %v9609_v28 = vmul.f32 %v9419_v51, %v16538_v62  ;;  %v16545_v56 = vld [vmem:[#allocation140_spill] sm:$0xff] }
 0x248   : > { %v9614_v61 = vmul.f32 %v9419_v51, %v16541_v17  ;;  %v9619_v46 = vmul.f32 %v9419_v51, %v16543_v35  ;;  %v16546_v1 = vunpack.c.l.bf16 %v16545_v56  ;;  %v16548_v10 = vunpack.c.h.bf16 %v16545_v56 }
 0x249   : > { %16537 = vst [vmem:[#allocation138_spill] sm:$0xff] %v9604_v22  ;;  %16539 = vst [vmem:[#allocation645_spill] sm:$0xff] %v9609_v28  ;;  %v16550_v28 = vld [vmem:[#allocation141_spill] sm:$0xff] }
 0x24a   : > { %16542 = vst [vmem:[#allocation139_spill] sm:$0xff] %v9614_v61  ;;  %16544 = vst [vmem:[#allocation646_spill] sm:$0xff] %v9619_v46  ;;  %v9624_v8 = vmul.f32 %v9419_v51, %v16546_v1  ;;  %v9629_v62 = vmul.f32 %v9419_v51, %v16548_v10  ;;  %v16551_v22 = vunpack.c.l.bf16 %v16550_v28  ;;  %v16553_v50 = vunpack.c.h.bf16 %v16550_v28  ;;  %v16555_v46 = vld [vmem:[#allocation142_spill] sm:$0xff] }
 0x24b   : > { %v16556_v61 = vunpack.c.l.bf16 %v16555_v46  ;;  %v16558_v56 = vunpack.c.h.bf16 %v16555_v46 }
 0x24c   : > { %16547 = vst [vmem:[#allocation140_spill] sm:$0xff] %v9624_v8  ;;  %16549 = vst [vmem:[#allocation647_spill] sm:$0xff] %v9629_v62  ;;  %v9634_v17 = vmul.f32 %v9419_v51, %v16551_v22  ;;  %v9639_v35 = vmul.f32 %v9419_v51, %v16553_v50  ;;  %v16560_v62 = vld [vmem:[#allocation143_spill] sm:$0xff] }
 0x24d   : > { %v9644_v1 = vmul.f32 %v9419_v51, %v16556_v61  ;;  %v9649_v10 = vmul.f32 %v9419_v51, %v16558_v56  ;;  %v16561_v8 = vunpack.c.l.bf16 %v16560_v62  ;;  %v16563_v28 = vunpack.c.h.bf16 %v16560_v62 }
 0x24e   : > { %16552 = vst [vmem:[#allocation141_spill] sm:$0xff] %v9634_v17  ;;  %16554 = vst [vmem:[#allocation648_spill] sm:$0xff] %v9639_v35  ;;  %v16565_v35 = vld [vmem:[#allocation144_spill] sm:$0xff] }
 0x24f   : > { %16557 = vst [vmem:[#allocation142_spill] sm:$0xff] %v9644_v1  ;;  %16559 = vst [vmem:[#allocation649_spill] sm:$0xff] %v9649_v10  ;;  %v9654_v22 = vmul.f32 %v9419_v51, %v16561_v8  ;;  %v9659_v50 = vmul.f32 %v9419_v51, %v16563_v28  ;;  %v16566_v17 = vunpack.c.l.bf16 %v16565_v35  ;;  %v16568_v46 = vunpack.c.h.bf16 %v16565_v35  ;;  %v16570_v10 = vld [vmem:[#allocation145_spill] sm:$0xff] }
 0x250   : > { %v16571_v1 = vunpack.c.l.bf16 %v16570_v10  ;;  %v16573_v62 = vunpack.c.h.bf16 %v16570_v10 }
 0x251   : > { %16562 = vst [vmem:[#allocation143_spill] sm:$0xff] %v9654_v22  ;;  %16564 = vst [vmem:[#allocation650_spill] sm:$0xff] %v9659_v50  ;;  %v9664_v61 = vmul.f32 %v9419_v51, %v16566_v17  ;;  %v9669_v56 = vmul.f32 %v9419_v51, %v16568_v46  ;;  %v16575_v50 = vld [vmem:[#allocation146_spill] sm:$0xff] }
 0x252   : > { %v9674_v8 = vmul.f32 %v9419_v51, %v16571_v1  ;;  %v9679_v28 = vmul.f32 %v9419_v51, %v16573_v62  ;;  %v16576_v22 = vunpack.c.l.bf16 %v16575_v50  ;;  %v16578_v35 = vunpack.c.h.bf16 %v16575_v50 }
 0x253   : > { %16567 = vst [vmem:[#allocation144_spill] sm:$0xff] %v9664_v61  ;;  %16569 = vst [vmem:[#allocation651_spill] sm:$0xff] %v9669_v56  ;;  %v16580_v56 = vld [vmem:[#allocation147_spill] sm:$0xff] }
 0x254   : > { %16572 = vst [vmem:[#allocation145_spill] sm:$0xff] %v9674_v8  ;;  %16574 = vst [vmem:[#allocation652_spill] sm:$0xff] %v9679_v28  ;;  %v9684_v17 = vmul.f32 %v9419_v51, %v16576_v22  ;;  %v9689_v46 = vmul.f32 %v9419_v51, %v16578_v35  ;;  %v16581_v61 = vunpack.c.l.bf16 %v16580_v56  ;;  %v16583_v10 = vunpack.c.h.bf16 %v16580_v56  ;;  %v16585_v28 = vld [vmem:[#allocation148_spill] sm:$0xff] }
 0x255   : > { %v16586_v8 = vunpack.c.l.bf16 %v16585_v28  ;;  %v16588_v50 = vunpack.c.h.bf16 %v16585_v28 }
 0x256   : > { %16577 = vst [vmem:[#allocation146_spill] sm:$0xff] %v9684_v17  ;;  %16579 = vst [vmem:[#allocation653_spill] sm:$0xff] %v9689_v46  ;;  %v9694_v1 = vmul.f32 %v9419_v51, %v16581_v61  ;;  %v9699_v62 = vmul.f32 %v9419_v51, %v16583_v10  ;;  %v16590_v46 = vld [vmem:[#allocation149_spill] sm:$0xff] }
 0x257   : > { %v9704_v22 = vmul.f32 %v9419_v51, %v16586_v8  ;;  %v9709_v35 = vmul.f32 %v9419_v51, %v16588_v50  ;;  %v16591_v17 = vunpack.c.l.bf16 %v16590_v46  ;;  %v16593_v56 = vunpack.c.h.bf16 %v16590_v46 }
 0x258   : > { %16582 = vst [vmem:[#allocation147_spill] sm:$0xff] %v9694_v1  ;;  %16584 = vst [vmem:[#allocation654_spill] sm:$0xff] %v9699_v62  ;;  %v16595_v62 = vld [vmem:[#allocation150_spill] sm:$0xff] }
 0x259   : > { %16587 = vst [vmem:[#allocation148_spill] sm:$0xff] %v9704_v22  ;;  %16589 = vst [vmem:[#allocation655_spill] sm:$0xff] %v9709_v35  ;;  %v9714_v61 = vmul.f32 %v9419_v51, %v16591_v17  ;;  %v9719_v10 = vmul.f32 %v9419_v51, %v16593_v56  ;;  %v16596_v1 = vunpack.c.l.bf16 %v16595_v62  ;;  %v16598_v28 = vunpack.c.h.bf16 %v16595_v62  ;;  %v16600_v35 = vld [vmem:[#allocation151_spill] sm:$0xff] }
 0x25a   : > { %v16601_v22 = vunpack.c.l.bf16 %v16600_v35  ;;  %v16603_v46 = vunpack.c.h.bf16 %v16600_v35 }
 0x25b   : > { %16592 = vst [vmem:[#allocation149_spill] sm:$0xff] %v9714_v61  ;;  %16594 = vst [vmem:[#allocation656_spill] sm:$0xff] %v9719_v10  ;;  %v9724_v8 = vmul.f32 %v9419_v51, %v16596_v1  ;;  %v9729_v50 = vmul.f32 %v9419_v51, %v16598_v28  ;;  %v9741_v10 = vpop.permute.xlu0 %1819  ;;  %v16605_v61 = vld [vmem:[#allocation152_spill] sm:$0xff] }
 0x25c   : > { %v9734_v17 = vmul.f32 %v9419_v51, %v16601_v22  ;;  %v9739_v56 = vmul.f32 %v9419_v51, %v16603_v46  ;;  %v16606_v1 = vunpack.c.l.bf16 %v16605_v61  ;;  %v16608_v62 = vunpack.c.h.bf16 %v16605_v61 }
 0x25d   : > { %16597 = vst [vmem:[#allocation150_spill] sm:$0xff] %v9724_v8  ;;  %16599 = vst [vmem:[#allocation657_spill] sm:$0xff] %v9729_v50  ;;  %v16610_v50 = vld [vmem:[#allocation153_spill] sm:$0xff] }
 0x25e   : > { %16602 = vst [vmem:[#allocation151_spill] sm:$0xff] %v9734_v17  ;;  %16604 = vst [vmem:[#allocation658_spill] sm:$0xff] %v9739_v56  ;;  %v9746_v8 = vmul.f32 %v9419_v51, %v16606_v1  ;;  %v9751_v28 = vmul.f32 %v9419_v51, %v16608_v62  ;;  %v16611_v22 = vunpack.c.l.bf16 %v16610_v50  ;;  %v16613_v35 = vunpack.c.h.bf16 %v16610_v50  ;;  %v16615_v56 = vld [vmem:[#allocation154_spill] sm:$0xff] }
 0x25f   : > { %v16616_v47 = vunpack.c.l.bf16 %v16615_v56  ;;  %v16618_v61 = vunpack.c.h.bf16 %v16615_v56 }
 0x260   : > { %16607 = vst [vmem:[#allocation152_spill] sm:$0xff] %v9746_v8  ;;  %16609 = vst [vmem:[#allocation659_spill] sm:$0xff] %v9751_v28  ;;  %v9756_v17 = vmul.f32 %v9419_v51, %v16611_v22  ;;  %v9761_v46 = vmul.f32 %v9419_v51, %v16613_v35  ;;  %v16620_v28 = vld [vmem:[#allocation155_spill] sm:$0xff] }
 0x261   : > { %v9766_v1 = vmul.f32 %v9419_v51, %v16616_v47  ;;  %v9771_v62 = vmul.f32 %v9419_v51, %v16618_v61  ;;  %v16621_v8 = vunpack.c.l.bf16 %v16620_v28  ;;  %v16623_v50 = vunpack.c.h.bf16 %v16620_v28 }
 0x262   : > { %16612 = vst [vmem:[#allocation153_spill] sm:$0xff] %v9756_v17  ;;  %16614 = vst [vmem:[#allocation660_spill] sm:$0xff] %v9761_v46  ;;  %v16625_v46 = vld [vmem:[#allocation156_spill] sm:$0xff] }
 0x263   : > { %16617 = vst [vmem:[#allocation154_spill] sm:$0xff] %v9766_v1  ;;  %16619 = vst [vmem:[#allocation661_spill] sm:$0xff] %v9771_v62  ;;  %v9776_v22 = vmul.f32 %v9419_v51, %v16621_v8  ;;  %v9781_v35 = vmul.f32 %v9419_v51, %v16623_v50  ;;  %v16626_v17 = vunpack.c.l.bf16 %v16625_v46  ;;  %v16628_v56 = vunpack.c.h.bf16 %v16625_v46  ;;  %v16630_v62 = vld [vmem:[#allocation157_spill] sm:$0xff] }
 0x264   : > { %v16631_v1 = vunpack.c.l.bf16 %v16630_v62  ;;  %v16633_v28 = vunpack.c.h.bf16 %v16630_v62 }
 0x265   : > { %16622 = vst [vmem:[#allocation155_spill] sm:$0xff] %v9776_v22  ;;  %16624 = vst [vmem:[#allocation662_spill] sm:$0xff] %v9781_v35  ;;  %v9786_v47 = vmul.f32 %v9419_v51, %v16626_v17  ;;  %v9791_v61 = vmul.f32 %v9419_v51, %v16628_v56  ;;  %v16635_v35 = vld [vmem:[#allocation158_spill] sm:$0xff] }
 0x266   : > { %v9796_v8 = vmul.f32 %v9419_v51, %v16631_v1  ;;  %v9801_v50 = vmul.f32 %v9419_v51, %v16633_v28  ;;  %v16636_v22 = vunpack.c.l.bf16 %v16635_v35  ;;  %v16638_v46 = vunpack.c.h.bf16 %v16635_v35  ;;  %v16645_v28 = vld [vmem:[#allocation160_spill] sm:$0xff] }
 0x267   : > { %16627 = vst [vmem:[#allocation156_spill] sm:$0xff] %v9786_v47  ;;  %16629 = vst [vmem:[#allocation663_spill] sm:$0xff] %v9791_v61  ;;  %v16640_v61 = vld [vmem:[#allocation159_spill] sm:$0xff]  ;;  %v16648_v35 = vunpack.c.h.bf16 %v16645_v28 }
 0x268   : > { %16632 = vst [vmem:[#allocation157_spill] sm:$0xff] %v9796_v8  ;;  %16634 = vst [vmem:[#allocation664_spill] sm:$0xff] %v9801_v50  ;;  %v9806_v17 = vmul.f32 %v9741_v10, %v16636_v22  ;;  %v9811_v56 = vmul.f32 %v9741_v10, %v16638_v46  ;;  %v16641_v47 = vunpack.c.l.bf16 %v16640_v61  ;;  %v16643_v62 = vunpack.c.h.bf16 %v16640_v61  ;;  %v16650_v8 = vld [vmem:[#allocation161_spill] sm:$0xff] }
 0x269   : > { %v16646_v50 = vunpack.c.l.bf16 %v16645_v28  ;;  %v9831_v46 = vmul.f32 %v9741_v10, %v16648_v35  ;;  %v16653_v61 = vunpack.c.h.bf16 %v16650_v8 }
 0x26a   : > { %16637 = vst [vmem:[#allocation158_spill] sm:$0xff] %v9806_v17  ;;  %16639 = vst [vmem:[#allocation665_spill] sm:$0xff] %v9811_v56  ;;  %v9816_v1 = vmul.f32 %v9741_v10, %v16641_v47  ;;  %v9821_v51 = vmul.f32 %v9741_v10, %v16643_v62  ;;  %v16651_v56 = vunpack.c.l.bf16 %v16650_v8 }
 0x26b   : > { %v9826_v22 = vmul.f32 %v9741_v10, %v16646_v50  ;;  %16649 = vst [vmem:[#allocation667_spill] sm:$0xff] %v9831_v46  ;;  %v9841_v62 = vmul.f32 %v9741_v10, %v16653_v61  ;;  %v16660_v46 = vld [vmem:[#allocation163_spill] sm:$0xff] }
 0x26c   : > { %16642 = vst [vmem:[#allocation159_spill] sm:$0xff] %v9816_v1  ;;  %16644 = vst [vmem:[#allocation666_spill] sm:$0xff] %v9821_v51  ;;  %v9836_v47 = vmul.f32 %v9741_v10, %v16651_v56  ;;  %v16655_v51 = vld [vmem:[#allocation162_spill] sm:$0xff]  ;;  %v16663_v8 = vunpack.c.h.bf16 %v16660_v46 }
 0x26d   : > { %16647 = vst [vmem:[#allocation160_spill] sm:$0xff] %v9826_v22  ;;  %16654 = vst [vmem:[#allocation668_spill] sm:$0xff] %v9841_v62  ;;  %v16656_v1 = vunpack.c.l.bf16 %v16655_v51  ;;  %v16658_v28 = vunpack.c.h.bf16 %v16655_v51  ;;  %v16661_v22 = vunpack.c.l.bf16 %v16660_v46  ;;  %v16665_v62 = vld [vmem:[#allocation164_spill] sm:$0xff] }
 0x26e   : > { %16652 = vst [vmem:[#allocation161_spill] sm:$0xff] %v9836_v47  ;;  %v9861_v61 = vmul.f32 %v9741_v10, %v16663_v8  ;;  %v16666_v47 = vunpack.c.l.bf16 %v16665_v62  ;;  %v16668_v51 = vunpack.c.h.bf16 %v16665_v62 }
 0x26f   : > { %v9846_v50 = vmul.f32 %v9741_v10, %v16656_v1  ;;  %v9851_v35 = vmul.f32 %v9741_v10, %v16658_v28  ;;  %v9856_v56 = vmul.f32 %v9741_v10, %v16661_v22 }
 0x270   : > { %16664 = vst [vmem:[#allocation670_spill] sm:$0xff] %v9861_v61  ;;  %v9866_v1 = vmul.f32 %v9741_v10, %v16666_v47  ;;  %v9871_v28 = vmul.f32 %v9741_v10, %v16668_v51  ;;  %v16675_v61 = vld [vmem:[#allocation166_spill] sm:$0xff] }
 0x271   : > { %16657 = vst [vmem:[#allocation162_spill] sm:$0xff] %v9846_v50  ;;  %16659 = vst [vmem:[#allocation669_spill] sm:$0xff] %v9851_v35  ;;  %v16670_v35 = vld [vmem:[#allocation165_spill] sm:$0xff]  ;;  %v16678_v62 = vunpack.c.h.bf16 %v16675_v61 }
 0x272   : > { %16662 = vst [vmem:[#allocation163_spill] sm:$0xff] %v9856_v56  ;;  %16667 = vst [vmem:[#allocation164_spill] sm:$0xff] %v9866_v1  ;;  %v16671_v50 = vunpack.c.l.bf16 %v16670_v35  ;;  %v16673_v46 = vunpack.c.h.bf16 %v16670_v35  ;;  %v16676_v56 = vunpack.c.l.bf16 %v16675_v61 }
 0x273   : > { %16669 = vst [vmem:[#allocation671_spill] sm:$0xff] %v9871_v28  ;;  %v9891_v51 = vmul.f32 %v9741_v10, %v16678_v62  ;;  %v16680_v28 = vld [vmem:[#allocation167_spill] sm:$0xff] }
 0x274   : > { %v9876_v22 = vmul.f32 %v9741_v10, %v16671_v50  ;;  %v9881_v8 = vmul.f32 %v9741_v10, %v16673_v46  ;;  %v9886_v47 = vmul.f32 %v9741_v10, %v16676_v56  ;;  %v16681_v1 = vunpack.c.l.bf16 %v16680_v28 }
 0x275   : > { %16679 = vst [vmem:[#allocation673_spill] sm:$0xff] %v9891_v51  ;;  %v16683_v35 = vunpack.c.h.bf16 %v16680_v28  ;;  %v16690_v51 = vld [vmem:[#allocation169_spill] sm:$0xff] }
 0x276   : > { %16672 = vst [vmem:[#allocation165_spill] sm:$0xff] %v9876_v22  ;;  %16674 = vst [vmem:[#allocation672_spill] sm:$0xff] %v9881_v8  ;;  %v9896_v50 = vmul.f32 %v9741_v10, %v16681_v1  ;;  %v16685_v8 = vld [vmem:[#allocation168_spill] sm:$0xff]  ;;  %v16693_v28 = vunpack.c.h.bf16 %v16690_v51 }
 0x277   : > { %16677 = vst [vmem:[#allocation166_spill] sm:$0xff] %v9886_v47  ;;  %v9901_v46 = vmul.f32 %v9741_v10, %v16683_v35  ;;  %v16686_v22 = vunpack.c.l.bf16 %v16685_v8  ;;  %v16688_v61 = vunpack.c.h.bf16 %v16685_v8  ;;  %v16691_v47 = vunpack.c.l.bf16 %v16690_v51 }
 0x278   : > { %16682 = vst [vmem:[#allocation167_spill] sm:$0xff] %v9896_v50  ;;  %v9921_v35 = vmul.f32 %v9741_v10, %v16693_v28 }
 0x279   : > { %16684 = vst [vmem:[#allocation674_spill] sm:$0xff] %v9901_v46  ;;  %v9906_v56 = vmul.f32 %v9741_v10, %v16686_v22  ;;  %v9911_v62 = vmul.f32 %v9741_v10, %v16688_v61  ;;  %v9916_v1 = vmul.f32 %v9741_v10, %v16691_v47  ;;  %v16695_v46 = vld [vmem:[#allocation170_spill] sm:$0xff] }
 0x27a   : > { %16694 = vst [vmem:[#allocation676_spill] sm:$0xff] %v9921_v35  ;;  %v16696_v50 = vunpack.c.l.bf16 %v16695_v46  ;;  %v16698_v8 = vunpack.c.h.bf16 %v16695_v46  ;;  %v16705_v35 = vld [vmem:[#allocation172_spill] sm:$0xff] }
 0x27b   : > { %16687 = vst [vmem:[#allocation168_spill] sm:$0xff] %v9906_v56  ;;  %16689 = vst [vmem:[#allocation675_spill] sm:$0xff] %v9911_v62  ;;  %v16700_v62 = vld [vmem:[#allocation171_spill] sm:$0xff]  ;;  %v16708_v46 = vunpack.c.h.bf16 %v16705_v35 }
 0x27c   : > { %16692 = vst [vmem:[#allocation169_spill] sm:$0xff] %v9916_v1  ;;  %v9926_v22 = vmul.f32 %v9741_v10, %v16696_v50  ;;  %v9931_v61 = vmul.f32 %v9741_v10, %v16698_v8  ;;  %v16701_v56 = vunpack.c.l.bf16 %v16700_v62  ;;  %v16703_v51 = vunpack.c.h.bf16 %v16700_v62 }
 0x27d   : > { %v16706_v1 = vunpack.c.l.bf16 %v16705_v35  ;;  %v9951_v8 = vmul.f32 %v9741_v10, %v16708_v46 }
 0x27e   : > { %16697 = vst [vmem:[#allocation170_spill] sm:$0xff] %v9926_v22  ;;  %16699 = vst [vmem:[#allocation677_spill] sm:$0xff] %v9931_v61  ;;  %v9936_v47 = vmul.f32 %v9741_v10, %v16701_v56  ;;  %v9941_v28 = vmul.f32 %v9741_v10, %v16703_v51  ;;  %v16710_v61 = vld [vmem:[#allocation173_spill] sm:$0xff] }
 0x27f   : > { %v9946_v50 = vmul.f32 %v9741_v10, %v16706_v1  ;;  %16709 = vst [vmem:[#allocation679_spill] sm:$0xff] %v9951_v8  ;;  %v16711_v22 = vunpack.c.l.bf16 %v16710_v61  ;;  %v16713_v62 = vunpack.c.h.bf16 %v16710_v61  ;;  %v16720_v8 = vld [vmem:[#allocation175_spill] sm:$0xff] }
 0x280   : > { %16702 = vst [vmem:[#allocation171_spill] sm:$0xff] %v9936_v47  ;;  %16704 = vst [vmem:[#allocation678_spill] sm:$0xff] %v9941_v28  ;;  %v16715_v28 = vld [vmem:[#allocation174_spill] sm:$0xff]  ;;  %v16723_v61 = vunpack.c.h.bf16 %v16720_v8 }
 0x281   : > { %16707 = vst [vmem:[#allocation172_spill] sm:$0xff] %v9946_v50  ;;  %v9956_v56 = vmul.f32 %v9741_v10, %v16711_v22  ;;  %v9961_v51 = vmul.f32 %v9741_v10, %v16713_v62  ;;  %v16716_v47 = vunpack.c.l.bf16 %v16715_v28  ;;  %v16718_v35 = vunpack.c.h.bf16 %v16715_v28 }
 0x282   : > { %v16721_v50 = vunpack.c.l.bf16 %v16720_v8  ;;  %v9981_v62 = vmul.f32 %v9741_v10, %v16723_v61 }
 0x283   : > { %16712 = vst [vmem:[#allocation173_spill] sm:$0xff] %v9956_v56  ;;  %16714 = vst [vmem:[#allocation680_spill] sm:$0xff] %v9961_v51  ;;  %v9966_v1 = vmul.f32 %v9741_v10, %v16716_v47  ;;  %v9971_v46 = vmul.f32 %v9741_v10, %v16718_v35  ;;  %v16725_v51 = vld [vmem:[#allocation176_spill] sm:$0xff] }
 0x284   : > { %v9976_v22 = vmul.f32 %v9741_v10, %v16721_v50  ;;  %16724 = vst [vmem:[#allocation682_spill] sm:$0xff] %v9981_v62  ;;  %v16726_v56 = vunpack.c.l.bf16 %v16725_v51  ;;  %v16728_v28 = vunpack.c.h.bf16 %v16725_v51  ;;  %v16735_v62 = vld [vmem:[#allocation178_spill] sm:$0xff] }
 0x285   : > { %16717 = vst [vmem:[#allocation174_spill] sm:$0xff] %v9966_v1  ;;  %16719 = vst [vmem:[#allocation681_spill] sm:$0xff] %v9971_v46  ;;  %v16730_v46 = vld [vmem:[#allocation177_spill] sm:$0xff]  ;;  %v16738_v51 = vunpack.c.h.bf16 %v16735_v62 }
 0x286   : > { %16722 = vst [vmem:[#allocation175_spill] sm:$0xff] %v9976_v22  ;;  %v9986_v47 = vmul.f32 %v9741_v10, %v16726_v56  ;;  %v9991_v35 = vmul.f32 %v9741_v10, %v16728_v28  ;;  %v16731_v1 = vunpack.c.l.bf16 %v16730_v46  ;;  %v16733_v8 = vunpack.c.h.bf16 %v16730_v46 }
 0x287   : > { %v16736_v22 = vunpack.c.l.bf16 %v16735_v62  ;;  %v10011_v28 = vmul.f32 %v9741_v10, %v16738_v51 }
 0x288   : > { %16727 = vst [vmem:[#allocation176_spill] sm:$0xff] %v9986_v47  ;;  %16729 = vst [vmem:[#allocation683_spill] sm:$0xff] %v9991_v35  ;;  %v9996_v50 = vmul.f32 %v9741_v10, %v16731_v1  ;;  %v10001_v61 = vmul.f32 %v9741_v10, %v16733_v8  ;;  %v16740_v35 = vld [vmem:[#allocation179_spill] sm:$0xff] }
 0x289   : > { %v10006_v56 = vmul.f32 %v9741_v10, %v16736_v22  ;;  %16739 = vst [vmem:[#allocation685_spill] sm:$0xff] %v10011_v28  ;;  %v16741_v47 = vunpack.c.l.bf16 %v16740_v35  ;;  %v16743_v46 = vunpack.c.h.bf16 %v16740_v35  ;;  %v16750_v28 = vld [vmem:[#allocation181_spill] sm:$0xff] }
 0x28a   : > { %16732 = vst [vmem:[#allocation177_spill] sm:$0xff] %v9996_v50  ;;  %16734 = vst [vmem:[#allocation684_spill] sm:$0xff] %v10001_v61  ;;  %v16745_v61 = vld [vmem:[#allocation180_spill] sm:$0xff]  ;;  %v16753_v35 = vunpack.c.h.bf16 %v16750_v28 }
 0x28b   : > { %16737 = vst [vmem:[#allocation178_spill] sm:$0xff] %v10006_v56  ;;  %v10016_v1 = vmul.f32 %v9741_v10, %v16741_v47  ;;  %v10021_v8 = vmul.f32 %v9741_v10, %v16743_v46  ;;  %v16746_v50 = vunpack.c.l.bf16 %v16745_v61  ;;  %v16748_v62 = vunpack.c.h.bf16 %v16745_v61 }
 0x28c   : > { %v16751_v56 = vunpack.c.l.bf16 %v16750_v28  ;;  %v10041_v46 = vmul.f32 %v9741_v10, %v16753_v35 }
 0x28d   : > { %16742 = vst [vmem:[#allocation179_spill] sm:$0xff] %v10016_v1  ;;  %16744 = vst [vmem:[#allocation686_spill] sm:$0xff] %v10021_v8  ;;  %v10026_v22 = vmul.f32 %v9741_v10, %v16746_v50  ;;  %v10031_v51 = vmul.f32 %v9741_v10, %v16748_v62  ;;  %v16755_v8 = vld [vmem:[#allocation182_spill] sm:$0xff] }
 0x28e   : > { %v10036_v47 = vmul.f32 %v9741_v10, %v16751_v56  ;;  %16754 = vst [vmem:[#allocation688_spill] sm:$0xff] %v10041_v46  ;;  %v16756_v1 = vunpack.c.l.bf16 %v16755_v8  ;;  %v16758_v61 = vunpack.c.h.bf16 %v16755_v8  ;;  %v10063_v46 = vpop.permute.xlu1 %1824 }
 0x28f   : > { %16747 = vst [vmem:[#allocation180_spill] sm:$0xff] %v10026_v22  ;;  %16749 = vst [vmem:[#allocation687_spill] sm:$0xff] %v10031_v51  ;;  %v16760_v51 = vld [vmem:[#allocation183_spill] sm:$0xff] }
 0x290   : > { %16752 = vst [vmem:[#allocation181_spill] sm:$0xff] %v10036_v47  ;;  %v10046_v50 = vmul.f32 %v9741_v10, %v16756_v1  ;;  %v10051_v62 = vmul.f32 %v9741_v10, %v16758_v61  ;;  %v16761_v22 = vunpack.c.l.bf16 %v16760_v51  ;;  %v16763_v28 = vunpack.c.h.bf16 %v16760_v51  ;;  %v16765_v47 = vld [vmem:[#allocation184_spill] sm:$0xff] }
 0x291   : > { %v16766_v1 = vunpack.c.l.bf16 %v16765_v47  ;;  %v16768_v8 = vunpack.c.h.bf16 %v16765_v47 }
 0x292   : > { %16757 = vst [vmem:[#allocation182_spill] sm:$0xff] %v10046_v50  ;;  %16759 = vst [vmem:[#allocation689_spill] sm:$0xff] %v10051_v62  ;;  %v10056_v56 = vmul.f32 %v9741_v10, %v16761_v22  ;;  %v10061_v35 = vmul.f32 %v9741_v10, %v16763_v28  ;;  %v16770_v62 = vld [vmem:[#allocation185_spill] sm:$0xff] }
 0x293   : > { %v10068_v50 = vmul.f32 %v9741_v10, %v16766_v1  ;;  %v10073_v61 = vmul.f32 %v9741_v10, %v16768_v8  ;;  %v16771_v22 = vunpack.c.l.bf16 %v16770_v62  ;;  %v16773_v51 = vunpack.c.h.bf16 %v16770_v62 }
 0x294   : > { %16762 = vst [vmem:[#allocation183_spill] sm:$0xff] %v10056_v56  ;;  %16764 = vst [vmem:[#allocation690_spill] sm:$0xff] %v10061_v35  ;;  %v16775_v35 = vld [vmem:[#allocation186_spill] sm:$0xff] }
 0x295   : > { %16767 = vst [vmem:[#allocation184_spill] sm:$0xff] %v10068_v50  ;;  %16769 = vst [vmem:[#allocation691_spill] sm:$0xff] %v10073_v61  ;;  %v10078_v56 = vmul.f32 %v9741_v10, %v16771_v22  ;;  %v10083_v28 = vmul.f32 %v9741_v10, %v16773_v51  ;;  %v16776_v17 = vunpack.c.l.bf16 %v16775_v35  ;;  %v16778_v47 = vunpack.c.h.bf16 %v16775_v35  ;;  %v16780_v61 = vld [vmem:[#allocation187_spill] sm:$0xff] }
 0x296   : > { %v16781_v50 = vunpack.c.l.bf16 %v16780_v61  ;;  %v16783_v62 = vunpack.c.h.bf16 %v16780_v61 }
 0x297   : > { %16772 = vst [vmem:[#allocation185_spill] sm:$0xff] %v10078_v56  ;;  %16774 = vst [vmem:[#allocation692_spill] sm:$0xff] %v10083_v28  ;;  %v10088_v1 = vmul.f32 %v9741_v10, %v16776_v17  ;;  %v10093_v8 = vmul.f32 %v9741_v10, %v16778_v47  ;;  %v16785_v28 = vld [vmem:[#allocation188_spill] sm:$0xff] }
 0x298   : > { %v10098_v22 = vmul.f32 %v9741_v10, %v16781_v50  ;;  %v10103_v51 = vmul.f32 %v9741_v10, %v16783_v62  ;;  %v16786_v56 = vunpack.c.l.bf16 %v16785_v28  ;;  %v16788_v35 = vunpack.c.h.bf16 %v16785_v28 }
 0x299   : > { %16777 = vst [vmem:[#allocation186_spill] sm:$0xff] %v10088_v1  ;;  %16779 = vst [vmem:[#allocation693_spill] sm:$0xff] %v10093_v8  ;;  %v16790_v8 = vld [vmem:[#allocation189_spill] sm:$0xff] }
 0x29a   : > { %16782 = vst [vmem:[#allocation187_spill] sm:$0xff] %v10098_v22  ;;  %16784 = vst [vmem:[#allocation694_spill] sm:$0xff] %v10103_v51  ;;  %v10108_v17 = vmul.f32 %v9741_v10, %v16786_v56  ;;  %v10113_v47 = vmul.f32 %v9741_v10, %v16788_v35  ;;  %v16791_v1 = vunpack.c.l.bf16 %v16790_v8  ;;  %v16793_v61 = vunpack.c.h.bf16 %v16790_v8  ;;  %v16795_v51 = vld [vmem:[#allocation190_spill] sm:$0xff] }
 0x29b   : > { %v16796_v22 = vunpack.c.l.bf16 %v16795_v51  ;;  %v16798_v28 = vunpack.c.h.bf16 %v16795_v51 }
 0x29c   : > { %16787 = vst [vmem:[#allocation188_spill] sm:$0xff] %v10108_v17  ;;  %16789 = vst [vmem:[#allocation695_spill] sm:$0xff] %v10113_v47  ;;  %v10118_v50 = vmul.f32 %v9741_v10, %v16791_v1  ;;  %v10123_v62 = vmul.f32 %v9741_v10, %v16793_v61  ;;  %v16800_v47 = vld [vmem:[#allocation191_spill] sm:$0xff]  ;;  %v16805_v61 = vld [vmem:[#allocation192_spill] sm:$0xff] }
 0x29d   : > { %v10128_v56 = vmul.f32 %v10063_v46, %v16796_v22  ;;  %v10133_v35 = vmul.f32 %v10063_v46, %v16798_v28  ;;  %v16801_v17 = vunpack.c.l.bf16 %v16800_v47  ;;  %v16803_v8 = vunpack.c.h.bf16 %v16800_v47 }
 0x29e   : > { %16792 = vst [vmem:[#allocation189_spill] sm:$0xff] %v10118_v50  ;;  %16794 = vst [vmem:[#allocation696_spill] sm:$0xff] %v10123_v62  ;;  %v16806_v62 = vunpack.c.l.bf16 %v16805_v61  ;;  %v16808_v51 = vunpack.c.h.bf16 %v16805_v61  ;;  %v16810_v50 = vld [vmem:[#allocation193_spill] sm:$0xff] }
 0x29f   : > { %16797 = vst [vmem:[#allocation190_spill] sm:$0xff] %v10128_v56  ;;  %16799 = vst [vmem:[#allocation697_spill] sm:$0xff] %v10133_v35  ;;  %v10138_v1 = vmul.f32 %v10063_v46, %v16801_v17  ;;  %v10143_v10 = vmul.f32 %v10063_v46, %v16803_v8  ;;  %v16811_v35 = vunpack.c.l.bf16 %v16810_v50  ;;  %v16813_v47 = vunpack.c.h.bf16 %v16810_v50 }
 0x2a0   : > { %v10148_v22 = vmul.f32 %v10063_v46, %v16806_v62  ;;  %v10153_v28 = vmul.f32 %v10063_v46, %v16808_v51 }
 0x2a1   : > { %16802 = vst [vmem:[#allocation191_spill] sm:$0xff] %v10138_v1  ;;  %16804 = vst [vmem:[#allocation698_spill] sm:$0xff] %v10143_v10  ;;  %v10158_v17 = vmul.f32 %v10063_v46, %v16811_v35  ;;  %v10163_v8 = vmul.f32 %v10063_v46, %v16813_v47  ;;  %v16815_v10 = vld [vmem:[#allocation194_spill] sm:$0xff] }
 0x2a2   : > { %16807 = vst [vmem:[#allocation192_spill] sm:$0xff] %v10148_v22  ;;  %16809 = vst [vmem:[#allocation699_spill] sm:$0xff] %v10153_v28  ;;  %v16816_v1 = vunpack.c.l.bf16 %v16815_v10  ;;  %v16818_v61 = vunpack.c.h.bf16 %v16815_v10  ;;  %v16820_v28 = vld [vmem:[#allocation195_spill] sm:$0xff] }
 0x2a3   : > { %16812 = vst [vmem:[#allocation193_spill] sm:$0xff] %v10158_v17  ;;  %16814 = vst [vmem:[#allocation700_spill] sm:$0xff] %v10163_v8  ;;  %v16821_v22 = vunpack.c.l.bf16 %v16820_v28  ;;  %v16823_v50 = vunpack.c.h.bf16 %v16820_v28  ;;  %v16825_v8 = vld [vmem:[#allocation196_spill] sm:$0xff] }
 0x2a4   : > { %v10168_v62 = vmul.f32 %v10063_v46, %v16816_v1  ;;  %v10173_v51 = vmul.f32 %v10063_v46, %v16818_v61  ;;  %v16826_v17 = vunpack.c.l.bf16 %v16825_v8  ;;  %v16828_v10 = vunpack.c.h.bf16 %v16825_v8 }
 0x2a5   : > { %v10178_v35 = vmul.f32 %v10063_v46, %v16821_v22  ;;  %v10183_v47 = vmul.f32 %v10063_v46, %v16823_v50 }
 0x2a6   : > { %16817 = vst [vmem:[#allocation194_spill] sm:$0xff] %v10168_v62  ;;  %16819 = vst [vmem:[#allocation701_spill] sm:$0xff] %v10173_v51  ;;  %v10188_v1 = vmul.f32 %v10063_v46, %v16826_v17  ;;  %v10193_v61 = vmul.f32 %v10063_v46, %v16828_v10  ;;  %v16830_v51 = vld [vmem:[#allocation197_spill] sm:$0xff] }
 0x2a7   : > { %16822 = vst [vmem:[#allocation195_spill] sm:$0xff] %v10178_v35  ;;  %16824 = vst [vmem:[#allocation702_spill] sm:$0xff] %v10183_v47  ;;  %v16831_v62 = vunpack.c.l.bf16 %v16830_v51  ;;  %v16833_v28 = vunpack.c.h.bf16 %v16830_v51  ;;  %v16835_v47 = vld [vmem:[#allocation198_spill] sm:$0xff] }
 0x2a8   : > { %16827 = vst [vmem:[#allocation196_spill] sm:$0xff] %v10188_v1  ;;  %16829 = vst [vmem:[#allocation703_spill] sm:$0xff] %v10193_v61  ;;  %v16836_v35 = vunpack.c.l.bf16 %v16835_v47  ;;  %v16838_v8 = vunpack.c.h.bf16 %v16835_v47  ;;  %v16840_v61 = vld [vmem:[#allocation199_spill] sm:$0xff] }
 0x2a9   : > { %v10198_v22 = vmul.f32 %v10063_v46, %v16831_v62  ;;  %v10203_v50 = vmul.f32 %v10063_v46, %v16833_v28  ;;  %v16841_v1 = vunpack.c.l.bf16 %v16840_v61  ;;  %v16843_v51 = vunpack.c.h.bf16 %v16840_v61 }
 0x2aa   : > { %v10208_v17 = vmul.f32 %v10063_v46, %v16836_v35  ;;  %v10213_v10 = vmul.f32 %v10063_v46, %v16838_v8 }
 0x2ab   : > { %16832 = vst [vmem:[#allocation197_spill] sm:$0xff] %v10198_v22  ;;  %16834 = vst [vmem:[#allocation704_spill] sm:$0xff] %v10203_v50  ;;  %v10218_v62 = vmul.f32 %v10063_v46, %v16841_v1  ;;  %v10223_v28 = vmul.f32 %v10063_v46, %v16843_v51  ;;  %v16845_v50 = vld [vmem:[#allocation200_spill] sm:$0xff] }
 0x2ac   : > { %16837 = vst [vmem:[#allocation198_spill] sm:$0xff] %v10208_v17  ;;  %16839 = vst [vmem:[#allocation705_spill] sm:$0xff] %v10213_v10  ;;  %v16846_v22 = vunpack.c.l.bf16 %v16845_v50  ;;  %v16848_v47 = vunpack.c.h.bf16 %v16845_v50  ;;  %v16850_v10 = vld [vmem:[#allocation201_spill] sm:$0xff] }
 0x2ad   : > { %16842 = vst [vmem:[#allocation199_spill] sm:$0xff] %v10218_v62  ;;  %16844 = vst [vmem:[#allocation706_spill] sm:$0xff] %v10223_v28  ;;  %v16851_v17 = vunpack.c.l.bf16 %v16850_v10  ;;  %v16853_v61 = vunpack.c.h.bf16 %v16850_v10  ;;  %v16855_v28 = vld [vmem:[#allocation202_spill] sm:$0xff] }
 0x2ae   : > { %v10228_v35 = vmul.f32 %v10063_v46, %v16846_v22  ;;  %v10233_v8 = vmul.f32 %v10063_v46, %v16848_v47  ;;  %v16856_v62 = vunpack.c.l.bf16 %v16855_v28  ;;  %v16858_v50 = vunpack.c.h.bf16 %v16855_v28 }
 0x2af   : > { %v10238_v1 = vmul.f32 %v10063_v46, %v16851_v17  ;;  %v10243_v51 = vmul.f32 %v10063_v46, %v16853_v61 }
 0x2b0   : > { %16847 = vst [vmem:[#allocation200_spill] sm:$0xff] %v10228_v35  ;;  %16849 = vst [vmem:[#allocation707_spill] sm:$0xff] %v10233_v8  ;;  %v10248_v22 = vmul.f32 %v10063_v46, %v16856_v62  ;;  %v10253_v47 = vmul.f32 %v10063_v46, %v16858_v50  ;;  %v16860_v8 = vld [vmem:[#allocation203_spill] sm:$0xff] }
 0x2b1   : > { %16852 = vst [vmem:[#allocation201_spill] sm:$0xff] %v10238_v1  ;;  %16854 = vst [vmem:[#allocation708_spill] sm:$0xff] %v10243_v51  ;;  %v16861_v35 = vunpack.c.l.bf16 %v16860_v8  ;;  %v16863_v10 = vunpack.c.h.bf16 %v16860_v8  ;;  %v16865_v51 = vld [vmem:[#allocation204_spill] sm:$0xff] }
 0x2b2   : > { %16857 = vst [vmem:[#allocation202_spill] sm:$0xff] %v10248_v22  ;;  %16859 = vst [vmem:[#allocation709_spill] sm:$0xff] %v10253_v47  ;;  %v16866_v1 = vunpack.c.l.bf16 %v16865_v51  ;;  %v16868_v28 = vunpack.c.h.bf16 %v16865_v51  ;;  %v16870_v47 = vld [vmem:[#allocation205_spill] sm:$0xff] }
 0x2b3   : > { %v10258_v17 = vmul.f32 %v10063_v46, %v16861_v35  ;;  %v10263_v61 = vmul.f32 %v10063_v46, %v16863_v10  ;;  %v16871_v22 = vunpack.c.l.bf16 %v16870_v47  ;;  %v16873_v8 = vunpack.c.h.bf16 %v16870_v47 }
 0x2b4   : > { %v10268_v62 = vmul.f32 %v10063_v46, %v16866_v1  ;;  %v10273_v50 = vmul.f32 %v10063_v46, %v16868_v28 }
 0x2b5   : > { %16862 = vst [vmem:[#allocation203_spill] sm:$0xff] %v10258_v17  ;;  %16864 = vst [vmem:[#allocation710_spill] sm:$0xff] %v10263_v61  ;;  %v10278_v35 = vmul.f32 %v10063_v46, %v16871_v22  ;;  %v10283_v10 = vmul.f32 %v10063_v46, %v16873_v8  ;;  %v16875_v61 = vld [vmem:[#allocation206_spill] sm:$0xff] }
 0x2b6   : > { %16867 = vst [vmem:[#allocation204_spill] sm:$0xff] %v10268_v62  ;;  %16869 = vst [vmem:[#allocation711_spill] sm:$0xff] %v10273_v50  ;;  %v16876_v17 = vunpack.c.l.bf16 %v16875_v61  ;;  %v16878_v51 = vunpack.c.h.bf16 %v16875_v61  ;;  %v16880_v50 = vld [vmem:[#allocation207_spill] sm:$0xff] }
 0x2b7   : > { %16872 = vst [vmem:[#allocation205_spill] sm:$0xff] %v10278_v35  ;;  %16874 = vst [vmem:[#allocation712_spill] sm:$0xff] %v10283_v10  ;;  %v16881_v62 = vunpack.c.l.bf16 %v16880_v50  ;;  %v16883_v47 = vunpack.c.h.bf16 %v16880_v50  ;;  %v16885_v10 = vld [vmem:[#allocation208_spill] sm:$0xff] }
 0x2b8   : > { %v10288_v1 = vmul.f32 %v10063_v46, %v16876_v17  ;;  %v10293_v28 = vmul.f32 %v10063_v46, %v16878_v51  ;;  %v16886_v35 = vunpack.c.l.bf16 %v16885_v10  ;;  %v16888_v61 = vunpack.c.h.bf16 %v16885_v10 }
 0x2b9   : > { %v10298_v22 = vmul.f32 %v10063_v46, %v16881_v62  ;;  %v10303_v8 = vmul.f32 %v10063_v46, %v16883_v47 }
 0x2ba   : > { %16877 = vst [vmem:[#allocation206_spill] sm:$0xff] %v10288_v1  ;;  %16879 = vst [vmem:[#allocation713_spill] sm:$0xff] %v10293_v28  ;;  %v10308_v17 = vmul.f32 %v10063_v46, %v16886_v35  ;;  %v10313_v51 = vmul.f32 %v10063_v46, %v16888_v61  ;;  %v16890_v28 = vld [vmem:[#allocation209_spill] sm:$0xff] }
 0x2bb   : > { %16882 = vst [vmem:[#allocation207_spill] sm:$0xff] %v10298_v22  ;;  %16884 = vst [vmem:[#allocation714_spill] sm:$0xff] %v10303_v8  ;;  %v16891_v1 = vunpack.c.l.bf16 %v16890_v28  ;;  %v16893_v50 = vunpack.c.h.bf16 %v16890_v28  ;;  %v16895_v8 = vld [vmem:[#allocation210_spill] sm:$0xff] }
 0x2bc   : > { %16887 = vst [vmem:[#allocation208_spill] sm:$0xff] %v10308_v17  ;;  %16889 = vst [vmem:[#allocation715_spill] sm:$0xff] %v10313_v51  ;;  %v16896_v22 = vunpack.c.l.bf16 %v16895_v8  ;;  %v16898_v10 = vunpack.c.h.bf16 %v16895_v8  ;;  %v16900_v51 = vld [vmem:[#allocation211_spill] sm:$0xff] }
 0x2bd   : > { %v10318_v62 = vmul.f32 %v10063_v46, %v16891_v1  ;;  %v10323_v47 = vmul.f32 %v10063_v46, %v16893_v50  ;;  %v16901_v17 = vunpack.c.l.bf16 %v16900_v51  ;;  %v16903_v28 = vunpack.c.h.bf16 %v16900_v51 }
 0x2be   : > { %v10328_v35 = vmul.f32 %v10063_v46, %v16896_v22  ;;  %v10333_v61 = vmul.f32 %v10063_v46, %v16898_v10 }
 0x2bf   : > { %16892 = vst [vmem:[#allocation209_spill] sm:$0xff] %v10318_v62  ;;  %16894 = vst [vmem:[#allocation716_spill] sm:$0xff] %v10323_v47  ;;  %v10338_v1 = vmul.f32 %v10063_v46, %v16901_v17  ;;  %v10343_v50 = vmul.f32 %v10063_v46, %v16903_v28  ;;  %v16905_v47 = vld [vmem:[#allocation212_spill] sm:$0xff] }
 0x2c0   : > { %16897 = vst [vmem:[#allocation210_spill] sm:$0xff] %v10328_v35  ;;  %16899 = vst [vmem:[#allocation717_spill] sm:$0xff] %v10333_v61  ;;  %v16906_v62 = vunpack.c.l.bf16 %v16905_v47  ;;  %v16908_v8 = vunpack.c.h.bf16 %v16905_v47  ;;  %v16910_v61 = vld [vmem:[#allocation213_spill] sm:$0xff] }
 0x2c1   : > { %16902 = vst [vmem:[#allocation211_spill] sm:$0xff] %v10338_v1  ;;  %16904 = vst [vmem:[#allocation718_spill] sm:$0xff] %v10343_v50  ;;  %v16911_v35 = vunpack.c.l.bf16 %v16910_v61  ;;  %v16913_v51 = vunpack.c.h.bf16 %v16910_v61  ;;  %v16915_v50 = vld [vmem:[#allocation214_spill] sm:$0xff] }
 0x2c2   : > { %v10348_v22 = vmul.f32 %v10063_v46, %v16906_v62  ;;  %v10353_v10 = vmul.f32 %v10063_v46, %v16908_v8  ;;  %v16916_v1 = vunpack.c.l.bf16 %v16915_v50  ;;  %v16918_v47 = vunpack.c.h.bf16 %v16915_v50 }
 0x2c3   : > { %v10358_v17 = vmul.f32 %v10063_v46, %v16911_v35  ;;  %v10363_v28 = vmul.f32 %v10063_v46, %v16913_v51 }
 0x2c4   : > { %16907 = vst [vmem:[#allocation212_spill] sm:$0xff] %v10348_v22  ;;  %16909 = vst [vmem:[#allocation719_spill] sm:$0xff] %v10353_v10  ;;  %v10368_v62 = vmul.f32 %v10063_v46, %v16916_v1  ;;  %v10373_v8 = vmul.f32 %v10063_v46, %v16918_v47  ;;  %v16920_v10 = vld [vmem:[#allocation215_spill] sm:$0xff] }
 0x2c5   : > { %16912 = vst [vmem:[#allocation213_spill] sm:$0xff] %v10358_v17  ;;  %16914 = vst [vmem:[#allocation720_spill] sm:$0xff] %v10363_v28  ;;  %v16921_v22 = vunpack.c.l.bf16 %v16920_v10  ;;  %v16923_v61 = vunpack.c.h.bf16 %v16920_v10  ;;  %v10385_v28 = vpop.permute.xlu0 %1829  ;;  %v16925_v17 = vld [vmem:[#allocation216_spill] sm:$0xff] }
 0x2c6   : > { %16917 = vst [vmem:[#allocation214_spill] sm:$0xff] %v10368_v62  ;;  %16919 = vst [vmem:[#allocation721_spill] sm:$0xff] %v10373_v8  ;;  %v16926_v1 = vunpack.c.l.bf16 %v16925_v17  ;;  %v16928_v50 = vunpack.c.h.bf16 %v16925_v17  ;;  %v16930_v8 = vld [vmem:[#allocation217_spill] sm:$0xff] }
 0x2c7   : > { %v10378_v35 = vmul.f32 %v10063_v46, %v16921_v22  ;;  %v10383_v51 = vmul.f32 %v10063_v46, %v16923_v61  ;;  %v16931_v22 = vunpack.c.l.bf16 %v16930_v8  ;;  %v16933_v10 = vunpack.c.h.bf16 %v16930_v8 }
 0x2c8   : > { %v10390_v62 = vmul.f32 %v10063_v46, %v16926_v1  ;;  %v10395_v47 = vmul.f32 %v10063_v46, %v16928_v50 }
 0x2c9   : > { %16922 = vst [vmem:[#allocation215_spill] sm:$0xff] %v10378_v35  ;;  %16924 = vst [vmem:[#allocation722_spill] sm:$0xff] %v10383_v51  ;;  %v10400_v35 = vmul.f32 %v10063_v46, %v16931_v22  ;;  %v10405_v61 = vmul.f32 %v10063_v46, %v16933_v10  ;;  %v16935_v51 = vld [vmem:[#allocation218_spill] sm:$0xff] }
 0x2ca   : > { %16927 = vst [vmem:[#allocation216_spill] sm:$0xff] %v10390_v62  ;;  %16929 = vst [vmem:[#allocation723_spill] sm:$0xff] %v10395_v47  ;;  %v16936_v56 = vunpack.c.l.bf16 %v16935_v51  ;;  %v16938_v17 = vunpack.c.h.bf16 %v16935_v51  ;;  %v16940_v47 = vld [vmem:[#allocation219_spill] sm:$0xff] }
 0x2cb   : > { %16932 = vst [vmem:[#allocation217_spill] sm:$0xff] %v10400_v35  ;;  %16934 = vst [vmem:[#allocation724_spill] sm:$0xff] %v10405_v61  ;;  %v16941_v62 = vunpack.c.l.bf16 %v16940_v47  ;;  %v16943_v8 = vunpack.c.h.bf16 %v16940_v47  ;;  %v16945_v61 = vld [vmem:[#allocation220_spill] sm:$0xff] }
 0x2cc   : > { %v10410_v1 = vmul.f32 %v10063_v46, %v16936_v56  ;;  %v10415_v50 = vmul.f32 %v10063_v46, %v16938_v17  ;;  %v16946_v35 = vunpack.c.l.bf16 %v16945_v61  ;;  %v16948_v51 = vunpack.c.h.bf16 %v16945_v61 }
 0x2cd   : > { %v10420_v22 = vmul.f32 %v10063_v46, %v16941_v62  ;;  %v10425_v10 = vmul.f32 %v10063_v46, %v16943_v8 }
 0x2ce   : > { %16937 = vst [vmem:[#allocation218_spill] sm:$0xff] %v10410_v1  ;;  %16939 = vst [vmem:[#allocation725_spill] sm:$0xff] %v10415_v50  ;;  %v10430_v56 = vmul.f32 %v10063_v46, %v16946_v35  ;;  %v10435_v17 = vmul.f32 %v10063_v46, %v16948_v51  ;;  %v16950_v50 = vld [vmem:[#allocation221_spill] sm:$0xff] }
 0x2cf   : > { %16942 = vst [vmem:[#allocation219_spill] sm:$0xff] %v10420_v22  ;;  %16944 = vst [vmem:[#allocation726_spill] sm:$0xff] %v10425_v10  ;;  %v16951_v1 = vunpack.c.l.bf16 %v16950_v50  ;;  %v16953_v47 = vunpack.c.h.bf16 %v16950_v50  ;;  %v16955_v10 = vld [vmem:[#allocation222_spill] sm:$0xff] }
 0x2d0   : > { %16947 = vst [vmem:[#allocation220_spill] sm:$0xff] %v10430_v56  ;;  %16949 = vst [vmem:[#allocation727_spill] sm:$0xff] %v10435_v17  ;;  %v16956_v22 = vunpack.c.l.bf16 %v16955_v10  ;;  %v16958_v61 = vunpack.c.h.bf16 %v16955_v10  ;;  %v16960_v17 = vld [vmem:[#allocation223_spill] sm:$0xff] }
 0x2d1   : > { %v10440_v62 = vmul.f32 %v10063_v46, %v16951_v1  ;;  %v10445_v8 = vmul.f32 %v10063_v46, %v16953_v47  ;;  %v16961_v56 = vunpack.c.l.bf16 %v16960_v17  ;;  %v16963_v50 = vunpack.c.h.bf16 %v16960_v17  ;;  %v16965_v47 = vld [vmem:[#allocation224_spill] sm:$0xff] }
 0x2d2   : > { %v10450_v35 = vmul.f32 %v10385_v28, %v16956_v22  ;;  %v10455_v51 = vmul.f32 %v10385_v28, %v16958_v61  ;;  %v16968_v10 = vunpack.c.h.bf16 %v16965_v47 }
 0x2d3   : > { %16952 = vst [vmem:[#allocation221_spill] sm:$0xff] %v10440_v62  ;;  %16954 = vst [vmem:[#allocation728_spill] sm:$0xff] %v10445_v8  ;;  %v10460_v1 = vmul.f32 %v10385_v28, %v16961_v56  ;;  %v10465_v46 = vmul.f32 %v10385_v28, %v16963_v50  ;;  %v16966_v8 = vunpack.c.l.bf16 %v16965_v47  ;;  %v16970_v62 = vld [vmem:[#allocation225_spill] sm:$0xff] }
 0x2d4   : > { %16957 = vst [vmem:[#allocation222_spill] sm:$0xff] %v10450_v35  ;;  %16959 = vst [vmem:[#allocation729_spill] sm:$0xff] %v10455_v51  ;;  %v10475_v61 = vmul.f32 %v10385_v28, %v16968_v10  ;;  %v16971_v51 = vunpack.c.l.bf16 %v16970_v62  ;;  %v16973_v17 = vunpack.c.h.bf16 %v16970_v62 }
 0x2d5   : > { %16962 = vst [vmem:[#allocation223_spill] sm:$0xff] %v10460_v1  ;;  %16964 = vst [vmem:[#allocation730_spill] sm:$0xff] %v10465_v46  ;;  %v10470_v22 = vmul.f32 %v10385_v28, %v16966_v8  ;;  %v16975_v46 = vld [vmem:[#allocation226_spill] sm:$0xff] }
 0x2d6   : > { %16969 = vst [vmem:[#allocation731_spill] sm:$0xff] %v10475_v61  ;;  %v10480_v56 = vmul.f32 %v10385_v28, %v16971_v51  ;;  %v10485_v50 = vmul.f32 %v10385_v28, %v16973_v17  ;;  %v16976_v1 = vunpack.c.l.bf16 %v16975_v46  ;;  %v16978_v47 = vunpack.c.h.bf16 %v16975_v46  ;;  %v16980_v61 = vld [vmem:[#allocation227_spill] sm:$0xff] }
 0x2d7   : > { %16967 = vst [vmem:[#allocation224_spill] sm:$0xff] %v10470_v22  ;;  %v16981_v22 = vunpack.c.l.bf16 %v16980_v61  ;;  %v16983_v62 = vunpack.c.h.bf16 %v16980_v61 }
 0x2d8   : > { %16972 = vst [vmem:[#allocation225_spill] sm:$0xff] %v10480_v56  ;;  %16974 = vst [vmem:[#allocation732_spill] sm:$0xff] %v10485_v50  ;;  %v10490_v8 = vmul.f32 %v10385_v28, %v16976_v1  ;;  %v10495_v10 = vmul.f32 %v10385_v28, %v16978_v47  ;;  %v16985_v50 = vld [vmem:[#allocation228_spill] sm:$0xff] }
 0x2d9   : > { %v10500_v51 = vmul.f32 %v10385_v28, %v16981_v22  ;;  %v10505_v17 = vmul.f32 %v10385_v28, %v16983_v62  ;;  %v16986_v56 = vunpack.c.l.bf16 %v16985_v50  ;;  %v16988_v46 = vunpack.c.h.bf16 %v16985_v50 }
 0x2da   : > { %16977 = vst [vmem:[#allocation226_spill] sm:$0xff] %v10490_v8  ;;  %16979 = vst [vmem:[#allocation733_spill] sm:$0xff] %v10495_v10  ;;  %v16990_v10 = vld [vmem:[#allocation229_spill] sm:$0xff] }
 0x2db   : > { %16982 = vst [vmem:[#allocation227_spill] sm:$0xff] %v10500_v51  ;;  %16984 = vst [vmem:[#allocation734_spill] sm:$0xff] %v10505_v17  ;;  %v10510_v1 = vmul.f32 %v10385_v28, %v16986_v56  ;;  %v10515_v47 = vmul.f32 %v10385_v28, %v16988_v46  ;;  %v16991_v8 = vunpack.c.l.bf16 %v16990_v10  ;;  %v16993_v61 = vunpack.c.h.bf16 %v16990_v10  ;;  %v16995_v17 = vld [vmem:[#allocation230_spill] sm:$0xff] }
 0x2dc   : > { %v16996_v51 = vunpack.c.l.bf16 %v16995_v17  ;;  %v16998_v50 = vunpack.c.h.bf16 %v16995_v17 }
 0x2dd   : > { %16987 = vst [vmem:[#allocation228_spill] sm:$0xff] %v10510_v1  ;;  %16989 = vst [vmem:[#allocation735_spill] sm:$0xff] %v10515_v47  ;;  %v10520_v22 = vmul.f32 %v10385_v28, %v16991_v8  ;;  %v10525_v62 = vmul.f32 %v10385_v28, %v16993_v61  ;;  %v17000_v47 = vld [vmem:[#allocation231_spill] sm:$0xff] }
 0x2de   : > { %v10530_v56 = vmul.f32 %v10385_v28, %v16996_v51  ;;  %v10535_v46 = vmul.f32 %v10385_v28, %v16998_v50  ;;  %v17001_v1 = vunpack.c.l.bf16 %v17000_v47  ;;  %v17003_v10 = vunpack.c.h.bf16 %v17000_v47 }
 0x2df   : > { %16992 = vst [vmem:[#allocation229_spill] sm:$0xff] %v10520_v22  ;;  %16994 = vst [vmem:[#allocation736_spill] sm:$0xff] %v10525_v62  ;;  %v17005_v62 = vld [vmem:[#allocation232_spill] sm:$0xff] }
 0x2e0   : > { %16997 = vst [vmem:[#allocation230_spill] sm:$0xff] %v10530_v56  ;;  %16999 = vst [vmem:[#allocation737_spill] sm:$0xff] %v10535_v46  ;;  %v10540_v8 = vmul.f32 %v10385_v28, %v17001_v1  ;;  %v10545_v61 = vmul.f32 %v10385_v28, %v17003_v10  ;;  %v17006_v22 = vunpack.c.l.bf16 %v17005_v62  ;;  %v17008_v17 = vunpack.c.h.bf16 %v17005_v62  ;;  %v17010_v46 = vld [vmem:[#allocation233_spill] sm:$0xff] }
 0x2e1   : > { %v17011_v56 = vunpack.c.l.bf16 %v17010_v46  ;;  %v17013_v47 = vunpack.c.h.bf16 %v17010_v46 }
 0x2e2   : > { %17002 = vst [vmem:[#allocation231_spill] sm:$0xff] %v10540_v8  ;;  %17004 = vst [vmem:[#allocation738_spill] sm:$0xff] %v10545_v61  ;;  %v10550_v51 = vmul.f32 %v10385_v28, %v17006_v22  ;;  %v10555_v50 = vmul.f32 %v10385_v28, %v17008_v17  ;;  %v17015_v61 = vld [vmem:[#allocation234_spill] sm:$0xff] }
 0x2e3   : > { %v10560_v1 = vmul.f32 %v10385_v28, %v17011_v56  ;;  %v10565_v10 = vmul.f32 %v10385_v28, %v17013_v47  ;;  %v17016_v8 = vunpack.c.l.bf16 %v17015_v61  ;;  %v17018_v62 = vunpack.c.h.bf16 %v17015_v61 }
 0x2e4   : > { %17007 = vst [vmem:[#allocation232_spill] sm:$0xff] %v10550_v51  ;;  %17009 = vst [vmem:[#allocation739_spill] sm:$0xff] %v10555_v50  ;;  %v17020_v50 = vld [vmem:[#allocation235_spill] sm:$0xff] }
 0x2e5   : > { %17012 = vst [vmem:[#allocation233_spill] sm:$0xff] %v10560_v1  ;;  %17014 = vst [vmem:[#allocation740_spill] sm:$0xff] %v10565_v10  ;;  %v10570_v22 = vmul.f32 %v10385_v28, %v17016_v8  ;;  %v10575_v17 = vmul.f32 %v10385_v28, %v17018_v62  ;;  %v17021_v51 = vunpack.c.l.bf16 %v17020_v50  ;;  %v17023_v46 = vunpack.c.h.bf16 %v17020_v50  ;;  %v17025_v10 = vld [vmem:[#allocation236_spill] sm:$0xff] }
 0x2e6   : > { %v17026_v1 = vunpack.c.l.bf16 %v17025_v10  ;;  %v17028_v61 = vunpack.c.h.bf16 %v17025_v10 }
 0x2e7   : > { %17017 = vst [vmem:[#allocation234_spill] sm:$0xff] %v10570_v22  ;;  %17019 = vst [vmem:[#allocation741_spill] sm:$0xff] %v10575_v17  ;;  %v10580_v56 = vmul.f32 %v10385_v28, %v17021_v51  ;;  %v10585_v47 = vmul.f32 %v10385_v28, %v17023_v46  ;;  %v17030_v17 = vld [vmem:[#allocation237_spill] sm:$0xff] }
 0x2e8   : > { %v10590_v8 = vmul.f32 %v10385_v28, %v17026_v1  ;;  %v10595_v62 = vmul.f32 %v10385_v28, %v17028_v61  ;;  %v17031_v22 = vunpack.c.l.bf16 %v17030_v17  ;;  %v17033_v50 = vunpack.c.h.bf16 %v17030_v17 }
 0x2e9   : > { %17022 = vst [vmem:[#allocation235_spill] sm:$0xff] %v10580_v56  ;;  %17024 = vst [vmem:[#allocation742_spill] sm:$0xff] %v10585_v47  ;;  %v17035_v47 = vld [vmem:[#allocation238_spill] sm:$0xff] }
 0x2ea   : > { %17027 = vst [vmem:[#allocation236_spill] sm:$0xff] %v10590_v8  ;;  %17029 = vst [vmem:[#allocation743_spill] sm:$0xff] %v10595_v62  ;;  %v10600_v51 = vmul.f32 %v10385_v28, %v17031_v22  ;;  %v10605_v46 = vmul.f32 %v10385_v28, %v17033_v50  ;;  %v17036_v56 = vunpack.c.l.bf16 %v17035_v47  ;;  %v17038_v10 = vunpack.c.h.bf16 %v17035_v47  ;;  %v17040_v62 = vld [vmem:[#allocation239_spill] sm:$0xff] }
 0x2eb   : > { %v17041_v8 = vunpack.c.l.bf16 %v17040_v62  ;;  %v17043_v17 = vunpack.c.h.bf16 %v17040_v62 }
 0x2ec   : > { %17032 = vst [vmem:[#allocation237_spill] sm:$0xff] %v10600_v51  ;;  %17034 = vst [vmem:[#allocation744_spill] sm:$0xff] %v10605_v46  ;;  %v10610_v1 = vmul.f32 %v10385_v28, %v17036_v56  ;;  %v10615_v61 = vmul.f32 %v10385_v28, %v17038_v10  ;;  %v17045_v46 = vld [vmem:[#allocation240_spill] sm:$0xff] }
 0x2ed   : > { %v10620_v22 = vmul.f32 %v10385_v28, %v17041_v8  ;;  %v10625_v50 = vmul.f32 %v10385_v28, %v17043_v17  ;;  %v17046_v51 = vunpack.c.l.bf16 %v17045_v46  ;;  %v17048_v47 = vunpack.c.h.bf16 %v17045_v46 }
 0x2ee   : > { %17037 = vst [vmem:[#allocation238_spill] sm:$0xff] %v10610_v1  ;;  %17039 = vst [vmem:[#allocation745_spill] sm:$0xff] %v10615_v61  ;;  %v17050_v61 = vld [vmem:[#allocation241_spill] sm:$0xff] }
 0x2ef   : > { %17042 = vst [vmem:[#allocation239_spill] sm:$0xff] %v10620_v22  ;;  %17044 = vst [vmem:[#allocation746_spill] sm:$0xff] %v10625_v50  ;;  %v10630_v56 = vmul.f32 %v10385_v28, %v17046_v51  ;;  %v10635_v10 = vmul.f32 %v10385_v28, %v17048_v47  ;;  %v17051_v1 = vunpack.c.l.bf16 %v17050_v61  ;;  %v17053_v62 = vunpack.c.h.bf16 %v17050_v61  ;;  %v17055_v50 = vld [vmem:[#allocation242_spill] sm:$0xff] }
 0x2f0   : > { %v17056_v22 = vunpack.c.l.bf16 %v17055_v50  ;;  %v17058_v46 = vunpack.c.h.bf16 %v17055_v50 }
 0x2f1   : > { %17047 = vst [vmem:[#allocation240_spill] sm:$0xff] %v10630_v56  ;;  %17049 = vst [vmem:[#allocation747_spill] sm:$0xff] %v10635_v10  ;;  %v10640_v8 = vmul.f32 %v10385_v28, %v17051_v1  ;;  %v10645_v17 = vmul.f32 %v10385_v28, %v17053_v62  ;;  %v17060_v10 = vld [vmem:[#allocation243_spill] sm:$0xff] }
 0x2f2   : > { %v10650_v51 = vmul.f32 %v10385_v28, %v17056_v22  ;;  %v10655_v47 = vmul.f32 %v10385_v28, %v17058_v46  ;;  %v17061_v56 = vunpack.c.l.bf16 %v17060_v10  ;;  %v17063_v61 = vunpack.c.h.bf16 %v17060_v10 }
 0x2f3   : > { %17052 = vst [vmem:[#allocation241_spill] sm:$0xff] %v10640_v8  ;;  %17054 = vst [vmem:[#allocation748_spill] sm:$0xff] %v10645_v17  ;;  %v17065_v17 = vld [vmem:[#allocation244_spill] sm:$0xff] }
 0x2f4   : > { %17057 = vst [vmem:[#allocation242_spill] sm:$0xff] %v10650_v51  ;;  %17059 = vst [vmem:[#allocation749_spill] sm:$0xff] %v10655_v47  ;;  %v10660_v1 = vmul.f32 %v10385_v28, %v17061_v56  ;;  %v10665_v62 = vmul.f32 %v10385_v28, %v17063_v61  ;;  %v17066_v8 = vunpack.c.l.bf16 %v17065_v17  ;;  %v17068_v50 = vunpack.c.h.bf16 %v17065_v17  ;;  %v17070_v47 = vld [vmem:[#allocation245_spill] sm:$0xff] }
 0x2f5   : > { %v17071_v51 = vunpack.c.l.bf16 %v17070_v47  ;;  %v17073_v10 = vunpack.c.h.bf16 %v17070_v47 }
 0x2f6   : > { %17062 = vst [vmem:[#allocation243_spill] sm:$0xff] %v10660_v1  ;;  %17064 = vst [vmem:[#allocation750_spill] sm:$0xff] %v10665_v62  ;;  %v10670_v22 = vmul.f32 %v10385_v28, %v17066_v8  ;;  %v10675_v46 = vmul.f32 %v10385_v28, %v17068_v50  ;;  %v17075_v62 = vld [vmem:[#allocation246_spill] sm:$0xff] }
 0x2f7   : > { %v10680_v56 = vmul.f32 %v10385_v28, %v17071_v51  ;;  %v10685_v61 = vmul.f32 %v10385_v28, %v17073_v10  ;;  %v17076_v1 = vunpack.c.l.bf16 %v17075_v62  ;;  %v17078_v17 = vunpack.c.h.bf16 %v17075_v62 }
 0x2f8   : > { %17067 = vst [vmem:[#allocation244_spill] sm:$0xff] %v10670_v22  ;;  %17069 = vst [vmem:[#allocation751_spill] sm:$0xff] %v10675_v46  ;;  %v17080_v46 = vld [vmem:[#allocation247_spill] sm:$0xff] }
 0x2f9   : > { %17072 = vst [vmem:[#allocation245_spill] sm:$0xff] %v10680_v56  ;;  %17074 = vst [vmem:[#allocation752_spill] sm:$0xff] %v10685_v61  ;;  %v10690_v8 = vmul.f32 %v10385_v28, %v17076_v1  ;;  %v10695_v50 = vmul.f32 %v10385_v28, %v17078_v17  ;;  %v17081_v22 = vunpack.c.l.bf16 %v17080_v46  ;;  %v17083_v47 = vunpack.c.h.bf16 %v17080_v46  ;;  %v10707_v61 = vpop.permute.xlu1 %1834  ;;  %v17085_v56 = vld [vmem:[#allocation248_spill] sm:$0xff] }
 0x2fa   : > { %v17086_v1 = vunpack.c.l.bf16 %v17085_v56  ;;  %v17088_v62 = vunpack.c.h.bf16 %v17085_v56 }
 0x2fb   : > { %17077 = vst [vmem:[#allocation246_spill] sm:$0xff] %v10690_v8  ;;  %17079 = vst [vmem:[#allocation753_spill] sm:$0xff] %v10695_v50  ;;  %v10700_v51 = vmul.f32 %v10385_v28, %v17081_v22  ;;  %v10705_v10 = vmul.f32 %v10385_v28, %v17083_v47  ;;  %v17090_v50 = vld [vmem:[#allocation249_spill] sm:$0xff] }
 0x2fc   : > { %v10712_v8 = vmul.f32 %v10385_v28, %v17086_v1  ;;  %v10717_v17 = vmul.f32 %v10385_v28, %v17088_v62  ;;  %v17091_v22 = vunpack.c.l.bf16 %v17090_v50  ;;  %v17093_v46 = vunpack.c.h.bf16 %v17090_v50 }
 0x2fd   : > { %17082 = vst [vmem:[#allocation247_spill] sm:$0xff] %v10700_v51  ;;  %17084 = vst [vmem:[#allocation754_spill] sm:$0xff] %v10705_v10  ;;  %v17095_v10 = vld [vmem:[#allocation250_spill] sm:$0xff] }
 0x2fe   : > { %17087 = vst [vmem:[#allocation248_spill] sm:$0xff] %v10712_v8  ;;  %17089 = vst [vmem:[#allocation755_spill] sm:$0xff] %v10717_v17  ;;  %v10722_v51 = vmul.f32 %v10385_v28, %v17091_v22  ;;  %v10727_v47 = vmul.f32 %v10385_v28, %v17093_v46  ;;  %v17096_v35 = vunpack.c.l.bf16 %v17095_v10  ;;  %v17098_v56 = vunpack.c.h.bf16 %v17095_v10  ;;  %v17100_v17 = vld [vmem:[#allocation251_spill] sm:$0xff] }
 0x2ff   : > { %v17101_v8 = vunpack.c.l.bf16 %v17100_v17  ;;  %v17103_v50 = vunpack.c.h.bf16 %v17100_v17 }
 0x300   : > { %17092 = vst [vmem:[#allocation249_spill] sm:$0xff] %v10722_v51  ;;  %17094 = vst [vmem:[#allocation756_spill] sm:$0xff] %v10727_v47  ;;  %v10732_v1 = vmul.f32 %v10385_v28, %v17096_v35  ;;  %v10737_v62 = vmul.f32 %v10385_v28, %v17098_v56  ;;  %v17105_v47 = vld [vmem:[#allocation252_spill] sm:$0xff] }
 0x301   : > { %v10742_v22 = vmul.f32 %v10385_v28, %v17101_v8  ;;  %v10747_v46 = vmul.f32 %v10385_v28, %v17103_v50  ;;  %v17106_v51 = vunpack.c.l.bf16 %v17105_v47  ;;  %v17108_v10 = vunpack.c.h.bf16 %v17105_v47 }
 0x302   : > { %17097 = vst [vmem:[#allocation250_spill] sm:$0xff] %v10732_v1  ;;  %17099 = vst [vmem:[#allocation757_spill] sm:$0xff] %v10737_v62  ;;  %v17110_v62 = vld [vmem:[#allocation253_spill] sm:$0xff] }
 0x303   : > { %17102 = vst [vmem:[#allocation251_spill] sm:$0xff] %v10742_v22  ;;  %17104 = vst [vmem:[#allocation758_spill] sm:$0xff] %v10747_v46  ;;  %v10752_v35 = vmul.f32 %v10385_v28, %v17106_v51  ;;  %v10757_v56 = vmul.f32 %v10385_v28, %v17108_v10  ;;  %v17111_v1 = vunpack.c.l.bf16 %v17110_v62  ;;  %v17113_v17 = vunpack.c.h.bf16 %v17110_v62  ;;  %v17115_v46 = vld [vmem:[#allocation254_spill] sm:$0xff] }
 0x304   : > { %v17116_v22 = vunpack.c.l.bf16 %v17115_v46  ;;  %v17118_v47 = vunpack.c.h.bf16 %v17115_v46 }
 0x305   : > { %17107 = vst [vmem:[#allocation252_spill] sm:$0xff] %v10752_v35  ;;  %17109 = vst [vmem:[#allocation759_spill] sm:$0xff] %v10757_v56  ;;  %v10762_v8 = vmul.f32 %v10385_v28, %v17111_v1  ;;  %v10767_v50 = vmul.f32 %v10385_v28, %v17113_v17  ;;  %v17120_v56 = vld [vmem:[#allocation255_spill] sm:$0xff]  ;;  %v17125_v17 = vld [vmem:[#allocation256_spill] sm:$0xff] }
 0x306   : > { %v10772_v51 = vmul.f32 %v10707_v61, %v17116_v22  ;;  %v10777_v10 = vmul.f32 %v10707_v61, %v17118_v47  ;;  %v17121_v35 = vunpack.c.l.bf16 %v17120_v56  ;;  %v17123_v62 = vunpack.c.h.bf16 %v17120_v56 }
 0x307   : > { %17112 = vst [vmem:[#allocation253_spill] sm:$0xff] %v10762_v8  ;;  %17114 = vst [vmem:[#allocation760_spill] sm:$0xff] %v10767_v50  ;;  %v17126_v50 = vunpack.c.l.bf16 %v17125_v17  ;;  %v17128_v46 = vunpack.c.h.bf16 %v17125_v17  ;;  %v17130_v8 = vld [vmem:[#allocation257_spill] sm:$0xff] }
 0x308   : > { %17117 = vst [vmem:[#allocation254_spill] sm:$0xff] %v10772_v51  ;;  %17119 = vst [vmem:[#allocation761_spill] sm:$0xff] %v10777_v10  ;;  %v10782_v1 = vmul.f32 %v10707_v61, %v17121_v35  ;;  %v10787_v28 = vmul.f32 %v10707_v61, %v17123_v62  ;;  %v17131_v10 = vunpack.c.l.bf16 %v17130_v8  ;;  %v17133_v56 = vunpack.c.h.bf16 %v17130_v8 }
 0x309   : > { %v10792_v22 = vmul.f32 %v10707_v61, %v17126_v50  ;;  %v10797_v47 = vmul.f32 %v10707_v61, %v17128_v46 }
 0x30a   : > { %17122 = vst [vmem:[#allocation255_spill] sm:$0xff] %v10782_v1  ;;  %17124 = vst [vmem:[#allocation762_spill] sm:$0xff] %v10787_v28  ;;  %v10802_v35 = vmul.f32 %v10707_v61, %v17131_v10  ;;  %v10807_v62 = vmul.f32 %v10707_v61, %v17133_v56  ;;  %v17135_v28 = vld [vmem:[#allocation258_spill] sm:$0xff] }
 0x30b   : > { %17127 = vst [vmem:[#allocation256_spill] sm:$0xff] %v10792_v22  ;;  %17129 = vst [vmem:[#allocation763_spill] sm:$0xff] %v10797_v47  ;;  %v17136_v1 = vunpack.c.l.bf16 %v17135_v28  ;;  %v17138_v17 = vunpack.c.h.bf16 %v17135_v28  ;;  %v17140_v47 = vld [vmem:[#allocation259_spill] sm:$0xff] }
 0x30c   : > { %17132 = vst [vmem:[#allocation257_spill] sm:$0xff] %v10802_v35  ;;  %17134 = vst [vmem:[#allocation764_spill] sm:$0xff] %v10807_v62  ;;  %v17141_v22 = vunpack.c.l.bf16 %v17140_v47  ;;  %v17143_v8 = vunpack.c.h.bf16 %v17140_v47  ;;  %v17145_v62 = vld [vmem:[#allocation260_spill] sm:$0xff] }
 0x30d   : > { %v10812_v50 = vmul.f32 %v10707_v61, %v17136_v1  ;;  %v10817_v46 = vmul.f32 %v10707_v61, %v17138_v17  ;;  %v17146_v35 = vunpack.c.l.bf16 %v17145_v62  ;;  %v17148_v28 = vunpack.c.h.bf16 %v17145_v62 }
 0x30e   : > { %v10822_v10 = vmul.f32 %v10707_v61, %v17141_v22  ;;  %v10827_v56 = vmul.f32 %v10707_v61, %v17143_v8 }
 0x30f   : > { %17137 = vst [vmem:[#allocation258_spill] sm:$0xff] %v10812_v50  ;;  %17139 = vst [vmem:[#allocation765_spill] sm:$0xff] %v10817_v46  ;;  %v10832_v1 = vmul.f32 %v10707_v61, %v17146_v35  ;;  %v10837_v17 = vmul.f32 %v10707_v61, %v17148_v28  ;;  %v17150_v46 = vld [vmem:[#allocation261_spill] sm:$0xff] }
 0x310   : > { %17142 = vst [vmem:[#allocation259_spill] sm:$0xff] %v10822_v10  ;;  %17144 = vst [vmem:[#allocation766_spill] sm:$0xff] %v10827_v56  ;;  %v17151_v50 = vunpack.c.l.bf16 %v17150_v46  ;;  %v17153_v47 = vunpack.c.h.bf16 %v17150_v46  ;;  %v17155_v56 = vld [vmem:[#allocation262_spill] sm:$0xff] }
 0x311   : > { %17147 = vst [vmem:[#allocation260_spill] sm:$0xff] %v10832_v1  ;;  %17149 = vst [vmem:[#allocation767_spill] sm:$0xff] %v10837_v17  ;;  %v17156_v10 = vunpack.c.l.bf16 %v17155_v56  ;;  %v17158_v62 = vunpack.c.h.bf16 %v17155_v56  ;;  %v17160_v17 = vld [vmem:[#allocation263_spill] sm:$0xff] }
 0x312   : > { %v10842_v22 = vmul.f32 %v10707_v61, %v17151_v50  ;;  %v10847_v8 = vmul.f32 %v10707_v61, %v17153_v47  ;;  %v17161_v1 = vunpack.c.l.bf16 %v17160_v17  ;;  %v17163_v46 = vunpack.c.h.bf16 %v17160_v17 }
 0x313   : > { %v10852_v35 = vmul.f32 %v10707_v61, %v17156_v10  ;;  %v10857_v28 = vmul.f32 %v10707_v61, %v17158_v62 }
 0x314   : > { %17152 = vst [vmem:[#allocation261_spill] sm:$0xff] %v10842_v22  ;;  %17154 = vst [vmem:[#allocation768_spill] sm:$0xff] %v10847_v8  ;;  %v10862_v50 = vmul.f32 %v10707_v61, %v17161_v1  ;;  %v10867_v47 = vmul.f32 %v10707_v61, %v17163_v46  ;;  %v17165_v8 = vld [vmem:[#allocation264_spill] sm:$0xff] }
 0x315   : > { %17157 = vst [vmem:[#allocation262_spill] sm:$0xff] %v10852_v35  ;;  %17159 = vst [vmem:[#allocation769_spill] sm:$0xff] %v10857_v28  ;;  %v17166_v22 = vunpack.c.l.bf16 %v17165_v8  ;;  %v17168_v56 = vunpack.c.h.bf16 %v17165_v8  ;;  %v17170_v28 = vld [vmem:[#allocation265_spill] sm:$0xff] }
 0x316   : > { %17162 = vst [vmem:[#allocation263_spill] sm:$0xff] %v10862_v50  ;;  %17164 = vst [vmem:[#allocation770_spill] sm:$0xff] %v10867_v47  ;;  %v17171_v35 = vunpack.c.l.bf16 %v17170_v28  ;;  %v17173_v17 = vunpack.c.h.bf16 %v17170_v28  ;;  %v17175_v47 = vld [vmem:[#allocation266_spill] sm:$0xff] }
 0x317   : > { %v10872_v10 = vmul.f32 %v10707_v61, %v17166_v22  ;;  %v10877_v62 = vmul.f32 %v10707_v61, %v17168_v56  ;;  %v17176_v50 = vunpack.c.l.bf16 %v17175_v47  ;;  %v17178_v8 = vunpack.c.h.bf16 %v17175_v47 }
 0x318   : > { %v10882_v1 = vmul.f32 %v10707_v61, %v17171_v35  ;;  %v10887_v46 = vmul.f32 %v10707_v61, %v17173_v17 }
 0x319   : > { %17167 = vst [vmem:[#allocation264_spill] sm:$0xff] %v10872_v10  ;;  %17169 = vst [vmem:[#allocation771_spill] sm:$0xff] %v10877_v62  ;;  %v10892_v22 = vmul.f32 %v10707_v61, %v17176_v50  ;;  %v10897_v56 = vmul.f32 %v10707_v61, %v17178_v8  ;;  %v17180_v62 = vld [vmem:[#allocation267_spill] sm:$0xff] }
 0x31a   : > { %17172 = vst [vmem:[#allocation265_spill] sm:$0xff] %v10882_v1  ;;  %17174 = vst [vmem:[#allocation772_spill] sm:$0xff] %v10887_v46  ;;  %v17181_v10 = vunpack.c.l.bf16 %v17180_v62  ;;  %v17183_v28 = vunpack.c.h.bf16 %v17180_v62  ;;  %v17185_v46 = vld [vmem:[#allocation268_spill] sm:$0xff] }
 0x31b   : > { %17177 = vst [vmem:[#allocation266_spill] sm:$0xff] %v10892_v22  ;;  %17179 = vst [vmem:[#allocation773_spill] sm:$0xff] %v10897_v56  ;;  %v17186_v1 = vunpack.c.l.bf16 %v17185_v46  ;;  %v17188_v47 = vunpack.c.h.bf16 %v17185_v46  ;;  %v17190_v56 = vld [vmem:[#allocation269_spill] sm:$0xff] }
 0x31c   : > { %v10902_v35 = vmul.f32 %v10707_v61, %v17181_v10  ;;  %v10907_v17 = vmul.f32 %v10707_v61, %v17183_v28  ;;  %v17191_v22 = vunpack.c.l.bf16 %v17190_v56  ;;  %v17193_v62 = vunpack.c.h.bf16 %v17190_v56 }
 0x31d   : > { %v10912_v50 = vmul.f32 %v10707_v61, %v17186_v1  ;;  %v10917_v8 = vmul.f32 %v10707_v61, %v17188_v47 }
 0x31e   : > { %17182 = vst [vmem:[#allocation267_spill] sm:$0xff] %v10902_v35  ;;  %17184 = vst [vmem:[#allocation774_spill] sm:$0xff] %v10907_v17  ;;  %v10922_v10 = vmul.f32 %v10707_v61, %v17191_v22  ;;  %v10927_v28 = vmul.f32 %v10707_v61, %v17193_v62  ;;  %v17195_v17 = vld [vmem:[#allocation270_spill] sm:$0xff] }
 0x31f   : > { %17187 = vst [vmem:[#allocation268_spill] sm:$0xff] %v10912_v50  ;;  %17189 = vst [vmem:[#allocation775_spill] sm:$0xff] %v10917_v8  ;;  %v17196_v35 = vunpack.c.l.bf16 %v17195_v17  ;;  %v17198_v46 = vunpack.c.h.bf16 %v17195_v17  ;;  %v17200_v8 = vld [vmem:[#allocation271_spill] sm:$0xff] }
 0x320   : > { %17192 = vst [vmem:[#allocation269_spill] sm:$0xff] %v10922_v10  ;;  %17194 = vst [vmem:[#allocation776_spill] sm:$0xff] %v10927_v28  ;;  %v17201_v50 = vunpack.c.l.bf16 %v17200_v8  ;;  %v17203_v56 = vunpack.c.h.bf16 %v17200_v8  ;;  %v17205_v28 = vld [vmem:[#allocation272_spill] sm:$0xff] }
 0x321   : > { %v10932_v1 = vmul.f32 %v10707_v61, %v17196_v35  ;;  %v10937_v47 = vmul.f32 %v10707_v61, %v17198_v46  ;;  %v17206_v10 = vunpack.c.l.bf16 %v17205_v28  ;;  %v17208_v17 = vunpack.c.h.bf16 %v17205_v28 }
 0x322   : > { %v10942_v22 = vmul.f32 %v10707_v61, %v17201_v50  ;;  %v10947_v62 = vmul.f32 %v10707_v61, %v17203_v56 }
 0x323   : > { %17197 = vst [vmem:[#allocation270_spill] sm:$0xff] %v10932_v1  ;;  %17199 = vst [vmem:[#allocation777_spill] sm:$0xff] %v10937_v47  ;;  %v10952_v35 = vmul.f32 %v10707_v61, %v17206_v10  ;;  %v10957_v46 = vmul.f32 %v10707_v61, %v17208_v17  ;;  %v17210_v47 = vld [vmem:[#allocation273_spill] sm:$0xff] }
 0x324   : > { %17202 = vst [vmem:[#allocation271_spill] sm:$0xff] %v10942_v22  ;;  %17204 = vst [vmem:[#allocation778_spill] sm:$0xff] %v10947_v62  ;;  %v17211_v1 = vunpack.c.l.bf16 %v17210_v47  ;;  %v17213_v8 = vunpack.c.h.bf16 %v17210_v47  ;;  %v17215_v62 = vld [vmem:[#allocation274_spill] sm:$0xff] }
 0x325   : > { %17207 = vst [vmem:[#allocation272_spill] sm:$0xff] %v10952_v35  ;;  %17209 = vst [vmem:[#allocation779_spill] sm:$0xff] %v10957_v46  ;;  %v17216_v22 = vunpack.c.l.bf16 %v17215_v62  ;;  %v17218_v28 = vunpack.c.h.bf16 %v17215_v62  ;;  %v17220_v46 = vld [vmem:[#allocation275_spill] sm:$0xff] }
 0x326   : > { %v10962_v50 = vmul.f32 %v10707_v61, %v17211_v1  ;;  %v10967_v56 = vmul.f32 %v10707_v61, %v17213_v8  ;;  %v17221_v35 = vunpack.c.l.bf16 %v17220_v46  ;;  %v17223_v47 = vunpack.c.h.bf16 %v17220_v46 }
 0x327   : > { %v10972_v10 = vmul.f32 %v10707_v61, %v17216_v22  ;;  %v10977_v17 = vmul.f32 %v10707_v61, %v17218_v28 }
 0x328   : > { %17212 = vst [vmem:[#allocation273_spill] sm:$0xff] %v10962_v50  ;;  %17214 = vst [vmem:[#allocation780_spill] sm:$0xff] %v10967_v56  ;;  %v10982_v1 = vmul.f32 %v10707_v61, %v17221_v35  ;;  %v10987_v8 = vmul.f32 %v10707_v61, %v17223_v47  ;;  %v17225_v56 = vld [vmem:[#allocation276_spill] sm:$0xff] }
 0x329   : > { %17217 = vst [vmem:[#allocation274_spill] sm:$0xff] %v10972_v10  ;;  %17219 = vst [vmem:[#allocation781_spill] sm:$0xff] %v10977_v17  ;;  %v17226_v50 = vunpack.c.l.bf16 %v17225_v56  ;;  %v17228_v62 = vunpack.c.h.bf16 %v17225_v56  ;;  %v17230_v17 = vld [vmem:[#allocation277_spill] sm:$0xff] }
 0x32a   : > { %17222 = vst [vmem:[#allocation275_spill] sm:$0xff] %v10982_v1  ;;  %17224 = vst [vmem:[#allocation782_spill] sm:$0xff] %v10987_v8  ;;  %v17231_v10 = vunpack.c.l.bf16 %v17230_v17  ;;  %v17233_v46 = vunpack.c.h.bf16 %v17230_v17  ;;  %v17235_v8 = vld [vmem:[#allocation278_spill] sm:$0xff] }
 0x32b   : > { %v10992_v22 = vmul.f32 %v10707_v61, %v17226_v50  ;;  %v10997_v28 = vmul.f32 %v10707_v61, %v17228_v62  ;;  %v17236_v1 = vunpack.c.l.bf16 %v17235_v8  ;;  %v17238_v56 = vunpack.c.h.bf16 %v17235_v8 }
 0x32c   : > { %v11002_v35 = vmul.f32 %v10707_v61, %v17231_v10  ;;  %v11007_v47 = vmul.f32 %v10707_v61, %v17233_v46 }
 0x32d   : > { %17227 = vst [vmem:[#allocation276_spill] sm:$0xff] %v10992_v22  ;;  %17229 = vst [vmem:[#allocation783_spill] sm:$0xff] %v10997_v28  ;;  %v11012_v50 = vmul.f32 %v10707_v61, %v17236_v1  ;;  %v11017_v62 = vmul.f32 %v10707_v61, %v17238_v56  ;;  %v17240_v28 = vld [vmem:[#allocation279_spill] sm:$0xff] }
 0x32e   : > { %17232 = vst [vmem:[#allocation277_spill] sm:$0xff] %v11002_v35  ;;  %17234 = vst [vmem:[#allocation784_spill] sm:$0xff] %v11007_v47  ;;  %v17241_v22 = vunpack.c.l.bf16 %v17240_v28  ;;  %v17243_v17 = vunpack.c.h.bf16 %v17240_v28  ;;  %v11029_v47 = vpop.permute.xlu0 %1839  ;;  %v17245_v35 = vld [vmem:[#allocation280_spill] sm:$0xff] }
 0x32f   : > { %17237 = vst [vmem:[#allocation278_spill] sm:$0xff] %v11012_v50  ;;  %17239 = vst [vmem:[#allocation785_spill] sm:$0xff] %v11017_v62  ;;  %v17246_v1 = vunpack.c.l.bf16 %v17245_v35  ;;  %v17248_v8 = vunpack.c.h.bf16 %v17245_v35  ;;  %v17250_v62 = vld [vmem:[#allocation281_spill] sm:$0xff] }
 0x330   : > { %v11022_v10 = vmul.f32 %v10707_v61, %v17241_v22  ;;  %v11027_v46 = vmul.f32 %v10707_v61, %v17243_v17  ;;  %v17251_v22 = vunpack.c.l.bf16 %v17250_v62  ;;  %v17253_v28 = vunpack.c.h.bf16 %v17250_v62 }
 0x331   : > { %v11034_v50 = vmul.f32 %v10707_v61, %v17246_v1  ;;  %v11039_v56 = vmul.f32 %v10707_v61, %v17248_v8 }
 0x332   : > { %17242 = vst [vmem:[#allocation279_spill] sm:$0xff] %v11022_v10  ;;  %17244 = vst [vmem:[#allocation786_spill] sm:$0xff] %v11027_v46  ;;  %v11044_v10 = vmul.f32 %v10707_v61, %v17251_v22  ;;  %v11049_v17 = vmul.f32 %v10707_v61, %v17253_v28  ;;  %v17255_v46 = vld [vmem:[#allocation282_spill] sm:$0xff] }
 0x333   : > { %17247 = vst [vmem:[#allocation280_spill] sm:$0xff] %v11034_v50  ;;  %17249 = vst [vmem:[#allocation787_spill] sm:$0xff] %v11039_v56  ;;  %v17256_v51 = vunpack.c.l.bf16 %v17255_v46  ;;  %v17258_v35 = vunpack.c.h.bf16 %v17255_v46  ;;  %v17260_v56 = vld [vmem:[#allocation283_spill] sm:$0xff] }
 0x334   : > { %17252 = vst [vmem:[#allocation281_spill] sm:$0xff] %v11044_v10  ;;  %17254 = vst [vmem:[#allocation788_spill] sm:$0xff] %v11049_v17  ;;  %v17261_v50 = vunpack.c.l.bf16 %v17260_v56  ;;  %v17263_v62 = vunpack.c.h.bf16 %v17260_v56  ;;  %v17265_v17 = vld [vmem:[#allocation284_spill] sm:$0xff] }
 0x335   : > { %v11054_v1 = vmul.f32 %v10707_v61, %v17256_v51  ;;  %v11059_v8 = vmul.f32 %v10707_v61, %v17258_v35  ;;  %v17266_v10 = vunpack.c.l.bf16 %v17265_v17  ;;  %v17268_v46 = vunpack.c.h.bf16 %v17265_v17 }
 0x336   : > { %v11064_v22 = vmul.f32 %v10707_v61, %v17261_v50  ;;  %v11069_v28 = vmul.f32 %v10707_v61, %v17263_v62 }
 0x337   : > { %17257 = vst [vmem:[#allocation282_spill] sm:$0xff] %v11054_v1  ;;  %17259 = vst [vmem:[#allocation789_spill] sm:$0xff] %v11059_v8  ;;  %v11074_v51 = vmul.f32 %v10707_v61, %v17266_v10  ;;  %v11079_v35 = vmul.f32 %v10707_v61, %v17268_v46  ;;  %v17270_v8 = vld [vmem:[#allocation285_spill] sm:$0xff] }
 0x338   : > { %17262 = vst [vmem:[#allocation283_spill] sm:$0xff] %v11064_v22  ;;  %17264 = vst [vmem:[#allocation790_spill] sm:$0xff] %v11069_v28  ;;  %v17271_v1 = vunpack.c.l.bf16 %v17270_v8  ;;  %v17273_v56 = vunpack.c.h.bf16 %v17270_v8  ;;  %v17275_v28 = vld [vmem:[#allocation286_spill] sm:$0xff] }
 0x339   : > { %17267 = vst [vmem:[#allocation284_spill] sm:$0xff] %v11074_v51  ;;  %17269 = vst [vmem:[#allocation791_spill] sm:$0xff] %v11079_v35  ;;  %v17276_v22 = vunpack.c.l.bf16 %v17275_v28  ;;  %v17278_v17 = vunpack.c.h.bf16 %v17275_v28  ;;  %v17280_v35 = vld [vmem:[#allocation287_spill] sm:$0xff] }
 0x33a   : > { %v11084_v50 = vmul.f32 %v10707_v61, %v17271_v1  ;;  %v11089_v62 = vmul.f32 %v10707_v61, %v17273_v56  ;;  %v17281_v51 = vunpack.c.l.bf16 %v17280_v35  ;;  %v17283_v8 = vunpack.c.h.bf16 %v17280_v35  ;;  %v17285_v56 = vld [vmem:[#allocation288_spill] sm:$0xff] }
 0x33b   : > { %v11094_v10 = vmul.f32 %v11029_v47, %v17276_v22  ;;  %v11099_v46 = vmul.f32 %v11029_v47, %v17278_v17  ;;  %v17288_v28 = vunpack.c.h.bf16 %v17285_v56 }
 0x33c   : > { %17272 = vst [vmem:[#allocation285_spill] sm:$0xff] %v11084_v50  ;;  %17274 = vst [vmem:[#allocation792_spill] sm:$0xff] %v11089_v62  ;;  %v11104_v1 = vmul.f32 %v11029_v47, %v17281_v51  ;;  %v11109_v61 = vmul.f32 %v11029_v47, %v17283_v8  ;;  %v17286_v62 = vunpack.c.l.bf16 %v17285_v56  ;;  %v17290_v50 = vld [vmem:[#allocation289_spill] sm:$0xff] }
 0x33d   : > { %17277 = vst [vmem:[#allocation286_spill] sm:$0xff] %v11094_v10  ;;  %17279 = vst [vmem:[#allocation793_spill] sm:$0xff] %v11099_v46  ;;  %v11119_v17 = vmul.f32 %v11029_v47, %v17288_v28  ;;  %v17291_v46 = vunpack.c.l.bf16 %v17290_v50  ;;  %v17293_v35 = vunpack.c.h.bf16 %v17290_v50 }
 0x33e   : > { %17282 = vst [vmem:[#allocation287_spill] sm:$0xff] %v11104_v1  ;;  %17284 = vst [vmem:[#allocation794_spill] sm:$0xff] %v11109_v61  ;;  %v11114_v22 = vmul.f32 %v11029_v47, %v17286_v62  ;;  %v17295_v61 = vld [vmem:[#allocation290_spill] sm:$0xff] }
 0x33f   : > { %17289 = vst [vmem:[#allocation795_spill] sm:$0xff] %v11119_v17  ;;  %v11124_v51 = vmul.f32 %v11029_v47, %v17291_v46  ;;  %v11129_v8 = vmul.f32 %v11029_v47, %v17293_v35  ;;  %v17296_v1 = vunpack.c.l.bf16 %v17295_v61  ;;  %v17298_v56 = vunpack.c.h.bf16 %v17295_v61  ;;  %v17300_v17 = vld [vmem:[#allocation291_spill] sm:$0xff] }
 0x340   : > { %17287 = vst [vmem:[#allocation288_spill] sm:$0xff] %v11114_v22  ;;  %v17301_v22 = vunpack.c.l.bf16 %v17300_v17  ;;  %v17303_v50 = vunpack.c.h.bf16 %v17300_v17 }
 0x341   : > { %17292 = vst [vmem:[#allocation289_spill] sm:$0xff] %v11124_v51  ;;  %17294 = vst [vmem:[#allocation796_spill] sm:$0xff] %v11129_v8  ;;  %v11134_v62 = vmul.f32 %v11029_v47, %v17296_v1  ;;  %v11139_v28 = vmul.f32 %v11029_v47, %v17298_v56  ;;  %v17305_v8 = vld [vmem:[#allocation292_spill] sm:$0xff] }
 0x342   : > { %v11144_v46 = vmul.f32 %v11029_v47, %v17301_v22  ;;  %v11149_v35 = vmul.f32 %v11029_v47, %v17303_v50  ;;  %v17306_v51 = vunpack.c.l.bf16 %v17305_v8  ;;  %v17308_v61 = vunpack.c.h.bf16 %v17305_v8 }
 0x343   : > { %17297 = vst [vmem:[#allocation290_spill] sm:$0xff] %v11134_v62  ;;  %17299 = vst [vmem:[#allocation797_spill] sm:$0xff] %v11139_v28  ;;  %v17310_v28 = vld [vmem:[#allocation293_spill] sm:$0xff] }
 0x344   : > { %17302 = vst [vmem:[#allocation291_spill] sm:$0xff] %v11144_v46  ;;  %17304 = vst [vmem:[#allocation798_spill] sm:$0xff] %v11149_v35  ;;  %v11154_v1 = vmul.f32 %v11029_v47, %v17306_v51  ;;  %v11159_v56 = vmul.f32 %v11029_v47, %v17308_v61  ;;  %v17311_v62 = vunpack.c.l.bf16 %v17310_v28  ;;  %v17313_v17 = vunpack.c.h.bf16 %v17310_v28  ;;  %v17315_v35 = vld [vmem:[#allocation294_spill] sm:$0xff] }
 0x345   : > { %v17316_v46 = vunpack.c.l.bf16 %v17315_v35  ;;  %v17318_v8 = vunpack.c.h.bf16 %v17315_v35 }
 0x346   : > { %17307 = vst [vmem:[#allocation292_spill] sm:$0xff] %v11154_v1  ;;  %17309 = vst [vmem:[#allocation799_spill] sm:$0xff] %v11159_v56  ;;  %v11164_v22 = vmul.f32 %v11029_v47, %v17311_v62  ;;  %v11169_v50 = vmul.f32 %v11029_v47, %v17313_v17  ;;  %v17320_v56 = vld [vmem:[#allocation295_spill] sm:$0xff] }
 0x347   : > { %v11174_v51 = vmul.f32 %v11029_v47, %v17316_v46  ;;  %v11179_v61 = vmul.f32 %v11029_v47, %v17318_v8  ;;  %v17321_v1 = vunpack.c.l.bf16 %v17320_v56  ;;  %v17323_v28 = vunpack.c.h.bf16 %v17320_v56 }
 0x348   : > { %17312 = vst [vmem:[#allocation293_spill] sm:$0xff] %v11164_v22  ;;  %17314 = vst [vmem:[#allocation800_spill] sm:$0xff] %v11169_v50  ;;  %v17325_v50 = vld [vmem:[#allocation296_spill] sm:$0xff] }
 0x349   : > { %17317 = vst [vmem:[#allocation294_spill] sm:$0xff] %v11174_v51  ;;  %17319 = vst [vmem:[#allocation801_spill] sm:$0xff] %v11179_v61  ;;  %v11184_v62 = vmul.f32 %v11029_v47, %v17321_v1  ;;  %v11189_v17 = vmul.f32 %v11029_v47, %v17323_v28  ;;  %v17326_v22 = vunpack.c.l.bf16 %v17325_v50  ;;  %v17328_v35 = vunpack.c.h.bf16 %v17325_v50  ;;  %v17330_v61 = vld [vmem:[#allocation297_spill] sm:$0xff] }
 0x34a   : > { %v17331_v51 = vunpack.c.l.bf16 %v17330_v61  ;;  %v17333_v56 = vunpack.c.h.bf16 %v17330_v61 }
 0x34b   : > { %17322 = vst [vmem:[#allocation295_spill] sm:$0xff] %v11184_v62  ;;  %17324 = vst [vmem:[#allocation802_spill] sm:$0xff] %v11189_v17  ;;  %v11194_v46 = vmul.f32 %v11029_v47, %v17326_v22  ;;  %v11199_v8 = vmul.f32 %v11029_v47, %v17328_v35  ;;  %v17335_v17 = vld [vmem:[#allocation298_spill] sm:$0xff] }
 0x34c   : > { %v11204_v1 = vmul.f32 %v11029_v47, %v17331_v51  ;;  %v11209_v28 = vmul.f32 %v11029_v47, %v17333_v56  ;;  %v17336_v62 = vunpack.c.l.bf16 %v17335_v17  ;;  %v17338_v50 = vunpack.c.h.bf16 %v17335_v17 }
 0x34d   : > { %17327 = vst [vmem:[#allocation296_spill] sm:$0xff] %v11194_v46  ;;  %17329 = vst [vmem:[#allocation803_spill] sm:$0xff] %v11199_v8  ;;  %v17340_v8 = vld [vmem:[#allocation299_spill] sm:$0xff] }
 0x34e   : > { %17332 = vst [vmem:[#allocation297_spill] sm:$0xff] %v11204_v1  ;;  %17334 = vst [vmem:[#allocation804_spill] sm:$0xff] %v11209_v28  ;;  %v11214_v22 = vmul.f32 %v11029_v47, %v17336_v62  ;;  %v11219_v35 = vmul.f32 %v11029_v47, %v17338_v50  ;;  %v17341_v46 = vunpack.c.l.bf16 %v17340_v8  ;;  %v17343_v61 = vunpack.c.h.bf16 %v17340_v8  ;;  %v17345_v28 = vld [vmem:[#allocation300_spill] sm:$0xff] }
 0x34f   : > { %v17346_v1 = vunpack.c.l.bf16 %v17345_v28  ;;  %v17348_v17 = vunpack.c.h.bf16 %v17345_v28 }
 0x350   : > { %17337 = vst [vmem:[#allocation298_spill] sm:$0xff] %v11214_v22  ;;  %17339 = vst [vmem:[#allocation805_spill] sm:$0xff] %v11219_v35  ;;  %v11224_v51 = vmul.f32 %v11029_v47, %v17341_v46  ;;  %v11229_v56 = vmul.f32 %v11029_v47, %v17343_v61  ;;  %v17350_v35 = vld [vmem:[#allocation301_spill] sm:$0xff] }
 0x351   : > { %v11234_v62 = vmul.f32 %v11029_v47, %v17346_v1  ;;  %v11239_v50 = vmul.f32 %v11029_v47, %v17348_v17  ;;  %v17351_v22 = vunpack.c.l.bf16 %v17350_v35  ;;  %v17353_v8 = vunpack.c.h.bf16 %v17350_v35 }
 0x352   : > { %17342 = vst [vmem:[#allocation299_spill] sm:$0xff] %v11224_v51  ;;  %17344 = vst [vmem:[#allocation806_spill] sm:$0xff] %v11229_v56  ;;  %v17355_v56 = vld [vmem:[#allocation302_spill] sm:$0xff] }
 0x353   : > { %17347 = vst [vmem:[#allocation300_spill] sm:$0xff] %v11234_v62  ;;  %17349 = vst [vmem:[#allocation807_spill] sm:$0xff] %v11239_v50  ;;  %v11244_v46 = vmul.f32 %v11029_v47, %v17351_v22  ;;  %v11249_v61 = vmul.f32 %v11029_v47, %v17353_v8  ;;  %v17356_v51 = vunpack.c.l.bf16 %v17355_v56  ;;  %v17358_v28 = vunpack.c.h.bf16 %v17355_v56  ;;  %v17360_v50 = vld [vmem:[#allocation303_spill] sm:$0xff] }
 0x354   : > { %v17361_v62 = vunpack.c.l.bf16 %v17360_v50  ;;  %v17363_v35 = vunpack.c.h.bf16 %v17360_v50 }
 0x355   : > { %17352 = vst [vmem:[#allocation301_spill] sm:$0xff] %v11244_v46  ;;  %17354 = vst [vmem:[#allocation808_spill] sm:$0xff] %v11249_v61  ;;  %v11254_v1 = vmul.f32 %v11029_v47, %v17356_v51  ;;  %v11259_v17 = vmul.f32 %v11029_v47, %v17358_v28  ;;  %v17365_v61 = vld [vmem:[#allocation304_spill] sm:$0xff] }
 0x356   : > { %v11264_v22 = vmul.f32 %v11029_v47, %v17361_v62  ;;  %v11269_v8 = vmul.f32 %v11029_v47, %v17363_v35  ;;  %v17366_v46 = vunpack.c.l.bf16 %v17365_v61  ;;  %v17368_v56 = vunpack.c.h.bf16 %v17365_v61 }
 0x357   : > { %17357 = vst [vmem:[#allocation302_spill] sm:$0xff] %v11254_v1  ;;  %17359 = vst [vmem:[#allocation809_spill] sm:$0xff] %v11259_v17  ;;  %v17370_v17 = vld [vmem:[#allocation305_spill] sm:$0xff] }
 0x358   : > { %17362 = vst [vmem:[#allocation303_spill] sm:$0xff] %v11264_v22  ;;  %17364 = vst [vmem:[#allocation810_spill] sm:$0xff] %v11269_v8  ;;  %v11274_v51 = vmul.f32 %v11029_v47, %v17366_v46  ;;  %v11279_v28 = vmul.f32 %v11029_v47, %v17368_v56  ;;  %v17371_v1 = vunpack.c.l.bf16 %v17370_v17  ;;  %v17373_v50 = vunpack.c.h.bf16 %v17370_v17  ;;  %v17375_v8 = vld [vmem:[#allocation306_spill] sm:$0xff] }
 0x359   : > { %v17376_v22 = vunpack.c.l.bf16 %v17375_v8  ;;  %v17378_v61 = vunpack.c.h.bf16 %v17375_v8 }
 0x35a   : > { %17367 = vst [vmem:[#allocation304_spill] sm:$0xff] %v11274_v51  ;;  %17369 = vst [vmem:[#allocation811_spill] sm:$0xff] %v11279_v28  ;;  %v11284_v62 = vmul.f32 %v11029_v47, %v17371_v1  ;;  %v11289_v35 = vmul.f32 %v11029_v47, %v17373_v50  ;;  %v17380_v28 = vld [vmem:[#allocation307_spill] sm:$0xff] }
 0x35b   : > { %v11294_v46 = vmul.f32 %v11029_v47, %v17376_v22  ;;  %v11299_v56 = vmul.f32 %v11029_v47, %v17378_v61  ;;  %v17381_v51 = vunpack.c.l.bf16 %v17380_v28  ;;  %v17383_v17 = vunpack.c.h.bf16 %v17380_v28 }
 0x35c   : > { %17372 = vst [vmem:[#allocation305_spill] sm:$0xff] %v11284_v62  ;;  %17374 = vst [vmem:[#allocation812_spill] sm:$0xff] %v11289_v35  ;;  %v17385_v35 = vld [vmem:[#allocation308_spill] sm:$0xff] }
 0x35d   : > { %17377 = vst [vmem:[#allocation306_spill] sm:$0xff] %v11294_v46  ;;  %17379 = vst [vmem:[#allocation813_spill] sm:$0xff] %v11299_v56  ;;  %v11304_v1 = vmul.f32 %v11029_v47, %v17381_v51  ;;  %v11309_v50 = vmul.f32 %v11029_v47, %v17383_v17  ;;  %v17386_v62 = vunpack.c.l.bf16 %v17385_v35  ;;  %v17388_v8 = vunpack.c.h.bf16 %v17385_v35  ;;  %v17390_v56 = vld [vmem:[#allocation309_spill] sm:$0xff] }
 0x35e   : > { %v17391_v46 = vunpack.c.l.bf16 %v17390_v56  ;;  %v17393_v28 = vunpack.c.h.bf16 %v17390_v56 }
 0x35f   : > { %17382 = vst [vmem:[#allocation307_spill] sm:$0xff] %v11304_v1  ;;  %17384 = vst [vmem:[#allocation814_spill] sm:$0xff] %v11309_v50  ;;  %v11314_v22 = vmul.f32 %v11029_v47, %v17386_v62  ;;  %v11319_v61 = vmul.f32 %v11029_v47, %v17388_v8  ;;  %v17395_v50 = vld [vmem:[#allocation310_spill] sm:$0xff] }
 0x360   : > { %v11324_v51 = vmul.f32 %v11029_v47, %v17391_v46  ;;  %v11329_v17 = vmul.f32 %v11029_v47, %v17393_v28  ;;  %v17396_v1 = vunpack.c.l.bf16 %v17395_v50  ;;  %v17398_v35 = vunpack.c.h.bf16 %v17395_v50 }
 0x361   : > { %17387 = vst [vmem:[#allocation308_spill] sm:$0xff] %v11314_v22  ;;  %17389 = vst [vmem:[#allocation815_spill] sm:$0xff] %v11319_v61  ;;  %v17400_v61 = vld [vmem:[#allocation311_spill] sm:$0xff] }
 0x362   : > { %17392 = vst [vmem:[#allocation309_spill] sm:$0xff] %v11324_v51  ;;  %17394 = vst [vmem:[#allocation816_spill] sm:$0xff] %v11329_v17  ;;  %v11334_v62 = vmul.f32 %v11029_v47, %v17396_v1  ;;  %v11339_v8 = vmul.f32 %v11029_v47, %v17398_v35  ;;  %v17401_v22 = vunpack.c.l.bf16 %v17400_v61  ;;  %v17403_v56 = vunpack.c.h.bf16 %v17400_v61  ;;  %v11351_v17 = vpop.permute.xlu1 %1844  ;;  %v17405_v51 = vld [vmem:[#allocation312_spill] sm:$0xff] }
 0x363   : > { %v17406_v1 = vunpack.c.l.bf16 %v17405_v51  ;;  %v17408_v50 = vunpack.c.h.bf16 %v17405_v51 }
 0x364   : > { %17397 = vst [vmem:[#allocation310_spill] sm:$0xff] %v11334_v62  ;;  %17399 = vst [vmem:[#allocation817_spill] sm:$0xff] %v11339_v8  ;;  %v11344_v46 = vmul.f32 %v11029_v47, %v17401_v22  ;;  %v11349_v28 = vmul.f32 %v11029_v47, %v17403_v56  ;;  %v17410_v8 = vld [vmem:[#allocation313_spill] sm:$0xff] }
 0x365   : > { %v11356_v62 = vmul.f32 %v11029_v47, %v17406_v1  ;;  %v11361_v35 = vmul.f32 %v11029_v47, %v17408_v50  ;;  %v17411_v22 = vunpack.c.l.bf16 %v17410_v8  ;;  %v17413_v61 = vunpack.c.h.bf16 %v17410_v8 }
 0x366   : > { %17402 = vst [vmem:[#allocation311_spill] sm:$0xff] %v11344_v46  ;;  %17404 = vst [vmem:[#allocation818_spill] sm:$0xff] %v11349_v28  ;;  %v17415_v28 = vld [vmem:[#allocation314_spill] sm:$0xff] }
 0x367   : > { %17407 = vst [vmem:[#allocation312_spill] sm:$0xff] %v11356_v62  ;;  %17409 = vst [vmem:[#allocation819_spill] sm:$0xff] %v11361_v35  ;;  %v11366_v46 = vmul.f32 %v11029_v47, %v17411_v22  ;;  %v11371_v56 = vmul.f32 %v11029_v47, %v17413_v61  ;;  %v17416_v10 = vunpack.c.l.bf16 %v17415_v28  ;;  %v17418_v51 = vunpack.c.h.bf16 %v17415_v28  ;;  %v17420_v35 = vld [vmem:[#allocation315_spill] sm:$0xff] }
 0x368   : > { %v17421_v62 = vunpack.c.l.bf16 %v17420_v35  ;;  %v17423_v8 = vunpack.c.h.bf16 %v17420_v35 }
 0x369   : > { %17412 = vst [vmem:[#allocation313_spill] sm:$0xff] %v11366_v46  ;;  %17414 = vst [vmem:[#allocation820_spill] sm:$0xff] %v11371_v56  ;;  %v11376_v1 = vmul.f32 %v11029_v47, %v17416_v10  ;;  %v11381_v50 = vmul.f32 %v11029_v47, %v17418_v51  ;;  %v17425_v56 = vld [vmem:[#allocation316_spill] sm:$0xff] }
 0x36a   : > { %v11386_v22 = vmul.f32 %v11029_v47, %v17421_v62  ;;  %v11391_v61 = vmul.f32 %v11029_v47, %v17423_v8  ;;  %v17426_v46 = vunpack.c.l.bf16 %v17425_v56  ;;  %v17428_v28 = vunpack.c.h.bf16 %v17425_v56 }
 0x36b   : > { %17417 = vst [vmem:[#allocation314_spill] sm:$0xff] %v11376_v1  ;;  %17419 = vst [vmem:[#allocation821_spill] sm:$0xff] %v11381_v50  ;;  %v17430_v50 = vld [vmem:[#allocation317_spill] sm:$0xff] }
 0x36c   : > { %17422 = vst [vmem:[#allocation315_spill] sm:$0xff] %v11386_v22  ;;  %17424 = vst [vmem:[#allocation822_spill] sm:$0xff] %v11391_v61  ;;  %v11396_v10 = vmul.f32 %v11029_v47, %v17426_v46  ;;  %v11401_v51 = vmul.f32 %v11029_v47, %v17428_v28  ;;  %v17431_v1 = vunpack.c.l.bf16 %v17430_v50  ;;  %v17433_v35 = vunpack.c.h.bf16 %v17430_v50  ;;  %v17435_v61 = vld [vmem:[#allocation318_spill] sm:$0xff] }
 0x36d   : > { %v17436_v22 = vunpack.c.l.bf16 %v17435_v61  ;;  %v17438_v56 = vunpack.c.h.bf16 %v17435_v61 }
 0x36e   : > { %17427 = vst [vmem:[#allocation316_spill] sm:$0xff] %v11396_v10  ;;  %17429 = vst [vmem:[#allocation823_spill] sm:$0xff] %v11401_v51  ;;  %v11406_v62 = vmul.f32 %v11029_v47, %v17431_v1  ;;  %v11411_v8 = vmul.f32 %v11029_v47, %v17433_v35  ;;  %v17440_v51 = vld [vmem:[#allocation319_spill] sm:$0xff]  ;;  %v17445_v35 = vld [vmem:[#allocation320_spill] sm:$0xff] }
 0x36f   : > { %v11416_v46 = vmul.f32 %v11351_v17, %v17436_v22  ;;  %v11421_v28 = vmul.f32 %v11351_v17, %v17438_v56  ;;  %v17441_v10 = vunpack.c.l.bf16 %v17440_v51  ;;  %v17443_v50 = vunpack.c.h.bf16 %v17440_v51 }
 0x370   : > { %17432 = vst [vmem:[#allocation317_spill] sm:$0xff] %v11406_v62  ;;  %17434 = vst [vmem:[#allocation824_spill] sm:$0xff] %v11411_v8  ;;  %v17446_v8 = vunpack.c.l.bf16 %v17445_v35  ;;  %v17448_v61 = vunpack.c.h.bf16 %v17445_v35  ;;  %v17450_v62 = vld [vmem:[#allocation321_spill] sm:$0xff] }
 0x371   : > { %17437 = vst [vmem:[#allocation318_spill] sm:$0xff] %v11416_v46  ;;  %17439 = vst [vmem:[#allocation825_spill] sm:$0xff] %v11421_v28  ;;  %v11426_v1 = vmul.f32 %v11351_v17, %v17441_v10  ;;  %v11431_v47 = vmul.f32 %v11351_v17, %v17443_v50  ;;  %v17451_v28 = vunpack.c.l.bf16 %v17450_v62  ;;  %v17453_v51 = vunpack.c.h.bf16 %v17450_v62 }
 0x372   : > { %v11436_v22 = vmul.f32 %v11351_v17, %v17446_v8  ;;  %v11441_v56 = vmul.f32 %v11351_v17, %v17448_v61 }
 0x373   : > { %17442 = vst [vmem:[#allocation319_spill] sm:$0xff] %v11426_v1  ;;  %17444 = vst [vmem:[#allocation826_spill] sm:$0xff] %v11431_v47  ;;  %v11446_v10 = vmul.f32 %v11351_v17, %v17451_v28  ;;  %v11451_v50 = vmul.f32 %v11351_v17, %v17453_v51  ;;  %v17455_v47 = vld [vmem:[#allocation322_spill] sm:$0xff] }
 0x374   : > { %17447 = vst [vmem:[#allocation320_spill] sm:$0xff] %v11436_v22  ;;  %17449 = vst [vmem:[#allocation827_spill] sm:$0xff] %v11441_v56  ;;  %v17456_v1 = vunpack.c.l.bf16 %v17455_v47  ;;  %v17458_v35 = vunpack.c.h.bf16 %v17455_v47  ;;  %v17460_v56 = vld [vmem:[#allocation323_spill] sm:$0xff] }
 0x375   : > { %17452 = vst [vmem:[#allocation321_spill] sm:$0xff] %v11446_v10  ;;  %17454 = vst [vmem:[#allocation828_spill] sm:$0xff] %v11451_v50  ;;  %v17461_v22 = vunpack.c.l.bf16 %v17460_v56  ;;  %v17463_v62 = vunpack.c.h.bf16 %v17460_v56  ;;  %v17465_v50 = vld [vmem:[#allocation324_spill] sm:$0xff] }
 0x376   : > { %v11456_v8 = vmul.f32 %v11351_v17, %v17456_v1  ;;  %v11461_v61 = vmul.f32 %v11351_v17, %v17458_v35  ;;  %v17466_v10 = vunpack.c.l.bf16 %v17465_v50  ;;  %v17468_v47 = vunpack.c.h.bf16 %v17465_v50 }
 0x377   : > { %v11466_v28 = vmul.f32 %v11351_v17, %v17461_v22  ;;  %v11471_v51 = vmul.f32 %v11351_v17, %v17463_v62 }
 0x378   : > { %17457 = vst [vmem:[#allocation322_spill] sm:$0xff] %v11456_v8  ;;  %17459 = vst [vmem:[#allocation829_spill] sm:$0xff] %v11461_v61  ;;  %v11476_v1 = vmul.f32 %v11351_v17, %v17466_v10  ;;  %v11481_v35 = vmul.f32 %v11351_v17, %v17468_v47  ;;  %v17470_v61 = vld [vmem:[#allocation325_spill] sm:$0xff] }
 0x379   : > { %17462 = vst [vmem:[#allocation323_spill] sm:$0xff] %v11466_v28  ;;  %17464 = vst [vmem:[#allocation830_spill] sm:$0xff] %v11471_v51  ;;  %v17471_v8 = vunpack.c.l.bf16 %v17470_v61  ;;  %v17473_v56 = vunpack.c.h.bf16 %v17470_v61  ;;  %v17475_v51 = vld [vmem:[#allocation326_spill] sm:$0xff] }
 0x37a   : > { %17467 = vst [vmem:[#allocation324_spill] sm:$0xff] %v11476_v1  ;;  %17469 = vst [vmem:[#allocation831_spill] sm:$0xff] %v11481_v35  ;;  %v17476_v28 = vunpack.c.l.bf16 %v17475_v51  ;;  %v17478_v50 = vunpack.c.h.bf16 %v17475_v51  ;;  %v17480_v35 = vld [vmem:[#allocation327_spill] sm:$0xff] }
 0x37b   : > { %v11486_v22 = vmul.f32 %v11351_v17, %v17471_v8  ;;  %v11491_v62 = vmul.f32 %v11351_v17, %v17473_v56  ;;  %v17481_v1 = vunpack.c.l.bf16 %v17480_v35  ;;  %v17483_v61 = vunpack.c.h.bf16 %v17480_v35 }
 0x37c   : > { %v11496_v10 = vmul.f32 %v11351_v17, %v17476_v28  ;;  %v11501_v47 = vmul.f32 %v11351_v17, %v17478_v50 }
 0x37d   : > { %17472 = vst [vmem:[#allocation325_spill] sm:$0xff] %v11486_v22  ;;  %17474 = vst [vmem:[#allocation832_spill] sm:$0xff] %v11491_v62  ;;  %v11506_v8 = vmul.f32 %v11351_v17, %v17481_v1  ;;  %v11511_v56 = vmul.f32 %v11351_v17, %v17483_v61  ;;  %v17485_v62 = vld [vmem:[#allocation328_spill] sm:$0xff] }
 0x37e   : > { %17477 = vst [vmem:[#allocation326_spill] sm:$0xff] %v11496_v10  ;;  %17479 = vst [vmem:[#allocation833_spill] sm:$0xff] %v11501_v47  ;;  %v17486_v22 = vunpack.c.l.bf16 %v17485_v62  ;;  %v17488_v51 = vunpack.c.h.bf16 %v17485_v62  ;;  %v17490_v47 = vld [vmem:[#allocation329_spill] sm:$0xff] }
 0x37f   : > { %17482 = vst [vmem:[#allocation327_spill] sm:$0xff] %v11506_v8  ;;  %17484 = vst [vmem:[#allocation834_spill] sm:$0xff] %v11511_v56  ;;  %v17491_v10 = vunpack.c.l.bf16 %v17490_v47  ;;  %v17493_v35 = vunpack.c.h.bf16 %v17490_v47  ;;  %v17495_v56 = vld [vmem:[#allocation330_spill] sm:$0xff] }
 0x380   : > { %v11516_v28 = vmul.f32 %v11351_v17, %v17486_v22  ;;  %v11521_v50 = vmul.f32 %v11351_v17, %v17488_v51  ;;  %v17496_v8 = vunpack.c.l.bf16 %v17495_v56  ;;  %v17498_v62 = vunpack.c.h.bf16 %v17495_v56 }
 0x381   : > { %v11526_v1 = vmul.f32 %v11351_v17, %v17491_v10  ;;  %v11531_v61 = vmul.f32 %v11351_v17, %v17493_v35 }
 0x382   : > { %17487 = vst [vmem:[#allocation328_spill] sm:$0xff] %v11516_v28  ;;  %17489 = vst [vmem:[#allocation835_spill] sm:$0xff] %v11521_v50  ;;  %v11536_v22 = vmul.f32 %v11351_v17, %v17496_v8  ;;  %v11541_v51 = vmul.f32 %v11351_v17, %v17498_v62  ;;  %v17500_v50 = vld [vmem:[#allocation331_spill] sm:$0xff] }
 0x383   : > { %17492 = vst [vmem:[#allocation329_spill] sm:$0xff] %v11526_v1  ;;  %17494 = vst [vmem:[#allocation836_spill] sm:$0xff] %v11531_v61  ;;  %v17501_v28 = vunpack.c.l.bf16 %v17500_v50  ;;  %v17503_v47 = vunpack.c.h.bf16 %v17500_v50  ;;  %v17505_v61 = vld [vmem:[#allocation332_spill] sm:$0xff] }
 0x384   : > { %17497 = vst [vmem:[#allocation330_spill] sm:$0xff] %v11536_v22  ;;  %17499 = vst [vmem:[#allocation837_spill] sm:$0xff] %v11541_v51  ;;  %v17506_v1 = vunpack.c.l.bf16 %v17505_v61  ;;  %v17508_v56 = vunpack.c.h.bf16 %v17505_v61  ;;  %v17510_v51 = vld [vmem:[#allocation333_spill] sm:$0xff] }
 0x385   : > { %v11546_v10 = vmul.f32 %v11351_v17, %v17501_v28  ;;  %v11551_v35 = vmul.f32 %v11351_v17, %v17503_v47  ;;  %v17511_v22 = vunpack.c.l.bf16 %v17510_v51  ;;  %v17513_v50 = vunpack.c.h.bf16 %v17510_v51 }
 0x386   : > { %v11556_v8 = vmul.f32 %v11351_v17, %v17506_v1  ;;  %v11561_v62 = vmul.f32 %v11351_v17, %v17508_v56 }
 0x387   : > { %17502 = vst [vmem:[#allocation331_spill] sm:$0xff] %v11546_v10  ;;  %17504 = vst [vmem:[#allocation838_spill] sm:$0xff] %v11551_v35  ;;  %v11566_v28 = vmul.f32 %v11351_v17, %v17511_v22  ;;  %v11571_v47 = vmul.f32 %v11351_v17, %v17513_v50  ;;  %v17515_v35 = vld [vmem:[#allocation334_spill] sm:$0xff] }
 0x388   : > { %17507 = vst [vmem:[#allocation332_spill] sm:$0xff] %v11556_v8  ;;  %17509 = vst [vmem:[#allocation839_spill] sm:$0xff] %v11561_v62  ;;  %v17516_v10 = vunpack.c.l.bf16 %v17515_v35  ;;  %v17518_v61 = vunpack.c.h.bf16 %v17515_v35  ;;  %v17520_v62 = vld [vmem:[#allocation335_spill] sm:$0xff] }
 0x389   : > { %17512 = vst [vmem:[#allocation333_spill] sm:$0xff] %v11566_v28  ;;  %17514 = vst [vmem:[#allocation840_spill] sm:$0xff] %v11571_v47  ;;  %v17521_v8 = vunpack.c.l.bf16 %v17520_v62  ;;  %v17523_v51 = vunpack.c.h.bf16 %v17520_v62  ;;  %v17525_v47 = vld [vmem:[#allocation336_spill] sm:$0xff] }
 0x38a   : > { %v11576_v1 = vmul.f32 %v11351_v17, %v17516_v10  ;;  %v11581_v56 = vmul.f32 %v11351_v17, %v17518_v61  ;;  %v17526_v28 = vunpack.c.l.bf16 %v17525_v47  ;;  %v17528_v35 = vunpack.c.h.bf16 %v17525_v47 }
 0x38b   : > { %v11586_v22 = vmul.f32 %v11351_v17, %v17521_v8  ;;  %v11591_v50 = vmul.f32 %v11351_v17, %v17523_v51 }
 0x38c   : > { %17517 = vst [vmem:[#allocation334_spill] sm:$0xff] %v11576_v1  ;;  %17519 = vst [vmem:[#allocation841_spill] sm:$0xff] %v11581_v56  ;;  %v11596_v10 = vmul.f32 %v11351_v17, %v17526_v28  ;;  %v11601_v61 = vmul.f32 %v11351_v17, %v17528_v35  ;;  %v17530_v56 = vld [vmem:[#allocation337_spill] sm:$0xff] }
 0x38d   : > { %17522 = vst [vmem:[#allocation335_spill] sm:$0xff] %v11586_v22  ;;  %17524 = vst [vmem:[#allocation842_spill] sm:$0xff] %v11591_v50  ;;  %v17531_v1 = vunpack.c.l.bf16 %v17530_v56  ;;  %v17533_v62 = vunpack.c.h.bf16 %v17530_v56  ;;  %v17535_v50 = vld [vmem:[#allocation338_spill] sm:$0xff] }
 0x38e   : > { %17527 = vst [vmem:[#allocation336_spill] sm:$0xff] %v11596_v10  ;;  %17529 = vst [vmem:[#allocation843_spill] sm:$0xff] %v11601_v61  ;;  %v17536_v22 = vunpack.c.l.bf16 %v17535_v50  ;;  %v17538_v47 = vunpack.c.h.bf16 %v17535_v50  ;;  %v17540_v61 = vld [vmem:[#allocation339_spill] sm:$0xff] }
 0x38f   : > { %v11606_v8 = vmul.f32 %v11351_v17, %v17531_v1  ;;  %v11611_v51 = vmul.f32 %v11351_v17, %v17533_v62  ;;  %v17541_v10 = vunpack.c.l.bf16 %v17540_v61  ;;  %v17543_v56 = vunpack.c.h.bf16 %v17540_v61 }
 0x390   : > { %v11616_v28 = vmul.f32 %v11351_v17, %v17536_v22  ;;  %v11621_v35 = vmul.f32 %v11351_v17, %v17538_v47 }
 0x391   : > { %17532 = vst [vmem:[#allocation337_spill] sm:$0xff] %v11606_v8  ;;  %17534 = vst [vmem:[#allocation844_spill] sm:$0xff] %v11611_v51  ;;  %v11626_v1 = vmul.f32 %v11351_v17, %v17541_v10  ;;  %v11631_v62 = vmul.f32 %v11351_v17, %v17543_v56  ;;  %v17545_v51 = vld [vmem:[#allocation340_spill] sm:$0xff] }
 0x392   : > { %17537 = vst [vmem:[#allocation338_spill] sm:$0xff] %v11616_v28  ;;  %17539 = vst [vmem:[#allocation845_spill] sm:$0xff] %v11621_v35  ;;  %v17546_v8 = vunpack.c.l.bf16 %v17545_v51  ;;  %v17548_v50 = vunpack.c.h.bf16 %v17545_v51  ;;  %v17550_v35 = vld [vmem:[#allocation341_spill] sm:$0xff] }
 0x393   : > { %17542 = vst [vmem:[#allocation339_spill] sm:$0xff] %v11626_v1  ;;  %17544 = vst [vmem:[#allocation846_spill] sm:$0xff] %v11631_v62  ;;  %v17551_v28 = vunpack.c.l.bf16 %v17550_v35  ;;  %v17553_v61 = vunpack.c.h.bf16 %v17550_v35  ;;  %v17555_v62 = vld [vmem:[#allocation342_spill] sm:$0xff] }
 0x394   : > { %v11636_v22 = vmul.f32 %v11351_v17, %v17546_v8  ;;  %v11641_v47 = vmul.f32 %v11351_v17, %v17548_v50  ;;  %v17556_v1 = vunpack.c.l.bf16 %v17555_v62  ;;  %v17558_v51 = vunpack.c.h.bf16 %v17555_v62 }
 0x395   : > { %v11646_v10 = vmul.f32 %v11351_v17, %v17551_v28  ;;  %v11651_v56 = vmul.f32 %v11351_v17, %v17553_v61 }
 0x396   : > { %17547 = vst [vmem:[#allocation340_spill] sm:$0xff] %v11636_v22  ;;  %17549 = vst [vmem:[#allocation847_spill] sm:$0xff] %v11641_v47  ;;  %v11656_v8 = vmul.f32 %v11351_v17, %v17556_v1  ;;  %v11661_v50 = vmul.f32 %v11351_v17, %v17558_v51  ;;  %v17560_v47 = vld [vmem:[#allocation343_spill] sm:$0xff] }
 0x397   : > { %17552 = vst [vmem:[#allocation341_spill] sm:$0xff] %v11646_v10  ;;  %17554 = vst [vmem:[#allocation848_spill] sm:$0xff] %v11651_v56  ;;  %v17561_v22 = vunpack.c.l.bf16 %v17560_v47  ;;  %v17563_v35 = vunpack.c.h.bf16 %v17560_v47  ;;  %v11673_v56 = vpop.permute.xlu0 %1849  ;;  %v17565_v10 = vld [vmem:[#allocation344_spill] sm:$0xff] }
 0x398   : > { %17557 = vst [vmem:[#allocation342_spill] sm:$0xff] %v11656_v8  ;;  %17559 = vst [vmem:[#allocation849_spill] sm:$0xff] %v11661_v50  ;;  %v17566_v1 = vunpack.c.l.bf16 %v17565_v10  ;;  %v17568_v62 = vunpack.c.h.bf16 %v17565_v10  ;;  %v17570_v50 = vld [vmem:[#allocation345_spill] sm:$0xff] }
 0x399   : > { %v11666_v28 = vmul.f32 %v11351_v17, %v17561_v22  ;;  %v11671_v61 = vmul.f32 %v11351_v17, %v17563_v35  ;;  %v17571_v22 = vunpack.c.l.bf16 %v17570_v50  ;;  %v17573_v47 = vunpack.c.h.bf16 %v17570_v50 }
 0x39a   : > { %v11678_v8 = vmul.f32 %v11351_v17, %v17566_v1  ;;  %v11683_v51 = vmul.f32 %v11351_v17, %v17568_v62 }
 0x39b   : > { %17562 = vst [vmem:[#allocation343_spill] sm:$0xff] %v11666_v28  ;;  %17564 = vst [vmem:[#allocation850_spill] sm:$0xff] %v11671_v61  ;;  %v11688_v28 = vmul.f32 %v11351_v17, %v17571_v22  ;;  %v11693_v35 = vmul.f32 %v11351_v17, %v17573_v47  ;;  %v17575_v61 = vld [vmem:[#allocation346_spill] sm:$0xff] }
 0x39c   : > { %17567 = vst [vmem:[#allocation344_spill] sm:$0xff] %v11678_v8  ;;  %17569 = vst [vmem:[#allocation851_spill] sm:$0xff] %v11683_v51  ;;  %v17576_v46 = vunpack.c.l.bf16 %v17575_v61  ;;  %v17578_v10 = vunpack.c.h.bf16 %v17575_v61  ;;  %v17580_v51 = vld [vmem:[#allocation347_spill] sm:$0xff] }
 0x39d   : > { %17572 = vst [vmem:[#allocation345_spill] sm:$0xff] %v11688_v28  ;;  %17574 = vst [vmem:[#allocation852_spill] sm:$0xff] %v11693_v35  ;;  %v17581_v8 = vunpack.c.l.bf16 %v17580_v51  ;;  %v17583_v50 = vunpack.c.h.bf16 %v17580_v51  ;;  %v17585_v35 = vld [vmem:[#allocation348_spill] sm:$0xff] }
 0x39e   : > { %v11698_v1 = vmul.f32 %v11351_v17, %v17576_v46  ;;  %v11703_v62 = vmul.f32 %v11351_v17, %v17578_v10  ;;  %v17586_v28 = vunpack.c.l.bf16 %v17585_v35  ;;  %v17588_v61 = vunpack.c.h.bf16 %v17585_v35 }
 0x39f   : > { %v11708_v22 = vmul.f32 %v11351_v17, %v17581_v8  ;;  %v11713_v47 = vmul.f32 %v11351_v17, %v17583_v50 }
 0x3a0   : > { %17577 = vst [vmem:[#allocation346_spill] sm:$0xff] %v11698_v1  ;;  %17579 = vst [vmem:[#allocation853_spill] sm:$0xff] %v11703_v62  ;;  %v11718_v46 = vmul.f32 %v11351_v17, %v17586_v28  ;;  %v11723_v10 = vmul.f32 %v11351_v17, %v17588_v61  ;;  %v17590_v62 = vld [vmem:[#allocation349_spill] sm:$0xff] }
 0x3a1   : > { %17582 = vst [vmem:[#allocation347_spill] sm:$0xff] %v11708_v22  ;;  %17584 = vst [vmem:[#allocation854_spill] sm:$0xff] %v11713_v47  ;;  %v17591_v1 = vunpack.c.l.bf16 %v17590_v62  ;;  %v17593_v51 = vunpack.c.h.bf16 %v17590_v62  ;;  %v17595_v47 = vld [vmem:[#allocation350_spill] sm:$0xff] }
 0x3a2   : > { %17587 = vst [vmem:[#allocation348_spill] sm:$0xff] %v11718_v46  ;;  %17589 = vst [vmem:[#allocation855_spill] sm:$0xff] %v11723_v10  ;;  %v17596_v22 = vunpack.c.l.bf16 %v17595_v47  ;;  %v17598_v35 = vunpack.c.h.bf16 %v17595_v47  ;;  %v17600_v10 = vld [vmem:[#allocation351_spill] sm:$0xff] }
 0x3a3   : > { %v11728_v8 = vmul.f32 %v11351_v17, %v17591_v1  ;;  %v11733_v50 = vmul.f32 %v11351_v17, %v17593_v51  ;;  %v17601_v46 = vunpack.c.l.bf16 %v17600_v10  ;;  %v17603_v62 = vunpack.c.h.bf16 %v17600_v10  ;;  %v17605_v51 = vld [vmem:[#allocation352_spill] sm:$0xff] }
 0x3a4   : > { %v11738_v28 = vmul.f32 %v11673_v56, %v17596_v22  ;;  %v11743_v61 = vmul.f32 %v11673_v56, %v17598_v35  ;;  %v17608_v47 = vunpack.c.h.bf16 %v17605_v51 }
 0x3a5   : > { %17592 = vst [vmem:[#allocation349_spill] sm:$0xff] %v11728_v8  ;;  %17594 = vst [vmem:[#allocation856_spill] sm:$0xff] %v11733_v50  ;;  %v11748_v1 = vmul.f32 %v11673_v56, %v17601_v46  ;;  %v11753_v17 = vmul.f32 %v11673_v56, %v17603_v62  ;;  %v17606_v50 = vunpack.c.l.bf16 %v17605_v51  ;;  %v17610_v8 = vld [vmem:[#allocation353_spill] sm:$0xff] }
 0x3a6   : > { %17597 = vst [vmem:[#allocation350_spill] sm:$0xff] %v11738_v28  ;;  %17599 = vst [vmem:[#allocation857_spill] sm:$0xff] %v11743_v61  ;;  %v11763_v35 = vmul.f32 %v11673_v56, %v17608_v47  ;;  %v17611_v61 = vunpack.c.l.bf16 %v17610_v8  ;;  %v17613_v10 = vunpack.c.h.bf16 %v17610_v8 }
 0x3a7   : > { %17602 = vst [vmem:[#allocation351_spill] sm:$0xff] %v11748_v1  ;;  %17604 = vst [vmem:[#allocation858_spill] sm:$0xff] %v11753_v17  ;;  %v11758_v22 = vmul.f32 %v11673_v56, %v17606_v50  ;;  %v17615_v17 = vld [vmem:[#allocation354_spill] sm:$0xff] }
 0x3a8   : > { %17609 = vst [vmem:[#allocation859_spill] sm:$0xff] %v11763_v35  ;;  %v11768_v46 = vmul.f32 %v11673_v56, %v17611_v61  ;;  %v11773_v62 = vmul.f32 %v11673_v56, %v17613_v10  ;;  %v17616_v1 = vunpack.c.l.bf16 %v17615_v17  ;;  %v17618_v51 = vunpack.c.h.bf16 %v17615_v17  ;;  %v17620_v35 = vld [vmem:[#allocation355_spill] sm:$0xff] }
 0x3a9   : > { %17607 = vst [vmem:[#allocation352_spill] sm:$0xff] %v11758_v22  ;;  %v17621_v22 = vunpack.c.l.bf16 %v17620_v35  ;;  %v17623_v8 = vunpack.c.h.bf16 %v17620_v35 }
 0x3aa   : > { %17612 = vst [vmem:[#allocation353_spill] sm:$0xff] %v11768_v46  ;;  %17614 = vst [vmem:[#allocation860_spill] sm:$0xff] %v11773_v62  ;;  %v11778_v50 = vmul.f32 %v11673_v56, %v17616_v1  ;;  %v11783_v47 = vmul.f32 %v11673_v56, %v17618_v51  ;;  %v17625_v62 = vld [vmem:[#allocation356_spill] sm:$0xff] }
 0x3ab   : > { %v11788_v61 = vmul.f32 %v11673_v56, %v17621_v22  ;;  %v11793_v10 = vmul.f32 %v11673_v56, %v17623_v8  ;;  %v17626_v46 = vunpack.c.l.bf16 %v17625_v62  ;;  %v17628_v17 = vunpack.c.h.bf16 %v17625_v62 }
 0x3ac   : > { %17617 = vst [vmem:[#allocation354_spill] sm:$0xff] %v11778_v50  ;;  %17619 = vst [vmem:[#allocation861_spill] sm:$0xff] %v11783_v47  ;;  %v17630_v47 = vld [vmem:[#allocation357_spill] sm:$0xff] }
 0x3ad   : > { %17622 = vst [vmem:[#allocation355_spill] sm:$0xff] %v11788_v61  ;;  %17624 = vst [vmem:[#allocation862_spill] sm:$0xff] %v11793_v10  ;;  %v11798_v1 = vmul.f32 %v11673_v56, %v17626_v46  ;;  %v11803_v51 = vmul.f32 %v11673_v56, %v17628_v17  ;;  %v17631_v50 = vunpack.c.l.bf16 %v17630_v47  ;;  %v17633_v35 = vunpack.c.h.bf16 %v17630_v47  ;;  %v17635_v10 = vld [vmem:[#allocation358_spill] sm:$0xff] }
 0x3ae   : > { %v17636_v61 = vunpack.c.l.bf16 %v17635_v10  ;;  %v17638_v62 = vunpack.c.h.bf16 %v17635_v10 }
 0x3af   : > { %17627 = vst [vmem:[#allocation356_spill] sm:$0xff] %v11798_v1  ;;  %17629 = vst [vmem:[#allocation863_spill] sm:$0xff] %v11803_v51  ;;  %v11808_v22 = vmul.f32 %v11673_v56, %v17631_v50  ;;  %v11813_v8 = vmul.f32 %v11673_v56, %v17633_v35  ;;  %v17640_v51 = vld [vmem:[#allocation359_spill] sm:$0xff] }
 0x3b0   : > { %v11818_v46 = vmul.f32 %v11673_v56, %v17636_v61  ;;  %v11823_v17 = vmul.f32 %v11673_v56, %v17638_v62  ;;  %v17641_v1 = vunpack.c.l.bf16 %v17640_v51  ;;  %v17643_v47 = vunpack.c.h.bf16 %v17640_v51 }
 0x3b1   : > { %17632 = vst [vmem:[#allocation357_spill] sm:$0xff] %v11808_v22  ;;  %17634 = vst [vmem:[#allocation864_spill] sm:$0xff] %v11813_v8  ;;  %v17645_v8 = vld [vmem:[#allocation360_spill] sm:$0xff] }
 0x3b2   : > { %17637 = vst [vmem:[#allocation358_spill] sm:$0xff] %v11818_v46  ;;  %17639 = vst [vmem:[#allocation865_spill] sm:$0xff] %v11823_v17  ;;  %v11828_v50 = vmul.f32 %v11673_v56, %v17641_v1  ;;  %v11833_v35 = vmul.f32 %v11673_v56, %v17643_v47  ;;  %v17646_v22 = vunpack.c.l.bf16 %v17645_v8  ;;  %v17648_v10 = vunpack.c.h.bf16 %v17645_v8  ;;  %v17650_v17 = vld [vmem:[#allocation361_spill] sm:$0xff] }
 0x3b3   : > { %v17651_v46 = vunpack.c.l.bf16 %v17650_v17  ;;  %v17653_v51 = vunpack.c.h.bf16 %v17650_v17 }
 0x3b4   : > { %17642 = vst [vmem:[#allocation359_spill] sm:$0xff] %v11828_v50  ;;  %17644 = vst [vmem:[#allocation866_spill] sm:$0xff] %v11833_v35  ;;  %v11838_v61 = vmul.f32 %v11673_v56, %v17646_v22  ;;  %v11843_v62 = vmul.f32 %v11673_v56, %v17648_v10  ;;  %v17655_v35 = vld [vmem:[#allocation362_spill] sm:$0xff] }
 0x3b5   : > { %v11848_v1 = vmul.f32 %v11673_v56, %v17651_v46  ;;  %v11853_v47 = vmul.f32 %v11673_v56, %v17653_v51  ;;  %v17656_v50 = vunpack.c.l.bf16 %v17655_v35  ;;  %v17658_v8 = vunpack.c.h.bf16 %v17655_v35 }
 0x3b6   : > { %17647 = vst [vmem:[#allocation360_spill] sm:$0xff] %v11838_v61  ;;  %17649 = vst [vmem:[#allocation867_spill] sm:$0xff] %v11843_v62  ;;  %v17660_v62 = vld [vmem:[#allocation363_spill] sm:$0xff] }
 0x3b7   : > { %17652 = vst [vmem:[#allocation361_spill] sm:$0xff] %v11848_v1  ;;  %17654 = vst [vmem:[#allocation868_spill] sm:$0xff] %v11853_v47  ;;  %v11858_v22 = vmul.f32 %v11673_v56, %v17656_v50  ;;  %v11863_v10 = vmul.f32 %v11673_v56, %v17658_v8  ;;  %v17661_v61 = vunpack.c.l.bf16 %v17660_v62  ;;  %v17663_v17 = vunpack.c.h.bf16 %v17660_v62  ;;  %v17665_v47 = vld [vmem:[#allocation364_spill] sm:$0xff] }
 0x3b8   : > { %v17666_v1 = vunpack.c.l.bf16 %v17665_v47  ;;  %v17668_v35 = vunpack.c.h.bf16 %v17665_v47 }
 0x3b9   : > { %17657 = vst [vmem:[#allocation362_spill] sm:$0xff] %v11858_v22  ;;  %17659 = vst [vmem:[#allocation869_spill] sm:$0xff] %v11863_v10  ;;  %v11868_v46 = vmul.f32 %v11673_v56, %v17661_v61  ;;  %v11873_v51 = vmul.f32 %v11673_v56, %v17663_v17  ;;  %v17670_v10 = vld [vmem:[#allocation365_spill] sm:$0xff] }
 0x3ba   : > { %v11878_v50 = vmul.f32 %v11673_v56, %v17666_v1  ;;  %v11883_v8 = vmul.f32 %v11673_v56, %v17668_v35  ;;  %v17671_v22 = vunpack.c.l.bf16 %v17670_v10  ;;  %v17673_v62 = vunpack.c.h.bf16 %v17670_v10 }
 0x3bb   : > { %17662 = vst [vmem:[#allocation363_spill] sm:$0xff] %v11868_v46  ;;  %17664 = vst [vmem:[#allocation870_spill] sm:$0xff] %v11873_v51  ;;  %v17675_v51 = vld [vmem:[#allocation366_spill] sm:$0xff] }
 0x3bc   : > { %17667 = vst [vmem:[#allocation364_spill] sm:$0xff] %v11878_v50  ;;  %17669 = vst [vmem:[#allocation871_spill] sm:$0xff] %v11883_v8  ;;  %v11888_v61 = vmul.f32 %v11673_v56, %v17671_v22  ;;  %v11893_v17 = vmul.f32 %v11673_v56, %v17673_v62  ;;  %v17676_v46 = vunpack.c.l.bf16 %v17675_v51  ;;  %v17678_v47 = vunpack.c.h.bf16 %v17675_v51  ;;  %v17680_v8 = vld [vmem:[#allocation367_spill] sm:$0xff] }
 0x3bd   : > { %v17681_v50 = vunpack.c.l.bf16 %v17680_v8  ;;  %v17683_v10 = vunpack.c.h.bf16 %v17680_v8 }
 0x3be   : > { %17672 = vst [vmem:[#allocation365_spill] sm:$0xff] %v11888_v61  ;;  %17674 = vst [vmem:[#allocation872_spill] sm:$0xff] %v11893_v17  ;;  %v11898_v1 = vmul.f32 %v11673_v56, %v17676_v46  ;;  %v11903_v35 = vmul.f32 %v11673_v56, %v17678_v47  ;;  %v17685_v17 = vld [vmem:[#allocation368_spill] sm:$0xff] }
 0x3bf   : > { %v11908_v22 = vmul.f32 %v11673_v56, %v17681_v50  ;;  %v11913_v62 = vmul.f32 %v11673_v56, %v17683_v10  ;;  %v17686_v61 = vunpack.c.l.bf16 %v17685_v17  ;;  %v17688_v51 = vunpack.c.h.bf16 %v17685_v17 }
 0x3c0   : > { %17677 = vst [vmem:[#allocation366_spill] sm:$0xff] %v11898_v1  ;;  %17679 = vst [vmem:[#allocation873_spill] sm:$0xff] %v11903_v35  ;;  %v17690_v35 = vld [vmem:[#allocation369_spill] sm:$0xff] }
 0x3c1   : > { %17682 = vst [vmem:[#allocation367_spill] sm:$0xff] %v11908_v22  ;;  %17684 = vst [vmem:[#allocation874_spill] sm:$0xff] %v11913_v62  ;;  %v11918_v46 = vmul.f32 %v11673_v56, %v17686_v61  ;;  %v11923_v47 = vmul.f32 %v11673_v56, %v17688_v51  ;;  %v17691_v1 = vunpack.c.l.bf16 %v17690_v35  ;;  %v17693_v8 = vunpack.c.h.bf16 %v17690_v35  ;;  %v17695_v62 = vld [vmem:[#allocation370_spill] sm:$0xff] }
 0x3c2   : > { %v17696_v22 = vunpack.c.l.bf16 %v17695_v62  ;;  %v17698_v17 = vunpack.c.h.bf16 %v17695_v62 }
 0x3c3   : > { %17687 = vst [vmem:[#allocation368_spill] sm:$0xff] %v11918_v46  ;;  %17689 = vst [vmem:[#allocation875_spill] sm:$0xff] %v11923_v47  ;;  %v11928_v50 = vmul.f32 %v11673_v56, %v17691_v1  ;;  %v11933_v10 = vmul.f32 %v11673_v56, %v17693_v8  ;;  %v17700_v47 = vld [vmem:[#allocation371_spill] sm:$0xff] }
 0x3c4   : > { %v11938_v61 = vmul.f32 %v11673_v56, %v17696_v22  ;;  %v11943_v51 = vmul.f32 %v11673_v56, %v17698_v17  ;;  %v17701_v46 = vunpack.c.l.bf16 %v17700_v47  ;;  %v17703_v35 = vunpack.c.h.bf16 %v17700_v47 }
 0x3c5   : > { %17692 = vst [vmem:[#allocation369_spill] sm:$0xff] %v11928_v50  ;;  %17694 = vst [vmem:[#allocation876_spill] sm:$0xff] %v11933_v10  ;;  %v17705_v10 = vld [vmem:[#allocation372_spill] sm:$0xff] }
 0x3c6   : > { %17697 = vst [vmem:[#allocation370_spill] sm:$0xff] %v11938_v61  ;;  %17699 = vst [vmem:[#allocation877_spill] sm:$0xff] %v11943_v51  ;;  %v11948_v1 = vmul.f32 %v11673_v56, %v17701_v46  ;;  %v11953_v8 = vmul.f32 %v11673_v56, %v17703_v35  ;;  %v17706_v50 = vunpack.c.l.bf16 %v17705_v10  ;;  %v17708_v62 = vunpack.c.h.bf16 %v17705_v10  ;;  %v17710_v51 = vld [vmem:[#allocation373_spill] sm:$0xff] }
 0x3c7   : > { %v17711_v61 = vunpack.c.l.bf16 %v17710_v51  ;;  %v17713_v47 = vunpack.c.h.bf16 %v17710_v51 }
 0x3c8   : > { %17702 = vst [vmem:[#allocation371_spill] sm:$0xff] %v11948_v1  ;;  %17704 = vst [vmem:[#allocation878_spill] sm:$0xff] %v11953_v8  ;;  %v11958_v22 = vmul.f32 %v11673_v56, %v17706_v50  ;;  %v11963_v17 = vmul.f32 %v11673_v56, %v17708_v62  ;;  %v17715_v8 = vld [vmem:[#allocation374_spill] sm:$0xff] }
 0x3c9   : > { %v11968_v46 = vmul.f32 %v11673_v56, %v17711_v61  ;;  %v11973_v35 = vmul.f32 %v11673_v56, %v17713_v47  ;;  %v17716_v1 = vunpack.c.l.bf16 %v17715_v8  ;;  %v17718_v10 = vunpack.c.h.bf16 %v17715_v8 }
 0x3ca   : > { %17707 = vst [vmem:[#allocation372_spill] sm:$0xff] %v11958_v22  ;;  %17709 = vst [vmem:[#allocation879_spill] sm:$0xff] %v11963_v17  ;;  %v17720_v17 = vld [vmem:[#allocation375_spill] sm:$0xff] }
 0x3cb   : > { %17712 = vst [vmem:[#allocation373_spill] sm:$0xff] %v11968_v46  ;;  %17714 = vst [vmem:[#allocation880_spill] sm:$0xff] %v11973_v35  ;;  %v11978_v50 = vmul.f32 %v11673_v56, %v17716_v1  ;;  %v11983_v62 = vmul.f32 %v11673_v56, %v17718_v10  ;;  %v17721_v22 = vunpack.c.l.bf16 %v17720_v17  ;;  %v17723_v51 = vunpack.c.h.bf16 %v17720_v17  ;;  %v11995_v35 = vpop.permute.xlu1 %1854  ;;  %v17725_v46 = vld [vmem:[#allocation376_spill] sm:$0xff] }
 0x3cc   : > { %v17726_v1 = vunpack.c.l.bf16 %v17725_v46  ;;  %v17728_v8 = vunpack.c.h.bf16 %v17725_v46 }
 0x3cd   : > { %17717 = vst [vmem:[#allocation374_spill] sm:$0xff] %v11978_v50  ;;  %17719 = vst [vmem:[#allocation881_spill] sm:$0xff] %v11983_v62  ;;  %v11988_v61 = vmul.f32 %v11673_v56, %v17721_v22  ;;  %v11993_v47 = vmul.f32 %v11673_v56, %v17723_v51  ;;  %v17730_v62 = vld [vmem:[#allocation377_spill] sm:$0xff] }
 0x3ce   : > { %v12000_v50 = vmul.f32 %v11673_v56, %v17726_v1  ;;  %v12005_v10 = vmul.f32 %v11673_v56, %v17728_v8  ;;  %v17731_v22 = vunpack.c.l.bf16 %v17730_v62  ;;  %v17733_v17 = vunpack.c.h.bf16 %v17730_v62 }
 0x3cf   : > { %17722 = vst [vmem:[#allocation375_spill] sm:$0xff] %v11988_v61  ;;  %17724 = vst [vmem:[#allocation882_spill] sm:$0xff] %v11993_v47  ;;  %v17735_v47 = vld [vmem:[#allocation378_spill] sm:$0xff] }
 0x3d0   : > { %17727 = vst [vmem:[#allocation376_spill] sm:$0xff] %v12000_v50  ;;  %17729 = vst [vmem:[#allocation883_spill] sm:$0xff] %v12005_v10  ;;  %v12010_v61 = vmul.f32 %v11673_v56, %v17731_v22  ;;  %v12015_v51 = vmul.f32 %v11673_v56, %v17733_v17  ;;  %v17736_v28 = vunpack.c.l.bf16 %v17735_v47  ;;  %v17738_v46 = vunpack.c.h.bf16 %v17735_v47  ;;  %v17740_v10 = vld [vmem:[#allocation379_spill] sm:$0xff] }
 0x3d1   : > { %v17741_v50 = vunpack.c.l.bf16 %v17740_v10  ;;  %v17743_v62 = vunpack.c.h.bf16 %v17740_v10 }
 0x3d2   : > { %17732 = vst [vmem:[#allocation377_spill] sm:$0xff] %v12010_v61  ;;  %17734 = vst [vmem:[#allocation884_spill] sm:$0xff] %v12015_v51  ;;  %v12020_v1 = vmul.f32 %v11673_v56, %v17736_v28  ;;  %v12025_v8 = vmul.f32 %v11673_v56, %v17738_v46  ;;  %v17745_v51 = vld [vmem:[#allocation380_spill] sm:$0xff] }
 0x3d3   : > { %v12030_v22 = vmul.f32 %v11673_v56, %v17741_v50  ;;  %v12035_v17 = vmul.f32 %v11673_v56, %v17743_v62  ;;  %v17746_v61 = vunpack.c.l.bf16 %v17745_v51  ;;  %v17748_v47 = vunpack.c.h.bf16 %v17745_v51 }
 0x3d4   : > { %17737 = vst [vmem:[#allocation378_spill] sm:$0xff] %v12020_v1  ;;  %17739 = vst [vmem:[#allocation885_spill] sm:$0xff] %v12025_v8  ;;  %v17750_v8 = vld [vmem:[#allocation381_spill] sm:$0xff] }
 0x3d5   : > { %17742 = vst [vmem:[#allocation379_spill] sm:$0xff] %v12030_v22  ;;  %17744 = vst [vmem:[#allocation886_spill] sm:$0xff] %v12035_v17  ;;  %v12040_v28 = vmul.f32 %v11673_v56, %v17746_v61  ;;  %v12045_v46 = vmul.f32 %v11673_v56, %v17748_v47  ;;  %v17751_v1 = vunpack.c.l.bf16 %v17750_v8  ;;  %v17753_v10 = vunpack.c.h.bf16 %v17750_v8  ;;  %v17755_v17 = vld [vmem:[#allocation382_spill] sm:$0xff] }
 0x3d6   : > { %v17756_v22 = vunpack.c.l.bf16 %v17755_v17  ;;  %v17758_v51 = vunpack.c.h.bf16 %v17755_v17 }
 0x3d7   : > { %17747 = vst [vmem:[#allocation380_spill] sm:$0xff] %v12040_v28  ;;  %17749 = vst [vmem:[#allocation887_spill] sm:$0xff] %v12045_v46  ;;  %v12050_v50 = vmul.f32 %v11673_v56, %v17751_v1  ;;  %v12055_v62 = vmul.f32 %v11673_v56, %v17753_v10  ;;  %v17760_v46 = vld [vmem:[#allocation383_spill] sm:$0xff]  ;;  %v17765_v10 = vld [vmem:[#allocation384_spill] sm:$0xff] }
 0x3d8   : > { %v12060_v61 = vmul.f32 %v11995_v35, %v17756_v22  ;;  %v12065_v47 = vmul.f32 %v11995_v35, %v17758_v51  ;;  %v17761_v28 = vunpack.c.l.bf16 %v17760_v46  ;;  %v17763_v8 = vunpack.c.h.bf16 %v17760_v46 }
 0x3d9   : > { %17752 = vst [vmem:[#allocation381_spill] sm:$0xff] %v12050_v50  ;;  %17754 = vst [vmem:[#allocation888_spill] sm:$0xff] %v12055_v62  ;;  %v17766_v62 = vunpack.c.l.bf16 %v17765_v10  ;;  %v17768_v17 = vunpack.c.h.bf16 %v17765_v10  ;;  %v17770_v50 = vld [vmem:[#allocation385_spill] sm:$0xff] }
 0x3da   : > { %17757 = vst [vmem:[#allocation382_spill] sm:$0xff] %v12060_v61  ;;  %17759 = vst [vmem:[#allocation889_spill] sm:$0xff] %v12065_v47  ;;  %v12070_v1 = vmul.f32 %v11995_v35, %v17761_v28  ;;  %v12075_v56 = vmul.f32 %v11995_v35, %v17763_v8  ;;  %v17771_v47 = vunpack.c.l.bf16 %v17770_v50  ;;  %v17773_v46 = vunpack.c.h.bf16 %v17770_v50 }
 0x3db   : > { %v12080_v22 = vmul.f32 %v11995_v35, %v17766_v62  ;;  %v12085_v51 = vmul.f32 %v11995_v35, %v17768_v17 }
 0x3dc   : > { %17762 = vst [vmem:[#allocation383_spill] sm:$0xff] %v12070_v1  ;;  %17764 = vst [vmem:[#allocation890_spill] sm:$0xff] %v12075_v56  ;;  %v12090_v28 = vmul.f32 %v11995_v35, %v17771_v47  ;;  %v12095_v8 = vmul.f32 %v11995_v35, %v17773_v46  ;;  %v17775_v56 = vld [vmem:[#allocation386_spill] sm:$0xff] }
 0x3dd   : > { %17767 = vst [vmem:[#allocation384_spill] sm:$0xff] %v12080_v22  ;;  %17769 = vst [vmem:[#allocation891_spill] sm:$0xff] %v12085_v51  ;;  %v17776_v1 = vunpack.c.l.bf16 %v17775_v56  ;;  %v17778_v10 = vunpack.c.h.bf16 %v17775_v56  ;;  %v17780_v51 = vld [vmem:[#allocation387_spill] sm:$0xff] }
 0x3de   : > { %17772 = vst [vmem:[#allocation385_spill] sm:$0xff] %v12090_v28  ;;  %17774 = vst [vmem:[#allocation892_spill] sm:$0xff] %v12095_v8  ;;  %v17781_v22 = vunpack.c.l.bf16 %v17780_v51  ;;  %v17783_v50 = vunpack.c.h.bf16 %v17780_v51  ;;  %v17785_v8 = vld [vmem:[#allocation388_spill] sm:$0xff] }
 0x3df   : > { %v12100_v62 = vmul.f32 %v11995_v35, %v17776_v1  ;;  %v12105_v17 = vmul.f32 %v11995_v35, %v17778_v10  ;;  %v17786_v28 = vunpack.c.l.bf16 %v17785_v8  ;;  %v17788_v56 = vunpack.c.h.bf16 %v17785_v8 }
 0x3e0   : > { %v12110_v47 = vmul.f32 %v11995_v35, %v17781_v22  ;;  %v12115_v46 = vmul.f32 %v11995_v35, %v17783_v50 }
 0x3e1   : > { %17777 = vst [vmem:[#allocation386_spill] sm:$0xff] %v12100_v62  ;;  %17779 = vst [vmem:[#allocation893_spill] sm:$0xff] %v12105_v17  ;;  %v12120_v1 = vmul.f32 %v11995_v35, %v17786_v28  ;;  %v12125_v10 = vmul.f32 %v11995_v35, %v17788_v56  ;;  %v17790_v17 = vld [vmem:[#allocation389_spill] sm:$0xff] }
 0x3e2   : > { %17782 = vst [vmem:[#allocation387_spill] sm:$0xff] %v12110_v47  ;;  %17784 = vst [vmem:[#allocation894_spill] sm:$0xff] %v12115_v46  ;;  %v17791_v62 = vunpack.c.l.bf16 %v17790_v17  ;;  %v17793_v51 = vunpack.c.h.bf16 %v17790_v17  ;;  %v17795_v46 = vld [vmem:[#allocation390_spill] sm:$0xff] }
 0x3e3   : > { %17787 = vst [vmem:[#allocation388_spill] sm:$0xff] %v12120_v1  ;;  %17789 = vst [vmem:[#allocation895_spill] sm:$0xff] %v12125_v10  ;;  %v17796_v47 = vunpack.c.l.bf16 %v17795_v46  ;;  %v17798_v8 = vunpack.c.h.bf16 %v17795_v46  ;;  %v17800_v10 = vld [vmem:[#allocation391_spill] sm:$0xff] }
 0x3e4   : > { %v12130_v22 = vmul.f32 %v11995_v35, %v17791_v62  ;;  %v12135_v50 = vmul.f32 %v11995_v35, %v17793_v51  ;;  %v17801_v1 = vunpack.c.l.bf16 %v17800_v10  ;;  %v17803_v17 = vunpack.c.h.bf16 %v17800_v10 }
 0x3e5   : > { %v12140_v28 = vmul.f32 %v11995_v35, %v17796_v47  ;;  %v12145_v56 = vmul.f32 %v11995_v35, %v17798_v8 }
 0x3e6   : > { %17792 = vst [vmem:[#allocation389_spill] sm:$0xff] %v12130_v22  ;;  %17794 = vst [vmem:[#allocation896_spill] sm:$0xff] %v12135_v50  ;;  %v12150_v62 = vmul.f32 %v11995_v35, %v17801_v1  ;;  %v12155_v51 = vmul.f32 %v11995_v35, %v17803_v17  ;;  %v17805_v50 = vld [vmem:[#allocation392_spill] sm:$0xff] }
 0x3e7   : > { %17797 = vst [vmem:[#allocation390_spill] sm:$0xff] %v12140_v28  ;;  %17799 = vst [vmem:[#allocation897_spill] sm:$0xff] %v12145_v56  ;;  %v17806_v22 = vunpack.c.l.bf16 %v17805_v50  ;;  %v17808_v46 = vunpack.c.h.bf16 %v17805_v50  ;;  %v17810_v56 = vld [vmem:[#allocation393_spill] sm:$0xff] }
 0x3e8   : > { %17802 = vst [vmem:[#allocation391_spill] sm:$0xff] %v12150_v62  ;;  %17804 = vst [vmem:[#allocation898_spill] sm:$0xff] %v12155_v51  ;;  %v17811_v28 = vunpack.c.l.bf16 %v17810_v56  ;;  %v17813_v10 = vunpack.c.h.bf16 %v17810_v56  ;;  %v17815_v51 = vld [vmem:[#allocation394_spill] sm:$0xff] }
 0x3e9   : > { %v12160_v47 = vmul.f32 %v11995_v35, %v17806_v22  ;;  %v12165_v8 = vmul.f32 %v11995_v35, %v17808_v46  ;;  %v17816_v62 = vunpack.c.l.bf16 %v17815_v51  ;;  %v17818_v50 = vunpack.c.h.bf16 %v17815_v51 }
 0x3ea   : > { %v12170_v1 = vmul.f32 %v11995_v35, %v17811_v28  ;;  %v12175_v17 = vmul.f32 %v11995_v35, %v17813_v10 }
 0x3eb   : > { %17807 = vst [vmem:[#allocation392_spill] sm:$0xff] %v12160_v47  ;;  %17809 = vst [vmem:[#allocation899_spill] sm:$0xff] %v12165_v8  ;;  %v12180_v22 = vmul.f32 %v11995_v35, %v17816_v62  ;;  %v12185_v46 = vmul.f32 %v11995_v35, %v17818_v50  ;;  %v17820_v8 = vld [vmem:[#allocation395_spill] sm:$0xff] }
 0x3ec   : > { %17812 = vst [vmem:[#allocation393_spill] sm:$0xff] %v12170_v1  ;;  %17814 = vst [vmem:[#allocation900_spill] sm:$0xff] %v12175_v17  ;;  %v17821_v47 = vunpack.c.l.bf16 %v17820_v8  ;;  %v17823_v56 = vunpack.c.h.bf16 %v17820_v8  ;;  %v17825_v17 = vld [vmem:[#allocation396_spill] sm:$0xff] }
 0x3ed   : > { %17817 = vst [vmem:[#allocation394_spill] sm:$0xff] %v12180_v22  ;;  %17819 = vst [vmem:[#allocation901_spill] sm:$0xff] %v12185_v46  ;;  %v17826_v1 = vunpack.c.l.bf16 %v17825_v17  ;;  %v17828_v51 = vunpack.c.h.bf16 %v17825_v17  ;;  %v17830_v46 = vld [vmem:[#allocation397_spill] sm:$0xff] }
 0x3ee   : > { %v12190_v28 = vmul.f32 %v11995_v35, %v17821_v47  ;;  %v12195_v10 = vmul.f32 %v11995_v35, %v17823_v56  ;;  %v17831_v22 = vunpack.c.l.bf16 %v17830_v46  ;;  %v17833_v8 = vunpack.c.h.bf16 %v17830_v46 }
 0x3ef   : > { %v12200_v62 = vmul.f32 %v11995_v35, %v17826_v1  ;;  %v12205_v50 = vmul.f32 %v11995_v35, %v17828_v51 }
 0x3f0   : > { %17822 = vst [vmem:[#allocation395_spill] sm:$0xff] %v12190_v28  ;;  %17824 = vst [vmem:[#allocation902_spill] sm:$0xff] %v12195_v10  ;;  %v12210_v47 = vmul.f32 %v11995_v35, %v17831_v22  ;;  %v12215_v56 = vmul.f32 %v11995_v35, %v17833_v8  ;;  %v17835_v10 = vld [vmem:[#allocation398_spill] sm:$0xff] }
 0x3f1   : > { %17827 = vst [vmem:[#allocation396_spill] sm:$0xff] %v12200_v62  ;;  %17829 = vst [vmem:[#allocation903_spill] sm:$0xff] %v12205_v50  ;;  %v17836_v28 = vunpack.c.l.bf16 %v17835_v10  ;;  %v17838_v17 = vunpack.c.h.bf16 %v17835_v10  ;;  %v17840_v50 = vld [vmem:[#allocation399_spill] sm:$0xff] }
 0x3f2   : > { %17832 = vst [vmem:[#allocation397_spill] sm:$0xff] %v12210_v47  ;;  %17834 = vst [vmem:[#allocation904_spill] sm:$0xff] %v12215_v56  ;;  %v17841_v62 = vunpack.c.l.bf16 %v17840_v50  ;;  %v17843_v46 = vunpack.c.h.bf16 %v17840_v50  ;;  %v17845_v56 = vld [vmem:[#allocation400_spill] sm:$0xff] }
 0x3f3   : > { %v12220_v1 = vmul.f32 %v11995_v35, %v17836_v28  ;;  %v12225_v51 = vmul.f32 %v11995_v35, %v17838_v17  ;;  %v17846_v47 = vunpack.c.l.bf16 %v17845_v56  ;;  %v17848_v10 = vunpack.c.h.bf16 %v17845_v56 }
 0x3f4   : > { %v12230_v22 = vmul.f32 %v11995_v35, %v17841_v62  ;;  %v12235_v8 = vmul.f32 %v11995_v35, %v17843_v46 }
 0x3f5   : > { %17837 = vst [vmem:[#allocation398_spill] sm:$0xff] %v12220_v1  ;;  %17839 = vst [vmem:[#allocation905_spill] sm:$0xff] %v12225_v51  ;;  %v12240_v28 = vmul.f32 %v11995_v35, %v17846_v47  ;;  %v12245_v17 = vmul.f32 %v11995_v35, %v17848_v10  ;;  %v17850_v51 = vld [vmem:[#allocation401_spill] sm:$0xff] }
 0x3f6   : > { %17842 = vst [vmem:[#allocation399_spill] sm:$0xff] %v12230_v22  ;;  %17844 = vst [vmem:[#allocation906_spill] sm:$0xff] %v12235_v8  ;;  %v17851_v1 = vunpack.c.l.bf16 %v17850_v51  ;;  %v17853_v50 = vunpack.c.h.bf16 %v17850_v51  ;;  %v17855_v8 = vld [vmem:[#allocation402_spill] sm:$0xff] }
 0x3f7   : > { %17847 = vst [vmem:[#allocation400_spill] sm:$0xff] %v12240_v28  ;;  %17849 = vst [vmem:[#allocation907_spill] sm:$0xff] %v12245_v17  ;;  %v17856_v22 = vunpack.c.l.bf16 %v17855_v8  ;;  %v17858_v56 = vunpack.c.h.bf16 %v17855_v8  ;;  %v17860_v17 = vld [vmem:[#allocation403_spill] sm:$0xff] }
 0x3f8   : > { %v12250_v62 = vmul.f32 %v11995_v35, %v17851_v1  ;;  %v12255_v46 = vmul.f32 %v11995_v35, %v17853_v50  ;;  %v17861_v28 = vunpack.c.l.bf16 %v17860_v17  ;;  %v17863_v51 = vunpack.c.h.bf16 %v17860_v17 }
 0x3f9   : > { %v12260_v47 = vmul.f32 %v11995_v35, %v17856_v22  ;;  %v12265_v10 = vmul.f32 %v11995_v35, %v17858_v56 }
 0x3fa   : > { %17852 = vst [vmem:[#allocation401_spill] sm:$0xff] %v12250_v62  ;;  %17854 = vst [vmem:[#allocation908_spill] sm:$0xff] %v12255_v46  ;;  %v12270_v1 = vmul.f32 %v11995_v35, %v17861_v28  ;;  %v12275_v50 = vmul.f32 %v11995_v35, %v17863_v51  ;;  %v17865_v46 = vld [vmem:[#allocation404_spill] sm:$0xff] }
 0x3fb   : > { %17857 = vst [vmem:[#allocation402_spill] sm:$0xff] %v12260_v47  ;;  %17859 = vst [vmem:[#allocation909_spill] sm:$0xff] %v12265_v10  ;;  %v17866_v62 = vunpack.c.l.bf16 %v17865_v46  ;;  %v17868_v8 = vunpack.c.h.bf16 %v17865_v46  ;;  %v17870_v10 = vld [vmem:[#allocation405_spill] sm:$0xff] }
 0x3fc   : > { %17862 = vst [vmem:[#allocation403_spill] sm:$0xff] %v12270_v1  ;;  %17864 = vst [vmem:[#allocation910_spill] sm:$0xff] %v12275_v50  ;;  %v17871_v47 = vunpack.c.l.bf16 %v17870_v10  ;;  %v17873_v17 = vunpack.c.h.bf16 %v17870_v10  ;;  %v17875_v50 = vld [vmem:[#allocation406_spill] sm:$0xff] }
 0x3fd   : > { %v12280_v22 = vmul.f32 %v11995_v35, %v17866_v62  ;;  %v12285_v56 = vmul.f32 %v11995_v35, %v17868_v8  ;;  %v17876_v1 = vunpack.c.l.bf16 %v17875_v50  ;;  %v17878_v46 = vunpack.c.h.bf16 %v17875_v50 }
 0x3fe   : > { %v12290_v28 = vmul.f32 %v11995_v35, %v17871_v47  ;;  %v12295_v51 = vmul.f32 %v11995_v35, %v17873_v17 }
 0x3ff   : > { %17867 = vst [vmem:[#allocation404_spill] sm:$0xff] %v12280_v22  ;;  %17869 = vst [vmem:[#allocation911_spill] sm:$0xff] %v12285_v56  ;;  %v12300_v62 = vmul.f32 %v11995_v35, %v17876_v1  ;;  %v12305_v8 = vmul.f32 %v11995_v35, %v17878_v46  ;;  %v17880_v56 = vld [vmem:[#allocation407_spill] sm:$0xff] }
 0x400   : > { %17872 = vst [vmem:[#allocation405_spill] sm:$0xff] %v12290_v28  ;;  %17874 = vst [vmem:[#allocation912_spill] sm:$0xff] %v12295_v51  ;;  %v17881_v22 = vunpack.c.l.bf16 %v17880_v56  ;;  %v17883_v10 = vunpack.c.h.bf16 %v17880_v56  ;;  %v12317_v51 = vpop.permute.xlu0 %1859  ;;  %v17885_v28 = vld [vmem:[#allocation408_spill] sm:$0xff] }
 0x401   : > { %17877 = vst [vmem:[#allocation406_spill] sm:$0xff] %v12300_v62  ;;  %17879 = vst [vmem:[#allocation913_spill] sm:$0xff] %v12305_v8  ;;  %v17886_v1 = vunpack.c.l.bf16 %v17885_v28  ;;  %v17888_v50 = vunpack.c.h.bf16 %v17885_v28  ;;  %v17890_v8 = vld [vmem:[#allocation409_spill] sm:$0xff] }
 0x402   : > { %v12310_v47 = vmul.f32 %v11995_v35, %v17881_v22  ;;  %v12315_v17 = vmul.f32 %v11995_v35, %v17883_v10  ;;  %v17891_v22 = vunpack.c.l.bf16 %v17890_v8  ;;  %v17893_v56 = vunpack.c.h.bf16 %v17890_v8 }
 0x403   : > { %v12322_v62 = vmul.f32 %v11995_v35, %v17886_v1  ;;  %v12327_v46 = vmul.f32 %v11995_v35, %v17888_v50 }
 0x404   : > { %17882 = vst [vmem:[#allocation407_spill] sm:$0xff] %v12310_v47  ;;  %17884 = vst [vmem:[#allocation914_spill] sm:$0xff] %v12315_v17  ;;  %v12332_v47 = vmul.f32 %v11995_v35, %v17891_v22  ;;  %v12337_v10 = vmul.f32 %v11995_v35, %v17893_v56  ;;  %v17895_v17 = vld [vmem:[#allocation410_spill] sm:$0xff] }
 0x405   : > { %17887 = vst [vmem:[#allocation408_spill] sm:$0xff] %v12322_v62  ;;  %17889 = vst [vmem:[#allocation915_spill] sm:$0xff] %v12327_v46  ;;  %v17896_v61 = vunpack.c.l.bf16 %v17895_v17  ;;  %v17898_v28 = vunpack.c.h.bf16 %v17895_v17  ;;  %v17900_v46 = vld [vmem:[#allocation411_spill] sm:$0xff] }
 0x406   : > { %17892 = vst [vmem:[#allocation409_spill] sm:$0xff] %v12332_v47  ;;  %17894 = vst [vmem:[#allocation916_spill] sm:$0xff] %v12337_v10  ;;  %v17901_v62 = vunpack.c.l.bf16 %v17900_v46  ;;  %v17903_v8 = vunpack.c.h.bf16 %v17900_v46  ;;  %v17905_v10 = vld [vmem:[#allocation412_spill] sm:$0xff] }
 0x407   : > { %v12342_v1 = vmul.f32 %v11995_v35, %v17896_v61  ;;  %v12347_v50 = vmul.f32 %v11995_v35, %v17898_v28  ;;  %v17906_v47 = vunpack.c.l.bf16 %v17905_v10  ;;  %v17908_v17 = vunpack.c.h.bf16 %v17905_v10 }
 0x408   : > { %v12352_v22 = vmul.f32 %v11995_v35, %v17901_v62  ;;  %v12357_v56 = vmul.f32 %v11995_v35, %v17903_v8 }
 0x409   : > { %17897 = vst [vmem:[#allocation410_spill] sm:$0xff] %v12342_v1  ;;  %17899 = vst [vmem:[#allocation917_spill] sm:$0xff] %v12347_v50  ;;  %v12362_v61 = vmul.f32 %v11995_v35, %v17906_v47  ;;  %v12367_v28 = vmul.f32 %v11995_v35, %v17908_v17  ;;  %v17910_v50 = vld [vmem:[#allocation413_spill] sm:$0xff] }
 0x40a   : > { %17902 = vst [vmem:[#allocation411_spill] sm:$0xff] %v12352_v22  ;;  %17904 = vst [vmem:[#allocation918_spill] sm:$0xff] %v12357_v56  ;;  %v17911_v1 = vunpack.c.l.bf16 %v17910_v50  ;;  %v17913_v46 = vunpack.c.h.bf16 %v17910_v50  ;;  %v17915_v56 = vld [vmem:[#allocation414_spill] sm:$0xff] }
 0x40b   : > { %17907 = vst [vmem:[#allocation412_spill] sm:$0xff] %v12362_v61  ;;  %17909 = vst [vmem:[#allocation919_spill] sm:$0xff] %v12367_v28  ;;  %v17916_v22 = vunpack.c.l.bf16 %v17915_v56  ;;  %v17918_v10 = vunpack.c.h.bf16 %v17915_v56  ;;  %v17920_v28 = vld [vmem:[#allocation415_spill] sm:$0xff] }
 0x40c   : > { %v12372_v62 = vmul.f32 %v11995_v35, %v17911_v1  ;;  %v12377_v8 = vmul.f32 %v11995_v35, %v17913_v46  ;;  %v17921_v61 = vunpack.c.l.bf16 %v17920_v28  ;;  %v17923_v50 = vunpack.c.h.bf16 %v17920_v28  ;;  %v17925_v46 = vld [vmem:[#allocation416_spill] sm:$0xff] }
 0x40d   : > { %v12382_v47 = vmul.f32 %v12317_v51, %v17916_v22  ;;  %v12387_v17 = vmul.f32 %v12317_v51, %v17918_v10  ;;  %v17928_v56 = vunpack.c.h.bf16 %v17925_v46 }
 0x40e   : > { %17912 = vst [vmem:[#allocation413_spill] sm:$0xff] %v12372_v62  ;;  %17914 = vst [vmem:[#allocation920_spill] sm:$0xff] %v12377_v8  ;;  %v12392_v1 = vmul.f32 %v12317_v51, %v17921_v61  ;;  %v12397_v35 = vmul.f32 %v12317_v51, %v17923_v50  ;;  %v17926_v8 = vunpack.c.l.bf16 %v17925_v46  ;;  %v17930_v62 = vld [vmem:[#allocation417_spill] sm:$0xff] }
 0x40f   : > { %17917 = vst [vmem:[#allocation414_spill] sm:$0xff] %v12382_v47  ;;  %17919 = vst [vmem:[#allocation921_spill] sm:$0xff] %v12387_v17  ;;  %v12407_v10 = vmul.f32 %v12317_v51, %v17928_v56  ;;  %v17931_v17 = vunpack.c.l.bf16 %v17930_v62  ;;  %v17933_v28 = vunpack.c.h.bf16 %v17930_v62 }
 0x410   : > { %17922 = vst [vmem:[#allocation415_spill] sm:$0xff] %v12392_v1  ;;  %17924 = vst [vmem:[#allocation922_spill] sm:$0xff] %v12397_v35  ;;  %v12402_v22 = vmul.f32 %v12317_v51, %v17926_v8  ;;  %v17935_v35 = vld [vmem:[#allocation418_spill] sm:$0xff] }
 0x411   : > { %17929 = vst [vmem:[#allocation923_spill] sm:$0xff] %v12407_v10  ;;  %v12412_v61 = vmul.f32 %v12317_v51, %v17931_v17  ;;  %v12417_v50 = vmul.f32 %v12317_v51, %v17933_v28  ;;  %v17936_v1 = vunpack.c.l.bf16 %v17935_v35  ;;  %v17938_v46 = vunpack.c.h.bf16 %v17935_v35  ;;  %v17940_v10 = vld [vmem:[#allocation419_spill] sm:$0xff] }
 0x412   : > { %17927 = vst [vmem:[#allocation416_spill] sm:$0xff] %v12402_v22  ;;  %v17941_v22 = vunpack.c.l.bf16 %v17940_v10  ;;  %v17943_v62 = vunpack.c.h.bf16 %v17940_v10 }
 0x413   : > { %17932 = vst [vmem:[#allocation417_spill] sm:$0xff] %v12412_v61  ;;  %17934 = vst [vmem:[#allocation924_spill] sm:$0xff] %v12417_v50  ;;  %v12422_v8 = vmul.f32 %v12317_v51, %v17936_v1  ;;  %v12427_v56 = vmul.f32 %v12317_v51, %v17938_v46  ;;  %v17945_v50 = vld [vmem:[#allocation420_spill] sm:$0xff] }
 0x414   : > { %v12432_v17 = vmul.f32 %v12317_v51, %v17941_v22  ;;  %v12437_v28 = vmul.f32 %v12317_v51, %v17943_v62  ;;  %v17946_v61 = vunpack.c.l.bf16 %v17945_v50  ;;  %v17948_v35 = vunpack.c.h.bf16 %v17945_v50 }
 0x415   : > { %17937 = vst [vmem:[#allocation418_spill] sm:$0xff] %v12422_v8  ;;  %17939 = vst [vmem:[#allocation925_spill] sm:$0xff] %v12427_v56  ;;  %v17950_v56 = vld [vmem:[#allocation421_spill] sm:$0xff] }
 0x416   : > { %17942 = vst [vmem:[#allocation419_spill] sm:$0xff] %v12432_v17  ;;  %17944 = vst [vmem:[#allocation926_spill] sm:$0xff] %v12437_v28  ;;  %v12442_v1 = vmul.f32 %v12317_v51, %v17946_v61  ;;  %v12447_v46 = vmul.f32 %v12317_v51, %v17948_v35  ;;  %v17951_v8 = vunpack.c.l.bf16 %v17950_v56  ;;  %v17953_v10 = vunpack.c.h.bf16 %v17950_v56  ;;  %v17955_v28 = vld [vmem:[#allocation422_spill] sm:$0xff] }
 0x417   : > { %v17956_v17 = vunpack.c.l.bf16 %v17955_v28  ;;  %v17958_v50 = vunpack.c.h.bf16 %v17955_v28 }
 0x418   : > { %17947 = vst [vmem:[#allocation420_spill] sm:$0xff] %v12442_v1  ;;  %17949 = vst [vmem:[#allocation927_spill] sm:$0xff] %v12447_v46  ;;  %v12452_v22 = vmul.f32 %v12317_v51, %v17951_v8  ;;  %v12457_v62 = vmul.f32 %v12317_v51, %v17953_v10  ;;  %v17960_v46 = vld [vmem:[#allocation423_spill] sm:$0xff] }
 0x419   : > { %v12462_v61 = vmul.f32 %v12317_v51, %v17956_v17  ;;  %v12467_v35 = vmul.f32 %v12317_v51, %v17958_v50  ;;  %v17961_v1 = vunpack.c.l.bf16 %v17960_v46  ;;  %v17963_v56 = vunpack.c.h.bf16 %v17960_v46 }
 0x41a   : > { %17952 = vst [vmem:[#allocation421_spill] sm:$0xff] %v12452_v22  ;;  %17954 = vst [vmem:[#allocation928_spill] sm:$0xff] %v12457_v62  ;;  %v17965_v62 = vld [vmem:[#allocation424_spill] sm:$0xff] }
 0x41b   : > { %17957 = vst [vmem:[#allocation422_spill] sm:$0xff] %v12462_v61  ;;  %17959 = vst [vmem:[#allocation929_spill] sm:$0xff] %v12467_v35  ;;  %v12472_v8 = vmul.f32 %v12317_v51, %v17961_v1  ;;  %v12477_v10 = vmul.f32 %v12317_v51, %v17963_v56  ;;  %v17966_v22 = vunpack.c.l.bf16 %v17965_v62  ;;  %v17968_v28 = vunpack.c.h.bf16 %v17965_v62  ;;  %v17970_v35 = vld [vmem:[#allocation425_spill] sm:$0xff] }
 0x41c   : > { %v17971_v61 = vunpack.c.l.bf16 %v17970_v35  ;;  %v17973_v46 = vunpack.c.h.bf16 %v17970_v35 }
 0x41d   : > { %17962 = vst [vmem:[#allocation423_spill] sm:$0xff] %v12472_v8  ;;  %17964 = vst [vmem:[#allocation930_spill] sm:$0xff] %v12477_v10  ;;  %v12482_v17 = vmul.f32 %v12317_v51, %v17966_v22  ;;  %v12487_v50 = vmul.f32 %v12317_v51, %v17968_v28  ;;  %v17975_v10 = vld [vmem:[#allocation426_spill] sm:$0xff] }
 0x41e   : > { %v12492_v1 = vmul.f32 %v12317_v51, %v17971_v61  ;;  %v12497_v56 = vmul.f32 %v12317_v51, %v17973_v46  ;;  %v17976_v8 = vunpack.c.l.bf16 %v17975_v10  ;;  %v17978_v62 = vunpack.c.h.bf16 %v17975_v10 }
 0x41f   : > { %17967 = vst [vmem:[#allocation424_spill] sm:$0xff] %v12482_v17  ;;  %17969 = vst [vmem:[#allocation931_spill] sm:$0xff] %v12487_v50  ;;  %v17980_v50 = vld [vmem:[#allocation427_spill] sm:$0xff] }
 0x420   : > { %17972 = vst [vmem:[#allocation425_spill] sm:$0xff] %v12492_v1  ;;  %17974 = vst [vmem:[#allocation932_spill] sm:$0xff] %v12497_v56  ;;  %v12502_v22 = vmul.f32 %v12317_v51, %v17976_v8  ;;  %v12507_v28 = vmul.f32 %v12317_v51, %v17978_v62  ;;  %v17981_v17 = vunpack.c.l.bf16 %v17980_v50  ;;  %v17983_v35 = vunpack.c.h.bf16 %v17980_v50  ;;  %v17985_v56 = vld [vmem:[#allocation428_spill] sm:$0xff] }
 0x421   : > { %v17986_v1 = vunpack.c.l.bf16 %v17985_v56  ;;  %v17988_v10 = vunpack.c.h.bf16 %v17985_v56 }
 0x422   : > { %17977 = vst [vmem:[#allocation426_spill] sm:$0xff] %v12502_v22  ;;  %17979 = vst [vmem:[#allocation933_spill] sm:$0xff] %v12507_v28  ;;  %v12512_v61 = vmul.f32 %v12317_v51, %v17981_v17  ;;  %v12517_v46 = vmul.f32 %v12317_v51, %v17983_v35  ;;  %v17990_v28 = vld [vmem:[#allocation429_spill] sm:$0xff] }
 0x423   : > { %v12522_v8 = vmul.f32 %v12317_v51, %v17986_v1  ;;  %v12527_v62 = vmul.f32 %v12317_v51, %v17988_v10  ;;  %v17991_v22 = vunpack.c.l.bf16 %v17990_v28  ;;  %v17993_v50 = vunpack.c.h.bf16 %v17990_v28 }
 0x424   : > { %17982 = vst [vmem:[#allocation427_spill] sm:$0xff] %v12512_v61  ;;  %17984 = vst [vmem:[#allocation934_spill] sm:$0xff] %v12517_v46  ;;  %v17995_v46 = vld [vmem:[#allocation430_spill] sm:$0xff] }
 0x425   : > { %17987 = vst [vmem:[#allocation428_spill] sm:$0xff] %v12522_v8  ;;  %17989 = vst [vmem:[#allocation935_spill] sm:$0xff] %v12527_v62  ;;  %v12532_v17 = vmul.f32 %v12317_v51, %v17991_v22  ;;  %v12537_v35 = vmul.f32 %v12317_v51, %v17993_v50  ;;  %v17996_v61 = vunpack.c.l.bf16 %v17995_v46  ;;  %v17998_v56 = vunpack.c.h.bf16 %v17995_v46  ;;  %v18000_v62 = vld [vmem:[#allocation431_spill] sm:$0xff] }
 0x426   : > { %v18001_v8 = vunpack.c.l.bf16 %v18000_v62  ;;  %v18003_v28 = vunpack.c.h.bf16 %v18000_v62 }
 0x427   : > { %17992 = vst [vmem:[#allocation429_spill] sm:$0xff] %v12532_v17  ;;  %17994 = vst [vmem:[#allocation936_spill] sm:$0xff] %v12537_v35  ;;  %v12542_v1 = vmul.f32 %v12317_v51, %v17996_v61  ;;  %v12547_v10 = vmul.f32 %v12317_v51, %v17998_v56  ;;  %v18005_v35 = vld [vmem:[#allocation432_spill] sm:$0xff] }
 0x428   : > { %v12552_v22 = vmul.f32 %v12317_v51, %v18001_v8  ;;  %v12557_v50 = vmul.f32 %v12317_v51, %v18003_v28  ;;  %v18006_v17 = vunpack.c.l.bf16 %v18005_v35  ;;  %v18008_v46 = vunpack.c.h.bf16 %v18005_v35 }
 0x429   : > { %17997 = vst [vmem:[#allocation430_spill] sm:$0xff] %v12542_v1  ;;  %17999 = vst [vmem:[#allocation937_spill] sm:$0xff] %v12547_v10  ;;  %v18010_v10 = vld [vmem:[#allocation433_spill] sm:$0xff] }
 0x42a   : > { %18002 = vst [vmem:[#allocation431_spill] sm:$0xff] %v12552_v22  ;;  %18004 = vst [vmem:[#allocation938_spill] sm:$0xff] %v12557_v50  ;;  %v12562_v61 = vmul.f32 %v12317_v51, %v18006_v17  ;;  %v12567_v56 = vmul.f32 %v12317_v51, %v18008_v46  ;;  %v18011_v1 = vunpack.c.l.bf16 %v18010_v10  ;;  %v18013_v62 = vunpack.c.h.bf16 %v18010_v10  ;;  %v18015_v50 = vld [vmem:[#allocation434_spill] sm:$0xff] }
 0x42b   : > { %v18016_v22 = vunpack.c.l.bf16 %v18015_v50  ;;  %v18018_v35 = vunpack.c.h.bf16 %v18015_v50 }
 0x42c   : > { %18007 = vst [vmem:[#allocation432_spill] sm:$0xff] %v12562_v61  ;;  %18009 = vst [vmem:[#allocation939_spill] sm:$0xff] %v12567_v56  ;;  %v12572_v8 = vmul.f32 %v12317_v51, %v18011_v1  ;;  %v12577_v28 = vmul.f32 %v12317_v51, %v18013_v62  ;;  %v18020_v56 = vld [vmem:[#allocation435_spill] sm:$0xff] }
 0x42d   : > { %v12582_v17 = vmul.f32 %v12317_v51, %v18016_v22  ;;  %v12587_v46 = vmul.f32 %v12317_v51, %v18018_v35  ;;  %v18021_v61 = vunpack.c.l.bf16 %v18020_v56  ;;  %v18023_v10 = vunpack.c.h.bf16 %v18020_v56 }
 0x42e   : > { %18012 = vst [vmem:[#allocation433_spill] sm:$0xff] %v12572_v8  ;;  %18014 = vst [vmem:[#allocation940_spill] sm:$0xff] %v12577_v28  ;;  %v18025_v28 = vld [vmem:[#allocation436_spill] sm:$0xff] }
 0x42f   : > { %18017 = vst [vmem:[#allocation434_spill] sm:$0xff] %v12582_v17  ;;  %18019 = vst [vmem:[#allocation941_spill] sm:$0xff] %v12587_v46  ;;  %v12592_v1 = vmul.f32 %v12317_v51, %v18021_v61  ;;  %v12597_v62 = vmul.f32 %v12317_v51, %v18023_v10  ;;  %v18026_v8 = vunpack.c.l.bf16 %v18025_v28  ;;  %v18028_v50 = vunpack.c.h.bf16 %v18025_v28  ;;  %v18030_v46 = vld [vmem:[#allocation437_spill] sm:$0xff] }
 0x430   : > { %v18031_v17 = vunpack.c.l.bf16 %v18030_v46  ;;  %v18033_v56 = vunpack.c.h.bf16 %v18030_v46 }
 0x431   : > { %18022 = vst [vmem:[#allocation435_spill] sm:$0xff] %v12592_v1  ;;  %18024 = vst [vmem:[#allocation942_spill] sm:$0xff] %v12597_v62  ;;  %v12602_v22 = vmul.f32 %v12317_v51, %v18026_v8  ;;  %v12607_v35 = vmul.f32 %v12317_v51, %v18028_v50  ;;  %v18035_v62 = vld [vmem:[#allocation438_spill] sm:$0xff] }
 0x432   : > { %v12612_v61 = vmul.f32 %v12317_v51, %v18031_v17  ;;  %v12617_v10 = vmul.f32 %v12317_v51, %v18033_v56  ;;  %v18036_v1 = vunpack.c.l.bf16 %v18035_v62  ;;  %v18038_v28 = vunpack.c.h.bf16 %v18035_v62 }
 0x433   : > { %18027 = vst [vmem:[#allocation436_spill] sm:$0xff] %v12602_v22  ;;  %18029 = vst [vmem:[#allocation943_spill] sm:$0xff] %v12607_v35  ;;  %v18040_v35 = vld [vmem:[#allocation439_spill] sm:$0xff] }
 0x434   : > { %18032 = vst [vmem:[#allocation437_spill] sm:$0xff] %v12612_v61  ;;  %18034 = vst [vmem:[#allocation944_spill] sm:$0xff] %v12617_v10  ;;  %v12622_v8 = vmul.f32 %v12317_v51, %v18036_v1  ;;  %v12627_v50 = vmul.f32 %v12317_v51, %v18038_v28  ;;  %v18041_v22 = vunpack.c.l.bf16 %v18040_v35  ;;  %v18043_v46 = vunpack.c.h.bf16 %v18040_v35  ;;  %v12639_v10 = vpop.permute.xlu1 %1864  ;;  %v18045_v61 = vld [vmem:[#allocation440_spill] sm:$0xff] }
 0x435   : > { %v18046_v1 = vunpack.c.l.bf16 %v18045_v61  ;;  %v18048_v62 = vunpack.c.h.bf16 %v18045_v61 }
 0x436   : > { %18037 = vst [vmem:[#allocation438_spill] sm:$0xff] %v12622_v8  ;;  %18039 = vst [vmem:[#allocation945_spill] sm:$0xff] %v12627_v50  ;;  %v12632_v17 = vmul.f32 %v12317_v51, %v18041_v22  ;;  %v12637_v56 = vmul.f32 %v12317_v51, %v18043_v46  ;;  %v18050_v50 = vld [vmem:[#allocation441_spill] sm:$0xff] }
 0x437   : > { %v12644_v8 = vmul.f32 %v12317_v51, %v18046_v1  ;;  %v12649_v28 = vmul.f32 %v12317_v51, %v18048_v62  ;;  %v18051_v22 = vunpack.c.l.bf16 %v18050_v50  ;;  %v18053_v35 = vunpack.c.h.bf16 %v18050_v50 }
 0x438   : > { %18042 = vst [vmem:[#allocation439_spill] sm:$0xff] %v12632_v17  ;;  %18044 = vst [vmem:[#allocation946_spill] sm:$0xff] %v12637_v56  ;;  %v18055_v56 = vld [vmem:[#allocation442_spill] sm:$0xff] }
 0x439   : > { %18047 = vst [vmem:[#allocation440_spill] sm:$0xff] %v12644_v8  ;;  %18049 = vst [vmem:[#allocation947_spill] sm:$0xff] %v12649_v28  ;;  %v12654_v17 = vmul.f32 %v12317_v51, %v18051_v22  ;;  %v12659_v46 = vmul.f32 %v12317_v51, %v18053_v35  ;;  %v18056_v47 = vunpack.c.l.bf16 %v18055_v56  ;;  %v18058_v61 = vunpack.c.h.bf16 %v18055_v56  ;;  %v18060_v28 = vld [vmem:[#allocation443_spill] sm:$0xff] }
 0x43a   : > { %v18061_v8 = vunpack.c.l.bf16 %v18060_v28  ;;  %v18063_v50 = vunpack.c.h.bf16 %v18060_v28 }
 0x43b   : > { %18052 = vst [vmem:[#allocation441_spill] sm:$0xff] %v12654_v17  ;;  %18054 = vst [vmem:[#allocation948_spill] sm:$0xff] %v12659_v46  ;;  %v12664_v1 = vmul.f32 %v12317_v51, %v18056_v47  ;;  %v12669_v62 = vmul.f32 %v12317_v51, %v18058_v61  ;;  %v18065_v46 = vld [vmem:[#allocation444_spill] sm:$0xff] }
 0x43c   : > { %v12674_v22 = vmul.f32 %v12317_v51, %v18061_v8  ;;  %v12679_v35 = vmul.f32 %v12317_v51, %v18063_v50  ;;  %v18066_v17 = vunpack.c.l.bf16 %v18065_v46  ;;  %v18068_v56 = vunpack.c.h.bf16 %v18065_v46 }
 0x43d   : > { %18057 = vst [vmem:[#allocation442_spill] sm:$0xff] %v12664_v1  ;;  %18059 = vst [vmem:[#allocation949_spill] sm:$0xff] %v12669_v62  ;;  %v18070_v62 = vld [vmem:[#allocation445_spill] sm:$0xff] }
 0x43e   : > { %18062 = vst [vmem:[#allocation443_spill] sm:$0xff] %v12674_v22  ;;  %18064 = vst [vmem:[#allocation950_spill] sm:$0xff] %v12679_v35  ;;  %v12684_v47 = vmul.f32 %v12317_v51, %v18066_v17  ;;  %v12689_v61 = vmul.f32 %v12317_v51, %v18068_v56  ;;  %v18071_v1 = vunpack.c.l.bf16 %v18070_v62  ;;  %v18073_v28 = vunpack.c.h.bf16 %v18070_v62  ;;  %v18075_v35 = vld [vmem:[#allocation446_spill] sm:$0xff] }
 0x43f   : > { %v18076_v22 = vunpack.c.l.bf16 %v18075_v35  ;;  %v18077_v46 = vunpack.c.h.bf16 %v18075_v35 }
 0x440   : > { %18067 = vst [vmem:[#allocation444_spill] sm:$0xff] %v12684_v47  ;;  %18069 = vst [vmem:[#allocation951_spill] sm:$0xff] %v12689_v61  ;;  %v12694_v8 = vmul.f32 %v12317_v51, %v18071_v1  ;;  %v12699_v50 = vmul.f32 %v12317_v51, %v18073_v28  ;;  %v18079_v61 = vld [vmem:[#allocation447_spill] sm:$0xff]  ;;  %v18084_v28 = vld [vmem:[#allocation448_spill] sm:$0xff] }
 0x441   : > { %v12704_v17 = vmul.f32 %v12639_v10, %v18076_v22  ;;  %v12709_v56 = vmul.f32 %v12639_v10, %v18077_v46  ;;  %v18080_v47 = vunpack.c.l.bf16 %v18079_v61  ;;  %v18082_v62 = vunpack.c.h.bf16 %v18079_v61 }
 0x442   : > { %18072 = vst [vmem:[#allocation445_spill] sm:$0xff] %v12694_v8  ;;  %18074 = vst [vmem:[#allocation952_spill] sm:$0xff] %v12699_v50  ;;  %v18085_v50 = vunpack.c.l.bf16 %v18084_v28  ;;  %v18087_v35 = vunpack.c.h.bf16 %v18084_v28  ;;  %v18089_v8 = vld [vmem:[#allocation449_spill] sm:$0xff] }
 0x443   : > { %18078 = vst [vmem:[#allocation446_spill] sm:$0xff] %v12709_v56  ;;  %v12714_v1 = vmul.f32 %v12639_v10, %v18080_v47  ;;  %v12719_v51 = vmul.f32 %v12639_v10, %v18082_v62  ;;  %v18090_v56 = vunpack.c.l.bf16 %v18089_v8  ;;  %v18092_v61 = vunpack.c.h.bf16 %v18089_v8 }
 0x444   : > { %v12724_v22 = vmul.f32 %v12639_v10, %v18085_v50  ;;  %v12729_v46 = vmul.f32 %v12639_v10, %v18087_v35 }
 0x445   : > { %18081 = vst [vmem:[#allocation447_spill] sm:$0xff] %v12714_v1  ;;  %18083 = vst [vmem:[#allocation953_spill] sm:$0xff] %v12719_v51  ;;  %v12734_v47 = vmul.f32 %v12639_v10, %v18090_v56  ;;  %v12739_v62 = vmul.f32 %v12639_v10, %v18092_v61  ;;  %v18094_v51 = vld [vmem:[#allocation450_spill] sm:$0xff] }
 0x446   : > { %18086 = vst [vmem:[#allocation448_spill] sm:$0xff] %v12724_v22  ;;  %18088 = vst [vmem:[#allocation954_spill] sm:$0xff] %v12729_v46  ;;  %v18095_v1 = vunpack.c.l.bf16 %v18094_v51  ;;  %v18097_v28 = vunpack.c.h.bf16 %v18094_v51  ;;  %v18099_v46 = vld [vmem:[#allocation451_spill] sm:$0xff] }
 0x447   : > { %18091 = vst [vmem:[#allocation449_spill] sm:$0xff] %v12734_v47  ;;  %18093 = vst [vmem:[#allocation955_spill] sm:$0xff] %v12739_v62  ;;  %v18100_v22 = vunpack.c.l.bf16 %v18099_v46  ;;  %v18102_v8 = vunpack.c.h.bf16 %v18099_v46  ;;  %v18104_v62 = vld [vmem:[#allocation452_spill] sm:$0xff] }
 0x448   : > { %v12744_v50 = vmul.f32 %v12639_v10, %v18095_v1  ;;  %v12749_v35 = vmul.f32 %v12639_v10, %v18097_v28  ;;  %v18105_v47 = vunpack.c.l.bf16 %v18104_v62  ;;  %v18107_v51 = vunpack.c.h.bf16 %v18104_v62 }
 0x449   : > { %v12754_v56 = vmul.f32 %v12639_v10, %v18100_v22  ;;  %v12759_v61 = vmul.f32 %v12639_v10, %v18102_v8 }
 0x44a   : > { %18096 = vst [vmem:[#allocation450_spill] sm:$0xff] %v12744_v50  ;;  %18098 = vst [vmem:[#allocation956_spill] sm:$0xff] %v12749_v35  ;;  %v12764_v1 = vmul.f32 %v12639_v10, %v18105_v47  ;;  %v12769_v28 = vmul.f32 %v12639_v10, %v18107_v51  ;;  %v18109_v35 = vld [vmem:[#allocation453_spill] sm:$0xff] }
 0x44b   : > { %18101 = vst [vmem:[#allocation451_spill] sm:$0xff] %v12754_v56  ;;  %18103 = vst [vmem:[#allocation957_spill] sm:$0xff] %v12759_v61  ;;  %v18110_v50 = vunpack.c.l.bf16 %v18109_v35  ;;  %v18112_v46 = vunpack.c.h.bf16 %v18109_v35  ;;  %v18114_v61 = vld [vmem:[#allocation454_spill] sm:$0xff] }
 0x44c   : > { %18106 = vst [vmem:[#allocation452_spill] sm:$0xff] %v12764_v1  ;;  %18108 = vst [vmem:[#allocation958_spill] sm:$0xff] %v12769_v28  ;;  %v18115_v56 = vunpack.c.l.bf16 %v18114_v61  ;;  %v18117_v62 = vunpack.c.h.bf16 %v18114_v61  ;;  %v18119_v28 = vld [vmem:[#allocation455_spill] sm:$0xff] }
 0x44d   : > { %v12774_v22 = vmul.f32 %v12639_v10, %v18110_v50  ;;  %v12779_v8 = vmul.f32 %v12639_v10, %v18112_v46  ;;  %v18120_v1 = vunpack.c.l.bf16 %v18119_v28  ;;  %v18122_v35 = vunpack.c.h.bf16 %v18119_v28 }
 0x44e   : > { %v12784_v47 = vmul.f32 %v12639_v10, %v18115_v56  ;;  %v12789_v51 = vmul.f32 %v12639_v10, %v18117_v62 }
 0x44f   : > { %18111 = vst [vmem:[#allocation453_spill] sm:$0xff] %v12774_v22  ;;  %18113 = vst [vmem:[#allocation959_spill] sm:$0xff] %v12779_v8  ;;  %v12794_v50 = vmul.f32 %v12639_v10, %v18120_v1  ;;  %v12799_v46 = vmul.f32 %v12639_v10, %v18122_v35  ;;  %v18124_v8 = vld [vmem:[#allocation456_spill] sm:$0xff] }
 0x450   : > { %18116 = vst [vmem:[#allocation454_spill] sm:$0xff] %v12784_v47  ;;  %18118 = vst [vmem:[#allocation960_spill] sm:$0xff] %v12789_v51  ;;  %v18125_v22 = vunpack.c.l.bf16 %v18124_v8  ;;  %v18127_v61 = vunpack.c.h.bf16 %v18124_v8  ;;  %v18129_v51 = vld [vmem:[#allocation457_spill] sm:$0xff] }
 0x451   : > { %18121 = vst [vmem:[#allocation455_spill] sm:$0xff] %v12794_v50  ;;  %18123 = vst [vmem:[#allocation961_spill] sm:$0xff] %v12799_v46  ;;  %v18130_v47 = vunpack.c.l.bf16 %v18129_v51  ;;  %v18132_v28 = vunpack.c.h.bf16 %v18129_v51  ;;  %v18134_v46 = vld [vmem:[#allocation458_spill] sm:$0xff] }
 0x452   : > { %v12804_v56 = vmul.f32 %v12639_v10, %v18125_v22  ;;  %v12809_v62 = vmul.f32 %v12639_v10, %v18127_v61  ;;  %v18135_v50 = vunpack.c.l.bf16 %v18134_v46  ;;  %v18137_v8 = vunpack.c.h.bf16 %v18134_v46 }
 0x453   : > { %v12814_v1 = vmul.f32 %v12639_v10, %v18130_v47  ;;  %v12819_v35 = vmul.f32 %v12639_v10, %v18132_v28 }
 0x454   : > { %18126 = vst [vmem:[#allocation456_spill] sm:$0xff] %v12804_v56  ;;  %18128 = vst [vmem:[#allocation962_spill] sm:$0xff] %v12809_v62  ;;  %v12824_v22 = vmul.f32 %v12639_v10, %v18135_v50  ;;  %v12829_v61 = vmul.f32 %v12639_v10, %v18137_v8  ;;  %v18139_v62 = vld [vmem:[#allocation459_spill] sm:$0xff] }
 0x455   : > { %18131 = vst [vmem:[#allocation457_spill] sm:$0xff] %v12814_v1  ;;  %18133 = vst [vmem:[#allocation963_spill] sm:$0xff] %v12819_v35  ;;  %v18140_v56 = vunpack.c.l.bf16 %v18139_v62  ;;  %v18142_v51 = vunpack.c.h.bf16 %v18139_v62  ;;  %v18144_v35 = vld [vmem:[#allocation460_spill] sm:$0xff] }
 0x456   : > { %18136 = vst [vmem:[#allocation458_spill] sm:$0xff] %v12824_v22  ;;  %18138 = vst [vmem:[#allocation964_spill] sm:$0xff] %v12829_v61  ;;  %v18145_v1 = vunpack.c.l.bf16 %v18144_v35  ;;  %v18147_v46 = vunpack.c.h.bf16 %v18144_v35  ;;  %v18149_v61 = vld [vmem:[#allocation461_spill] sm:$0xff] }
 0x457   : > { %v12834_v47 = vmul.f32 %v12639_v10, %v18140_v56  ;;  %v12839_v28 = vmul.f32 %v12639_v10, %v18142_v51  ;;  %v18150_v22 = vunpack.c.l.bf16 %v18149_v61  ;;  %v18152_v62 = vunpack.c.h.bf16 %v18149_v61 }
 0x458   : > { %v12844_v50 = vmul.f32 %v12639_v10, %v18145_v1  ;;  %v12849_v8 = vmul.f32 %v12639_v10, %v18147_v46 }
 0x459   : > { %18141 = vst [vmem:[#allocation459_spill] sm:$0xff] %v12834_v47  ;;  %18143 = vst [vmem:[#allocation965_spill] sm:$0xff] %v12839_v28  ;;  %v12854_v56 = vmul.f32 %v12639_v10, %v18150_v22  ;;  %v12859_v51 = vmul.f32 %v12639_v10, %v18152_v62  ;;  %v18154_v28 = vld [vmem:[#allocation462_spill] sm:$0xff] }
 0x45a   : > { %18146 = vst [vmem:[#allocation460_spill] sm:$0xff] %v12844_v50  ;;  %18148 = vst [vmem:[#allocation966_spill] sm:$0xff] %v12849_v8  ;;  %v18155_v47 = vunpack.c.l.bf16 %v18154_v28  ;;  %v18157_v35 = vunpack.c.h.bf16 %v18154_v28  ;;  %v18159_v8 = vld [vmem:[#allocation463_spill] sm:$0xff] }
 0x45b   : > { %18151 = vst [vmem:[#allocation461_spill] sm:$0xff] %v12854_v56  ;;  %18153 = vst [vmem:[#allocation967_spill] sm:$0xff] %v12859_v51  ;;  %v18160_v50 = vunpack.c.l.bf16 %v18159_v8  ;;  %v18162_v61 = vunpack.c.h.bf16 %v18159_v8  ;;  %v18164_v51 = vld [vmem:[#allocation464_spill] sm:$0xff] }
 0x45c   : > { %v12864_v1 = vmul.f32 %v12639_v10, %v18155_v47  ;;  %v12869_v46 = vmul.f32 %v12639_v10, %v18157_v35  ;;  %v18165_v56 = vunpack.c.l.bf16 %v18164_v51  ;;  %v18167_v28 = vunpack.c.h.bf16 %v18164_v51 }
 0x45d   : > { %v12874_v22 = vmul.f32 %v12639_v10, %v18160_v50  ;;  %v12879_v62 = vmul.f32 %v12639_v10, %v18162_v61 }
 0x45e   : > { %18156 = vst [vmem:[#allocation462_spill] sm:$0xff] %v12864_v1  ;;  %18158 = vst [vmem:[#allocation968_spill] sm:$0xff] %v12869_v46  ;;  %v12884_v47 = vmul.f32 %v12639_v10, %v18165_v56  ;;  %v12889_v35 = vmul.f32 %v12639_v10, %v18167_v28  ;;  %v18169_v46 = vld [vmem:[#allocation465_spill] sm:$0xff] }
 0x45f   : > { %18161 = vst [vmem:[#allocation463_spill] sm:$0xff] %v12874_v22  ;;  %18163 = vst [vmem:[#allocation969_spill] sm:$0xff] %v12879_v62  ;;  %v18170_v1 = vunpack.c.l.bf16 %v18169_v46  ;;  %v18171_v8 = vunpack.c.h.bf16 %v18169_v46  ;;  %v18173_v62 = vld [vmem:[#allocation466_spill] sm:$0xff] }
 0x460   : > { %18166 = vst [vmem:[#allocation464_spill] sm:$0xff] %v12884_v47  ;;  %18168 = vst [vmem:[#allocation970_spill] sm:$0xff] %v12889_v35  ;;  %v18174_v22 = vunpack.c.l.bf16 %v18173_v62  ;;  %v18176_v51 = vunpack.c.h.bf16 %v18173_v62  ;;  %v18178_v35 = vld [vmem:[#allocation467_spill] sm:$0xff]  ;;  %v18184_v62 = vunpack.c.h.bf16 %v7808_v36 }
 0x461   : > { %v12894_v50 = vmul.f32 %v12639_v10, %v18170_v1  ;;  %v12899_v61 = vmul.f32 %v12639_v10, %v18171_v8  ;;  %v18179_v47 = vunpack.c.l.bf16 %v18178_v35  ;;  %v18180_v46 = vunpack.c.h.bf16 %v18178_v35 }
 0x462   : > { %v12904_v56 = vmul.f32 %v12639_v10, %v18174_v22  ;;  %v12909_v28 = vmul.f32 %v12639_v10, %v18176_v51  ;;  %v12929_v51 = vmul.f32 %v12639_v10, %v18184_v62 }
 0x463   : > { %18172 = vst [vmem:[#allocation465_spill] sm:$0xff] %v12899_v61  ;;  %v12914_v1 = vmul.f32 %v12639_v10, %v18179_v47  ;;  %v12919_v8 = vmul.f32 %v12639_v10, %v18180_v46  ;;  %v18182_v61 = vunpack.c.l.bf16 %v7808_v36  ;;  %v18191_v36 = vunpack.c.h.bf16 %v7818_v31 }
 0x464   : > { %18175 = vst [vmem:[#allocation466_spill] sm:$0xff] %v12904_v56  ;;  %18177 = vst [vmem:[#allocation971_spill] sm:$0xff] %v12909_v28  ;;  %v18186_v28 = vld [vmem:[#allocation468_spill] sm:$0xff] }
 0x465   : > { %18181 = vst [vmem:[#allocation467_spill] sm:$0xff] %v12919_v8  ;;  %v12924_v22 = vmul.f32 %v12639_v10, %v18182_v61  ;;  %18185 = vst [vmem:[#allocation973_spill] sm:$0xff] %v12929_v51  ;;  %v18187_v56 = vunpack.c.l.bf16 %v18186_v28  ;;  %v18188_v35 = vunpack.c.h.bf16 %v18186_v28  ;;  %v18190_v8 = vunpack.c.l.bf16 %v7818_v31  ;;  %v18193_v51 = vld [vmem:[#allocation469_spill] sm:$0xff] }
 0x466   : > { %v12949_v62 = vmul.f32 %v12639_v10, %v18191_v36  ;;  %v18195_v28 = vunpack.c.h.bf16 %v18193_v51  ;;  %v18198_v31 = vunpack.c.h.bf16 %v7828_v29 }
 0x467   : > { %18183 = vst [vmem:[#allocation972_spill] sm:$0xff] %v12924_v22  ;;  %v12934_v47 = vmul.f32 %v12639_v10, %v18187_v56  ;;  %v12939_v46 = vmul.f32 %v12639_v10, %v18188_v35  ;;  %v12944_v61 = vmul.f32 %v12639_v10, %v18190_v8  ;;  %v18194_v22 = vunpack.c.l.bf16 %v18193_v51 }
 0x468   : > { %18192 = vst [vmem:[#allocation974_spill] sm:$0xff] %v12949_v62  ;;  %v12959_v35 = vmul.f32 %v12639_v10, %v18195_v28  ;;  %v12969_v36 = vmul.f32 %v12639_v10, %v18198_v31  ;;  %v18200_v62 = vunpack.c.l.bf16 %v7831_v45  ;;  %v18201_v51 = vunpack.c.h.bf16 %v7831_v45 }
 0x469   : > { %18189 = vst [vmem:[#allocation468_spill] sm:$0xff] %v12939_v46  ;;  %v12954_v56 = vmul.f32 %v12639_v10, %v18194_v22  ;;  %v18197_v46 = vunpack.c.l.bf16 %v7828_v29  ;;  %v18204_v29 = vunpack.c.h.bf16 %v7838_v57  ;;  %v18207_v45 = vunpack.c.h.bf16 %v7841_v25 }
 0x46a   : > { %18196 = vst [vmem:[#allocation469_spill] sm:$0xff] %v12959_v35  ;;  %18199 = vst [vmem:[#allocation975_spill] sm:$0xff] %v12969_v36  ;;  %v12974_v22 = vmul.f32 %v12639_v10, %v18200_v62  ;;  %v12979_v28 = vmul.f32 %v12639_v10, %v18201_v51  ;;  %v18203_v35 = vunpack.c.l.bf16 %v7838_v57  ;;  %v18206_v36 = vunpack.c.l.bf16 %v7841_v25 }
 0x46b   : > { %v12964_v8 = vmul.f32 %v12639_v10, %v18197_v46  ;;  %v12989_v31 = vmul.f32 %v12639_v10, %v18204_v29  ;;  %v12999_v51 = vmul.f32 %v12639_v10, %v18207_v45  ;;  %v18210_v57 = vunpack.c.h.bf16 %v7848_v42 }
 0x46c   : > { %18202 = vst [vmem:[#allocation976_spill] sm:$0xff] %v12979_v28  ;;  %v12984_v46 = vmul.f32 %v12639_v10, %v18203_v35  ;;  %v12994_v62 = vmul.f32 %v12639_v10, %v18206_v36  ;;  %v18209_v28 = vunpack.c.l.bf16 %v7848_v42  ;;  %v18214_v25 = vunpack.c.h.bf16 %v7851_v30 }
 0x46d   : > { %18205 = vst [vmem:[#allocation977_spill] sm:$0xff] %v12989_v31  ;;  %18208 = vst [vmem:[#allocation978_spill] sm:$0xff] %v12999_v51  ;;  %v13009_v29 = vmul.f32 %v12639_v10, %v18210_v57  ;;  %v18212_v31 = vunpack.c.l.bf16 %v7851_v30  ;;  %v2891_v51 = vadd.f32 %v8196_v9, %v7874_v37  ;;  %v2933_v42 = vadd.f32 %v8206_v32, %v7884_v55  ;;  %v18215_v57 = vld [vmem:[#allocation470_spill] sm:$0xff] }
 0x46e   : > { %v13004_v35 = vmul.f32 %v12639_v10, %v18209_v28  ;;  %v13019_v45 = vmul.f32 %v12639_v10, %v18214_v25  ;;  %v2912_v28 = vadd.f32 %v8201_v7, %v7879_v24  ;;  %v18217_v25 = vld [vmem:[#allocation472_spill] sm:$0xff] }
 0x46f   : > { %18211 = vst [vmem:[#allocation979_spill] sm:$0xff] %v13009_v29  ;;  %v13014_v36 = vmul.f32 %v12639_v10, %v18212_v31  ;;  %v2954_v29 = vadd.f32 %v8211_v38, %v18215_v57  ;;  %v2975_v31 = vadd.f32 %v8216_v39, %v7894_v43  ;;  %v3017_v10 = vadd.f32 %v8226_v14, %v7904_v23  ;;  %v18225_v57 = vld [vmem:[#allocation160_spill] sm:$0xff] }
 0x470   : > { %v3038_v37 = vadd.f32 %v8231_v63, %v18217_v25  ;;  %v2892_v24 = vadd.f32 %v2891_v51, %v8518_v34  ;;  %v2913_v9 = vadd.f32 %v2912_v28, %v8523_v33  ;;  %v2934_v55 = vadd.f32 %v2933_v42, %v8528_v27  ;;  %v18220_v51 = vld [vmem:[#allocation128_spill] sm:$0xff]  ;;  %v18223_v28 = vld [vmem:[#allocation159_spill] sm:$0xff]  ;;  %v18224_v42 = vld [vmem:[#allocation666_spill] sm:$0xff] }
 0x471   : > { %18213 = vst [vmem:[#allocation980_spill] sm:$0xff] %v13014_v36  ;;  %v18216_v36 = vld [vmem:[#allocation471_spill] sm:$0xff]  ;;  %v2955_v7 = vadd.f32 %v2954_v29, %v8533_v60  ;;  %v2976_v32 = vadd.f32 %v2975_v31, %v8538_v48  ;;  %v3018_v38 = vadd.f32 %v3017_v10, %v8548_v19  ;;  %v18221_v29 = vld [vmem:[#allocation158_spill] sm:$0xff]  ;;  %v18228_v10 = vld [vmem:[#allocation668_spill] sm:$0xff] }
 0x472   : > { %v2996_v30 = vadd.f32 %v8221_v4, %v18216_v36  ;;  %v3039_v39 = vadd.f32 %v3038_v37, %v8553_v0  ;;  %v2893_v23 = vadd.f32 %v2892_v24, %v8840_v13  ;;  %v2914_v4 = vadd.f32 %v2913_v9, %v8845_v15  ;;  %v18222_v36 = vld [vmem:[#allocation665_spill] sm:$0xff]  ;;  %v18226_v31 = vld [vmem:[#allocation667_spill] sm:$0xff]  ;;  %v18229_v37 = vld [vmem:[#allocation190_spill] sm:$0xff] }
 0x473   : > { %v2935_v14 = vadd.f32 %v2934_v55, %v8850_v53  ;;  %v2956_v63 = vadd.f32 %v2955_v7, %v8855_v20  ;;  %v2977_v34 = vadd.f32 %v2976_v32, %v8860_v11  ;;  %v3019_v27 = vadd.f32 %v3018_v38, %v8870_v59  ;;  %v18230_v9 = vld [vmem:[#allocation697_spill] sm:$0xff]  ;;  %v18231_v7 = vld [vmem:[#allocation191_spill] sm:$0xff] }
 0x474   : > { %v2997_v43 = vadd.f32 %v2996_v30, %v8543_v21  ;;  %v3040_v60 = vadd.f32 %v3039_v39, %v8875_v12  ;;  %v2894_v48 = vadd.f32 %v2893_v23, %v9162_v49  ;;  %v2915_v21 = vadd.f32 %v2914_v4, %v9167_v18  ;;  %v18218_v18 = vld [vmem:[#allocation126_spill] sm:$0xff]  ;;  %v18227_v30 = vld [vmem:[#allocation161_spill] sm:$0xff]  ;;  %v18233_v39 = vld [vmem:[#allocation192_spill] sm:$0xff] }
 0x475   : > { %v2936_v19 = vadd.f32 %v2935_v14, %v9172_v16  ;;  %v2957_v0 = vadd.f32 %v2956_v63, %v9177_v2  ;;  %v2978_v13 = vadd.f32 %v2977_v34, %v9182_v5  ;;  %v3020_v53 = vadd.f32 %v3019_v27, %v9192_v44  ;;  %v18219_v2 = vld [vmem:[#allocation127_spill] sm:$0xff]  ;;  %v18235_v63 = vld [vmem:[#allocation193_spill] sm:$0xff] }
 0x476   : > { %v2998_v33 = vadd.f32 %v2997_v43, %v8865_v54  ;;  %v3041_v20 = vadd.f32 %v3040_v60, %v9197_v58  ;;  %v2895_v11 = vadd.f32 %v2894_v48, %v9484_v40  ;;  %v2916_v54 = vadd.f32 %v2915_v21, %v9489_v41  ;;  %v18232_v43 = vld [vmem:[#allocation698_spill] sm:$0xff]  ;;  %v18234_v4 = vld [vmem:[#allocation699_spill] sm:$0xff]  ;;  %v18238_v21 = vld [vmem:[#allocation729_spill] sm:$0xff] }
 0x477   : > { %v2937_v59 = vadd.f32 %v2936_v19, %v9494_v3  ;;  %v2958_v12 = vadd.f32 %v2957_v0, %v9499_v26  ;;  %v2979_v49 = vadd.f32 %v2978_v13, %v9504_v6  ;;  %v3021_v5 = vadd.f32 %v3020_v53, %v18219_v2  ;;  %v18237_v60 = vld [vmem:[#allocation222_spill] sm:$0xff]  ;;  %v18239_v0 = vld [vmem:[#allocation223_spill] sm:$0xff] }
 0x478   : > { %v2999_v15 = vadd.f32 %v2998_v33, %v9187_v52  ;;  %v3042_v52 = vadd.f32 %v3041_v20, %v18220_v51  ;;  %v2896_v44 = vadd.f32 %v2895_v11, %v18221_v29  ;;  %v2917_v58 = vadd.f32 %v2916_v54, %v18222_v36  ;;  %v18236_v33 = vld [vmem:[#allocation700_spill] sm:$0xff]  ;;  %v18242_v54 = vld [vmem:[#allocation731_spill] sm:$0xff]  ;;  %v18245_v2 = vld [vmem:[#allocation254_spill] sm:$0xff] }
 0x479   : > { %v2938_v40 = vadd.f32 %v2937_v59, %v18223_v28  ;;  %v2959_v41 = vadd.f32 %v2958_v12, %v18224_v42  ;;  %v2980_v3 = vadd.f32 %v2979_v49, %v18225_v57  ;;  %v3022_v6 = vadd.f32 %v3021_v5, %v18227_v30  ;;  %v18241_v20 = vld [vmem:[#allocation224_spill] sm:$0xff]  ;;  %v18243_v12 = vld [vmem:[#allocation225_spill] sm:$0xff]  ;;  %v18247_v29 = vld [vmem:[#allocation255_spill] sm:$0xff] }
 0x47a   : > { %v3000_v16 = vadd.f32 %v2999_v15, %v18218_v18  ;;  %v3043_v25 = vadd.f32 %v3042_v52, %v18228_v10  ;;  %v2897_v24 = vadd.f32 %v2896_v44, %v18229_v37  ;;  %v2918_v55 = vadd.f32 %v2917_v58, %v18230_v9  ;;  %v18240_v15 = vld [vmem:[#allocation730_spill] sm:$0xff]  ;;  %v18244_v18 = vld [vmem:[#allocation732_spill] sm:$0xff]  ;;  %v18246_v51 = vld [vmem:[#allocation761_spill] sm:$0xff] }
 0x47b   : > { %v2939_v32 = vadd.f32 %v2938_v40, %v18231_v7  ;;  %v2960_v38 = vadd.f32 %v2959_v41, %v18232_v43  ;;  %v2981_v23 = vadd.f32 %v2980_v3, %v18233_v39  ;;  %v3023_v34 = vadd.f32 %v3022_v6, %v18235_v63  ;;  %v18248_v36 = vld [vmem:[#allocation762_spill] sm:$0xff]  ;;  %v18249_v28 = vld [vmem:[#allocation256_spill] sm:$0xff]  ;;  %v18250_v42 = vld [vmem:[#allocation763_spill] sm:$0xff] }
 0x47c   : > { %v3001_v26 = vadd.f32 %v3000_v16, %v18226_v31  ;;  %v3044_v27 = vadd.f32 %v3043_v25, %v18236_v33  ;;  %v2898_v48 = vadd.f32 %v2897_v24, %v18237_v60  ;;  %v2919_v19 = vadd.f32 %v2918_v55, %v18238_v21  ;;  %v18251_v57 = vld [vmem:[#allocation257_spill] sm:$0xff]  ;;  %v18252_v31 = vld [vmem:[#allocation764_spill] sm:$0xff]  ;;  %v18253_v30 = vld [vmem:[#allocation286_spill] sm:$0xff] }
 0x47d   : > { %v2940_v13 = vadd.f32 %v2939_v32, %v18239_v0  ;;  %v2961_v53 = vadd.f32 %v2960_v38, %v18240_v15  ;;  %v2982_v11 = vadd.f32 %v2981_v23, %v18241_v20  ;;  %v3024_v49 = vadd.f32 %v3023_v34, %v18243_v12  ;;  %v18254_v10 = vld [vmem:[#allocation793_spill] sm:$0xff]  ;;  %v18255_v37 = vld [vmem:[#allocation287_spill] sm:$0xff]  ;;  %v18256_v9 = vld [vmem:[#allocation794_spill] sm:$0xff] }
 0x47e   : > { %v3002_v14 = vadd.f32 %v3001_v26, %v18234_v4  ;;  %v3045_v16 = vadd.f32 %v3044_v27, %v18244_v18  ;;  %v2899_v5 = vadd.f32 %v2898_v48, %v18245_v2  ;;  %v2920_v52 = vadd.f32 %v2919_v19, %v18246_v51  ;;  %v18257_v7 = vld [vmem:[#allocation288_spill] sm:$0xff]  ;;  %v18258_v43 = vld [vmem:[#allocation795_spill] sm:$0xff]  ;;  %v18259_v39 = vld [vmem:[#allocation289_spill] sm:$0xff] }
 0x47f   : > { %v2941_v44 = vadd.f32 %v2940_v13, %v18247_v29  ;;  %v2962_v58 = vadd.f32 %v2961_v53, %v18248_v36  ;;  %v2983_v40 = vadd.f32 %v2982_v11, %v18249_v28  ;;  %v3025_v3 = vadd.f32 %v3024_v49, %v18251_v57  ;;  %v18260_v4 = vld [vmem:[#allocation796_spill] sm:$0xff]  ;;  %v18261_v63 = vld [vmem:[#allocation318_spill] sm:$0xff]  ;;  %v18262_v33 = vld [vmem:[#allocation825_spill] sm:$0xff] }
 0x480   : > { %v3003_v59 = vadd.f32 %v3002_v14, %v18242_v54  ;;  %v3046_v26 = vadd.f32 %v3045_v16, %v18252_v31  ;;  %v2900_v6 = vadd.f32 %v2899_v5, %v18253_v30  ;;  %v2921_v25 = vadd.f32 %v2920_v52, %v18254_v10  ;;  %v18263_v60 = vld [vmem:[#allocation319_spill] sm:$0xff]  ;;  %v18264_v21 = vld [vmem:[#allocation826_spill] sm:$0xff]  ;;  %v18265_v0 = vld [vmem:[#allocation320_spill] sm:$0xff] }
 0x481   : > { %v2942_v24 = vadd.f32 %v2941_v44, %v18255_v37  ;;  %v2963_v55 = vadd.f32 %v2962_v58, %v18256_v9  ;;  %v2984_v32 = vadd.f32 %v2983_v40, %v18257_v7  ;;  %v3026_v23 = vadd.f32 %v3025_v3, %v18259_v39  ;;  %v18266_v15 = vld [vmem:[#allocation827_spill] sm:$0xff]  ;;  %v18267_v20 = vld [vmem:[#allocation321_spill] sm:$0xff]  ;;  %v18268_v54 = vld [vmem:[#allocation828_spill] sm:$0xff] }
 0x482   : > { %v3004_v41 = vadd.f32 %v3003_v59, %v18250_v42  ;;  %v3047_v14 = vadd.f32 %v3046_v26, %v18260_v4  ;;  %v2901_v34 = vadd.f32 %v2900_v6, %v18261_v63  ;;  %v2922_v27 = vadd.f32 %v2921_v25, %v18262_v33  ;;  %v18269_v12 = vld [vmem:[#allocation350_spill] sm:$0xff]  ;;  %v18270_v18 = vld [vmem:[#allocation857_spill] sm:$0xff]  ;;  %v18271_v2 = vld [vmem:[#allocation351_spill] sm:$0xff] }
 0x483   : > { %v2943_v48 = vadd.f32 %v2942_v24, %v18263_v60  ;;  %v2964_v19 = vadd.f32 %v2963_v55, %v18264_v21  ;;  %v2985_v13 = vadd.f32 %v2984_v32, %v18265_v0  ;;  %v3027_v11 = vadd.f32 %v3026_v23, %v18267_v20  ;;  %v18272_v51 = vld [vmem:[#allocation858_spill] sm:$0xff]  ;;  %v18273_v29 = vld [vmem:[#allocation352_spill] sm:$0xff]  ;;  %v18274_v36 = vld [vmem:[#allocation859_spill] sm:$0xff] }
 0x484   : > { %v3005_v38 = vadd.f32 %v3004_v41, %v18258_v43  ;;  %v3048_v59 = vadd.f32 %v3047_v14, %v18268_v54  ;;  %v2902_v49 = vadd.f32 %v2901_v34, %v18269_v12  ;;  %v2923_v16 = vadd.f32 %v2922_v27, %v18270_v18  ;;  %v18275_v28 = vld [vmem:[#allocation353_spill] sm:$0xff]  ;;  %v18276_v42 = vld [vmem:[#allocation860_spill] sm:$0xff]  ;;  %v18277_v57 = vld [vmem:[#allocation382_spill] sm:$0xff] }
 0x485   : > { %v2944_v5 = vadd.f32 %v2943_v48, %v18271_v2  ;;  %v2965_v52 = vadd.f32 %v2964_v19, %v18272_v51  ;;  %v2986_v44 = vadd.f32 %v2985_v13, %v18273_v29  ;;  %v3028_v40 = vadd.f32 %v3027_v11, %v18275_v28  ;;  %v18278_v31 = vld [vmem:[#allocation889_spill] sm:$0xff]  ;;  %v18279_v30 = vld [vmem:[#allocation383_spill] sm:$0xff]  ;;  %v18280_v10 = vld [vmem:[#allocation890_spill] sm:$0xff] }
 0x486   : > { %v3006_v53 = vadd.f32 %v3005_v38, %v18266_v15  ;;  %v3049_v41 = vadd.f32 %v3048_v59, %v18276_v42  ;;  %v2903_v3 = vadd.f32 %v2902_v49, %v18277_v57  ;;  %v2924_v26 = vadd.f32 %v2923_v16, %v18278_v31  ;;  %v18281_v37 = vld [vmem:[#allocation384_spill] sm:$0xff]  ;;  %v18282_v9 = vld [vmem:[#allocation891_spill] sm:$0xff]  ;;  %v18283_v7 = vld [vmem:[#allocation385_spill] sm:$0xff] }
 0x487   : > { %v2945_v6 = vadd.f32 %v2944_v5, %v18279_v30  ;;  %v2966_v25 = vadd.f32 %v2965_v52, %v18280_v10  ;;  %v2987_v24 = vadd.f32 %v2986_v44, %v18281_v37  ;;  %v3029_v32 = vadd.f32 %v3028_v40, %v18283_v7  ;;  %v18284_v43 = vld [vmem:[#allocation892_spill] sm:$0xff]  ;;  %v18285_v39 = vld [vmem:[#allocation414_spill] sm:$0xff]  ;;  %v18286_v4 = vld [vmem:[#allocation921_spill] sm:$0xff] }
 0x488   : > { %v3007_v58 = vadd.f32 %v3006_v53, %v18274_v36  ;;  %v3050_v38 = vadd.f32 %v3049_v41, %v18284_v43  ;;  %v2904_v23 = vadd.f32 %v2903_v3, %v18285_v39  ;;  %v2925_v14 = vadd.f32 %v2924_v26, %v18286_v4  ;;  %v18287_v63 = vld [vmem:[#allocation415_spill] sm:$0xff]  ;;  %v18288_v33 = vld [vmem:[#allocation922_spill] sm:$0xff]  ;;  %v18289_v60 = vld [vmem:[#allocation416_spill] sm:$0xff] }
 0x489   : > { %v2946_v34 = vadd.f32 %v2945_v6, %v18287_v63  ;;  %v2967_v27 = vadd.f32 %v2966_v25, %v18288_v33  ;;  %v2988_v48 = vadd.f32 %v2987_v24, %v18289_v60  ;;  %v18290_v21 = vld [vmem:[#allocation923_spill] sm:$0xff]  ;;  %v18291_v0 = vld [vmem:[#allocation417_spill] sm:$0xff]  ;;  %v18292_v15 = vld [vmem:[#allocation924_spill] sm:$0xff] }
 0x48a   : > { %v3008_v55 = vadd.f32 %v3007_v58, %v18282_v9  ;;  %v3030_v13 = vadd.f32 %v3029_v32, %v18291_v0  ;;  %v3051_v53 = vadd.f32 %v3050_v38, %v18292_v15  ;;  %v2905_v20 = vadd.f32 %v2904_v23, %v12704_v17  ;;  %v18293_v11 = vld [vmem:[#allocation446_spill] sm:$0xff]  ;;  %v18294_v59 = vld [vmem:[#allocation447_spill] sm:$0xff]  ;;  %v18295_v49 = vld [vmem:[#allocation953_spill] sm:$0xff] }
 0x48b   : > { %v2926_v54 = vadd.f32 %v2925_v14, %v18293_v11  ;;  %v2947_v12 = vadd.f32 %v2946_v34, %v18294_v59  ;;  %v2968_v18 = vadd.f32 %v2967_v27, %v18295_v49  ;;  %v18296_v16 = vld [vmem:[#allocation448_spill] sm:$0xff]  ;;  %v18297_v5 = vld [vmem:[#allocation954_spill] sm:$0xff]  ;;  %v18298_v52 = vld [vmem:[#allocation449_spill] sm:$0xff] }
 0x48c   : > { %v3009_v19 = vadd.f32 %v3008_v55, %v18290_v21  ;;  %v2989_v2 = vadd.f32 %v2988_v48, %v18296_v16  ;;  %v3031_v29 = vadd.f32 %v3030_v13, %v18298_v52  ;;  %v18299_v44 = vld [vmem:[#allocation955_spill] sm:$0xff]  ;;  %v2906_v58 = vrot.slane %v2905_v20, 4  ;;  %v18301_v52 = vld [vmem:[#allocation529_spill] sm:$0xff] }
 0x48d   : > { %v3052_v36 = vadd.f32 %v3051_v53, %v18299_v44  ;;  %v2927_v28 = vrot.slane %v2926_v54, 4  ;;  %v2948_v40 = vrot.slane %v2947_v12, 4  ;;  %v2969_v42 = vrot.slane %v2968_v18, 4  ;;  %v18302_v44 = vld [vmem:[#allocation474_spill] sm:$0xff] }
 0x48e   : > { %v3010_v51 = vadd.f32 %v3009_v19, %v18297_v5  ;;  %v2990_v41 = vrot.slane %v2989_v2, 4  ;;  %v3032_v57 = vrot.slane %v3031_v29, 4  ;;  %v2907_v31 = vadd.f32 %v2906_v58, %v2905_v20 }
 0x48f   : > { %v3053_v3 = vrot.slane %v3052_v36, 4  ;;  %v2928_v26 = vadd.f32 %v2927_v28, %v2926_v54  ;;  %v2949_v30 = vadd.f32 %v2948_v40, %v2947_v12  ;;  %v2970_v6 = vadd.f32 %v2969_v42, %v2968_v18  ;;  %v18304_v28 = vld [vmem:[#allocation475_spill] sm:$0xff] }
 0x490   : > { %v3011_v17 = vrot.slane %v3010_v51, 4  ;;  %v2991_v10 = vadd.f32 %v2990_v41, %v2989_v2  ;;  %v3033_v37 = vadd.f32 %v3032_v57, %v3031_v29  ;;  %v2908_v9 = vrot.slane %v2907_v31, 2  ;;  %v18305_v40 = vld [vmem:[#allocation531_spill] sm:$0xff]  ;;  %v18306_v41 = vld [vmem:[#allocation476_spill] sm:$0xff] }
 0x491   : > { %v3054_v24 = vadd.f32 %v3053_v3, %v3052_v36  ;;  %v2929_v55 = vrot.slane %v2928_v26, 2  ;;  %v2950_v7 = vrot.slane %v2949_v30, 2  ;;  %v2971_v32 = vrot.slane %v2970_v6, 2  ;;  %v18303_v36 = vld [vmem:[#allocation530_spill] sm:$0xff]  ;;  %v18308_v3 = vld [vmem:[#allocation477_spill] sm:$0xff] }
 0x492   : > { %v3012_v25 = vadd.f32 %v3011_v17, %v3010_v51  ;;  %v2992_v43 = vrot.slane %v2991_v10, 2  ;;  %v3034_v39 = vrot.slane %v3033_v37, 2  ;;  %v2909_v4 = vadd.f32 %v2908_v9, %v2907_v31  ;;  %v18300_v51 = vld [vmem:[#allocation473_spill] sm:$0xff]  ;;  %v18307_v17 = vld [vmem:[#allocation532_spill] sm:$0xff] }
 0x493   : > { %v3055_v23 = vrot.slane %v3054_v24, 2  ;;  %v2930_v14 = vadd.f32 %v2929_v55, %v2928_v26  ;;  %v2951_v63 = vadd.f32 %v2950_v7, %v2949_v30  ;;  %v2972_v34 = vadd.f32 %v2971_v32, %v2970_v6  ;;  %v18309_v31 = vld [vmem:[#allocation533_spill] sm:$0xff]  ;;  %v18310_v30 = vld [vmem:[#allocation478_spill] sm:$0xff]  ;;  %v18314_v9 = vld [vmem:[#allocation480_spill] sm:$0xff] }
 0x494   : > { %v3013_v38 = vrot.slane %v3012_v25, 2  ;;  %v2993_v33 = vadd.f32 %v2992_v43, %v2991_v10  ;;  %v3035_v60 = vadd.f32 %v3034_v39, %v3033_v37  ;;  %v2910_v21 = vrot.slane %v2909_v4, 1  ;;  %v18311_v6 = vld [vmem:[#allocation534_spill] sm:$0xff]  ;;  %v18313_v37 = vld [vmem:[#allocation535_spill] sm:$0xff]  ;;  %v18315_v55 = vld [vmem:[#allocation536_spill] sm:$0xff] }
 0x495   : > { %v3056_v48 = vadd.f32 %v3055_v23, %v3054_v24  ;;  %v2931_v19 = vrot.slane %v2930_v14, 1  ;;  %v2952_v0 = vrot.slane %v2951_v63, 1  ;;  %v2973_v13 = vrot.slane %v2972_v34, 1  ;;  %v18316_v32 = vld [vmem:[#allocation30_spill] sm:$0xff]  ;;  %v18318_v23 = vld [vmem:[#allocation32_spill] sm:$0xff] }
 0x496   : > { %v3014_v27 = vadd.f32 %v3013_v38, %v3012_v25  ;;  %v2994_v15 = vrot.slane %v2993_v33, 1  ;;  %v3036_v20 = vrot.slane %v3035_v60, 1  ;;  %v13149_v54 = vadd.f32 %v2910_v21, %v2909_v4  ;;  %v18312_v25 = vld [vmem:[#allocation479_spill] sm:$0xff] }
 0x497   : > { %v3057_v11 = vrot.slane %v3056_v48, 1  ;;  %v13151_v59 = vadd.f32 %v2931_v19, %v2930_v14  ;;  %v13153_v12 = vadd.f32 %v2952_v0, %v2951_v63  ;;  %v13155_v49 = vadd.f32 %v2973_v13, %v2972_v34  ;;  %v18317_v38 = vld [vmem:[#allocation31_spill] sm:$0xff]  ;;  %v18319_v14 = vld [vmem:[#allocation33_spill] sm:$0xff]  ;;  %v18320_v34 = vld [vmem:[#allocation34_spill] sm:$0xff] }
 0x498   : > { %v3015_v53 = vrot.slane %v3014_v27, 1  ;;  %v13157_v18 = vadd.f32 %v2994_v15, %v2993_v33  ;;  %v13161_v2 = vadd.f32 %v3036_v20, %v3035_v60  ;;  %v3059_v29 = vadd.f32 %v18301_v52, %v18300_v51  ;;  %v18323_v19 = vld [vmem:[#allocation37_spill] sm:$0xff]  ;;  %v18324_v13 = vld [vmem:[#allocation62_spill] sm:$0xff] }
 0x499   : > { %v13163_v5 = vadd.f32 %v3057_v11, %v3056_v48  ;;  %v3080_v58 = vadd.f32 %v18303_v36, %v18302_v44  ;;  %v3101_v42 = vadd.f32 %v18305_v40, %v18304_v28  ;;  %v3122_v57 = vadd.f32 %v18307_v17, %v18306_v41  ;;  %v18322_v48 = vld [vmem:[#allocation36_spill] sm:$0xff]  ;;  %v18327_v52 = vld [vmem:[#allocation65_spill] sm:$0xff]  ;;  %v18328_v44 = vld [vmem:[#allocation66_spill] sm:$0xff] }
 0x49a   : > { %v13159_v16 = vadd.f32 %v3015_v53, %v3014_v27  ;;  %v3143_v26 = vadd.f32 %v18309_v31, %v18308_v3  ;;  %v3164_v10 = vadd.f32 %v18311_v6, %v18310_v30  ;;  %v3185_v24 = vadd.f32 %v18313_v37, %v18312_v25  ;;  %v18321_v27 = vld [vmem:[#allocation35_spill] sm:$0xff]  ;;  %v18326_v11 = vld [vmem:[#allocation64_spill] sm:$0xff]  ;;  %v18331_v41 = vld [vmem:[#allocation69_spill] sm:$0xff] }
 0x49b   : > { %v3206_v7 = vadd.f32 %v18315_v55, %v18314_v9  ;;  %v3060_v43 = vadd.f32 %v3059_v29, %v18316_v32  ;;  %v3081_v39 = vadd.f32 %v3080_v58, %v18317_v38  ;;  %v3102_v4 = vadd.f32 %v3101_v42, %v18318_v23  ;;  %v18325_v53 = vld [vmem:[#allocation63_spill] sm:$0xff]  ;;  %v18330_v40 = vld [vmem:[#allocation68_spill] sm:$0xff]  ;;  %v18336_v37 = vld [vmem:[#allocation98_spill] sm:$0xff] }
 0x49c   : > { %v3123_v63 = vadd.f32 %v3122_v57, %v18319_v14  ;;  %v3144_v33 = vadd.f32 %v3143_v26, %v18320_v34  ;;  %v3165_v60 = vadd.f32 %v3164_v10, %v18321_v27  ;;  %v3186_v21 = vadd.f32 %v3185_v24, %v18322_v48  ;;  %v18329_v58 = vld [vmem:[#allocation67_spill] sm:$0xff]  ;;  %v18332_v57 = vld [vmem:[#allocation94_spill] sm:$0xff]  ;;  %v18334_v30 = vld [vmem:[#allocation96_spill] sm:$0xff] }
 0x49d   : > { %v3207_v0 = vadd.f32 %v3206_v7, %v18323_v19  ;;  %v3061_v15 = vadd.f32 %v3060_v43, %v18324_v13  ;;  %v3082_v20 = vadd.f32 %v3081_v39, %v18325_v53  ;;  %v3103_v51 = vadd.f32 %v3102_v4, %v18326_v11  ;;  %v18333_v31 = vld [vmem:[#allocation95_spill] sm:$0xff]  ;;  %v18335_v10 = vld [vmem:[#allocation97_spill] sm:$0xff]  ;;  %v18338_v7 = vld [vmem:[#allocation100_spill] sm:$0xff] }
 0x49e   : > { %v3124_v29 = vadd.f32 %v3123_v63, %v18327_v52  ;;  %v3145_v36 = vadd.f32 %v3144_v33, %v18328_v44  ;;  %v3166_v28 = vadd.f32 %v3165_v60, %v18329_v58  ;;  %v3187_v42 = vadd.f32 %v3186_v21, %v18330_v40  ;;  %v18337_v9 = vld [vmem:[#allocation99_spill] sm:$0xff]  ;;  %v18339_v43 = vld [vmem:[#allocation101_spill] sm:$0xff]  ;;  %v18341_v4 = vld [vmem:[#allocation130_spill] sm:$0xff] }
 0x49f   : > { %v3208_v17 = vadd.f32 %v3207_v0, %v18331_v41  ;;  %v3062_v3 = vadd.f32 %v3061_v15, %v18332_v57  ;;  %v3083_v26 = vadd.f32 %v3082_v20, %v18333_v31  ;;  %v3104_v6 = vadd.f32 %v3103_v51, %v18334_v30  ;;  %v18340_v39 = vld [vmem:[#allocation129_spill] sm:$0xff]  ;;  %v18342_v63 = vld [vmem:[#allocation131_spill] sm:$0xff]  ;;  %v18343_v33 = vld [vmem:[#allocation638_spill] sm:$0xff] }
 0x4a0   : > { %v3125_v25 = vadd.f32 %v3124_v29, %v18335_v10  ;;  %v3146_v24 = vadd.f32 %v3145_v36, %v18336_v37  ;;  %v3167_v55 = vadd.f32 %v3166_v28, %v18337_v9  ;;  %v3188_v32 = vadd.f32 %v3187_v42, %v18338_v7  ;;  %v18344_v60 = vld [vmem:[#allocation132_spill] sm:$0xff]  ;;  %v18345_v21 = vld [vmem:[#allocation639_spill] sm:$0xff]  ;;  %v18346_v0 = vld [vmem:[#allocation133_spill] sm:$0xff] }
 0x4a1   : > { %v3209_v38 = vadd.f32 %v3208_v17, %v18339_v43  ;;  %v3063_v23 = vadd.f32 %v3062_v3, %v18340_v39  ;;  %v3084_v14 = vadd.f32 %v3083_v26, %v18341_v4  ;;  %v3105_v34 = vadd.f32 %v3104_v6, %v18342_v63  ;;  %v18347_v15 = vld [vmem:[#allocation640_spill] sm:$0xff]  ;;  %v18348_v20 = vld [vmem:[#allocation162_spill] sm:$0xff]  ;;  %v18349_v51 = vld [vmem:[#allocation669_spill] sm:$0xff] }
 0x4a2   : > { %v3126_v27 = vadd.f32 %v3125_v25, %v18343_v33  ;;  %v3147_v48 = vadd.f32 %v3146_v24, %v18344_v60  ;;  %v3168_v19 = vadd.f32 %v3167_v55, %v18345_v21  ;;  %v3189_v13 = vadd.f32 %v3188_v32, %v18346_v0  ;;  %v18350_v29 = vld [vmem:[#allocation163_spill] sm:$0xff]  ;;  %v18351_v36 = vld [vmem:[#allocation670_spill] sm:$0xff]  ;;  %v18352_v28 = vld [vmem:[#allocation164_spill] sm:$0xff] }
 0x4a3   : > { %v3210_v53 = vadd.f32 %v3209_v38, %v18347_v15  ;;  %v3064_v11 = vadd.f32 %v3063_v23, %v18348_v20  ;;  %v3085_v52 = vadd.f32 %v3084_v14, %v18349_v51  ;;  %v3106_v44 = vadd.f32 %v3105_v34, %v18350_v29  ;;  %v18353_v42 = vld [vmem:[#allocation671_spill] sm:$0xff]  ;;  %v18354_v17 = vld [vmem:[#allocation165_spill] sm:$0xff]  ;;  %v18355_v3 = vld [vmem:[#allocation672_spill] sm:$0xff] }
 0x4a4   : > { %v3127_v58 = vadd.f32 %v3126_v27, %v18351_v36  ;;  %v3148_v40 = vadd.f32 %v3147_v48, %v18352_v28  ;;  %v3169_v41 = vadd.f32 %v3168_v19, %v18353_v42  ;;  %v3190_v57 = vadd.f32 %v3189_v13, %v18354_v17  ;;  %v18356_v26 = vld [vmem:[#allocation194_spill] sm:$0xff]  ;;  %v18357_v6 = vld [vmem:[#allocation701_spill] sm:$0xff]  ;;  %v18358_v25 = vld [vmem:[#allocation195_spill] sm:$0xff] }
 0x4a5   : > { %v3211_v31 = vadd.f32 %v3210_v53, %v18355_v3  ;;  %v3065_v30 = vadd.f32 %v3064_v11, %v18356_v26  ;;  %v3086_v10 = vadd.f32 %v3085_v52, %v18357_v6  ;;  %v3107_v37 = vadd.f32 %v3106_v44, %v18358_v25  ;;  %v18359_v24 = vld [vmem:[#allocation702_spill] sm:$0xff]  ;;  %v18360_v55 = vld [vmem:[#allocation196_spill] sm:$0xff]  ;;  %v18361_v32 = vld [vmem:[#allocation703_spill] sm:$0xff] }
 0x4a6   : > { %v3128_v9 = vadd.f32 %v3127_v58, %v18359_v24  ;;  %v3149_v7 = vadd.f32 %v3148_v40, %v18360_v55  ;;  %v3170_v43 = vadd.f32 %v3169_v41, %v18361_v32  ;;  %v18362_v38 = vld [vmem:[#allocation197_spill] sm:$0xff]  ;;  %v18363_v23 = vld [vmem:[#allocation704_spill] sm:$0xff]  ;;  %v18364_v14 = vld [vmem:[#allocation226_spill] sm:$0xff] }
 0x4a7   : > { %v3191_v39 = vadd.f32 %v3190_v57, %v18362_v38  ;;  %v3212_v4 = vadd.f32 %v3211_v31, %v18363_v23  ;;  %v3066_v63 = vadd.f32 %v3065_v30, %v18364_v14  ;;  %v18365_v34 = vld [vmem:[#allocation733_spill] sm:$0xff]  ;;  %v18366_v27 = vld [vmem:[#allocation227_spill] sm:$0xff]  ;;  %v18367_v48 = vld [vmem:[#allocation734_spill] sm:$0xff] }
 0x4a8   : > { %v3087_v33 = vadd.f32 %v3086_v10, %v18365_v34  ;;  %v3108_v60 = vadd.f32 %v3107_v37, %v18366_v27  ;;  %v3129_v21 = vadd.f32 %v3128_v9, %v18367_v48  ;;  %v18368_v19 = vld [vmem:[#allocation228_spill] sm:$0xff]  ;;  %v18369_v13 = vld [vmem:[#allocation735_spill] sm:$0xff]  ;;  %v18370_v53 = vld [vmem:[#allocation229_spill] sm:$0xff] }
 0x4a9   : > { %v3150_v0 = vadd.f32 %v3149_v7, %v18368_v19  ;;  %v3171_v15 = vadd.f32 %v3170_v43, %v18369_v13  ;;  %v3192_v20 = vadd.f32 %v3191_v39, %v18370_v53  ;;  %v18371_v11 = vld [vmem:[#allocation736_spill] sm:$0xff]  ;;  %v18372_v52 = vld [vmem:[#allocation258_spill] sm:$0xff]  ;;  %v18373_v44 = vld [vmem:[#allocation765_spill] sm:$0xff] }
 0x4aa   : > { %v3213_v51 = vadd.f32 %v3212_v4, %v18371_v11  ;;  %v3067_v29 = vadd.f32 %v3066_v63, %v18372_v52  ;;  %v3088_v36 = vadd.f32 %v3087_v33, %v18373_v44  ;;  %v18374_v58 = vld [vmem:[#allocation259_spill] sm:$0xff]  ;;  %v18375_v40 = vld [vmem:[#allocation766_spill] sm:$0xff]  ;;  %v18376_v41 = vld [vmem:[#allocation260_spill] sm:$0xff] }
 0x4ab   : > { %v3109_v28 = vadd.f32 %v3108_v60, %v18374_v58  ;;  %v3130_v42 = vadd.f32 %v3129_v21, %v18375_v40  ;;  %v3151_v17 = vadd.f32 %v3150_v0, %v18376_v41  ;;  %v18377_v57 = vld [vmem:[#allocation767_spill] sm:$0xff]  ;;  %v18378_v31 = vld [vmem:[#allocation261_spill] sm:$0xff]  ;;  %v18379_v30 = vld [vmem:[#allocation768_spill] sm:$0xff] }
 0x4ac   : > { %v3172_v3 = vadd.f32 %v3171_v15, %v18377_v57  ;;  %v3193_v26 = vadd.f32 %v3192_v20, %v18378_v31  ;;  %v3214_v6 = vadd.f32 %v3213_v51, %v18379_v30  ;;  %v18380_v10 = vld [vmem:[#allocation290_spill] sm:$0xff]  ;;  %v18381_v37 = vld [vmem:[#allocation797_spill] sm:$0xff]  ;;  %v18382_v9 = vld [vmem:[#allocation291_spill] sm:$0xff] }
 0x4ad   : > { %v3068_v25 = vadd.f32 %v3067_v29, %v18380_v10  ;;  %v3089_v24 = vadd.f32 %v3088_v36, %v18381_v37  ;;  %v3110_v55 = vadd.f32 %v3109_v28, %v18382_v9  ;;  %v18383_v7 = vld [vmem:[#allocation798_spill] sm:$0xff]  ;;  %v18384_v43 = vld [vmem:[#allocation292_spill] sm:$0xff]  ;;  %v18385_v39 = vld [vmem:[#allocation799_spill] sm:$0xff] }
 0x4ae   : > { %v3131_v32 = vadd.f32 %v3130_v42, %v18383_v7  ;;  %v3152_v38 = vadd.f32 %v3151_v17, %v18384_v43  ;;  %v3173_v23 = vadd.f32 %v3172_v3, %v18385_v39  ;;  %v18386_v4 = vld [vmem:[#allocation293_spill] sm:$0xff]  ;;  %v18387_v63 = vld [vmem:[#allocation800_spill] sm:$0xff]  ;;  %v18388_v33 = vld [vmem:[#allocation322_spill] sm:$0xff] }
 0x4af   : > { %v3194_v14 = vadd.f32 %v3193_v26, %v18386_v4  ;;  %v3215_v34 = vadd.f32 %v3214_v6, %v18387_v63  ;;  %v3069_v27 = vadd.f32 %v3068_v25, %v18388_v33  ;;  %v18389_v60 = vld [vmem:[#allocation829_spill] sm:$0xff]  ;;  %v18390_v21 = vld [vmem:[#allocation323_spill] sm:$0xff]  ;;  %v18391_v0 = vld [vmem:[#allocation830_spill] sm:$0xff] }
 0x4b0   : > { %v3090_v48 = vadd.f32 %v3089_v24, %v18389_v60  ;;  %v3111_v19 = vadd.f32 %v3110_v55, %v18390_v21  ;;  %v3132_v13 = vadd.f32 %v3131_v32, %v18391_v0  ;;  %v18392_v15 = vld [vmem:[#allocation324_spill] sm:$0xff]  ;;  %v18393_v20 = vld [vmem:[#allocation831_spill] sm:$0xff]  ;;  %v18394_v51 = vld [vmem:[#allocation325_spill] sm:$0xff] }
 0x4b1   : > { %v3153_v53 = vadd.f32 %v3152_v38, %v18392_v15  ;;  %v3174_v11 = vadd.f32 %v3173_v23, %v18393_v20  ;;  %v3195_v52 = vadd.f32 %v3194_v14, %v18394_v51  ;;  %v18395_v29 = vld [vmem:[#allocation832_spill] sm:$0xff]  ;;  %v18396_v36 = vld [vmem:[#allocation354_spill] sm:$0xff]  ;;  %v18397_v28 = vld [vmem:[#allocation861_spill] sm:$0xff] }
 0x4b2   : > { %v3216_v44 = vadd.f32 %v3215_v34, %v18395_v29  ;;  %v3070_v58 = vadd.f32 %v3069_v27, %v18396_v36  ;;  %v3091_v40 = vadd.f32 %v3090_v48, %v18397_v28  ;;  %v18398_v42 = vld [vmem:[#allocation355_spill] sm:$0xff]  ;;  %v18399_v17 = vld [vmem:[#allocation862_spill] sm:$0xff]  ;;  %v18400_v3 = vld [vmem:[#allocation356_spill] sm:$0xff] }
 0x4b3   : > { %v3112_v41 = vadd.f32 %v3111_v19, %v18398_v42  ;;  %v3133_v57 = vadd.f32 %v3132_v13, %v18399_v17  ;;  %v3154_v31 = vadd.f32 %v3153_v53, %v18400_v3  ;;  %v18401_v26 = vld [vmem:[#allocation863_spill] sm:$0xff]  ;;  %v18402_v6 = vld [vmem:[#allocation357_spill] sm:$0xff]  ;;  %v18403_v25 = vld [vmem:[#allocation864_spill] sm:$0xff] }
 0x4b4   : > { %v3175_v30 = vadd.f32 %v3174_v11, %v18401_v26  ;;  %v3196_v10 = vadd.f32 %v3195_v52, %v18402_v6  ;;  %v3217_v37 = vadd.f32 %v3216_v44, %v18403_v25  ;;  %v18404_v24 = vld [vmem:[#allocation386_spill] sm:$0xff]  ;;  %v18405_v55 = vld [vmem:[#allocation893_spill] sm:$0xff]  ;;  %v18406_v32 = vld [vmem:[#allocation387_spill] sm:$0xff] }
 0x4b5   : > { %v3071_v9 = vadd.f32 %v3070_v58, %v18404_v24  ;;  %v3092_v7 = vadd.f32 %v3091_v40, %v18405_v55  ;;  %v3113_v43 = vadd.f32 %v3112_v41, %v18406_v32  ;;  %v18407_v38 = vld [vmem:[#allocation894_spill] sm:$0xff]  ;;  %v18408_v23 = vld [vmem:[#allocation388_spill] sm:$0xff]  ;;  %v18409_v14 = vld [vmem:[#allocation895_spill] sm:$0xff] }
 0x4b6   : > { %v3134_v39 = vadd.f32 %v3133_v57, %v18407_v38  ;;  %v3155_v4 = vadd.f32 %v3154_v31, %v18408_v23  ;;  %v3176_v63 = vadd.f32 %v3175_v30, %v18409_v14  ;;  %v18410_v34 = vld [vmem:[#allocation389_spill] sm:$0xff]  ;;  %v18411_v27 = vld [vmem:[#allocation896_spill] sm:$0xff]  ;;  %v18412_v48 = vld [vmem:[#allocation418_spill] sm:$0xff] }
 0x4b7   : > { %v3197_v33 = vadd.f32 %v3196_v10, %v18410_v34  ;;  %v3218_v60 = vadd.f32 %v3217_v37, %v18411_v27  ;;  %v3072_v21 = vadd.f32 %v3071_v9, %v18412_v48  ;;  %v18413_v19 = vld [vmem:[#allocation925_spill] sm:$0xff]  ;;  %v18414_v13 = vld [vmem:[#allocation419_spill] sm:$0xff]  ;;  %v18415_v53 = vld [vmem:[#allocation926_spill] sm:$0xff] }
 0x4b8   : > { %v3093_v0 = vadd.f32 %v3092_v7, %v18413_v19  ;;  %v3114_v15 = vadd.f32 %v3113_v43, %v18414_v13  ;;  %v3135_v20 = vadd.f32 %v3134_v39, %v18415_v53  ;;  %v18416_v11 = vld [vmem:[#allocation420_spill] sm:$0xff]  ;;  %v18417_v52 = vld [vmem:[#allocation927_spill] sm:$0xff]  ;;  %v18418_v44 = vld [vmem:[#allocation421_spill] sm:$0xff] }
 0x4b9   : > { %v3156_v51 = vadd.f32 %v3155_v4, %v18416_v11  ;;  %v3177_v29 = vadd.f32 %v3176_v63, %v18417_v52  ;;  %v3198_v36 = vadd.f32 %v3197_v33, %v18418_v44  ;;  %v18419_v58 = vld [vmem:[#allocation928_spill] sm:$0xff]  ;;  %v18420_v40 = vld [vmem:[#allocation450_spill] sm:$0xff]  ;;  %v18422_v57 = vld [vmem:[#allocation451_spill] sm:$0xff] }
 0x4ba   : > { %v3219_v28 = vadd.f32 %v3218_v60, %v18419_v58  ;;  %v3073_v42 = vadd.f32 %v3072_v21, %v18420_v40  ;;  %v18421_v41 = vld [vmem:[#allocation956_spill] sm:$0xff]  ;;  %v3115_v3 = vadd.f32 %v3114_v15, %v18422_v57  ;;  %v18423_v31 = vld [vmem:[#allocation957_spill] sm:$0xff]  ;;  %v18425_v10 = vld [vmem:[#allocation958_spill] sm:$0xff] }
 0x4bb   : > { %v3094_v17 = vadd.f32 %v3093_v0, %v18421_v41  ;;  %v3136_v26 = vadd.f32 %v3135_v20, %v18423_v31  ;;  %v18424_v30 = vld [vmem:[#allocation452_spill] sm:$0xff]  ;;  %v3178_v25 = vadd.f32 %v3177_v29, %v18425_v10  ;;  %v18426_v37 = vld [vmem:[#allocation453_spill] sm:$0xff]  ;;  %v18427_v9 = vld [vmem:[#allocation959_spill] sm:$0xff] }
 0x4bc   : > { %v3157_v6 = vadd.f32 %v3156_v51, %v18424_v30  ;;  %v3199_v24 = vadd.f32 %v3198_v36, %v18426_v37  ;;  %v3220_v55 = vadd.f32 %v3219_v28, %v18427_v9  ;;  %v3074_v7 = vrot.slane %v3073_v42, 4 }
 0x4bd   : > { %v3095_v32 = vrot.slane %v3094_v17, 4  ;;  %v3116_v43 = vrot.slane %v3115_v3, 4  ;;  %v3137_v38 = vrot.slane %v3136_v26, 4  ;;  %v3179_v23 = vrot.slane %v3178_v25, 4 }
 0x4be   : > { %v3158_v39 = vrot.slane %v3157_v6, 4  ;;  %v3200_v4 = vrot.slane %v3199_v24, 4  ;;  %v3221_v14 = vrot.slane %v3220_v55, 4  ;;  %v3075_v63 = vadd.f32 %v3074_v7, %v3073_v42 }
 0x4bf   : > { %v3096_v34 = vadd.f32 %v3095_v32, %v3094_v17  ;;  %v3117_v33 = vadd.f32 %v3116_v43, %v3115_v3  ;;  %v3138_v27 = vadd.f32 %v3137_v38, %v3136_v26  ;;  %v3180_v48 = vadd.f32 %v3179_v23, %v3178_v25  ;;  %v18428_v38 = vld [vmem:[#allocation481_spill] sm:$0xff] }
 0x4c0   : > { %v3159_v60 = vadd.f32 %v3158_v39, %v3157_v6  ;;  %v3201_v21 = vadd.f32 %v3200_v4, %v3199_v24  ;;  %v3222_v19 = vadd.f32 %v3221_v14, %v3220_v55  ;;  %v3076_v0 = vrot.slane %v3075_v63, 2  ;;  %v18429_v39 = vld [vmem:[#allocation537_spill] sm:$0xff]  ;;  %v18430_v4 = vld [vmem:[#allocation482_spill] sm:$0xff] }
 0x4c1   : > { %v3097_v13 = vrot.slane %v3096_v34, 2  ;;  %v3118_v15 = vrot.slane %v3117_v33, 2  ;;  %v3139_v53 = vrot.slane %v3138_v27, 2  ;;  %v3181_v11 = vrot.slane %v3180_v48, 2  ;;  %v18431_v14 = vld [vmem:[#allocation538_spill] sm:$0xff] }
 0x4c2   : > { %v3160_v20 = vrot.slane %v3159_v60, 2  ;;  %v3202_v51 = vrot.slane %v3201_v21, 2  ;;  %v3223_v52 = vrot.slane %v3222_v19, 2  ;;  %v3077_v29 = vadd.f32 %v3076_v0, %v3075_v63  ;;  %v18437_v0 = vld [vmem:[#allocation541_spill] sm:$0xff] }
 0x4c3   : > { %v3098_v44 = vadd.f32 %v3097_v13, %v3096_v34  ;;  %v3119_v36 = vadd.f32 %v3118_v15, %v3117_v33  ;;  %v3140_v58 = vadd.f32 %v3139_v53, %v3138_v27  ;;  %v3182_v40 = vadd.f32 %v3181_v11, %v3180_v48  ;;  %v18432_v34 = vld [vmem:[#allocation483_spill] sm:$0xff]  ;;  %v18435_v48 = vld [vmem:[#allocation540_spill] sm:$0xff]  ;;  %v18438_v15 = vld [vmem:[#allocation486_spill] sm:$0xff] }
 0x4c4   : > { %v3161_v28 = vadd.f32 %v3160_v20, %v3159_v60  ;;  %v3203_v42 = vadd.f32 %v3202_v51, %v3201_v21  ;;  %v3224_v41 = vadd.f32 %v3223_v52, %v3222_v19  ;;  %v3078_v17 = vrot.slane %v3077_v29, 1  ;;  %v18433_v33 = vld [vmem:[#allocation539_spill] sm:$0xff]  ;;  %v18434_v60 = vld [vmem:[#allocation484_spill] sm:$0xff]  ;;  %v18436_v19 = vld [vmem:[#allocation485_spill] sm:$0xff] }
 0x4c5   : > { %v3099_v57 = vrot.slane %v3098_v44, 1  ;;  %v3120_v3 = vrot.slane %v3119_v36, 1  ;;  %v3141_v31 = vrot.slane %v3140_v58, 1  ;;  %v3183_v30 = vrot.slane %v3182_v40, 1  ;;  %v18439_v53 = vld [vmem:[#allocation542_spill] sm:$0xff]  ;;  %v18440_v11 = vld [vmem:[#allocation487_spill] sm:$0xff] }
 0x4c6   : > { %v3162_v26 = vrot.slane %v3161_v28, 1  ;;  %v3204_v6 = vrot.slane %v3203_v42, 1  ;;  %v3225_v10 = vrot.slane %v3224_v41, 1  ;;  %v13293_v25 = vadd.f32 %v3078_v17, %v3077_v29  ;;  %v18441_v51 = vld [vmem:[#allocation543_spill] sm:$0xff]  ;;  %v18442_v29 = vld [vmem:[#allocation488_spill] sm:$0xff] }
 0x4c7   : > { %v13295_v37 = vadd.f32 %v3099_v57, %v3098_v44  ;;  %v13297_v24 = vadd.f32 %v3120_v3, %v3119_v36  ;;  %v13299_v9 = vadd.f32 %v3141_v31, %v3140_v58  ;;  %v13303_v7 = vadd.f32 %v3183_v30, %v3182_v40  ;;  %v18443_v44 = vld [vmem:[#allocation544_spill] sm:$0xff]  ;;  %v18444_v58 = vld [vmem:[#allocation38_spill] sm:$0xff]  ;;  %v18447_v57 = vld [vmem:[#allocation567_spill] sm:$0xff] }
 0x4c8   : > { %v13301_v55 = vadd.f32 %v3162_v26, %v3161_v28  ;;  %v13305_v32 = vadd.f32 %v3204_v6, %v3203_v42  ;;  %v13307_v43 = vadd.f32 %v3225_v10, %v3224_v41  ;;  %v3227_v23 = vadd.f32 %v18429_v39, %v18428_v38  ;;  %v18445_v40 = vld [vmem:[#allocation566_spill] sm:$0xff]  ;;  %v18446_v41 = vld [vmem:[#allocation39_spill] sm:$0xff]  ;;  %v18448_v31 = vld [vmem:[#allocation40_spill] sm:$0xff] }
 0x4c9   : > { %v3248_v63 = vadd.f32 %v18431_v14, %v18430_v4  ;;  %v3269_v27 = vadd.f32 %v18433_v33, %v18432_v34  ;;  %v3290_v21 = vadd.f32 %v18435_v48, %v18434_v60  ;;  %v3311_v13 = vadd.f32 %v18437_v0, %v18436_v19  ;;  %v18449_v30 = vld [vmem:[#allocation568_spill] sm:$0xff]  ;;  %v18450_v10 = vld [vmem:[#allocation41_spill] sm:$0xff]  ;;  %v18452_v14 = vld [vmem:[#allocation70_spill] sm:$0xff] }
 0x4ca   : > { %v3332_v20 = vadd.f32 %v18439_v53, %v18438_v15  ;;  %v3353_v52 = vadd.f32 %v18441_v51, %v18440_v11  ;;  %v3374_v36 = vadd.f32 %v18443_v44, %v18442_v29  ;;  %v3228_v28 = vadd.f32 %v3227_v23, %v18444_v58  ;;  %v18451_v39 = vld [vmem:[#allocation569_spill] sm:$0xff]  ;;  %v18453_v33 = vld [vmem:[#allocation590_spill] sm:$0xff]  ;;  %v18454_v48 = vld [vmem:[#allocation71_spill] sm:$0xff] }
 0x4cb   : > { %v3249_v42 = vadd.f32 %v3248_v63, %v18445_v40  ;;  %v3270_v17 = vadd.f32 %v3269_v27, %v18446_v41  ;;  %v3291_v3 = vadd.f32 %v3290_v21, %v18447_v57  ;;  %v3312_v26 = vadd.f32 %v3311_v13, %v18448_v31  ;;  %v18455_v19 = vld [vmem:[#allocation591_spill] sm:$0xff]  ;;  %v18456_v0 = vld [vmem:[#allocation72_spill] sm:$0xff]  ;;  %v18458_v53 = vld [vmem:[#allocation73_spill] sm:$0xff] }
 0x4cc   : > { %v3333_v6 = vadd.f32 %v3332_v20, %v18449_v30  ;;  %v3354_v38 = vadd.f32 %v3353_v52, %v18450_v10  ;;  %v3375_v4 = vadd.f32 %v3374_v36, %v18451_v39  ;;  %v3229_v34 = vadd.f32 %v3228_v28, %v18452_v14  ;;  %v18457_v15 = vld [vmem:[#allocation592_spill] sm:$0xff]  ;;  %v18459_v11 = vld [vmem:[#allocation593_spill] sm:$0xff]  ;;  %v18460_v51 = vld [vmem:[#allocation102_spill] sm:$0xff] }
 0x4cd   : > { %v3250_v60 = vadd.f32 %v3249_v42, %v18453_v33  ;;  %v3271_v23 = vadd.f32 %v3270_v17, %v18454_v48  ;;  %v3292_v63 = vadd.f32 %v3291_v3, %v18455_v19  ;;  %v3313_v27 = vadd.f32 %v3312_v26, %v18456_v0  ;;  %v18461_v29 = vld [vmem:[#allocation614_spill] sm:$0xff]  ;;  %v18462_v36 = vld [vmem:[#allocation103_spill] sm:$0xff]  ;;  %v18464_v42 = vld [vmem:[#allocation104_spill] sm:$0xff] }
 0x4ce   : > { %v3334_v21 = vadd.f32 %v3333_v6, %v18457_v15  ;;  %v3355_v13 = vadd.f32 %v3354_v38, %v18458_v53  ;;  %v3376_v20 = vadd.f32 %v3375_v4, %v18459_v11  ;;  %v3230_v52 = vadd.f32 %v3229_v34, %v18460_v51  ;;  %v18463_v28 = vld [vmem:[#allocation615_spill] sm:$0xff]  ;;  %v18465_v17 = vld [vmem:[#allocation616_spill] sm:$0xff]  ;;  %v18466_v3 = vld [vmem:[#allocation105_spill] sm:$0xff] }
 0x4cf   : > { %v3251_v44 = vadd.f32 %v3250_v60, %v18461_v29  ;;  %v3272_v58 = vadd.f32 %v3271_v23, %v18462_v36  ;;  %v3293_v40 = vadd.f32 %v3292_v63, %v18463_v28  ;;  %v3314_v41 = vadd.f32 %v3313_v27, %v18464_v42  ;;  %v18467_v26 = vld [vmem:[#allocation617_spill] sm:$0xff]  ;;  %v18468_v6 = vld [vmem:[#allocation134_spill] sm:$0xff]  ;;  %v18470_v4 = vld [vmem:[#allocation135_spill] sm:$0xff] }
 0x4d0   : > { %v3335_v57 = vadd.f32 %v3334_v21, %v18465_v17  ;;  %v3356_v31 = vadd.f32 %v3355_v13, %v18466_v3  ;;  %v3377_v30 = vadd.f32 %v3376_v20, %v18467_v26  ;;  %v3231_v10 = vadd.f32 %v3230_v52, %v18468_v6  ;;  %v18469_v38 = vld [vmem:[#allocation641_spill] sm:$0xff]  ;;  %v18471_v34 = vld [vmem:[#allocation642_spill] sm:$0xff]  ;;  %v18472_v60 = vld [vmem:[#allocation136_spill] sm:$0xff] }
 0x4d1   : > { %v3252_v39 = vadd.f32 %v3251_v44, %v18469_v38  ;;  %v3273_v14 = vadd.f32 %v3272_v58, %v18470_v4  ;;  %v3294_v33 = vadd.f32 %v3293_v40, %v18471_v34  ;;  %v3315_v48 = vadd.f32 %v3314_v41, %v18472_v60  ;;  %v18473_v23 = vld [vmem:[#allocation643_spill] sm:$0xff]  ;;  %v18474_v63 = vld [vmem:[#allocation137_spill] sm:$0xff]  ;;  %v18475_v27 = vld [vmem:[#allocation644_spill] sm:$0xff] }
 0x4d2   : > { %v3336_v19 = vadd.f32 %v3335_v57, %v18473_v23  ;;  %v3357_v0 = vadd.f32 %v3356_v31, %v18474_v63  ;;  %v3378_v15 = vadd.f32 %v3377_v30, %v18475_v27  ;;  %v18476_v21 = vld [vmem:[#allocation166_spill] sm:$0xff]  ;;  %v18477_v13 = vld [vmem:[#allocation673_spill] sm:$0xff]  ;;  %v18478_v20 = vld [vmem:[#allocation167_spill] sm:$0xff] }
 0x4d3   : > { %v3232_v53 = vadd.f32 %v3231_v10, %v18476_v21  ;;  %v3253_v11 = vadd.f32 %v3252_v39, %v18477_v13  ;;  %v3274_v51 = vadd.f32 %v3273_v14, %v18478_v20  ;;  %v18479_v52 = vld [vmem:[#allocation674_spill] sm:$0xff]  ;;  %v18480_v44 = vld [vmem:[#allocation168_spill] sm:$0xff]  ;;  %v18481_v58 = vld [vmem:[#allocation675_spill] sm:$0xff] }
 0x4d4   : > { %v3295_v29 = vadd.f32 %v3294_v33, %v18479_v52  ;;  %v3316_v36 = vadd.f32 %v3315_v48, %v18480_v44  ;;  %v3337_v28 = vadd.f32 %v3336_v19, %v18481_v58  ;;  %v18482_v40 = vld [vmem:[#allocation169_spill] sm:$0xff]  ;;  %v18483_v41 = vld [vmem:[#allocation676_spill] sm:$0xff]  ;;  %v18484_v57 = vld [vmem:[#allocation198_spill] sm:$0xff] }
 0x4d5   : > { %v3358_v42 = vadd.f32 %v3357_v0, %v18482_v40  ;;  %v3379_v17 = vadd.f32 %v3378_v15, %v18483_v41  ;;  %v3233_v3 = vadd.f32 %v3232_v53, %v18484_v57  ;;  %v18485_v31 = vld [vmem:[#allocation705_spill] sm:$0xff]  ;;  %v18486_v30 = vld [vmem:[#allocation199_spill] sm:$0xff]  ;;  %v18487_v10 = vld [vmem:[#allocation706_spill] sm:$0xff] }
 0x4d6   : > { %v3254_v26 = vadd.f32 %v3253_v11, %v18485_v31  ;;  %v3275_v6 = vadd.f32 %v3274_v51, %v18486_v30  ;;  %v3296_v38 = vadd.f32 %v3295_v29, %v18487_v10  ;;  %v18488_v39 = vld [vmem:[#allocation200_spill] sm:$0xff]  ;;  %v18489_v14 = vld [vmem:[#allocation707_spill] sm:$0xff]  ;;  %v18490_v33 = vld [vmem:[#allocation201_spill] sm:$0xff] }
 0x4d7   : > { %v3317_v4 = vadd.f32 %v3316_v36, %v18488_v39  ;;  %v3338_v34 = vadd.f32 %v3337_v28, %v18489_v14  ;;  %v3359_v60 = vadd.f32 %v3358_v42, %v18490_v33  ;;  %v18491_v48 = vld [vmem:[#allocation708_spill] sm:$0xff]  ;;  %v18492_v19 = vld [vmem:[#allocation230_spill] sm:$0xff]  ;;  %v18493_v0 = vld [vmem:[#allocation737_spill] sm:$0xff] }
 0x4d8   : > { %v3380_v23 = vadd.f32 %v3379_v17, %v18491_v48  ;;  %v3234_v63 = vadd.f32 %v3233_v3, %v18492_v19  ;;  %v3255_v27 = vadd.f32 %v3254_v26, %v18493_v0  ;;  %v18494_v15 = vld [vmem:[#allocation231_spill] sm:$0xff]  ;;  %v18495_v53 = vld [vmem:[#allocation738_spill] sm:$0xff]  ;;  %v18496_v11 = vld [vmem:[#allocation232_spill] sm:$0xff] }
 0x4d9   : > { %v3276_v21 = vadd.f32 %v3275_v6, %v18494_v15  ;;  %v3297_v13 = vadd.f32 %v3296_v38, %v18495_v53  ;;  %v3318_v20 = vadd.f32 %v3317_v4, %v18496_v11  ;;  %v18497_v51 = vld [vmem:[#allocation739_spill] sm:$0xff]  ;;  %v18498_v29 = vld [vmem:[#allocation233_spill] sm:$0xff]  ;;  %v18499_v36 = vld [vmem:[#allocation740_spill] sm:$0xff] }
 0x4da   : > { %v3339_v52 = vadd.f32 %v3338_v34, %v18497_v51  ;;  %v3360_v44 = vadd.f32 %v3359_v60, %v18498_v29  ;;  %v3381_v58 = vadd.f32 %v3380_v23, %v18499_v36  ;;  %v18500_v28 = vld [vmem:[#allocation262_spill] sm:$0xff]  ;;  %v18501_v42 = vld [vmem:[#allocation769_spill] sm:$0xff]  ;;  %v18502_v17 = vld [vmem:[#allocation263_spill] sm:$0xff] }
 0x4db   : > { %v3235_v40 = vadd.f32 %v3234_v63, %v18500_v28  ;;  %v3256_v41 = vadd.f32 %v3255_v27, %v18501_v42  ;;  %v3277_v57 = vadd.f32 %v3276_v21, %v18502_v17  ;;  %v18503_v3 = vld [vmem:[#allocation770_spill] sm:$0xff]  ;;  %v18504_v26 = vld [vmem:[#allocation264_spill] sm:$0xff]  ;;  %v18505_v6 = vld [vmem:[#allocation771_spill] sm:$0xff] }
 0x4dc   : > { %v3298_v31 = vadd.f32 %v3297_v13, %v18503_v3  ;;  %v3319_v30 = vadd.f32 %v3318_v20, %v18504_v26  ;;  %v3340_v10 = vadd.f32 %v3339_v52, %v18505_v6  ;;  %v18506_v38 = vld [vmem:[#allocation265_spill] sm:$0xff]  ;;  %v18507_v4 = vld [vmem:[#allocation772_spill] sm:$0xff]  ;;  %v18508_v34 = vld [vmem:[#allocation294_spill] sm:$0xff] }
 0x4dd   : > { %v3361_v39 = vadd.f32 %v3360_v44, %v18506_v38  ;;  %v3382_v14 = vadd.f32 %v3381_v58, %v18507_v4  ;;  %v3236_v33 = vadd.f32 %v3235_v40, %v18508_v34  ;;  %v18509_v60 = vld [vmem:[#allocation801_spill] sm:$0xff]  ;;  %v18510_v23 = vld [vmem:[#allocation295_spill] sm:$0xff]  ;;  %v18511_v63 = vld [vmem:[#allocation802_spill] sm:$0xff] }
 0x4de   : > { %v3257_v48 = vadd.f32 %v3256_v41, %v18509_v60  ;;  %v3278_v19 = vadd.f32 %v3277_v57, %v18510_v23  ;;  %v3299_v0 = vadd.f32 %v3298_v31, %v18511_v63  ;;  %v18512_v27 = vld [vmem:[#allocation296_spill] sm:$0xff]  ;;  %v18513_v21 = vld [vmem:[#allocation803_spill] sm:$0xff]  ;;  %v18514_v13 = vld [vmem:[#allocation297_spill] sm:$0xff] }
 0x4df   : > { %v3320_v15 = vadd.f32 %v3319_v30, %v18512_v27  ;;  %v3341_v53 = vadd.f32 %v3340_v10, %v18513_v21  ;;  %v3362_v11 = vadd.f32 %v3361_v39, %v18514_v13  ;;  %v18515_v20 = vld [vmem:[#allocation804_spill] sm:$0xff]  ;;  %v18516_v52 = vld [vmem:[#allocation326_spill] sm:$0xff]  ;;  %v18517_v44 = vld [vmem:[#allocation833_spill] sm:$0xff] }
 0x4e0   : > { %v3383_v51 = vadd.f32 %v3382_v14, %v18515_v20  ;;  %v3237_v29 = vadd.f32 %v3236_v33, %v18516_v52  ;;  %v3258_v36 = vadd.f32 %v3257_v48, %v18517_v44  ;;  %v18518_v58 = vld [vmem:[#allocation327_spill] sm:$0xff]  ;;  %v18519_v40 = vld [vmem:[#allocation834_spill] sm:$0xff]  ;;  %v18520_v41 = vld [vmem:[#allocation328_spill] sm:$0xff] }
 0x4e1   : > { %v3279_v28 = vadd.f32 %v3278_v19, %v18518_v58  ;;  %v3300_v42 = vadd.f32 %v3299_v0, %v18519_v40  ;;  %v3321_v17 = vadd.f32 %v3320_v15, %v18520_v41  ;;  %v18521_v57 = vld [vmem:[#allocation835_spill] sm:$0xff]  ;;  %v18522_v31 = vld [vmem:[#allocation329_spill] sm:$0xff]  ;;  %v18523_v30 = vld [vmem:[#allocation836_spill] sm:$0xff] }
 0x4e2   : > { %v3342_v3 = vadd.f32 %v3341_v53, %v18521_v57  ;;  %v3363_v26 = vadd.f32 %v3362_v11, %v18522_v31  ;;  %v3384_v6 = vadd.f32 %v3383_v51, %v18523_v30  ;;  %v18524_v10 = vld [vmem:[#allocation358_spill] sm:$0xff]  ;;  %v18525_v39 = vld [vmem:[#allocation865_spill] sm:$0xff]  ;;  %v18526_v14 = vld [vmem:[#allocation359_spill] sm:$0xff] }
 0x4e3   : > { %v3238_v38 = vadd.f32 %v3237_v29, %v18524_v10  ;;  %v3259_v4 = vadd.f32 %v3258_v36, %v18525_v39  ;;  %v3280_v34 = vadd.f32 %v3279_v28, %v18526_v14  ;;  %v18527_v33 = vld [vmem:[#allocation866_spill] sm:$0xff]  ;;  %v18528_v48 = vld [vmem:[#allocation360_spill] sm:$0xff]  ;;  %v18529_v19 = vld [vmem:[#allocation867_spill] sm:$0xff] }
 0x4e4   : > { %v3301_v60 = vadd.f32 %v3300_v42, %v18527_v33  ;;  %v3322_v23 = vadd.f32 %v3321_v17, %v18528_v48  ;;  %v3343_v63 = vadd.f32 %v3342_v3, %v18529_v19  ;;  %v18530_v0 = vld [vmem:[#allocation361_spill] sm:$0xff]  ;;  %v18531_v15 = vld [vmem:[#allocation868_spill] sm:$0xff]  ;;  %v18532_v53 = vld [vmem:[#allocation390_spill] sm:$0xff] }
 0x4e5   : > { %v3364_v27 = vadd.f32 %v3363_v26, %v18530_v0  ;;  %v3385_v21 = vadd.f32 %v3384_v6, %v18531_v15  ;;  %v3239_v13 = vadd.f32 %v3238_v38, %v18532_v53  ;;  %v18533_v11 = vld [vmem:[#allocation897_spill] sm:$0xff]  ;;  %v18534_v51 = vld [vmem:[#allocation391_spill] sm:$0xff]  ;;  %v18535_v29 = vld [vmem:[#allocation898_spill] sm:$0xff] }
 0x4e6   : > { %v3260_v20 = vadd.f32 %v3259_v4, %v18533_v11  ;;  %v3281_v52 = vadd.f32 %v3280_v34, %v18534_v51  ;;  %v3302_v44 = vadd.f32 %v3301_v60, %v18535_v29  ;;  %v18536_v36 = vld [vmem:[#allocation392_spill] sm:$0xff]  ;;  %v18537_v28 = vld [vmem:[#allocation899_spill] sm:$0xff]  ;;  %v18538_v42 = vld [vmem:[#allocation393_spill] sm:$0xff] }
 0x4e7   : > { %v3323_v58 = vadd.f32 %v3322_v23, %v18536_v36  ;;  %v3344_v40 = vadd.f32 %v3343_v63, %v18537_v28  ;;  %v3365_v41 = vadd.f32 %v3364_v27, %v18538_v42  ;;  %v18539_v17 = vld [vmem:[#allocation900_spill] sm:$0xff]  ;;  %v18540_v3 = vld [vmem:[#allocation422_spill] sm:$0xff]  ;;  %v18541_v26 = vld [vmem:[#allocation929_spill] sm:$0xff] }
 0x4e8   : > { %v3386_v57 = vadd.f32 %v3385_v21, %v18539_v17  ;;  %v3240_v31 = vadd.f32 %v3239_v13, %v18540_v3  ;;  %v3261_v30 = vadd.f32 %v3260_v20, %v18541_v26  ;;  %v18542_v6 = vld [vmem:[#allocation423_spill] sm:$0xff]  ;;  %v18543_v38 = vld [vmem:[#allocation930_spill] sm:$0xff]  ;;  %v18544_v4 = vld [vmem:[#allocation424_spill] sm:$0xff] }
 0x4e9   : > { %v3282_v10 = vadd.f32 %v3281_v52, %v18542_v6  ;;  %v3303_v39 = vadd.f32 %v3302_v44, %v18543_v38  ;;  %v3324_v14 = vadd.f32 %v3323_v58, %v18544_v4  ;;  %v18545_v34 = vld [vmem:[#allocation931_spill] sm:$0xff]  ;;  %v18546_v60 = vld [vmem:[#allocation425_spill] sm:$0xff]  ;;  %v18547_v23 = vld [vmem:[#allocation932_spill] sm:$0xff] }
 0x4ea   : > { %v3345_v33 = vadd.f32 %v3344_v40, %v18545_v34  ;;  %v3366_v48 = vadd.f32 %v3365_v41, %v18546_v60  ;;  %v3387_v19 = vadd.f32 %v3386_v57, %v18547_v23  ;;  %v18548_v63 = vld [vmem:[#allocation454_spill] sm:$0xff]  ;;  %v18549_v27 = vld [vmem:[#allocation960_spill] sm:$0xff]  ;;  %v18550_v21 = vld [vmem:[#allocation455_spill] sm:$0xff] }
 0x4eb   : > { %v3241_v0 = vadd.f32 %v3240_v31, %v18548_v63  ;;  %v3262_v15 = vadd.f32 %v3261_v30, %v18549_v27  ;;  %v3283_v53 = vadd.f32 %v3282_v10, %v18550_v21  ;;  %v18551_v13 = vld [vmem:[#allocation961_spill] sm:$0xff]  ;;  %v18552_v20 = vld [vmem:[#allocation456_spill] sm:$0xff]  ;;  %v18553_v52 = vld [vmem:[#allocation962_spill] sm:$0xff] }
 0x4ec   : > { %v3304_v11 = vadd.f32 %v3303_v39, %v18551_v13  ;;  %v3325_v51 = vadd.f32 %v3324_v14, %v18552_v20  ;;  %v3346_v29 = vadd.f32 %v3345_v33, %v18553_v52  ;;  %v18554_v44 = vld [vmem:[#allocation457_spill] sm:$0xff]  ;;  %v18555_v58 = vld [vmem:[#allocation963_spill] sm:$0xff] }
 0x4ed   : > { %v3367_v36 = vadd.f32 %v3366_v48, %v18554_v44  ;;  %v3388_v28 = vadd.f32 %v3387_v19, %v18555_v58  ;;  %v3242_v40 = vrot.slane %v3241_v0, 4  ;;  %v3263_v42 = vrot.slane %v3262_v15, 4 }
 0x4ee   : > { %v3284_v41 = vrot.slane %v3283_v53, 4  ;;  %v3305_v17 = vrot.slane %v3304_v11, 4  ;;  %v3326_v57 = vrot.slane %v3325_v51, 4  ;;  %v3347_v3 = vrot.slane %v3346_v29, 4 }
 0x4ef   : > { %v3368_v31 = vrot.slane %v3367_v36, 4  ;;  %v3389_v26 = vrot.slane %v3388_v28, 4  ;;  %v3243_v30 = vadd.f32 %v3242_v40, %v3241_v0  ;;  %v3264_v6 = vadd.f32 %v3263_v42, %v3262_v15 }
 0x4f0   : > { %v3285_v10 = vadd.f32 %v3284_v41, %v3283_v53  ;;  %v3306_v38 = vadd.f32 %v3305_v17, %v3304_v11  ;;  %v3327_v39 = vadd.f32 %v3326_v57, %v3325_v51  ;;  %v3348_v4 = vadd.f32 %v3347_v3, %v3346_v29 }
 0x4f1   : > { %v3369_v14 = vadd.f32 %v3368_v31, %v3367_v36  ;;  %v3390_v34 = vadd.f32 %v3389_v26, %v3388_v28  ;;  %v3244_v33 = vrot.slane %v3243_v30, 2  ;;  %v3265_v60 = vrot.slane %v3264_v6, 2 }
 0x4f2   : > { %v3286_v48 = vrot.slane %v3285_v10, 2  ;;  %v3307_v23 = vrot.slane %v3306_v38, 2  ;;  %v3328_v19 = vrot.slane %v3327_v39, 2  ;;  %v3349_v63 = vrot.slane %v3348_v4, 2 }
 0x4f3   : > { %v3370_v27 = vrot.slane %v3369_v14, 2  ;;  %v3391_v21 = vrot.slane %v3390_v34, 2  ;;  %v3245_v13 = vadd.f32 %v3244_v33, %v3243_v30  ;;  %v3266_v20 = vadd.f32 %v3265_v60, %v3264_v6  ;;  %v18567_v60 = vld [vmem:[#allocation491_spill] sm:$0xff] }
 0x4f4   : > { %v3287_v52 = vadd.f32 %v3286_v48, %v3285_v10  ;;  %v3308_v44 = vadd.f32 %v3307_v23, %v3306_v38  ;;  %v3329_v0 = vadd.f32 %v3328_v19, %v3327_v39  ;;  %v3350_v15 = vadd.f32 %v3349_v63, %v3348_v4  ;;  %v18563_v38 = vld [vmem:[#allocation489_spill] sm:$0xff]  ;;  %v18568_v48 = vld [vmem:[#allocation11_spill] sm:$0xff]  ;;  %v18569_v19 = vld [vmem:[#allocation492_spill] sm:$0xff] }
 0x4f5   : > { %v3371_v53 = vadd.f32 %v3370_v27, %v3369_v14  ;;  %v3392_v11 = vadd.f32 %v3391_v21, %v3390_v34  ;;  %v3246_v51 = vrot.slane %v3245_v13, 1  ;;  %v3267_v29 = vrot.slane %v3266_v20, 1  ;;  %v18564_v39 = vld [vmem:[#allocation545_spill] sm:$0xff]  ;;  %v18565_v14 = vld [vmem:[#allocation490_spill] sm:$0xff]  ;;  %v18570_v63 = vld [vmem:[#allocation547_spill] sm:$0xff] }
 0x4f6   : > { %v3288_v36 = vrot.slane %v3287_v52, 1  ;;  %v3309_v58 = vrot.slane %v3308_v44, 1  ;;  %v3330_v28 = vrot.slane %v3329_v0, 1  ;;  %v3351_v40 = vrot.slane %v3350_v15, 1  ;;  %v18566_v34 = vld [vmem:[#allocation546_spill] sm:$0xff]  ;;  %v18571_v21 = vld [vmem:[#allocation493_spill] sm:$0xff] }
 0x4f7   : > { %v3372_v42 = vrot.slane %v3371_v53, 1  ;;  %v3393_v41 = vrot.slane %v3392_v11, 1  ;;  %v13437_v17 = vadd.f32 %v3246_v51, %v3245_v13  ;;  %v13439_v57 = vadd.f32 %v3267_v29, %v3266_v20  ;;  %v18572_v13 = vld [vmem:[#allocation12_spill] sm:$0xff]  ;;  %v18578_v29 = vld [vmem:[#allocation549_spill] sm:$0xff] }
 0x4f8   : > { %v13441_v3 = vadd.f32 %v3288_v36, %v3287_v52  ;;  %v13443_v31 = vadd.f32 %v3309_v58, %v3308_v44  ;;  %v13445_v26 = vadd.f32 %v3330_v28, %v3329_v0  ;;  %v13447_v30 = vadd.f32 %v3351_v40, %v3350_v15  ;;  %v18573_v52 = vld [vmem:[#allocation494_spill] sm:$0xff]  ;;  %v18574_v44 = vld [vmem:[#allocation548_spill] sm:$0xff]  ;;  %v18575_v15 = vld [vmem:[#allocation495_spill] sm:$0xff] }
 0x4f9   : > { %18556 = vst [vmem:[#allocation470_spill] sm:$0xff] %v13437_v17  ;;  %v13449_v6 = vadd.f32 %v3372_v42, %v3371_v53  ;;  %v13451_v10 = vadd.f32 %v3393_v41, %v3392_v11  ;;  %v3395_v4 = vadd.f32 %v18564_v39, %v18563_v38  ;;  %v3416_v33 = vadd.f32 %v18566_v34, %v18565_v14  ;;  %v18576_v53 = vld [vmem:[#allocation13_spill] sm:$0xff]  ;;  %v18577_v51 = vld [vmem:[#allocation496_spill] sm:$0xff]  ;;  %v18579_v58 = vld [vmem:[#allocation42_spill] sm:$0xff] }
 0x4fa   : > { %18557 = vst [vmem:[#allocation471_spill] sm:$0xff] %v13441_v3  ;;  %18558 = vst [vmem:[#allocation472_spill] sm:$0xff] %v13443_v31  ;;  %v3437_v23 = vadd.f32 %v18568_v48, %v18567_v60  ;;  %v3458_v27 = vadd.f32 %v18570_v63, %v18569_v19  ;;  %v3479_v20 = vadd.f32 %v18572_v13, %v18571_v21  ;;  %v18580_v40 = vld [vmem:[#allocation570_spill] sm:$0xff]  ;;  %v18581_v41 = vld [vmem:[#allocation43_spill] sm:$0xff] }
 0x4fb   : > { %18559 = vst [vmem:[#allocation126_spill] sm:$0xff] %v13445_v26  ;;  %18560 = vst [vmem:[#allocation127_spill] sm:$0xff] %v13447_v30  ;;  %v3500_v0 = vadd.f32 %v18574_v44, %v18573_v52  ;;  %v3521_v11 = vadd.f32 %v18576_v53, %v18575_v15  ;;  %v3542_v36 = vadd.f32 %v18578_v29, %v18577_v51  ;;  %v18582_v39 = vld [vmem:[#allocation571_spill] sm:$0xff]  ;;  %v18583_v34 = vld [vmem:[#allocation44_spill] sm:$0xff] }
 0x4fc   : > { %18561 = vst [vmem:[#allocation128_spill] sm:$0xff] %v13449_v6  ;;  %18562 = vst [vmem:[#allocation158_spill] sm:$0xff] %v13451_v10  ;;  %v3396_v28 = vadd.f32 %v3395_v4, %v18579_v58  ;;  %v3417_v42 = vadd.f32 %v3416_v33, %v18580_v40  ;;  %v3438_v38 = vadd.f32 %v3437_v23, %v18581_v41  ;;  %v18584_v48 = vld [vmem:[#allocation572_spill] sm:$0xff]  ;;  %v18585_v63 = vld [vmem:[#allocation45_spill] sm:$0xff] }
 0x4fd   : > { %v3459_v14 = vadd.f32 %v3458_v27, %v18582_v39  ;;  %v3480_v60 = vadd.f32 %v3479_v20, %v18583_v34  ;;  %v3501_v19 = vadd.f32 %v3500_v0, %v18584_v48  ;;  %v3522_v21 = vadd.f32 %v3521_v11, %v18585_v63  ;;  %v18586_v13 = vld [vmem:[#allocation573_spill] sm:$0xff]  ;;  %v18587_v44 = vld [vmem:[#allocation74_spill] sm:$0xff]  ;;  %v18589_v29 = vld [vmem:[#allocation75_spill] sm:$0xff] }
 0x4fe   : > { %v3543_v52 = vadd.f32 %v3542_v36, %v18586_v13  ;;  %v3397_v15 = vadd.f32 %v3396_v28, %v18587_v44  ;;  %v18588_v53 = vld [vmem:[#allocation594_spill] sm:$0xff]  ;;  %v3439_v4 = vadd.f32 %v3438_v38, %v18589_v29  ;;  %v18590_v58 = vld [vmem:[#allocation595_spill] sm:$0xff]  ;;  %v18591_v40 = vld [vmem:[#allocation76_spill] sm:$0xff] }
 0x4ff   : > { %v3418_v51 = vadd.f32 %v3417_v42, %v18588_v53  ;;  %v3460_v33 = vadd.f32 %v3459_v14, %v18590_v58  ;;  %v3481_v23 = vadd.f32 %v3480_v60, %v18591_v40  ;;  %v18592_v41 = vld [vmem:[#allocation596_spill] sm:$0xff]  ;;  %v18593_v39 = vld [vmem:[#allocation77_spill] sm:$0xff]  ;;  %v18595_v48 = vld [vmem:[#allocation106_spill] sm:$0xff] }
 0x500   : > { %v3502_v27 = vadd.f32 %v3501_v19, %v18592_v41  ;;  %v3523_v20 = vadd.f32 %v3522_v21, %v18593_v39  ;;  %v18594_v34 = vld [vmem:[#allocation597_spill] sm:$0xff]  ;;  %v3398_v11 = vadd.f32 %v3397_v15, %v18595_v48  ;;  %v18596_v63 = vld [vmem:[#allocation618_spill] sm:$0xff]  ;;  %v18597_v13 = vld [vmem:[#allocation107_spill] sm:$0xff] }
 0x501   : > { %v3544_v0 = vadd.f32 %v3543_v52, %v18594_v34  ;;  %v3419_v36 = vadd.f32 %v3418_v51, %v18596_v63  ;;  %v3440_v28 = vadd.f32 %v3439_v4, %v18597_v13  ;;  %v18598_v44 = vld [vmem:[#allocation619_spill] sm:$0xff]  ;;  %v18599_v53 = vld [vmem:[#allocation108_spill] sm:$0xff]  ;;  %v18601_v58 = vld [vmem:[#allocation109_spill] sm:$0xff] }
 0x502   : > { %v3461_v42 = vadd.f32 %v3460_v33, %v18598_v44  ;;  %v3482_v38 = vadd.f32 %v3481_v23, %v18599_v53  ;;  %v18600_v29 = vld [vmem:[#allocation620_spill] sm:$0xff]  ;;  %v3524_v60 = vadd.f32 %v3523_v20, %v18601_v58  ;;  %v18602_v40 = vld [vmem:[#allocation621_spill] sm:$0xff]  ;;  %v18603_v41 = vld [vmem:[#allocation138_spill] sm:$0xff] }
 0x503   : > { %v3503_v14 = vadd.f32 %v3502_v27, %v18600_v29  ;;  %v3545_v19 = vadd.f32 %v3544_v0, %v18602_v40  ;;  %v3399_v21 = vadd.f32 %v3398_v11, %v18603_v41  ;;  %v18604_v39 = vld [vmem:[#allocation645_spill] sm:$0xff]  ;;  %v18605_v34 = vld [vmem:[#allocation139_spill] sm:$0xff]  ;;  %v18606_v48 = vld [vmem:[#allocation646_spill] sm:$0xff] }
 0x504   : > { %v3420_v52 = vadd.f32 %v3419_v36, %v18604_v39  ;;  %v3441_v15 = vadd.f32 %v3440_v28, %v18605_v34  ;;  %v3462_v51 = vadd.f32 %v3461_v42, %v18606_v48  ;;  %v18607_v63 = vld [vmem:[#allocation140_spill] sm:$0xff]  ;;  %v18608_v13 = vld [vmem:[#allocation647_spill] sm:$0xff]  ;;  %v18609_v44 = vld [vmem:[#allocation141_spill] sm:$0xff] }
 0x505   : > { %v3483_v4 = vadd.f32 %v3482_v38, %v18607_v63  ;;  %v3504_v33 = vadd.f32 %v3503_v14, %v18608_v13  ;;  %v3525_v23 = vadd.f32 %v3524_v60, %v18609_v44  ;;  %v18610_v53 = vld [vmem:[#allocation648_spill] sm:$0xff]  ;;  %v18611_v29 = vld [vmem:[#allocation170_spill] sm:$0xff]  ;;  %v18612_v58 = vld [vmem:[#allocation677_spill] sm:$0xff] }
 0x506   : > { %v3546_v27 = vadd.f32 %v3545_v19, %v18610_v53  ;;  %v3400_v20 = vadd.f32 %v3399_v21, %v18611_v29  ;;  %v3421_v0 = vadd.f32 %v3420_v52, %v18612_v58  ;;  %v18613_v40 = vld [vmem:[#allocation171_spill] sm:$0xff]  ;;  %v18614_v41 = vld [vmem:[#allocation678_spill] sm:$0xff]  ;;  %v18615_v39 = vld [vmem:[#allocation172_spill] sm:$0xff] }
 0x507   : > { %v3442_v11 = vadd.f32 %v3441_v15, %v18613_v40  ;;  %v3463_v36 = vadd.f32 %v3462_v51, %v18614_v41  ;;  %v3484_v28 = vadd.f32 %v3483_v4, %v18615_v39  ;;  %v18616_v34 = vld [vmem:[#allocation679_spill] sm:$0xff]  ;;  %v18617_v48 = vld [vmem:[#allocation173_spill] sm:$0xff]  ;;  %v18618_v63 = vld [vmem:[#allocation680_spill] sm:$0xff] }
 0x508   : > { %v3505_v42 = vadd.f32 %v3504_v33, %v18616_v34  ;;  %v3526_v38 = vadd.f32 %v3525_v23, %v18617_v48  ;;  %v3547_v14 = vadd.f32 %v3546_v27, %v18618_v63  ;;  %v18619_v13 = vld [vmem:[#allocation202_spill] sm:$0xff]  ;;  %v18620_v44 = vld [vmem:[#allocation709_spill] sm:$0xff]  ;;  %v18621_v53 = vld [vmem:[#allocation203_spill] sm:$0xff] }
 0x509   : > { %v3401_v60 = vadd.f32 %v3400_v20, %v18619_v13  ;;  %v3422_v19 = vadd.f32 %v3421_v0, %v18620_v44  ;;  %v3443_v21 = vadd.f32 %v3442_v11, %v18621_v53  ;;  %v18622_v29 = vld [vmem:[#allocation710_spill] sm:$0xff]  ;;  %v18623_v58 = vld [vmem:[#allocation204_spill] sm:$0xff]  ;;  %v18624_v40 = vld [vmem:[#allocation711_spill] sm:$0xff] }
 0x50a   : > { %v3464_v52 = vadd.f32 %v3463_v36, %v18622_v29  ;;  %v3485_v15 = vadd.f32 %v3484_v28, %v18623_v58  ;;  %v3506_v51 = vadd.f32 %v3505_v42, %v18624_v40  ;;  %v18625_v41 = vld [vmem:[#allocation205_spill] sm:$0xff]  ;;  %v18626_v39 = vld [vmem:[#allocation712_spill] sm:$0xff]  ;;  %v18627_v34 = vld [vmem:[#allocation234_spill] sm:$0xff] }
 0x50b   : > { %v3527_v4 = vadd.f32 %v3526_v38, %v18625_v41  ;;  %v3548_v33 = vadd.f32 %v3547_v14, %v18626_v39  ;;  %v3402_v23 = vadd.f32 %v3401_v60, %v18627_v34  ;;  %v18628_v48 = vld [vmem:[#allocation741_spill] sm:$0xff]  ;;  %v18629_v63 = vld [vmem:[#allocation235_spill] sm:$0xff]  ;;  %v18630_v13 = vld [vmem:[#allocation742_spill] sm:$0xff] }
 0x50c   : > { %v3423_v27 = vadd.f32 %v3422_v19, %v18628_v48  ;;  %v3444_v20 = vadd.f32 %v3443_v21, %v18629_v63  ;;  %v3465_v0 = vadd.f32 %v3464_v52, %v18630_v13  ;;  %v18631_v44 = vld [vmem:[#allocation236_spill] sm:$0xff]  ;;  %v18632_v53 = vld [vmem:[#allocation743_spill] sm:$0xff]  ;;  %v18633_v29 = vld [vmem:[#allocation237_spill] sm:$0xff] }
 0x50d   : > { %v3486_v11 = vadd.f32 %v3485_v15, %v18631_v44  ;;  %v3507_v36 = vadd.f32 %v3506_v51, %v18632_v53  ;;  %v3528_v28 = vadd.f32 %v3527_v4, %v18633_v29  ;;  %v18634_v58 = vld [vmem:[#allocation744_spill] sm:$0xff]  ;;  %v18635_v40 = vld [vmem:[#allocation266_spill] sm:$0xff]  ;;  %v18636_v41 = vld [vmem:[#allocation773_spill] sm:$0xff] }
 0x50e   : > { %v3549_v42 = vadd.f32 %v3548_v33, %v18634_v58  ;;  %v3403_v38 = vadd.f32 %v3402_v23, %v18635_v40  ;;  %v3424_v14 = vadd.f32 %v3423_v27, %v18636_v41  ;;  %v18637_v39 = vld [vmem:[#allocation267_spill] sm:$0xff]  ;;  %v18638_v34 = vld [vmem:[#allocation774_spill] sm:$0xff]  ;;  %v18639_v48 = vld [vmem:[#allocation268_spill] sm:$0xff] }
 0x50f   : > { %v3445_v60 = vadd.f32 %v3444_v20, %v18637_v39  ;;  %v3466_v19 = vadd.f32 %v3465_v0, %v18638_v34  ;;  %v3487_v21 = vadd.f32 %v3486_v11, %v18639_v48  ;;  %v18640_v63 = vld [vmem:[#allocation775_spill] sm:$0xff]  ;;  %v18641_v13 = vld [vmem:[#allocation269_spill] sm:$0xff]  ;;  %v18642_v44 = vld [vmem:[#allocation776_spill] sm:$0xff] }
 0x510   : > { %v3508_v52 = vadd.f32 %v3507_v36, %v18640_v63  ;;  %v3529_v15 = vadd.f32 %v3528_v28, %v18641_v13  ;;  %v3550_v51 = vadd.f32 %v3549_v42, %v18642_v44  ;;  %v18643_v53 = vld [vmem:[#allocation298_spill] sm:$0xff]  ;;  %v18644_v29 = vld [vmem:[#allocation805_spill] sm:$0xff]  ;;  %v18645_v58 = vld [vmem:[#allocation299_spill] sm:$0xff] }
 0x511   : > { %v3404_v4 = vadd.f32 %v3403_v38, %v18643_v53  ;;  %v3425_v33 = vadd.f32 %v3424_v14, %v18644_v29  ;;  %v3446_v23 = vadd.f32 %v3445_v60, %v18645_v58  ;;  %v18646_v40 = vld [vmem:[#allocation806_spill] sm:$0xff]  ;;  %v18647_v41 = vld [vmem:[#allocation300_spill] sm:$0xff]  ;;  %v18648_v39 = vld [vmem:[#allocation807_spill] sm:$0xff] }
 0x512   : > { %v3467_v27 = vadd.f32 %v3466_v19, %v18646_v40  ;;  %v3488_v20 = vadd.f32 %v3487_v21, %v18647_v41  ;;  %v3509_v0 = vadd.f32 %v3508_v52, %v18648_v39  ;;  %v18649_v34 = vld [vmem:[#allocation301_spill] sm:$0xff]  ;;  %v18650_v48 = vld [vmem:[#allocation808_spill] sm:$0xff]  ;;  %v18651_v63 = vld [vmem:[#allocation330_spill] sm:$0xff] }
 0x513   : > { %v3530_v11 = vadd.f32 %v3529_v15, %v18649_v34  ;;  %v3551_v36 = vadd.f32 %v3550_v51, %v18650_v48  ;;  %v3405_v28 = vadd.f32 %v3404_v4, %v18651_v63  ;;  %v18652_v13 = vld [vmem:[#allocation837_spill] sm:$0xff]  ;;  %v18653_v44 = vld [vmem:[#allocation331_spill] sm:$0xff]  ;;  %v18654_v53 = vld [vmem:[#allocation838_spill] sm:$0xff] }
 0x514   : > { %v3426_v42 = vadd.f32 %v3425_v33, %v18652_v13  ;;  %v3447_v38 = vadd.f32 %v3446_v23, %v18653_v44  ;;  %v3468_v14 = vadd.f32 %v3467_v27, %v18654_v53  ;;  %v18655_v29 = vld [vmem:[#allocation332_spill] sm:$0xff]  ;;  %v18656_v58 = vld [vmem:[#allocation839_spill] sm:$0xff]  ;;  %v18657_v40 = vld [vmem:[#allocation333_spill] sm:$0xff] }
 0x515   : > { %v3489_v60 = vadd.f32 %v3488_v20, %v18655_v29  ;;  %v3510_v19 = vadd.f32 %v3509_v0, %v18656_v58  ;;  %v3531_v21 = vadd.f32 %v3530_v11, %v18657_v40  ;;  %v18658_v41 = vld [vmem:[#allocation840_spill] sm:$0xff]  ;;  %v18659_v39 = vld [vmem:[#allocation362_spill] sm:$0xff]  ;;  %v18660_v34 = vld [vmem:[#allocation869_spill] sm:$0xff] }
 0x516   : > { %v3552_v52 = vadd.f32 %v3551_v36, %v18658_v41  ;;  %v3406_v15 = vadd.f32 %v3405_v28, %v18659_v39  ;;  %v3427_v51 = vadd.f32 %v3426_v42, %v18660_v34  ;;  %v18661_v48 = vld [vmem:[#allocation363_spill] sm:$0xff]  ;;  %v18662_v63 = vld [vmem:[#allocation870_spill] sm:$0xff]  ;;  %v18663_v13 = vld [vmem:[#allocation364_spill] sm:$0xff] }
 0x517   : > { %v3448_v4 = vadd.f32 %v3447_v38, %v18661_v48  ;;  %v3469_v33 = vadd.f32 %v3468_v14, %v18662_v63  ;;  %v3490_v23 = vadd.f32 %v3489_v60, %v18663_v13  ;;  %v18664_v44 = vld [vmem:[#allocation871_spill] sm:$0xff]  ;;  %v18665_v53 = vld [vmem:[#allocation365_spill] sm:$0xff]  ;;  %v18666_v29 = vld [vmem:[#allocation872_spill] sm:$0xff] }
 0x518   : > { %v3511_v27 = vadd.f32 %v3510_v19, %v18664_v44  ;;  %v3532_v20 = vadd.f32 %v3531_v21, %v18665_v53  ;;  %v3553_v0 = vadd.f32 %v3552_v52, %v18666_v29  ;;  %v18667_v58 = vld [vmem:[#allocation394_spill] sm:$0xff]  ;;  %v18668_v40 = vld [vmem:[#allocation901_spill] sm:$0xff]  ;;  %v18669_v41 = vld [vmem:[#allocation395_spill] sm:$0xff] }
 0x519   : > { %v3407_v11 = vadd.f32 %v3406_v15, %v18667_v58  ;;  %v3428_v36 = vadd.f32 %v3427_v51, %v18668_v40  ;;  %v3449_v28 = vadd.f32 %v3448_v4, %v18669_v41  ;;  %v18670_v39 = vld [vmem:[#allocation902_spill] sm:$0xff]  ;;  %v18671_v34 = vld [vmem:[#allocation396_spill] sm:$0xff]  ;;  %v18672_v48 = vld [vmem:[#allocation903_spill] sm:$0xff] }
 0x51a   : > { %v3470_v42 = vadd.f32 %v3469_v33, %v18670_v39  ;;  %v3491_v38 = vadd.f32 %v3490_v23, %v18671_v34  ;;  %v3512_v14 = vadd.f32 %v3511_v27, %v18672_v48  ;;  %v18673_v63 = vld [vmem:[#allocation397_spill] sm:$0xff]  ;;  %v18674_v13 = vld [vmem:[#allocation904_spill] sm:$0xff]  ;;  %v18675_v44 = vld [vmem:[#allocation426_spill] sm:$0xff] }
 0x51b   : > { %v3533_v60 = vadd.f32 %v3532_v20, %v18673_v63  ;;  %v3554_v19 = vadd.f32 %v3553_v0, %v18674_v13  ;;  %v3408_v21 = vadd.f32 %v3407_v11, %v18675_v44  ;;  %v18676_v53 = vld [vmem:[#allocation933_spill] sm:$0xff]  ;;  %v18677_v29 = vld [vmem:[#allocation427_spill] sm:$0xff]  ;;  %v18678_v58 = vld [vmem:[#allocation934_spill] sm:$0xff] }
 0x51c   : > { %v3429_v52 = vadd.f32 %v3428_v36, %v18676_v53  ;;  %v3450_v15 = vadd.f32 %v3449_v28, %v18677_v29  ;;  %v3471_v51 = vadd.f32 %v3470_v42, %v18678_v58  ;;  %v18679_v40 = vld [vmem:[#allocation428_spill] sm:$0xff]  ;;  %v18680_v41 = vld [vmem:[#allocation935_spill] sm:$0xff]  ;;  %v18681_v39 = vld [vmem:[#allocation429_spill] sm:$0xff] }
 0x51d   : > { %v3492_v4 = vadd.f32 %v3491_v38, %v18679_v40  ;;  %v3513_v33 = vadd.f32 %v3512_v14, %v18680_v41  ;;  %v3534_v23 = vadd.f32 %v3533_v60, %v18681_v39  ;;  %v18682_v34 = vld [vmem:[#allocation936_spill] sm:$0xff]  ;;  %v18683_v48 = vld [vmem:[#allocation458_spill] sm:$0xff]  ;;  %v18685_v13 = vld [vmem:[#allocation459_spill] sm:$0xff] }
 0x51e   : > { %v3555_v27 = vadd.f32 %v3554_v19, %v18682_v34  ;;  %v3409_v20 = vadd.f32 %v3408_v21, %v18683_v48  ;;  %v18684_v63 = vld [vmem:[#allocation964_spill] sm:$0xff]  ;;  %v3451_v11 = vadd.f32 %v3450_v15, %v18685_v13  ;;  %v18686_v44 = vld [vmem:[#allocation965_spill] sm:$0xff]  ;;  %v18688_v29 = vld [vmem:[#allocation966_spill] sm:$0xff] }
 0x51f   : > { %v3430_v0 = vadd.f32 %v3429_v52, %v18684_v63  ;;  %v3472_v36 = vadd.f32 %v3471_v51, %v18686_v44  ;;  %v18687_v53 = vld [vmem:[#allocation460_spill] sm:$0xff]  ;;  %v3514_v42 = vadd.f32 %v3513_v33, %v18688_v29  ;;  %v18689_v58 = vld [vmem:[#allocation461_spill] sm:$0xff]  ;;  %v18690_v40 = vld [vmem:[#allocation967_spill] sm:$0xff] }
 0x520   : > { %v3493_v28 = vadd.f32 %v3492_v4, %v18687_v53  ;;  %v3535_v38 = vadd.f32 %v3534_v23, %v18689_v58  ;;  %v3556_v14 = vadd.f32 %v3555_v27, %v18690_v40  ;;  %v3410_v41 = vrot.slane %v3409_v20, 4 }
 0x521   : > { %v3431_v60 = vrot.slane %v3430_v0, 4  ;;  %v3452_v39 = vrot.slane %v3451_v11, 4  ;;  %v3473_v19 = vrot.slane %v3472_v36, 4  ;;  %v3515_v21 = vrot.slane %v3514_v42, 4 }
 0x522   : > { %v3494_v34 = vrot.slane %v3493_v28, 4  ;;  %v3536_v48 = vrot.slane %v3535_v38, 4  ;;  %v3557_v52 = vrot.slane %v3556_v14, 4  ;;  %v3411_v63 = vadd.f32 %v3410_v41, %v3409_v20 }
 0x523   : > { %v3432_v15 = vadd.f32 %v3431_v60, %v3430_v0  ;;  %v3453_v13 = vadd.f32 %v3452_v39, %v3451_v11  ;;  %v3474_v51 = vadd.f32 %v3473_v19, %v3472_v36  ;;  %v3516_v4 = vadd.f32 %v3515_v21, %v3514_v42 }
 0x524   : > { %v3495_v44 = vadd.f32 %v3494_v34, %v3493_v28  ;;  %v3537_v53 = vadd.f32 %v3536_v48, %v3535_v38  ;;  %v3558_v33 = vadd.f32 %v3557_v52, %v3556_v14  ;;  %v3412_v29 = vrot.slane %v3411_v63, 2 }
 0x525   : > { %v3433_v23 = vrot.slane %v3432_v15, 2  ;;  %v3454_v58 = vrot.slane %v3453_v13, 2  ;;  %v3475_v27 = vrot.slane %v3474_v51, 2  ;;  %v3517_v6 = vrot.slane %v3516_v4, 2 }
 0x526   : > { %v3496_v40 = vrot.slane %v3495_v44, 2  ;;  %v3538_v10 = vrot.slane %v3537_v53, 2  ;;  %v3559_v26 = vrot.slane %v3558_v33, 2  ;;  %v3413_v30 = vadd.f32 %v3412_v29, %v3411_v63 }
 0x527   : > { %v3434_v3 = vadd.f32 %v3433_v23, %v3432_v15  ;;  %v3455_v31 = vadd.f32 %v3454_v58, %v3453_v13  ;;  %v3476_v17 = vadd.f32 %v3475_v27, %v3474_v51  ;;  %v3518_v0 = vadd.f32 %v3517_v6, %v3516_v4  ;;  %v18698_v15 = vld [vmem:[#allocation497_spill] sm:$0xff]  ;;  %v18699_v13 = vld [vmem:[#allocation14_spill] sm:$0xff]  ;;  %v18707_v58 = vld [vmem:[#allocation16_spill] sm:$0xff] }
 0x528   : > { %v3497_v20 = vadd.f32 %v3496_v40, %v3495_v44  ;;  %v3539_v11 = vadd.f32 %v3538_v10, %v3537_v53  ;;  %v3560_v36 = vadd.f32 %v3559_v26, %v3558_v33  ;;  %v3414_v28 = vrot.slane %v3413_v30, 1  ;;  %v18700_v44 = vld [vmem:[#allocation498_spill] sm:$0xff]  ;;  %v18703_v53 = vld [vmem:[#allocation15_spill] sm:$0xff]  ;;  %v18704_v33 = vld [vmem:[#allocation500_spill] sm:$0xff] }
 0x529   : > { %v3435_v42 = vrot.slane %v3434_v3, 1  ;;  %v3456_v38 = vrot.slane %v3455_v31, 1  ;;  %v3477_v14 = vrot.slane %v3476_v17, 1  ;;  %v3519_v60 = vrot.slane %v3518_v0, 1  ;;  %v18706_v23 = vld [vmem:[#allocation501_spill] sm:$0xff]  ;;  %v18708_v40 = vld [vmem:[#allocation502_spill] sm:$0xff] }
 0x52a   : > { %v3498_v41 = vrot.slane %v3497_v20, 1  ;;  %v3540_v39 = vrot.slane %v3539_v11, 1  ;;  %v3561_v19 = vrot.slane %v3560_v36, 1  ;;  %v13581_v34 = vadd.f32 %v3414_v28, %v3413_v30  ;;  %v18701_v30 = vld [vmem:[#allocation550_spill] sm:$0xff] }
 0x52b   : > { %v13583_v21 = vadd.f32 %v3435_v42, %v3434_v3  ;;  %v13585_v48 = vadd.f32 %v3456_v38, %v3455_v31  ;;  %v13587_v52 = vadd.f32 %v3477_v14, %v3476_v17  ;;  %v13591_v6 = vadd.f32 %v3519_v60, %v3518_v0  ;;  %v18702_v3 = vld [vmem:[#allocation499_spill] sm:$0xff]  ;;  %v18712_v42 = vld [vmem:[#allocation504_spill] sm:$0xff]  ;;  %v18713_v38 = vld [vmem:[#allocation553_spill] sm:$0xff] }
 0x52c   : > { %18691 = vst [vmem:[#allocation665_spill] sm:$0xff] %v13581_v34  ;;  %v13589_v63 = vadd.f32 %v3498_v41, %v3497_v20  ;;  %v13593_v26 = vadd.f32 %v3540_v39, %v3539_v11  ;;  %v13595_v10 = vadd.f32 %v3561_v19, %v3560_v36  ;;  %v3563_v51 = vadd.f32 %v18699_v13, %v18698_v15  ;;  %v18705_v17 = vld [vmem:[#allocation551_spill] sm:$0xff]  ;;  %v18709_v20 = vld [vmem:[#allocation552_spill] sm:$0xff]  ;;  %v18711_v36 = vld [vmem:[#allocation17_spill] sm:$0xff] }
 0x52d   : > { %18692 = vst [vmem:[#allocation159_spill] sm:$0xff] %v13585_v48  ;;  %18693 = vst [vmem:[#allocation666_spill] sm:$0xff] %v13587_v52  ;;  %v3584_v4 = vadd.f32 %v18701_v30, %v18700_v44  ;;  %v3605_v31 = vadd.f32 %v18703_v53, %v18702_v3  ;;  %v3626_v29 = vadd.f32 %v18705_v17, %v18704_v33  ;;  %v18710_v11 = vld [vmem:[#allocation503_spill] sm:$0xff]  ;;  %v18714_v41 = vld [vmem:[#allocation46_spill] sm:$0xff] }
 0x52e   : > { %18694 = vst [vmem:[#allocation160_spill] sm:$0xff] %v13589_v63  ;;  %18695 = vst [vmem:[#allocation667_spill] sm:$0xff] %v13591_v6  ;;  %v3647_v27 = vadd.f32 %v18707_v58, %v18706_v23  ;;  %v3668_v0 = vadd.f32 %v18709_v20, %v18708_v40  ;;  %v3689_v28 = vadd.f32 %v18711_v36, %v18710_v11  ;;  %v18715_v39 = vld [vmem:[#allocation574_spill] sm:$0xff]  ;;  %v18716_v15 = vld [vmem:[#allocation47_spill] sm:$0xff] }
 0x52f   : > { %18696 = vst [vmem:[#allocation161_spill] sm:$0xff] %v13593_v26  ;;  %18697 = vst [vmem:[#allocation668_spill] sm:$0xff] %v13595_v10  ;;  %v3710_v14 = vadd.f32 %v18713_v38, %v18712_v42  ;;  %v3564_v60 = vadd.f32 %v3563_v51, %v18714_v41  ;;  %v3585_v19 = vadd.f32 %v3584_v4, %v18715_v39  ;;  %v18717_v44 = vld [vmem:[#allocation575_spill] sm:$0xff]  ;;  %v18718_v3 = vld [vmem:[#allocation48_spill] sm:$0xff] }
 0x530   : > { %v3606_v13 = vadd.f32 %v3605_v31, %v18716_v15  ;;  %v3627_v30 = vadd.f32 %v3626_v29, %v18717_v44  ;;  %v3648_v53 = vadd.f32 %v3647_v27, %v18718_v3  ;;  %v18719_v33 = vld [vmem:[#allocation576_spill] sm:$0xff]  ;;  %v18720_v23 = vld [vmem:[#allocation49_spill] sm:$0xff]  ;;  %v18722_v11 = vld [vmem:[#allocation78_spill] sm:$0xff] }
 0x531   : > { %v3669_v17 = vadd.f32 %v3668_v0, %v18719_v33  ;;  %v3690_v58 = vadd.f32 %v3689_v28, %v18720_v23  ;;  %v18721_v40 = vld [vmem:[#allocation577_spill] sm:$0xff]  ;;  %v3565_v36 = vadd.f32 %v3564_v60, %v18722_v11  ;;  %v18723_v26 = vld [vmem:[#allocation598_spill] sm:$0xff]  ;;  %v18724_v38 = vld [vmem:[#allocation79_spill] sm:$0xff] }
 0x532   : > { %v3711_v20 = vadd.f32 %v3710_v14, %v18721_v40  ;;  %v3586_v42 = vadd.f32 %v3585_v19, %v18723_v26  ;;  %v3607_v51 = vadd.f32 %v3606_v13, %v18724_v38  ;;  %v18725_v41 = vld [vmem:[#allocation599_spill] sm:$0xff]  ;;  %v18726_v39 = vld [vmem:[#allocation80_spill] sm:$0xff]  ;;  %v18728_v44 = vld [vmem:[#allocation81_spill] sm:$0xff] }
 0x533   : > { %v3628_v4 = vadd.f32 %v3627_v30, %v18725_v41  ;;  %v3649_v31 = vadd.f32 %v3648_v53, %v18726_v39  ;;  %v18727_v15 = vld [vmem:[#allocation600_spill] sm:$0xff]  ;;  %v3691_v27 = vadd.f32 %v3690_v58, %v18728_v44  ;;  %v18729_v3 = vld [vmem:[#allocation601_spill] sm:$0xff]  ;;  %v18730_v33 = vld [vmem:[#allocation110_spill] sm:$0xff] }
 0x534   : > { %v3670_v29 = vadd.f32 %v3669_v17, %v18727_v15  ;;  %v3712_v0 = vadd.f32 %v3711_v20, %v18729_v3  ;;  %v3566_v28 = vadd.f32 %v3565_v36, %v18730_v33  ;;  %v18731_v23 = vld [vmem:[#allocation622_spill] sm:$0xff]  ;;  %v18732_v40 = vld [vmem:[#allocation111_spill] sm:$0xff]  ;;  %v18734_v19 = vld [vmem:[#allocation112_spill] sm:$0xff] }
 0x535   : > { %v3587_v14 = vadd.f32 %v3586_v42, %v18731_v23  ;;  %v3608_v60 = vadd.f32 %v3607_v51, %v18732_v40  ;;  %v18733_v11 = vld [vmem:[#allocation623_spill] sm:$0xff]  ;;  %v3650_v13 = vadd.f32 %v3649_v31, %v18734_v19  ;;  %v18735_v38 = vld [vmem:[#allocation624_spill] sm:$0xff]  ;;  %v18736_v41 = vld [vmem:[#allocation113_spill] sm:$0xff] }
 0x536   : > { %v3629_v26 = vadd.f32 %v3628_v4, %v18733_v11  ;;  %v3671_v30 = vadd.f32 %v3670_v29, %v18735_v38  ;;  %v3692_v53 = vadd.f32 %v3691_v27, %v18736_v41  ;;  %v18737_v39 = vld [vmem:[#allocation625_spill] sm:$0xff]  ;;  %v18738_v15 = vld [vmem:[#allocation142_spill] sm:$0xff]  ;;  %v18740_v3 = vld [vmem:[#allocation143_spill] sm:$0xff] }
 0x537   : > { %v3713_v17 = vadd.f32 %v3712_v0, %v18737_v39  ;;  %v3567_v58 = vadd.f32 %v3566_v28, %v18738_v15  ;;  %v18739_v44 = vld [vmem:[#allocation649_spill] sm:$0xff]  ;;  %v3609_v36 = vadd.f32 %v3608_v60, %v18740_v3  ;;  %v18741_v33 = vld [vmem:[#allocation650_spill] sm:$0xff]  ;;  %v18742_v23 = vld [vmem:[#allocation144_spill] sm:$0xff] }
 0x538   : > { %v3588_v20 = vadd.f32 %v3587_v14, %v18739_v44  ;;  %v3630_v42 = vadd.f32 %v3629_v26, %v18741_v33  ;;  %v3651_v51 = vadd.f32 %v3650_v13, %v18742_v23  ;;  %v18743_v40 = vld [vmem:[#allocation651_spill] sm:$0xff]  ;;  %v18744_v11 = vld [vmem:[#allocation145_spill] sm:$0xff]  ;;  %v18745_v19 = vld [vmem:[#allocation652_spill] sm:$0xff] }
 0x539   : > { %v3672_v4 = vadd.f32 %v3671_v30, %v18743_v40  ;;  %v3693_v31 = vadd.f32 %v3692_v53, %v18744_v11  ;;  %v3714_v29 = vadd.f32 %v3713_v17, %v18745_v19  ;;  %v18746_v38 = vld [vmem:[#allocation174_spill] sm:$0xff]  ;;  %v18747_v41 = vld [vmem:[#allocation681_spill] sm:$0xff]  ;;  %v18748_v39 = vld [vmem:[#allocation175_spill] sm:$0xff] }
 0x53a   : > { %v3568_v27 = vadd.f32 %v3567_v58, %v18746_v38  ;;  %v3589_v0 = vadd.f32 %v3588_v20, %v18747_v41  ;;  %v3610_v28 = vadd.f32 %v3609_v36, %v18748_v39  ;;  %v18749_v15 = vld [vmem:[#allocation682_spill] sm:$0xff]  ;;  %v18750_v44 = vld [vmem:[#allocation176_spill] sm:$0xff]  ;;  %v18751_v3 = vld [vmem:[#allocation683_spill] sm:$0xff] }
 0x53b   : > { %v3631_v14 = vadd.f32 %v3630_v42, %v18749_v15  ;;  %v3652_v60 = vadd.f32 %v3651_v51, %v18750_v44  ;;  %v3673_v26 = vadd.f32 %v3672_v4, %v18751_v3  ;;  %v18752_v33 = vld [vmem:[#allocation177_spill] sm:$0xff]  ;;  %v18753_v23 = vld [vmem:[#allocation684_spill] sm:$0xff]  ;;  %v18754_v40 = vld [vmem:[#allocation206_spill] sm:$0xff] }
 0x53c   : > { %v3694_v13 = vadd.f32 %v3693_v31, %v18752_v33  ;;  %v3715_v30 = vadd.f32 %v3714_v29, %v18753_v23  ;;  %v3569_v53 = vadd.f32 %v3568_v27, %v18754_v40  ;;  %v18755_v11 = vld [vmem:[#allocation713_spill] sm:$0xff]  ;;  %v18756_v19 = vld [vmem:[#allocation207_spill] sm:$0xff]  ;;  %v18757_v38 = vld [vmem:[#allocation714_spill] sm:$0xff] }
 0x53d   : > { %v3590_v17 = vadd.f32 %v3589_v0, %v18755_v11  ;;  %v3611_v58 = vadd.f32 %v3610_v28, %v18756_v19  ;;  %v3632_v20 = vadd.f32 %v3631_v14, %v18757_v38  ;;  %v18758_v41 = vld [vmem:[#allocation208_spill] sm:$0xff]  ;;  %v18759_v39 = vld [vmem:[#allocation715_spill] sm:$0xff]  ;;  %v18760_v15 = vld [vmem:[#allocation209_spill] sm:$0xff] }
 0x53e   : > { %v3653_v36 = vadd.f32 %v3652_v60, %v18758_v41  ;;  %v3674_v42 = vadd.f32 %v3673_v26, %v18759_v39  ;;  %v3695_v51 = vadd.f32 %v3694_v13, %v18760_v15  ;;  %v18761_v44 = vld [vmem:[#allocation716_spill] sm:$0xff]  ;;  %v18762_v3 = vld [vmem:[#allocation238_spill] sm:$0xff]  ;;  %v18763_v33 = vld [vmem:[#allocation745_spill] sm:$0xff] }
 0x53f   : > { %v3716_v4 = vadd.f32 %v3715_v30, %v18761_v44  ;;  %v3570_v31 = vadd.f32 %v3569_v53, %v18762_v3  ;;  %v3591_v29 = vadd.f32 %v3590_v17, %v18763_v33  ;;  %v18764_v23 = vld [vmem:[#allocation239_spill] sm:$0xff]  ;;  %v18765_v40 = vld [vmem:[#allocation746_spill] sm:$0xff]  ;;  %v18766_v11 = vld [vmem:[#allocation240_spill] sm:$0xff] }
 0x540   : > { %v3612_v27 = vadd.f32 %v3611_v58, %v18764_v23  ;;  %v3633_v0 = vadd.f32 %v3632_v20, %v18765_v40  ;;  %v3654_v28 = vadd.f32 %v3653_v36, %v18766_v11  ;;  %v18767_v19 = vld [vmem:[#allocation747_spill] sm:$0xff]  ;;  %v18768_v38 = vld [vmem:[#allocation241_spill] sm:$0xff]  ;;  %v18769_v41 = vld [vmem:[#allocation748_spill] sm:$0xff] }
 0x541   : > { %v3675_v14 = vadd.f32 %v3674_v42, %v18767_v19  ;;  %v3696_v60 = vadd.f32 %v3695_v51, %v18768_v38  ;;  %v3717_v26 = vadd.f32 %v3716_v4, %v18769_v41  ;;  %v18770_v39 = vld [vmem:[#allocation270_spill] sm:$0xff]  ;;  %v18771_v15 = vld [vmem:[#allocation777_spill] sm:$0xff]  ;;  %v18772_v44 = vld [vmem:[#allocation271_spill] sm:$0xff] }
 0x542   : > { %v3571_v13 = vadd.f32 %v3570_v31, %v18770_v39  ;;  %v3592_v30 = vadd.f32 %v3591_v29, %v18771_v15  ;;  %v3613_v53 = vadd.f32 %v3612_v27, %v18772_v44  ;;  %v18773_v3 = vld [vmem:[#allocation778_spill] sm:$0xff]  ;;  %v18774_v33 = vld [vmem:[#allocation272_spill] sm:$0xff]  ;;  %v18775_v23 = vld [vmem:[#allocation779_spill] sm:$0xff] }
 0x543   : > { %v3634_v17 = vadd.f32 %v3633_v0, %v18773_v3  ;;  %v3655_v58 = vadd.f32 %v3654_v28, %v18774_v33  ;;  %v3676_v20 = vadd.f32 %v3675_v14, %v18775_v23  ;;  %v18776_v40 = vld [vmem:[#allocation273_spill] sm:$0xff]  ;;  %v18777_v11 = vld [vmem:[#allocation780_spill] sm:$0xff]  ;;  %v18778_v19 = vld [vmem:[#allocation302_spill] sm:$0xff] }
 0x544   : > { %v3697_v36 = vadd.f32 %v3696_v60, %v18776_v40  ;;  %v3718_v42 = vadd.f32 %v3717_v26, %v18777_v11  ;;  %v3572_v51 = vadd.f32 %v3571_v13, %v18778_v19  ;;  %v18779_v38 = vld [vmem:[#allocation809_spill] sm:$0xff]  ;;  %v18780_v41 = vld [vmem:[#allocation303_spill] sm:$0xff]  ;;  %v18781_v39 = vld [vmem:[#allocation810_spill] sm:$0xff] }
 0x545   : > { %v3593_v4 = vadd.f32 %v3592_v30, %v18779_v38  ;;  %v3614_v31 = vadd.f32 %v3613_v53, %v18780_v41  ;;  %v3635_v29 = vadd.f32 %v3634_v17, %v18781_v39  ;;  %v18782_v15 = vld [vmem:[#allocation304_spill] sm:$0xff]  ;;  %v18783_v44 = vld [vmem:[#allocation811_spill] sm:$0xff]  ;;  %v18784_v3 = vld [vmem:[#allocation305_spill] sm:$0xff] }
 0x546   : > { %v3656_v27 = vadd.f32 %v3655_v58, %v18782_v15  ;;  %v3677_v0 = vadd.f32 %v3676_v20, %v18783_v44  ;;  %v3698_v28 = vadd.f32 %v3697_v36, %v18784_v3  ;;  %v18785_v33 = vld [vmem:[#allocation812_spill] sm:$0xff]  ;;  %v18786_v23 = vld [vmem:[#allocation334_spill] sm:$0xff]  ;;  %v18787_v40 = vld [vmem:[#allocation841_spill] sm:$0xff] }
 0x547   : > { %v3719_v14 = vadd.f32 %v3718_v42, %v18785_v33  ;;  %v3573_v60 = vadd.f32 %v3572_v51, %v18786_v23  ;;  %v3594_v26 = vadd.f32 %v3593_v4, %v18787_v40  ;;  %v18788_v11 = vld [vmem:[#allocation335_spill] sm:$0xff]  ;;  %v18789_v19 = vld [vmem:[#allocation842_spill] sm:$0xff]  ;;  %v18790_v38 = vld [vmem:[#allocation336_spill] sm:$0xff] }
 0x548   : > { %v3615_v13 = vadd.f32 %v3614_v31, %v18788_v11  ;;  %v3636_v30 = vadd.f32 %v3635_v29, %v18789_v19  ;;  %v3657_v53 = vadd.f32 %v3656_v27, %v18790_v38  ;;  %v18791_v41 = vld [vmem:[#allocation843_spill] sm:$0xff]  ;;  %v18792_v39 = vld [vmem:[#allocation337_spill] sm:$0xff]  ;;  %v18793_v15 = vld [vmem:[#allocation844_spill] sm:$0xff] }
 0x549   : > { %v3678_v17 = vadd.f32 %v3677_v0, %v18791_v41  ;;  %v3699_v58 = vadd.f32 %v3698_v28, %v18792_v39  ;;  %v3720_v20 = vadd.f32 %v3719_v14, %v18793_v15  ;;  %v18794_v44 = vld [vmem:[#allocation366_spill] sm:$0xff]  ;;  %v18795_v3 = vld [vmem:[#allocation873_spill] sm:$0xff]  ;;  %v18796_v33 = vld [vmem:[#allocation367_spill] sm:$0xff] }
 0x54a   : > { %v3574_v36 = vadd.f32 %v3573_v60, %v18794_v44  ;;  %v3595_v42 = vadd.f32 %v3594_v26, %v18795_v3  ;;  %v3616_v51 = vadd.f32 %v3615_v13, %v18796_v33  ;;  %v18797_v23 = vld [vmem:[#allocation874_spill] sm:$0xff]  ;;  %v18798_v40 = vld [vmem:[#allocation368_spill] sm:$0xff]  ;;  %v18799_v11 = vld [vmem:[#allocation875_spill] sm:$0xff] }
 0x54b   : > { %v3637_v4 = vadd.f32 %v3636_v30, %v18797_v23  ;;  %v3658_v31 = vadd.f32 %v3657_v53, %v18798_v40  ;;  %v3679_v29 = vadd.f32 %v3678_v17, %v18799_v11  ;;  %v18800_v19 = vld [vmem:[#allocation369_spill] sm:$0xff]  ;;  %v18801_v38 = vld [vmem:[#allocation876_spill] sm:$0xff]  ;;  %v18802_v41 = vld [vmem:[#allocation398_spill] sm:$0xff] }
 0x54c   : > { %v3700_v27 = vadd.f32 %v3699_v58, %v18800_v19  ;;  %v3721_v0 = vadd.f32 %v3720_v20, %v18801_v38  ;;  %v3575_v28 = vadd.f32 %v3574_v36, %v18802_v41  ;;  %v18803_v39 = vld [vmem:[#allocation905_spill] sm:$0xff]  ;;  %v18804_v15 = vld [vmem:[#allocation399_spill] sm:$0xff]  ;;  %v18805_v44 = vld [vmem:[#allocation906_spill] sm:$0xff] }
 0x54d   : > { %v3596_v14 = vadd.f32 %v3595_v42, %v18803_v39  ;;  %v3617_v60 = vadd.f32 %v3616_v51, %v18804_v15  ;;  %v3638_v26 = vadd.f32 %v3637_v4, %v18805_v44  ;;  %v18806_v3 = vld [vmem:[#allocation400_spill] sm:$0xff]  ;;  %v18807_v33 = vld [vmem:[#allocation907_spill] sm:$0xff]  ;;  %v18808_v23 = vld [vmem:[#allocation401_spill] sm:$0xff] }
 0x54e   : > { %v3659_v13 = vadd.f32 %v3658_v31, %v18806_v3  ;;  %v3680_v30 = vadd.f32 %v3679_v29, %v18807_v33  ;;  %v3701_v53 = vadd.f32 %v3700_v27, %v18808_v23  ;;  %v18809_v40 = vld [vmem:[#allocation908_spill] sm:$0xff]  ;;  %v18810_v11 = vld [vmem:[#allocation430_spill] sm:$0xff]  ;;  %v18811_v19 = vld [vmem:[#allocation937_spill] sm:$0xff] }
 0x54f   : > { %v3722_v17 = vadd.f32 %v3721_v0, %v18809_v40  ;;  %v3576_v58 = vadd.f32 %v3575_v28, %v18810_v11  ;;  %v3597_v20 = vadd.f32 %v3596_v14, %v18811_v19  ;;  %v18812_v38 = vld [vmem:[#allocation431_spill] sm:$0xff]  ;;  %v18813_v41 = vld [vmem:[#allocation938_spill] sm:$0xff]  ;;  %v18814_v39 = vld [vmem:[#allocation432_spill] sm:$0xff] }
 0x550   : > { %v3618_v36 = vadd.f32 %v3617_v60, %v18812_v38  ;;  %v3639_v42 = vadd.f32 %v3638_v26, %v18813_v41  ;;  %v3660_v51 = vadd.f32 %v3659_v13, %v18814_v39  ;;  %v18815_v15 = vld [vmem:[#allocation939_spill] sm:$0xff]  ;;  %v18816_v44 = vld [vmem:[#allocation433_spill] sm:$0xff]  ;;  %v18817_v3 = vld [vmem:[#allocation940_spill] sm:$0xff] }
 0x551   : > { %v3681_v4 = vadd.f32 %v3680_v30, %v18815_v15  ;;  %v3702_v31 = vadd.f32 %v3701_v53, %v18816_v44  ;;  %v3723_v29 = vadd.f32 %v3722_v17, %v18817_v3  ;;  %v18818_v33 = vld [vmem:[#allocation462_spill] sm:$0xff]  ;;  %v18819_v23 = vld [vmem:[#allocation968_spill] sm:$0xff]  ;;  %v18820_v40 = vld [vmem:[#allocation463_spill] sm:$0xff] }
 0x552   : > { %v3577_v27 = vadd.f32 %v3576_v58, %v18818_v33  ;;  %v3598_v0 = vadd.f32 %v3597_v20, %v18819_v23  ;;  %v3619_v28 = vadd.f32 %v3618_v36, %v18820_v40  ;;  %v18821_v11 = vld [vmem:[#allocation969_spill] sm:$0xff]  ;;  %v18822_v19 = vld [vmem:[#allocation464_spill] sm:$0xff]  ;;  %v18823_v38 = vld [vmem:[#allocation970_spill] sm:$0xff] }
 0x553   : > { %v3640_v14 = vadd.f32 %v3639_v42, %v18821_v11  ;;  %v3661_v60 = vadd.f32 %v3660_v51, %v18822_v19  ;;  %v3682_v26 = vadd.f32 %v3681_v4, %v18823_v38  ;;  %v3703_v13 = vadd.f32 %v3702_v31, %v12894_v50  ;;  %v18824_v41 = vld [vmem:[#allocation465_spill] sm:$0xff] }
 0x554   : > { %v3724_v30 = vadd.f32 %v3723_v29, %v18824_v41  ;;  %v3578_v39 = vrot.slane %v3577_v27, 4  ;;  %v3599_v53 = vrot.slane %v3598_v0, 4  ;;  %v3620_v15 = vrot.slane %v3619_v28, 4 }
 0x555   : > { %v3641_v17 = vrot.slane %v3640_v14, 4  ;;  %v3662_v44 = vrot.slane %v3661_v60, 4  ;;  %v3683_v58 = vrot.slane %v3682_v26, 4  ;;  %v3704_v3 = vrot.slane %v3703_v13, 4 }
 0x556   : > { %v3725_v20 = vrot.slane %v3724_v30, 4  ;;  %v3579_v33 = vadd.f32 %v3578_v39, %v3577_v27  ;;  %v3600_v36 = vadd.f32 %v3599_v53, %v3598_v0  ;;  %v3621_v23 = vadd.f32 %v3620_v15, %v3619_v28 }
 0x557   : > { %v3642_v42 = vadd.f32 %v3641_v17, %v3640_v14  ;;  %v3663_v40 = vadd.f32 %v3662_v44, %v3661_v60  ;;  %v3684_v51 = vadd.f32 %v3683_v58, %v3682_v26  ;;  %v3705_v11 = vadd.f32 %v3704_v3, %v3703_v13 }
 0x558   : > { %v3726_v4 = vadd.f32 %v3725_v20, %v3724_v30  ;;  %v3580_v19 = vrot.slane %v3579_v33, 2  ;;  %v3601_v50 = vrot.slane %v3600_v36, 2  ;;  %v3622_v31 = vrot.slane %v3621_v23, 2 }
 0x559   : > { %v3643_v29 = vrot.slane %v3642_v42, 2  ;;  %v3664_v38 = vrot.slane %v3663_v40, 2  ;;  %v3685_v41 = vrot.slane %v3684_v51, 2  ;;  %v3706_v10 = vrot.slane %v3705_v11, 2 }
 0x55a   : > { %v3727_v63 = vrot.slane %v3726_v4, 2  ;;  %v3581_v6 = vadd.f32 %v3580_v19, %v3579_v33  ;;  %v3602_v48 = vadd.f32 %v3601_v50, %v3600_v36  ;;  %v3623_v52 = vadd.f32 %v3622_v31, %v3621_v23  ;;  %v18831_v23 = vld [vmem:[#allocation505_spill] sm:$0xff]  ;;  %v18837_v19 = vld [vmem:[#allocation508_spill] sm:$0xff] }
 0x55b   : > { %v3644_v34 = vadd.f32 %v3643_v29, %v3642_v42  ;;  %v3665_v27 = vadd.f32 %v3664_v38, %v3663_v40  ;;  %v3686_v0 = vadd.f32 %v3685_v41, %v3684_v51  ;;  %v3707_v28 = vadd.f32 %v3706_v10, %v3705_v11  ;;  %v18832_v42 = vld [vmem:[#allocation18_spill] sm:$0xff]  ;;  %v18839_v31 = vld [vmem:[#allocation509_spill] sm:$0xff]  ;;  %v18840_v29 = vld [vmem:[#allocation20_spill] sm:$0xff] }
 0x55c   : > { %v3728_v14 = vadd.f32 %v3727_v63, %v3726_v4  ;;  %v3582_v60 = vrot.slane %v3581_v6, 1  ;;  %v3603_v26 = vrot.slane %v3602_v48, 1  ;;  %v3624_v13 = vrot.slane %v3623_v52, 1  ;;  %v18833_v51 = vld [vmem:[#allocation506_spill] sm:$0xff]  ;;  %v18836_v4 = vld [vmem:[#allocation19_spill] sm:$0xff] }
 0x55d   : > { %v3645_v30 = vrot.slane %v3644_v34, 1  ;;  %v3666_v39 = vrot.slane %v3665_v27, 1  ;;  %v3687_v53 = vrot.slane %v3686_v0, 1  ;;  %v3708_v15 = vrot.slane %v3707_v28, 1  ;;  %v18841_v41 = vld [vmem:[#allocation510_spill] sm:$0xff] }
 0x55e   : > { %v3729_v17 = vrot.slane %v3728_v14, 1  ;;  %v13725_v44 = vadd.f32 %v3582_v60, %v3581_v6  ;;  %v13727_v58 = vadd.f32 %v3603_v26, %v3602_v48  ;;  %v13729_v3 = vadd.f32 %v3624_v13, %v3623_v52  ;;  %v18834_v6 = vld [vmem:[#allocation554_spill] sm:$0xff]  ;;  %v18835_v48 = vld [vmem:[#allocation507_spill] sm:$0xff]  ;;  %v18845_v26 = vld [vmem:[#allocation512_spill] sm:$0xff] }
 0x55f   : > { %v13731_v20 = vadd.f32 %v3645_v30, %v3644_v34  ;;  %v13733_v33 = vadd.f32 %v3666_v39, %v3665_v27  ;;  %v13735_v10 = vadd.f32 %v3687_v53, %v3686_v0  ;;  %v13737_v63 = vadd.f32 %v3708_v15, %v3707_v28  ;;  %v18838_v34 = vld [vmem:[#allocation555_spill] sm:$0xff]  ;;  %v18842_v27 = vld [vmem:[#allocation556_spill] sm:$0xff]  ;;  %v18846_v13 = vld [vmem:[#allocation557_spill] sm:$0xff] }
 0x560   : > { %18825 = vst [vmem:[#allocation190_spill] sm:$0xff] %v13729_v3  ;;  %v13739_v36 = vadd.f32 %v3729_v17, %v3728_v14  ;;  %v3731_v40 = vadd.f32 %v18832_v42, %v18831_v23  ;;  %v3752_v11 = vadd.f32 %v18834_v6, %v18833_v51  ;;  %v3773_v52 = vadd.f32 %v18836_v4, %v18835_v48  ;;  %v18843_v28 = vld [vmem:[#allocation511_spill] sm:$0xff]  ;;  %v18844_v14 = vld [vmem:[#allocation21_spill] sm:$0xff]  ;;  %v18847_v39 = vld [vmem:[#allocation50_spill] sm:$0xff] }
 0x561   : > { %18826 = vst [vmem:[#allocation697_spill] sm:$0xff] %v13731_v20  ;;  %18827 = vst [vmem:[#allocation191_spill] sm:$0xff] %v13733_v33  ;;  %v3794_v50 = vadd.f32 %v18838_v34, %v18837_v19  ;;  %v3815_v38 = vadd.f32 %v18840_v29, %v18839_v31  ;;  %v3836_v0 = vadd.f32 %v18842_v27, %v18841_v41  ;;  %v18848_v15 = vld [vmem:[#allocation578_spill] sm:$0xff]  ;;  %v18849_v23 = vld [vmem:[#allocation51_spill] sm:$0xff] }
 0x562   : > { %18828 = vst [vmem:[#allocation698_spill] sm:$0xff] %v13735_v10  ;;  %18829 = vst [vmem:[#allocation192_spill] sm:$0xff] %v13737_v63  ;;  %v3857_v60 = vadd.f32 %v18844_v14, %v18843_v28  ;;  %v3878_v30 = vadd.f32 %v18846_v13, %v18845_v26  ;;  %v3732_v53 = vadd.f32 %v3731_v40, %v18847_v39  ;;  %v18850_v51 = vld [vmem:[#allocation579_spill] sm:$0xff]  ;;  %v18851_v48 = vld [vmem:[#allocation52_spill] sm:$0xff] }
 0x563   : > { %18830 = vst [vmem:[#allocation699_spill] sm:$0xff] %v13739_v36  ;;  %v3753_v17 = vadd.f32 %v3752_v11, %v18848_v15  ;;  %v3774_v42 = vadd.f32 %v3773_v52, %v18849_v23  ;;  %v3795_v6 = vadd.f32 %v3794_v50, %v18850_v51  ;;  %v3816_v4 = vadd.f32 %v3815_v38, %v18851_v48  ;;  %v18852_v19 = vld [vmem:[#allocation580_spill] sm:$0xff]  ;;  %v18853_v31 = vld [vmem:[#allocation53_spill] sm:$0xff]  ;;  %v18855_v28 = vld [vmem:[#allocation82_spill] sm:$0xff] }
 0x564   : > { %v3837_v34 = vadd.f32 %v3836_v0, %v18852_v19  ;;  %v3858_v29 = vadd.f32 %v3857_v60, %v18853_v31  ;;  %v18854_v41 = vld [vmem:[#allocation581_spill] sm:$0xff]  ;;  %v3733_v14 = vadd.f32 %v3732_v53, %v18855_v28  ;;  %v18856_v63 = vld [vmem:[#allocation602_spill] sm:$0xff]  ;;  %v18857_v13 = vld [vmem:[#allocation83_spill] sm:$0xff] }
 0x565   : > { %v3879_v27 = vadd.f32 %v3878_v30, %v18854_v41  ;;  %v3754_v26 = vadd.f32 %v3753_v17, %v18856_v63  ;;  %v3775_v40 = vadd.f32 %v3774_v42, %v18857_v13  ;;  %v18858_v39 = vld [vmem:[#allocation603_spill] sm:$0xff]  ;;  %v18859_v15 = vld [vmem:[#allocation84_spill] sm:$0xff]  ;;  %v18861_v51 = vld [vmem:[#allocation85_spill] sm:$0xff] }
 0x566   : > { %v3796_v11 = vadd.f32 %v3795_v6, %v18858_v39  ;;  %v3817_v52 = vadd.f32 %v3816_v4, %v18859_v15  ;;  %v18860_v23 = vld [vmem:[#allocation604_spill] sm:$0xff]  ;;  %v3859_v38 = vadd.f32 %v3858_v29, %v18861_v51  ;;  %v18862_v48 = vld [vmem:[#allocation605_spill] sm:$0xff]  ;;  %v18863_v19 = vld [vmem:[#allocation114_spill] sm:$0xff] }
 0x567   : > { %v3838_v50 = vadd.f32 %v3837_v34, %v18860_v23  ;;  %v3880_v0 = vadd.f32 %v3879_v27, %v18862_v48  ;;  %v3734_v60 = vadd.f32 %v3733_v14, %v18863_v19  ;;  %v18864_v31 = vld [vmem:[#allocation626_spill] sm:$0xff]  ;;  %v18865_v41 = vld [vmem:[#allocation115_spill] sm:$0xff]  ;;  %v18867_v17 = vld [vmem:[#allocation116_spill] sm:$0xff] }
 0x568   : > { %v3755_v30 = vadd.f32 %v3754_v26, %v18864_v31  ;;  %v3776_v53 = vadd.f32 %v3775_v40, %v18865_v41  ;;  %v18866_v28 = vld [vmem:[#allocation627_spill] sm:$0xff]  ;;  %v3818_v42 = vadd.f32 %v3817_v52, %v18867_v17  ;;  %v18868_v13 = vld [vmem:[#allocation628_spill] sm:$0xff]  ;;  %v18869_v39 = vld [vmem:[#allocation117_spill] sm:$0xff] }
 0x569   : > { %v3797_v63 = vadd.f32 %v3796_v11, %v18866_v28  ;;  %v3839_v6 = vadd.f32 %v3838_v50, %v18868_v13  ;;  %v3860_v4 = vadd.f32 %v3859_v38, %v18869_v39  ;;  %v18870_v15 = vld [vmem:[#allocation629_spill] sm:$0xff]  ;;  %v18871_v23 = vld [vmem:[#allocation146_spill] sm:$0xff]  ;;  %v18873_v48 = vld [vmem:[#allocation147_spill] sm:$0xff] }
 0x56a   : > { %v3881_v34 = vadd.f32 %v3880_v0, %v18870_v15  ;;  %v3735_v29 = vadd.f32 %v3734_v60, %v18871_v23  ;;  %v18872_v51 = vld [vmem:[#allocation653_spill] sm:$0xff]  ;;  %v3777_v14 = vadd.f32 %v3776_v53, %v18873_v48  ;;  %v18874_v19 = vld [vmem:[#allocation654_spill] sm:$0xff]  ;;  %v18875_v31 = vld [vmem:[#allocation148_spill] sm:$0xff] }
 0x56b   : > { %v3756_v27 = vadd.f32 %v3755_v30, %v18872_v51  ;;  %v3798_v26 = vadd.f32 %v3797_v63, %v18874_v19  ;;  %v3819_v40 = vadd.f32 %v3818_v42, %v18875_v31  ;;  %v18876_v41 = vld [vmem:[#allocation655_spill] sm:$0xff]  ;;  %v18877_v28 = vld [vmem:[#allocation149_spill] sm:$0xff]  ;;  %v18878_v17 = vld [vmem:[#allocation656_spill] sm:$0xff] }
 0x56c   : > { %v3840_v11 = vadd.f32 %v3839_v6, %v18876_v41  ;;  %v3861_v52 = vadd.f32 %v3860_v4, %v18877_v28  ;;  %v3882_v50 = vadd.f32 %v3881_v34, %v18878_v17  ;;  %v18879_v13 = vld [vmem:[#allocation178_spill] sm:$0xff]  ;;  %v18880_v39 = vld [vmem:[#allocation685_spill] sm:$0xff]  ;;  %v18881_v15 = vld [vmem:[#allocation179_spill] sm:$0xff] }
 0x56d   : > { %v3736_v38 = vadd.f32 %v3735_v29, %v18879_v13  ;;  %v3757_v0 = vadd.f32 %v3756_v27, %v18880_v39  ;;  %v3778_v60 = vadd.f32 %v3777_v14, %v18881_v15  ;;  %v18882_v23 = vld [vmem:[#allocation686_spill] sm:$0xff]  ;;  %v18883_v51 = vld [vmem:[#allocation180_spill] sm:$0xff]  ;;  %v18884_v48 = vld [vmem:[#allocation687_spill] sm:$0xff] }
 0x56e   : > { %v3799_v30 = vadd.f32 %v3798_v26, %v18882_v23  ;;  %v3820_v53 = vadd.f32 %v3819_v40, %v18883_v51  ;;  %v3841_v63 = vadd.f32 %v3840_v11, %v18884_v48  ;;  %v18885_v19 = vld [vmem:[#allocation181_spill] sm:$0xff]  ;;  %v18886_v31 = vld [vmem:[#allocation688_spill] sm:$0xff]  ;;  %v18887_v41 = vld [vmem:[#allocation210_spill] sm:$0xff] }
 0x56f   : > { %v3862_v42 = vadd.f32 %v3861_v52, %v18885_v19  ;;  %v3883_v6 = vadd.f32 %v3882_v50, %v18886_v31  ;;  %v3737_v4 = vadd.f32 %v3736_v38, %v18887_v41  ;;  %v18888_v28 = vld [vmem:[#allocation717_spill] sm:$0xff]  ;;  %v18889_v17 = vld [vmem:[#allocation211_spill] sm:$0xff]  ;;  %v18890_v13 = vld [vmem:[#allocation718_spill] sm:$0xff] }
 0x570   : > { %v3758_v34 = vadd.f32 %v3757_v0, %v18888_v28  ;;  %v3779_v29 = vadd.f32 %v3778_v60, %v18889_v17  ;;  %v3800_v27 = vadd.f32 %v3799_v30, %v18890_v13  ;;  %v18891_v39 = vld [vmem:[#allocation212_spill] sm:$0xff]  ;;  %v18892_v15 = vld [vmem:[#allocation719_spill] sm:$0xff]  ;;  %v18893_v23 = vld [vmem:[#allocation213_spill] sm:$0xff] }
 0x571   : > { %v3821_v14 = vadd.f32 %v3820_v53, %v18891_v39  ;;  %v3842_v26 = vadd.f32 %v3841_v63, %v18892_v15  ;;  %v3863_v40 = vadd.f32 %v3862_v42, %v18893_v23  ;;  %v18894_v51 = vld [vmem:[#allocation720_spill] sm:$0xff]  ;;  %v18895_v48 = vld [vmem:[#allocation242_spill] sm:$0xff]  ;;  %v18896_v19 = vld [vmem:[#allocation749_spill] sm:$0xff] }
 0x572   : > { %v3884_v11 = vadd.f32 %v3883_v6, %v18894_v51  ;;  %v3738_v52 = vadd.f32 %v3737_v4, %v18895_v48  ;;  %v3759_v50 = vadd.f32 %v3758_v34, %v18896_v19  ;;  %v18897_v31 = vld [vmem:[#allocation243_spill] sm:$0xff]  ;;  %v18898_v41 = vld [vmem:[#allocation750_spill] sm:$0xff]  ;;  %v18899_v28 = vld [vmem:[#allocation244_spill] sm:$0xff] }
 0x573   : > { %v3780_v38 = vadd.f32 %v3779_v29, %v18897_v31  ;;  %v3801_v0 = vadd.f32 %v3800_v27, %v18898_v41  ;;  %v3822_v60 = vadd.f32 %v3821_v14, %v18899_v28  ;;  %v18900_v17 = vld [vmem:[#allocation751_spill] sm:$0xff]  ;;  %v18901_v13 = vld [vmem:[#allocation245_spill] sm:$0xff]  ;;  %v18902_v39 = vld [vmem:[#allocation752_spill] sm:$0xff] }
 0x574   : > { %v3843_v30 = vadd.f32 %v3842_v26, %v18900_v17  ;;  %v3864_v53 = vadd.f32 %v3863_v40, %v18901_v13  ;;  %v3885_v63 = vadd.f32 %v3884_v11, %v18902_v39  ;;  %v18903_v15 = vld [vmem:[#allocation274_spill] sm:$0xff]  ;;  %v18904_v23 = vld [vmem:[#allocation781_spill] sm:$0xff]  ;;  %v18905_v51 = vld [vmem:[#allocation275_spill] sm:$0xff] }
 0x575   : > { %v3739_v42 = vadd.f32 %v3738_v52, %v18903_v15  ;;  %v3760_v6 = vadd.f32 %v3759_v50, %v18904_v23  ;;  %v3781_v4 = vadd.f32 %v3780_v38, %v18905_v51  ;;  %v18906_v48 = vld [vmem:[#allocation782_spill] sm:$0xff]  ;;  %v18907_v19 = vld [vmem:[#allocation276_spill] sm:$0xff]  ;;  %v18908_v31 = vld [vmem:[#allocation783_spill] sm:$0xff] }
 0x576   : > { %v3802_v34 = vadd.f32 %v3801_v0, %v18906_v48  ;;  %v3823_v29 = vadd.f32 %v3822_v60, %v18907_v19  ;;  %v3844_v27 = vadd.f32 %v3843_v30, %v18908_v31  ;;  %v18909_v41 = vld [vmem:[#allocation277_spill] sm:$0xff]  ;;  %v18910_v28 = vld [vmem:[#allocation784_spill] sm:$0xff]  ;;  %v18911_v17 = vld [vmem:[#allocation306_spill] sm:$0xff] }
 0x577   : > { %v3865_v14 = vadd.f32 %v3864_v53, %v18909_v41  ;;  %v3886_v26 = vadd.f32 %v3885_v63, %v18910_v28  ;;  %v3740_v40 = vadd.f32 %v3739_v42, %v18911_v17  ;;  %v18912_v13 = vld [vmem:[#allocation813_spill] sm:$0xff]  ;;  %v18913_v39 = vld [vmem:[#allocation307_spill] sm:$0xff]  ;;  %v18914_v15 = vld [vmem:[#allocation814_spill] sm:$0xff] }
 0x578   : > { %v3761_v11 = vadd.f32 %v3760_v6, %v18912_v13  ;;  %v3782_v52 = vadd.f32 %v3781_v4, %v18913_v39  ;;  %v3803_v50 = vadd.f32 %v3802_v34, %v18914_v15  ;;  %v18915_v23 = vld [vmem:[#allocation308_spill] sm:$0xff]  ;;  %v18916_v51 = vld [vmem:[#allocation815_spill] sm:$0xff]  ;;  %v18917_v48 = vld [vmem:[#allocation309_spill] sm:$0xff] }
 0x579   : > { %v3824_v38 = vadd.f32 %v3823_v29, %v18915_v23  ;;  %v3845_v0 = vadd.f32 %v3844_v27, %v18916_v51  ;;  %v3866_v60 = vadd.f32 %v3865_v14, %v18917_v48  ;;  %v18918_v19 = vld [vmem:[#allocation816_spill] sm:$0xff]  ;;  %v18919_v31 = vld [vmem:[#allocation338_spill] sm:$0xff]  ;;  %v18920_v41 = vld [vmem:[#allocation845_spill] sm:$0xff] }
 0x57a   : > { %v3887_v30 = vadd.f32 %v3886_v26, %v18918_v19  ;;  %v3741_v53 = vadd.f32 %v3740_v40, %v18919_v31  ;;  %v3762_v63 = vadd.f32 %v3761_v11, %v18920_v41  ;;  %v18921_v28 = vld [vmem:[#allocation339_spill] sm:$0xff]  ;;  %v18922_v17 = vld [vmem:[#allocation846_spill] sm:$0xff]  ;;  %v18923_v13 = vld [vmem:[#allocation340_spill] sm:$0xff] }
 0x57b   : > { %v3783_v42 = vadd.f32 %v3782_v52, %v18921_v28  ;;  %v3804_v6 = vadd.f32 %v3803_v50, %v18922_v17  ;;  %v3825_v4 = vadd.f32 %v3824_v38, %v18923_v13  ;;  %v18924_v39 = vld [vmem:[#allocation847_spill] sm:$0xff]  ;;  %v18925_v15 = vld [vmem:[#allocation341_spill] sm:$0xff]  ;;  %v18926_v23 = vld [vmem:[#allocation848_spill] sm:$0xff] }
 0x57c   : > { %v3846_v34 = vadd.f32 %v3845_v0, %v18924_v39  ;;  %v3867_v29 = vadd.f32 %v3866_v60, %v18925_v15  ;;  %v3888_v27 = vadd.f32 %v3887_v30, %v18926_v23  ;;  %v18927_v51 = vld [vmem:[#allocation370_spill] sm:$0xff]  ;;  %v18928_v48 = vld [vmem:[#allocation877_spill] sm:$0xff]  ;;  %v18929_v19 = vld [vmem:[#allocation371_spill] sm:$0xff] }
 0x57d   : > { %v3742_v14 = vadd.f32 %v3741_v53, %v18927_v51  ;;  %v3763_v26 = vadd.f32 %v3762_v63, %v18928_v48  ;;  %v3784_v40 = vadd.f32 %v3783_v42, %v18929_v19  ;;  %v18930_v31 = vld [vmem:[#allocation878_spill] sm:$0xff]  ;;  %v18931_v41 = vld [vmem:[#allocation372_spill] sm:$0xff]  ;;  %v18932_v28 = vld [vmem:[#allocation879_spill] sm:$0xff] }
 0x57e   : > { %v3805_v11 = vadd.f32 %v3804_v6, %v18930_v31  ;;  %v3826_v52 = vadd.f32 %v3825_v4, %v18931_v41  ;;  %v3847_v50 = vadd.f32 %v3846_v34, %v18932_v28  ;;  %v18933_v17 = vld [vmem:[#allocation373_spill] sm:$0xff]  ;;  %v18934_v13 = vld [vmem:[#allocation880_spill] sm:$0xff]  ;;  %v18935_v39 = vld [vmem:[#allocation402_spill] sm:$0xff] }
 0x57f   : > { %v3868_v38 = vadd.f32 %v3867_v29, %v18933_v17  ;;  %v3889_v0 = vadd.f32 %v3888_v27, %v18934_v13  ;;  %v3743_v60 = vadd.f32 %v3742_v14, %v18935_v39  ;;  %v18936_v15 = vld [vmem:[#allocation909_spill] sm:$0xff]  ;;  %v18937_v23 = vld [vmem:[#allocation403_spill] sm:$0xff]  ;;  %v18938_v51 = vld [vmem:[#allocation910_spill] sm:$0xff] }
 0x580   : > { %v3764_v30 = vadd.f32 %v3763_v26, %v18936_v15  ;;  %v3785_v53 = vadd.f32 %v3784_v40, %v18937_v23  ;;  %v3806_v63 = vadd.f32 %v3805_v11, %v18938_v51  ;;  %v18939_v48 = vld [vmem:[#allocation404_spill] sm:$0xff]  ;;  %v18940_v19 = vld [vmem:[#allocation911_spill] sm:$0xff]  ;;  %v18941_v31 = vld [vmem:[#allocation405_spill] sm:$0xff] }
 0x581   : > { %v3827_v42 = vadd.f32 %v3826_v52, %v18939_v48  ;;  %v3848_v6 = vadd.f32 %v3847_v50, %v18940_v19  ;;  %v3869_v4 = vadd.f32 %v3868_v38, %v18941_v31  ;;  %v18942_v41 = vld [vmem:[#allocation912_spill] sm:$0xff]  ;;  %v18943_v28 = vld [vmem:[#allocation434_spill] sm:$0xff]  ;;  %v18944_v17 = vld [vmem:[#allocation941_spill] sm:$0xff] }
 0x582   : > { %v3890_v34 = vadd.f32 %v3889_v0, %v18942_v41  ;;  %v3744_v29 = vadd.f32 %v3743_v60, %v18943_v28  ;;  %v3765_v27 = vadd.f32 %v3764_v30, %v18944_v17  ;;  %v18945_v13 = vld [vmem:[#allocation435_spill] sm:$0xff]  ;;  %v18946_v39 = vld [vmem:[#allocation942_spill] sm:$0xff]  ;;  %v18947_v15 = vld [vmem:[#allocation436_spill] sm:$0xff] }
 0x583   : > { %v3786_v14 = vadd.f32 %v3785_v53, %v18945_v13  ;;  %v3807_v26 = vadd.f32 %v3806_v63, %v18946_v39  ;;  %v3828_v40 = vadd.f32 %v3827_v42, %v18947_v15  ;;  %v18948_v23 = vld [vmem:[#allocation943_spill] sm:$0xff]  ;;  %v18949_v51 = vld [vmem:[#allocation437_spill] sm:$0xff]  ;;  %v18950_v48 = vld [vmem:[#allocation944_spill] sm:$0xff] }
 0x584   : > { %v3849_v11 = vadd.f32 %v3848_v6, %v18948_v23  ;;  %v3870_v52 = vadd.f32 %v3869_v4, %v18949_v51  ;;  %v3891_v50 = vadd.f32 %v3890_v34, %v18950_v48  ;;  %v18951_v19 = vld [vmem:[#allocation466_spill] sm:$0xff]  ;;  %v18952_v31 = vld [vmem:[#allocation971_spill] sm:$0xff]  ;;  %v18954_v28 = vld [vmem:[#allocation972_spill] sm:$0xff] }
 0x585   : > { %v3745_v38 = vadd.f32 %v3744_v29, %v18951_v19  ;;  %v3766_v0 = vadd.f32 %v3765_v27, %v18952_v31  ;;  %v3787_v60 = vadd.f32 %v3786_v14, %v12914_v1  ;;  %v18953_v41 = vld [vmem:[#allocation467_spill] sm:$0xff]  ;;  %v3829_v53 = vadd.f32 %v3828_v40, %v18954_v28  ;;  %v18955_v17 = vld [vmem:[#allocation973_spill] sm:$0xff]  ;;  %v18956_v13 = vld [vmem:[#allocation468_spill] sm:$0xff] }
 0x586   : > { %v3808_v30 = vadd.f32 %v3807_v26, %v18953_v41  ;;  %v3850_v63 = vadd.f32 %v3849_v11, %v18955_v17  ;;  %v3871_v42 = vadd.f32 %v3870_v52, %v12934_v47  ;;  %v3892_v6 = vadd.f32 %v3891_v50, %v18956_v13 }
 0x587   : > { %v3746_v39 = vrot.slane %v3745_v38, 4  ;;  %v3767_v4 = vrot.slane %v3766_v0, 4  ;;  %v3788_v15 = vrot.slane %v3787_v60, 4  ;;  %v3830_v23 = vrot.slane %v3829_v53, 4 }
 0x588   : > { %v3809_v34 = vrot.slane %v3808_v30, 4  ;;  %v3851_v29 = vrot.slane %v3850_v63, 4  ;;  %v3872_v51 = vrot.slane %v3871_v42, 4  ;;  %v3893_v27 = vrot.slane %v3892_v6, 4 }
 0x589   : > { %v3747_v48 = vadd.f32 %v3746_v39, %v3745_v38  ;;  %v3768_v1 = vadd.f32 %v3767_v4, %v3766_v0  ;;  %v3789_v14 = vadd.f32 %v3788_v15, %v3787_v60  ;;  %v3831_v19 = vadd.f32 %v3830_v23, %v3829_v53 }
 0x58a   : > { %v3810_v26 = vadd.f32 %v3809_v34, %v3808_v30  ;;  %v3852_v40 = vadd.f32 %v3851_v29, %v3850_v63  ;;  %v3873_v31 = vadd.f32 %v3872_v51, %v3871_v42  ;;  %v3894_v11 = vadd.f32 %v3893_v27, %v3892_v6 }
 0x58b   : > { %v3748_v41 = vrot.slane %v3747_v48, 2  ;;  %v3769_v47 = vrot.slane %v3768_v1, 2  ;;  %v3790_v52 = vrot.slane %v3789_v14, 2  ;;  %v3832_v28 = vrot.slane %v3831_v19, 2 }
 0x58c   : > { %v3811_v50 = vrot.slane %v3810_v26, 2  ;;  %v3853_v17 = vrot.slane %v3852_v40, 2  ;;  %v3874_v13 = vrot.slane %v3873_v31, 2  ;;  %v3895_v36 = vrot.slane %v3894_v11, 2 }
 0x58d   : > { %v3749_v33 = vadd.f32 %v3748_v41, %v3747_v48  ;;  %v3770_v10 = vadd.f32 %v3769_v47, %v3768_v1  ;;  %v3791_v3 = vadd.f32 %v3790_v52, %v3789_v14  ;;  %v3833_v38 = vadd.f32 %v3832_v28, %v3831_v19  ;;  %v18962_v19 = vld [vmem:[#allocation22_spill] sm:$0xff]  ;;  %v18966_v41 = vld [vmem:[#allocation23_spill] sm:$0xff]  ;;  %v18967_v47 = vld [vmem:[#allocation516_spill] sm:$0xff] }
 0x58e   : > { %v3812_v20 = vadd.f32 %v3811_v50, %v3810_v26  ;;  %v3854_v0 = vadd.f32 %v3853_v17, %v3852_v40  ;;  %v3875_v60 = vadd.f32 %v3874_v13, %v3873_v31  ;;  %v3896_v30 = vadd.f32 %v3895_v36, %v3894_v11  ;;  %v18961_v26 = vld [vmem:[#allocation513_spill] sm:$0xff]  ;;  %v18963_v31 = vld [vmem:[#allocation514_spill] sm:$0xff]  ;;  %v18970_v28 = vld [vmem:[#allocation24_spill] sm:$0xff] }
 0x58f   : > { %v3750_v53 = vrot.slane %v3749_v33, 1  ;;  %v3771_v63 = vrot.slane %v3770_v10, 1  ;;  %v3792_v42 = vrot.slane %v3791_v3, 1  ;;  %v3834_v39 = vrot.slane %v3833_v38, 1  ;;  %v18969_v50 = vld [vmem:[#allocation517_spill] sm:$0xff]  ;;  %v18971_v13 = vld [vmem:[#allocation518_spill] sm:$0xff] }
 0x590   : > { %v3813_v6 = vrot.slane %v3812_v20, 1  ;;  %v3855_v4 = vrot.slane %v3854_v0, 1  ;;  %v3876_v15 = vrot.slane %v3875_v60, 1  ;;  %v3897_v34 = vrot.slane %v3896_v30, 1 }
 0x591   : > { %v13869_v23 = vadd.f32 %v3750_v53, %v3749_v33  ;;  %v13871_v29 = vadd.f32 %v3771_v63, %v3770_v10  ;;  %v13873_v51 = vadd.f32 %v3792_v42, %v3791_v3  ;;  %v13877_v48 = vadd.f32 %v3834_v39, %v3833_v38  ;;  %v18964_v33 = vld [vmem:[#allocation558_spill] sm:$0xff]  ;;  %v18965_v10 = vld [vmem:[#allocation515_spill] sm:$0xff]  ;;  %v18972_v38 = vld [vmem:[#allocation560_spill] sm:$0xff] }
 0x592   : > { %v13875_v27 = vadd.f32 %v3813_v6, %v3812_v20  ;;  %v13879_v1 = vadd.f32 %v3855_v4, %v3854_v0  ;;  %v13881_v36 = vadd.f32 %v3876_v15, %v3875_v60  ;;  %v13883_v14 = vadd.f32 %v3897_v34, %v3896_v30  ;;  %v18968_v20 = vld [vmem:[#allocation559_spill] sm:$0xff]  ;;  %v18974_v30 = vld [vmem:[#allocation25_spill] sm:$0xff]  ;;  %v18975_v63 = vld [vmem:[#allocation520_spill] sm:$0xff] }
 0x593   : > { %18957 = vst [vmem:[#allocation193_spill] sm:$0xff] %v13877_v48  ;;  %v3899_v40 = vadd.f32 %v18962_v19, %v18961_v26  ;;  %v3920_v11 = vadd.f32 %v18964_v33, %v18963_v31  ;;  %v3941_v3 = vadd.f32 %v18966_v41, %v18965_v10  ;;  %v3962_v52 = vadd.f32 %v18968_v20, %v18967_v47  ;;  %v18973_v60 = vld [vmem:[#allocation519_spill] sm:$0xff]  ;;  %v18976_v42 = vld [vmem:[#allocation561_spill] sm:$0xff]  ;;  %v18977_v39 = vld [vmem:[#allocation54_spill] sm:$0xff] }
 0x594   : > { %18958 = vst [vmem:[#allocation700_spill] sm:$0xff] %v13879_v1  ;;  %18959 = vst [vmem:[#allocation222_spill] sm:$0xff] %v13881_v36  ;;  %v3983_v17 = vadd.f32 %v18970_v28, %v18969_v50  ;;  %v4004_v0 = vadd.f32 %v18972_v38, %v18971_v13  ;;  %v4025_v53 = vadd.f32 %v18974_v30, %v18973_v60  ;;  %v18978_v15 = vld [vmem:[#allocation582_spill] sm:$0xff]  ;;  %v18979_v26 = vld [vmem:[#allocation55_spill] sm:$0xff] }
 0x595   : > { %18960 = vst [vmem:[#allocation729_spill] sm:$0xff] %v13883_v14  ;;  %v4046_v6 = vadd.f32 %v18976_v42, %v18975_v63  ;;  %v3900_v4 = vadd.f32 %v3899_v40, %v18977_v39  ;;  %v3921_v34 = vadd.f32 %v3920_v11, %v18978_v15  ;;  %v3942_v19 = vadd.f32 %v3941_v3, %v18979_v26  ;;  %v18980_v31 = vld [vmem:[#allocation583_spill] sm:$0xff]  ;;  %v18981_v10 = vld [vmem:[#allocation56_spill] sm:$0xff]  ;;  %v18983_v50 = vld [vmem:[#allocation57_spill] sm:$0xff] }
 0x596   : > { %v3963_v33 = vadd.f32 %v3962_v52, %v18980_v31  ;;  %v3984_v41 = vadd.f32 %v3983_v17, %v18981_v10  ;;  %v18982_v47 = vld [vmem:[#allocation584_spill] sm:$0xff]  ;;  %v4026_v28 = vadd.f32 %v4025_v53, %v18983_v50  ;;  %v18984_v13 = vld [vmem:[#allocation585_spill] sm:$0xff]  ;;  %v18985_v60 = vld [vmem:[#allocation86_spill] sm:$0xff] }
 0x597   : > { %v4005_v20 = vadd.f32 %v4004_v0, %v18982_v47  ;;  %v4047_v38 = vadd.f32 %v4046_v6, %v18984_v13  ;;  %v3901_v30 = vadd.f32 %v3900_v4, %v18985_v60  ;;  %v18986_v36 = vld [vmem:[#allocation606_spill] sm:$0xff]  ;;  %v18987_v42 = vld [vmem:[#allocation87_spill] sm:$0xff]  ;;  %v18989_v15 = vld [vmem:[#allocation88_spill] sm:$0xff] }
 0x598   : > { %v3922_v63 = vadd.f32 %v3921_v34, %v18986_v36  ;;  %v3943_v40 = vadd.f32 %v3942_v19, %v18987_v42  ;;  %v18988_v39 = vld [vmem:[#allocation607_spill] sm:$0xff]  ;;  %v3985_v3 = vadd.f32 %v3984_v41, %v18989_v15  ;;  %v18990_v26 = vld [vmem:[#allocation608_spill] sm:$0xff]  ;;  %v18991_v31 = vld [vmem:[#allocation89_spill] sm:$0xff] }
 0x599   : > { %v3964_v11 = vadd.f32 %v3963_v33, %v18988_v39  ;;  %v4006_v52 = vadd.f32 %v4005_v20, %v18990_v26  ;;  %v4027_v17 = vadd.f32 %v4026_v28, %v18991_v31  ;;  %v18992_v10 = vld [vmem:[#allocation609_spill] sm:$0xff]  ;;  %v18993_v47 = vld [vmem:[#allocation118_spill] sm:$0xff]  ;;  %v18995_v13 = vld [vmem:[#allocation119_spill] sm:$0xff] }
 0x59a   : > { %v4048_v0 = vadd.f32 %v4047_v38, %v18992_v10  ;;  %v3902_v53 = vadd.f32 %v3901_v30, %v18993_v47  ;;  %v18994_v50 = vld [vmem:[#allocation630_spill] sm:$0xff]  ;;  %v3944_v4 = vadd.f32 %v3943_v40, %v18995_v13  ;;  %v18996_v60 = vld [vmem:[#allocation631_spill] sm:$0xff]  ;;  %v18997_v34 = vld [vmem:[#allocation120_spill] sm:$0xff] }
 0x59b   : > { %v3923_v6 = vadd.f32 %v3922_v63, %v18994_v50  ;;  %v3965_v36 = vadd.f32 %v3964_v11, %v18996_v60  ;;  %v3986_v19 = vadd.f32 %v3985_v3, %v18997_v34  ;;  %v18998_v42 = vld [vmem:[#allocation632_spill] sm:$0xff]  ;;  %v18999_v39 = vld [vmem:[#allocation121_spill] sm:$0xff]  ;;  %v19001_v26 = vld [vmem:[#allocation150_spill] sm:$0xff] }
 0x59c   : > { %v4007_v33 = vadd.f32 %v4006_v52, %v18998_v42  ;;  %v4028_v41 = vadd.f32 %v4027_v17, %v18999_v39  ;;  %v19000_v15 = vld [vmem:[#allocation633_spill] sm:$0xff]  ;;  %v3903_v28 = vadd.f32 %v3902_v53, %v19001_v26  ;;  %v19003_v10 = vld [vmem:[#allocation151_spill] sm:$0xff]  ;;  %v19004_v47 = vld [vmem:[#allocation658_spill] sm:$0xff] }
 0x59d   : > { %v4049_v20 = vadd.f32 %v4048_v0, %v19000_v15  ;;  %v19002_v31 = vld [vmem:[#allocation657_spill] sm:$0xff]  ;;  %v3945_v30 = vadd.f32 %v3944_v4, %v19003_v10  ;;  %v3966_v63 = vadd.f32 %v3965_v36, %v19004_v47  ;;  %v19005_v50 = vld [vmem:[#allocation152_spill] sm:$0xff]  ;;  %v19006_v13 = vld [vmem:[#allocation659_spill] sm:$0xff] }
 0x59e   : > { %v3924_v38 = vadd.f32 %v3923_v6, %v19002_v31  ;;  %v3987_v40 = vadd.f32 %v3986_v19, %v19005_v50  ;;  %v4008_v11 = vadd.f32 %v4007_v33, %v19006_v13  ;;  %v19007_v60 = vld [vmem:[#allocation153_spill] sm:$0xff]  ;;  %v19008_v34 = vld [vmem:[#allocation660_spill] sm:$0xff]  ;;  %v19009_v42 = vld [vmem:[#allocation182_spill] sm:$0xff] }
 0x59f   : > { %v4029_v3 = vadd.f32 %v4028_v41, %v19007_v60  ;;  %v4050_v52 = vadd.f32 %v4049_v20, %v19008_v34  ;;  %v3904_v17 = vadd.f32 %v3903_v28, %v19009_v42  ;;  %v19010_v39 = vld [vmem:[#allocation689_spill] sm:$0xff]  ;;  %v19011_v15 = vld [vmem:[#allocation183_spill] sm:$0xff]  ;;  %v19012_v26 = vld [vmem:[#allocation690_spill] sm:$0xff] }
 0x5a0   : > { %v3925_v0 = vadd.f32 %v3924_v38, %v19010_v39  ;;  %v3946_v53 = vadd.f32 %v3945_v30, %v19011_v15  ;;  %v3967_v6 = vadd.f32 %v3966_v63, %v19012_v26  ;;  %v19013_v31 = vld [vmem:[#allocation184_spill] sm:$0xff]  ;;  %v19014_v10 = vld [vmem:[#allocation691_spill] sm:$0xff]  ;;  %v19015_v47 = vld [vmem:[#allocation185_spill] sm:$0xff] }
 0x5a1   : > { %v3988_v4 = vadd.f32 %v3987_v40, %v19013_v31  ;;  %v4009_v36 = vadd.f32 %v4008_v11, %v19014_v10  ;;  %v4030_v19 = vadd.f32 %v4029_v3, %v19015_v47  ;;  %v19016_v50 = vld [vmem:[#allocation692_spill] sm:$0xff]  ;;  %v19017_v13 = vld [vmem:[#allocation214_spill] sm:$0xff]  ;;  %v19018_v60 = vld [vmem:[#allocation721_spill] sm:$0xff] }
 0x5a2   : > { %v4051_v33 = vadd.f32 %v4050_v52, %v19016_v50  ;;  %v3905_v41 = vadd.f32 %v3904_v17, %v19017_v13  ;;  %v3926_v20 = vadd.f32 %v3925_v0, %v19018_v60  ;;  %v19019_v34 = vld [vmem:[#allocation215_spill] sm:$0xff]  ;;  %v19020_v42 = vld [vmem:[#allocation722_spill] sm:$0xff]  ;;  %v19021_v39 = vld [vmem:[#allocation216_spill] sm:$0xff] }
 0x5a3   : > { %v3947_v28 = vadd.f32 %v3946_v53, %v19019_v34  ;;  %v3968_v38 = vadd.f32 %v3967_v6, %v19020_v42  ;;  %v3989_v30 = vadd.f32 %v3988_v4, %v19021_v39  ;;  %v19022_v15 = vld [vmem:[#allocation723_spill] sm:$0xff]  ;;  %v19023_v26 = vld [vmem:[#allocation217_spill] sm:$0xff]  ;;  %v19024_v31 = vld [vmem:[#allocation724_spill] sm:$0xff] }
 0x5a4   : > { %v4010_v63 = vadd.f32 %v4009_v36, %v19022_v15  ;;  %v4031_v40 = vadd.f32 %v4030_v19, %v19023_v26  ;;  %v4052_v11 = vadd.f32 %v4051_v33, %v19024_v31  ;;  %v19025_v10 = vld [vmem:[#allocation246_spill] sm:$0xff]  ;;  %v19026_v47 = vld [vmem:[#allocation753_spill] sm:$0xff]  ;;  %v19027_v50 = vld [vmem:[#allocation247_spill] sm:$0xff] }
 0x5a5   : > { %v3906_v3 = vadd.f32 %v3905_v41, %v19025_v10  ;;  %v3927_v52 = vadd.f32 %v3926_v20, %v19026_v47  ;;  %v3948_v17 = vadd.f32 %v3947_v28, %v19027_v50  ;;  %v19028_v13 = vld [vmem:[#allocation754_spill] sm:$0xff]  ;;  %v19029_v60 = vld [vmem:[#allocation248_spill] sm:$0xff]  ;;  %v19030_v34 = vld [vmem:[#allocation755_spill] sm:$0xff] }
 0x5a6   : > { %v3969_v0 = vadd.f32 %v3968_v38, %v19028_v13  ;;  %v3990_v53 = vadd.f32 %v3989_v30, %v19029_v60  ;;  %v4011_v6 = vadd.f32 %v4010_v63, %v19030_v34  ;;  %v19031_v42 = vld [vmem:[#allocation249_spill] sm:$0xff]  ;;  %v19032_v39 = vld [vmem:[#allocation756_spill] sm:$0xff]  ;;  %v19033_v15 = vld [vmem:[#allocation278_spill] sm:$0xff] }
 0x5a7   : > { %v4032_v4 = vadd.f32 %v4031_v40, %v19031_v42  ;;  %v4053_v36 = vadd.f32 %v4052_v11, %v19032_v39  ;;  %v3907_v19 = vadd.f32 %v3906_v3, %v19033_v15  ;;  %v19034_v26 = vld [vmem:[#allocation785_spill] sm:$0xff]  ;;  %v19035_v31 = vld [vmem:[#allocation279_spill] sm:$0xff]  ;;  %v19036_v10 = vld [vmem:[#allocation786_spill] sm:$0xff] }
 0x5a8   : > { %v3928_v33 = vadd.f32 %v3927_v52, %v19034_v26  ;;  %v3949_v41 = vadd.f32 %v3948_v17, %v19035_v31  ;;  %v3970_v20 = vadd.f32 %v3969_v0, %v19036_v10  ;;  %v19037_v47 = vld [vmem:[#allocation280_spill] sm:$0xff]  ;;  %v19038_v50 = vld [vmem:[#allocation787_spill] sm:$0xff]  ;;  %v19039_v13 = vld [vmem:[#allocation281_spill] sm:$0xff] }
 0x5a9   : > { %v3991_v28 = vadd.f32 %v3990_v53, %v19037_v47  ;;  %v4012_v38 = vadd.f32 %v4011_v6, %v19038_v50  ;;  %v4033_v30 = vadd.f32 %v4032_v4, %v19039_v13  ;;  %v19040_v60 = vld [vmem:[#allocation788_spill] sm:$0xff]  ;;  %v19041_v34 = vld [vmem:[#allocation310_spill] sm:$0xff]  ;;  %v19042_v42 = vld [vmem:[#allocation817_spill] sm:$0xff] }
 0x5aa   : > { %v4054_v63 = vadd.f32 %v4053_v36, %v19040_v60  ;;  %v3908_v40 = vadd.f32 %v3907_v19, %v19041_v34  ;;  %v3929_v11 = vadd.f32 %v3928_v33, %v19042_v42  ;;  %v19043_v39 = vld [vmem:[#allocation311_spill] sm:$0xff]  ;;  %v19044_v15 = vld [vmem:[#allocation818_spill] sm:$0xff]  ;;  %v19045_v26 = vld [vmem:[#allocation312_spill] sm:$0xff] }
 0x5ab   : > { %v3950_v3 = vadd.f32 %v3949_v41, %v19043_v39  ;;  %v3971_v52 = vadd.f32 %v3970_v20, %v19044_v15  ;;  %v3992_v17 = vadd.f32 %v3991_v28, %v19045_v26  ;;  %v19046_v31 = vld [vmem:[#allocation819_spill] sm:$0xff]  ;;  %v19047_v10 = vld [vmem:[#allocation313_spill] sm:$0xff]  ;;  %v19048_v47 = vld [vmem:[#allocation820_spill] sm:$0xff] }
 0x5ac   : > { %v4013_v0 = vadd.f32 %v4012_v38, %v19046_v31  ;;  %v4034_v53 = vadd.f32 %v4033_v30, %v19047_v10  ;;  %v4055_v6 = vadd.f32 %v4054_v63, %v19048_v47  ;;  %v19049_v50 = vld [vmem:[#allocation342_spill] sm:$0xff]  ;;  %v19050_v13 = vld [vmem:[#allocation849_spill] sm:$0xff]  ;;  %v19051_v60 = vld [vmem:[#allocation343_spill] sm:$0xff] }
 0x5ad   : > { %v3909_v4 = vadd.f32 %v3908_v40, %v19049_v50  ;;  %v3930_v36 = vadd.f32 %v3929_v11, %v19050_v13  ;;  %v3951_v19 = vadd.f32 %v3950_v3, %v19051_v60  ;;  %v19052_v34 = vld [vmem:[#allocation850_spill] sm:$0xff]  ;;  %v19053_v42 = vld [vmem:[#allocation344_spill] sm:$0xff]  ;;  %v19054_v39 = vld [vmem:[#allocation851_spill] sm:$0xff] }
 0x5ae   : > { %v3972_v33 = vadd.f32 %v3971_v52, %v19052_v34  ;;  %v3993_v41 = vadd.f32 %v3992_v17, %v19053_v42  ;;  %v4014_v20 = vadd.f32 %v4013_v0, %v19054_v39  ;;  %v19055_v15 = vld [vmem:[#allocation345_spill] sm:$0xff]  ;;  %v19056_v26 = vld [vmem:[#allocation852_spill] sm:$0xff]  ;;  %v19057_v31 = vld [vmem:[#allocation374_spill] sm:$0xff] }
 0x5af   : > { %v4035_v28 = vadd.f32 %v4034_v53, %v19055_v15  ;;  %v4056_v38 = vadd.f32 %v4055_v6, %v19056_v26  ;;  %v3910_v30 = vadd.f32 %v3909_v4, %v19057_v31  ;;  %v19058_v10 = vld [vmem:[#allocation881_spill] sm:$0xff]  ;;  %v19059_v47 = vld [vmem:[#allocation375_spill] sm:$0xff]  ;;  %v19060_v50 = vld [vmem:[#allocation882_spill] sm:$0xff] }
 0x5b0   : > { %v3931_v63 = vadd.f32 %v3930_v36, %v19058_v10  ;;  %v3952_v40 = vadd.f32 %v3951_v19, %v19059_v47  ;;  %v3973_v11 = vadd.f32 %v3972_v33, %v19060_v50  ;;  %v19061_v13 = vld [vmem:[#allocation376_spill] sm:$0xff]  ;;  %v19062_v60 = vld [vmem:[#allocation883_spill] sm:$0xff]  ;;  %v19063_v34 = vld [vmem:[#allocation377_spill] sm:$0xff] }
 0x5b1   : > { %v3994_v3 = vadd.f32 %v3993_v41, %v19061_v13  ;;  %v4015_v52 = vadd.f32 %v4014_v20, %v19062_v60  ;;  %v4036_v17 = vadd.f32 %v4035_v28, %v19063_v34  ;;  %v19064_v42 = vld [vmem:[#allocation884_spill] sm:$0xff]  ;;  %v19065_v39 = vld [vmem:[#allocation406_spill] sm:$0xff]  ;;  %v19066_v15 = vld [vmem:[#allocation913_spill] sm:$0xff] }
 0x5b2   : > { %v4057_v0 = vadd.f32 %v4056_v38, %v19064_v42  ;;  %v3911_v53 = vadd.f32 %v3910_v30, %v19065_v39  ;;  %v3932_v6 = vadd.f32 %v3931_v63, %v19066_v15  ;;  %v19067_v26 = vld [vmem:[#allocation407_spill] sm:$0xff]  ;;  %v19068_v31 = vld [vmem:[#allocation914_spill] sm:$0xff]  ;;  %v19069_v10 = vld [vmem:[#allocation408_spill] sm:$0xff] }
 0x5b3   : > { %v3953_v4 = vadd.f32 %v3952_v40, %v19067_v26  ;;  %v3974_v36 = vadd.f32 %v3973_v11, %v19068_v31  ;;  %v3995_v19 = vadd.f32 %v3994_v3, %v19069_v10  ;;  %v19070_v47 = vld [vmem:[#allocation915_spill] sm:$0xff]  ;;  %v19071_v50 = vld [vmem:[#allocation409_spill] sm:$0xff]  ;;  %v19072_v13 = vld [vmem:[#allocation916_spill] sm:$0xff] }
 0x5b4   : > { %v4016_v33 = vadd.f32 %v4015_v52, %v19070_v47  ;;  %v4037_v41 = vadd.f32 %v4036_v17, %v19071_v50  ;;  %v4058_v20 = vadd.f32 %v4057_v0, %v19072_v13  ;;  %v19073_v60 = vld [vmem:[#allocation438_spill] sm:$0xff]  ;;  %v19074_v34 = vld [vmem:[#allocation945_spill] sm:$0xff]  ;;  %v19075_v42 = vld [vmem:[#allocation439_spill] sm:$0xff] }
 0x5b5   : > { %v3912_v28 = vadd.f32 %v3911_v53, %v19073_v60  ;;  %v3933_v38 = vadd.f32 %v3932_v6, %v19074_v34  ;;  %v3954_v30 = vadd.f32 %v3953_v4, %v19075_v42  ;;  %v19076_v39 = vld [vmem:[#allocation946_spill] sm:$0xff]  ;;  %v19077_v15 = vld [vmem:[#allocation440_spill] sm:$0xff]  ;;  %v19078_v26 = vld [vmem:[#allocation947_spill] sm:$0xff] }
 0x5b6   : > { %v3975_v63 = vadd.f32 %v3974_v36, %v19076_v39  ;;  %v3996_v40 = vadd.f32 %v3995_v19, %v19077_v15  ;;  %v4017_v11 = vadd.f32 %v4016_v33, %v19078_v26  ;;  %v19079_v31 = vld [vmem:[#allocation441_spill] sm:$0xff]  ;;  %v19080_v10 = vld [vmem:[#allocation948_spill] sm:$0xff]  ;;  %v19081_v47 = vld [vmem:[#allocation974_spill] sm:$0xff] }
 0x5b7   : > { %v4038_v3 = vadd.f32 %v4037_v41, %v19079_v31  ;;  %v4059_v52 = vadd.f32 %v4058_v20, %v19080_v10  ;;  %v3913_v17 = vadd.f32 %v3912_v28, %v12944_v61  ;;  %v3934_v0 = vadd.f32 %v3933_v38, %v19081_v47  ;;  %v19082_v50 = vld [vmem:[#allocation469_spill] sm:$0xff]  ;;  %v19083_v13 = vld [vmem:[#allocation975_spill] sm:$0xff]  ;;  %v19084_v60 = vld [vmem:[#allocation976_spill] sm:$0xff] }
 0x5b8   : > { %v3955_v53 = vadd.f32 %v3954_v30, %v12954_v56  ;;  %v3976_v6 = vadd.f32 %v3975_v63, %v19082_v50  ;;  %v3997_v4 = vadd.f32 %v3996_v40, %v12964_v8  ;;  %v4018_v36 = vadd.f32 %v4017_v11, %v19083_v13 }
 0x5b9   : > { %v4039_v19 = vadd.f32 %v4038_v3, %v12974_v22  ;;  %v4060_v33 = vadd.f32 %v4059_v52, %v19084_v60  ;;  %v3914_v34 = vrot.slane %v3913_v17, 4  ;;  %v3935_v41 = vrot.slane %v3934_v0, 4 }
 0x5ba   : > { %v3956_v42 = vrot.slane %v3955_v53, 4  ;;  %v3977_v20 = vrot.slane %v3976_v6, 4  ;;  %v3998_v39 = vrot.slane %v3997_v4, 4  ;;  %v4019_v61 = vrot.slane %v4018_v36, 4 }
 0x5bb   : > { %v4040_v28 = vrot.slane %v4039_v19, 4  ;;  %v4061_v38 = vrot.slane %v4060_v33, 4  ;;  %v3915_v15 = vadd.f32 %v3914_v34, %v3913_v17  ;;  %v3936_v56 = vadd.f32 %v3935_v41, %v3934_v0 }
 0x5bc   : > { %v3957_v30 = vadd.f32 %v3956_v42, %v3955_v53  ;;  %v3978_v63 = vadd.f32 %v3977_v20, %v3976_v6  ;;  %v3999_v26 = vadd.f32 %v3998_v39, %v3997_v4  ;;  %v4020_v8 = vadd.f32 %v4019_v61, %v4018_v36 }
 0x5bd   : > { %v4041_v40 = vadd.f32 %v4040_v28, %v4039_v19  ;;  %v4062_v11 = vadd.f32 %v4061_v38, %v4060_v33  ;;  %v3916_v31 = vrot.slane %v3915_v15, 2  ;;  %v3937_v22 = vrot.slane %v3936_v56, 2 }
 0x5be   : > { %v3958_v3 = vrot.slane %v3957_v30, 2  ;;  %v3979_v10 = vrot.slane %v3978_v63, 2  ;;  %v4000_v52 = vrot.slane %v3999_v26, 2  ;;  %v4021_v47 = vrot.slane %v4020_v8, 2 }
 0x5bf   : > { %v4042_v50 = vrot.slane %v4041_v40, 2  ;;  %v4063_v13 = vrot.slane %v4062_v11, 2  ;;  %v3917_v60 = vadd.f32 %v3916_v31, %v3915_v15  ;;  %v3938_v14 = vadd.f32 %v3937_v22, %v3936_v56  ;;  %v19092_v31 = vld [vmem:[#allocation562_spill] sm:$0xff] }
 0x5c0   : > { %v3959_v48 = vadd.f32 %v3958_v3, %v3957_v30  ;;  %v3980_v1 = vadd.f32 %v3979_v10, %v3978_v63  ;;  %v4001_v17 = vadd.f32 %v4000_v52, %v3999_v26  ;;  %v4022_v0 = vadd.f32 %v4021_v47, %v4020_v8  ;;  %v19089_v26 = vld [vmem:[#allocation521_spill] sm:$0xff]  ;;  %v19090_v8 = vld [vmem:[#allocation26_spill] sm:$0xff]  ;;  %v19094_v3 = vld [vmem:[#allocation27_spill] sm:$0xff] }
 0x5c1   : > { %v4043_v53 = vadd.f32 %v4042_v50, %v4041_v40  ;;  %v4064_v6 = vadd.f32 %v4063_v13, %v4062_v11  ;;  %v3918_v4 = vrot.slane %v3917_v60, 1  ;;  %v3939_v36 = vrot.slane %v3938_v14, 1  ;;  %v19091_v11 = vld [vmem:[#allocation522_spill] sm:$0xff]  ;;  %v19095_v10 = vld [vmem:[#allocation524_spill] sm:$0xff]  ;;  %v19097_v47 = vld [vmem:[#allocation525_spill] sm:$0xff] }
 0x5c2   : > { %v3960_v19 = vrot.slane %v3959_v48, 1  ;;  %v3981_v33 = vrot.slane %v3980_v1, 1  ;;  %v4002_v34 = vrot.slane %v4001_v17, 1  ;;  %v4023_v41 = vrot.slane %v4022_v0, 1  ;;  %v19098_v50 = vld [vmem:[#allocation28_spill] sm:$0xff] }
 0x5c3   : > { %v4044_v42 = vrot.slane %v4043_v53, 1  ;;  %v4065_v20 = vrot.slane %v4064_v6, 1  ;;  %v14013_v39 = vadd.f32 %v3918_v4, %v3917_v60  ;;  %v14015_v61 = vadd.f32 %v3939_v36, %v3938_v14  ;;  %v19093_v14 = vld [vmem:[#allocation523_spill] sm:$0xff]  ;;  %v19099_v60 = vld [vmem:[#allocation526_spill] sm:$0xff]  ;;  %v19103_v36 = vld [vmem:[#allocation528_spill] sm:$0xff] }
 0x5c4   : > { %v14017_v28 = vadd.f32 %v3960_v19, %v3959_v48  ;;  %v14019_v38 = vadd.f32 %v3981_v33, %v3980_v1  ;;  %v14021_v15 = vadd.f32 %v4002_v34, %v4001_v17  ;;  %v14023_v56 = vadd.f32 %v4023_v41, %v4022_v0  ;;  %v19096_v1 = vld [vmem:[#allocation563_spill] sm:$0xff]  ;;  %v19100_v17 = vld [vmem:[#allocation564_spill] sm:$0xff]  ;;  %v19104_v19 = vld [vmem:[#allocation565_spill] sm:$0xff] }
 0x5c5   : > { %v14025_v30 = vadd.f32 %v4044_v42, %v4043_v53  ;;  %v14027_v63 = vadd.f32 %v4065_v20, %v4064_v6  ;;  %v4067_v40 = vadd.f32 %v19090_v8, %v19089_v26  ;;  %v4088_v22 = vadd.f32 %v19092_v31, %v19091_v11  ;;  %v19101_v53 = vld [vmem:[#allocation527_spill] sm:$0xff]  ;;  %v19102_v6 = vld [vmem:[#allocation29_spill] sm:$0xff]  ;;  %v19105_v34 = vld [vmem:[#allocation58_spill] sm:$0xff] }
 0x5c6   : > { %19085 = vst [vmem:[#allocation223_spill] sm:$0xff] %v14021_v15  ;;  %19086 = vst [vmem:[#allocation730_spill] sm:$0xff] %v14023_v56  ;;  %v4109_v48 = vadd.f32 %v19094_v3, %v19093_v14  ;;  %v4130_v52 = vadd.f32 %v19096_v1, %v19095_v10  ;;  %v4151_v13 = vadd.f32 %v19098_v50, %v19097_v47  ;;  %v19106_v42 = vld [vmem:[#allocation586_spill] sm:$0xff]  ;;  %v19107_v26 = vld [vmem:[#allocation59_spill] sm:$0xff] }
 0x5c7   : > { %19087 = vst [vmem:[#allocation224_spill] sm:$0xff] %v14025_v30  ;;  %19088 = vst [vmem:[#allocation731_spill] sm:$0xff] %v14027_v63  ;;  %v4172_v0 = vadd.f32 %v19100_v17, %v19099_v60  ;;  %v4193_v4 = vadd.f32 %v19102_v6, %v19101_v53  ;;  %v4214_v33 = vadd.f32 %v19104_v19, %v19103_v36  ;;  %v19108_v11 = vld [vmem:[#allocation587_spill] sm:$0xff]  ;;  %v19109_v14 = vld [vmem:[#allocation60_spill] sm:$0xff] }
 0x5c8   : > { %v4068_v41 = vadd.f32 %v4067_v40, %v19105_v34  ;;  %v4089_v20 = vadd.f32 %v4088_v22, %v19106_v42  ;;  %v4110_v8 = vadd.f32 %v4109_v48, %v19107_v26  ;;  %v4131_v31 = vadd.f32 %v4130_v52, %v19108_v11  ;;  %v19110_v10 = vld [vmem:[#allocation588_spill] sm:$0xff]  ;;  %v19111_v47 = vld [vmem:[#allocation61_spill] sm:$0xff]  ;;  %v19113_v53 = vld [vmem:[#allocation90_spill] sm:$0xff] }
 0x5c9   : > { %v4152_v3 = vadd.f32 %v4151_v13, %v19109_v14  ;;  %v4173_v1 = vadd.f32 %v4172_v0, %v19110_v10  ;;  %v4194_v50 = vadd.f32 %v4193_v4, %v19111_v47  ;;  %v19112_v60 = vld [vmem:[#allocation589_spill] sm:$0xff]  ;;  %v19114_v30 = vld [vmem:[#allocation610_spill] sm:$0xff]  ;;  %v19115_v19 = vld [vmem:[#allocation91_spill] sm:$0xff] }
 0x5ca   : > { %v4215_v17 = vadd.f32 %v4214_v33, %v19112_v60  ;;  %v4069_v6 = vadd.f32 %v4068_v41, %v19113_v53  ;;  %v4090_v36 = vadd.f32 %v4089_v20, %v19114_v30  ;;  %v4111_v40 = vadd.f32 %v4110_v8, %v19115_v19  ;;  %v19116_v34 = vld [vmem:[#allocation611_spill] sm:$0xff]  ;;  %v19117_v42 = vld [vmem:[#allocation92_spill] sm:$0xff]  ;;  %v19119_v11 = vld [vmem:[#allocation93_spill] sm:$0xff] }
 0x5cb   : > { %v4132_v22 = vadd.f32 %v4131_v31, %v19116_v34  ;;  %v4153_v48 = vadd.f32 %v4152_v3, %v19117_v42  ;;  %v19118_v26 = vld [vmem:[#allocation612_spill] sm:$0xff]  ;;  %v4195_v13 = vadd.f32 %v4194_v50, %v19119_v11  ;;  %v19120_v14 = vld [vmem:[#allocation613_spill] sm:$0xff]  ;;  %v19121_v10 = vld [vmem:[#allocation122_spill] sm:$0xff] }
 0x5cc   : > { %v4174_v52 = vadd.f32 %v4173_v1, %v19118_v26  ;;  %v4216_v0 = vadd.f32 %v4215_v17, %v19120_v14  ;;  %v4070_v4 = vadd.f32 %v4069_v6, %v19121_v10  ;;  %v19122_v47 = vld [vmem:[#allocation634_spill] sm:$0xff]  ;;  %v19123_v60 = vld [vmem:[#allocation123_spill] sm:$0xff]  ;;  %v19125_v20 = vld [vmem:[#allocation124_spill] sm:$0xff] }
 0x5cd   : > { %v4091_v33 = vadd.f32 %v4090_v36, %v19122_v47  ;;  %v4112_v41 = vadd.f32 %v4111_v40, %v19123_v60  ;;  %v19124_v53 = vld [vmem:[#allocation635_spill] sm:$0xff]  ;;  %v4154_v8 = vadd.f32 %v4153_v48, %v19125_v20  ;;  %v19126_v19 = vld [vmem:[#allocation636_spill] sm:$0xff]  ;;  %v19127_v34 = vld [vmem:[#allocation125_spill] sm:$0xff] }
 0x5ce   : > { %v4133_v30 = vadd.f32 %v4132_v22, %v19124_v53  ;;  %v4175_v31 = vadd.f32 %v4174_v52, %v19126_v19  ;;  %v4196_v3 = vadd.f32 %v4195_v13, %v19127_v34  ;;  %v19128_v42 = vld [vmem:[#allocation637_spill] sm:$0xff]  ;;  %v19129_v26 = vld [vmem:[#allocation154_spill] sm:$0xff]  ;;  %v19131_v14 = vld [vmem:[#allocation155_spill] sm:$0xff] }
 0x5cf   : > { %v4217_v1 = vadd.f32 %v4216_v0, %v19128_v42  ;;  %v4071_v50 = vadd.f32 %v4070_v4, %v19129_v26  ;;  %v19130_v11 = vld [vmem:[#allocation661_spill] sm:$0xff]  ;;  %v4113_v6 = vadd.f32 %v4112_v41, %v19131_v14  ;;  %v19132_v10 = vld [vmem:[#allocation662_spill] sm:$0xff]  ;;  %v19133_v47 = vld [vmem:[#allocation156_spill] sm:$0xff] }
 0x5d0   : > { %v4092_v17 = vadd.f32 %v4091_v33, %v19130_v11  ;;  %v4134_v36 = vadd.f32 %v4133_v30, %v19132_v10  ;;  %v4155_v40 = vadd.f32 %v4154_v8, %v19133_v47  ;;  %v19134_v60 = vld [vmem:[#allocation663_spill] sm:$0xff]  ;;  %v19135_v53 = vld [vmem:[#allocation157_spill] sm:$0xff]  ;;  %v19136_v20 = vld [vmem:[#allocation664_spill] sm:$0xff] }
 0x5d1   : > { %v4176_v22 = vadd.f32 %v4175_v31, %v19134_v60  ;;  %v4197_v48 = vadd.f32 %v4196_v3, %v19135_v53  ;;  %v4218_v52 = vadd.f32 %v4217_v1, %v19136_v20  ;;  %v19137_v19 = vld [vmem:[#allocation186_spill] sm:$0xff]  ;;  %v19138_v34 = vld [vmem:[#allocation693_spill] sm:$0xff]  ;;  %v19139_v42 = vld [vmem:[#allocation187_spill] sm:$0xff] }
 0x5d2   : > { %v4072_v13 = vadd.f32 %v4071_v50, %v19137_v19  ;;  %v4093_v0 = vadd.f32 %v4092_v17, %v19138_v34  ;;  %v4114_v4 = vadd.f32 %v4113_v6, %v19139_v42  ;;  %v19140_v26 = vld [vmem:[#allocation694_spill] sm:$0xff]  ;;  %v19141_v11 = vld [vmem:[#allocation188_spill] sm:$0xff]  ;;  %v19142_v14 = vld [vmem:[#allocation695_spill] sm:$0xff] }
 0x5d3   : > { %v4135_v33 = vadd.f32 %v4134_v36, %v19140_v26  ;;  %v4156_v41 = vadd.f32 %v4155_v40, %v19141_v11  ;;  %v4177_v30 = vadd.f32 %v4176_v22, %v19142_v14  ;;  %v19143_v10 = vld [vmem:[#allocation189_spill] sm:$0xff]  ;;  %v19144_v47 = vld [vmem:[#allocation696_spill] sm:$0xff]  ;;  %v19145_v60 = vld [vmem:[#allocation218_spill] sm:$0xff] }
 0x5d4   : > { %v4198_v8 = vadd.f32 %v4197_v48, %v19143_v10  ;;  %v4219_v31 = vadd.f32 %v4218_v52, %v19144_v47  ;;  %v4073_v3 = vadd.f32 %v4072_v13, %v19145_v60  ;;  %v19146_v53 = vld [vmem:[#allocation725_spill] sm:$0xff]  ;;  %v19147_v20 = vld [vmem:[#allocation219_spill] sm:$0xff]  ;;  %v19148_v19 = vld [vmem:[#allocation726_spill] sm:$0xff] }
 0x5d5   : > { %v4094_v1 = vadd.f32 %v4093_v0, %v19146_v53  ;;  %v4115_v50 = vadd.f32 %v4114_v4, %v19147_v20  ;;  %v4136_v17 = vadd.f32 %v4135_v33, %v19148_v19  ;;  %v19149_v34 = vld [vmem:[#allocation220_spill] sm:$0xff]  ;;  %v19150_v42 = vld [vmem:[#allocation727_spill] sm:$0xff]  ;;  %v19151_v26 = vld [vmem:[#allocation221_spill] sm:$0xff] }
 0x5d6   : > { %v4157_v6 = vadd.f32 %v4156_v41, %v19149_v34  ;;  %v4178_v36 = vadd.f32 %v4177_v30, %v19150_v42  ;;  %v4199_v40 = vadd.f32 %v4198_v8, %v19151_v26  ;;  %v19152_v11 = vld [vmem:[#allocation728_spill] sm:$0xff]  ;;  %v19153_v14 = vld [vmem:[#allocation250_spill] sm:$0xff]  ;;  %v19154_v10 = vld [vmem:[#allocation757_spill] sm:$0xff] }
 0x5d7   : > { %v4220_v22 = vadd.f32 %v4219_v31, %v19152_v11  ;;  %v4074_v48 = vadd.f32 %v4073_v3, %v19153_v14  ;;  %v4095_v52 = vadd.f32 %v4094_v1, %v19154_v10  ;;  %v19155_v47 = vld [vmem:[#allocation251_spill] sm:$0xff]  ;;  %v19156_v60 = vld [vmem:[#allocation758_spill] sm:$0xff]  ;;  %v19157_v53 = vld [vmem:[#allocation252_spill] sm:$0xff] }
 0x5d8   : > { %v4116_v13 = vadd.f32 %v4115_v50, %v19155_v47  ;;  %v4137_v0 = vadd.f32 %v4136_v17, %v19156_v60  ;;  %v4158_v4 = vadd.f32 %v4157_v6, %v19157_v53  ;;  %v19158_v20 = vld [vmem:[#allocation759_spill] sm:$0xff]  ;;  %v19159_v19 = vld [vmem:[#allocation253_spill] sm:$0xff]  ;;  %v19160_v34 = vld [vmem:[#allocation760_spill] sm:$0xff] }
 0x5d9   : > { %v4179_v33 = vadd.f32 %v4178_v36, %v19158_v20  ;;  %v4200_v41 = vadd.f32 %v4199_v40, %v19159_v19  ;;  %v4221_v30 = vadd.f32 %v4220_v22, %v19160_v34  ;;  %v19161_v42 = vld [vmem:[#allocation282_spill] sm:$0xff]  ;;  %v19162_v26 = vld [vmem:[#allocation789_spill] sm:$0xff]  ;;  %v19163_v11 = vld [vmem:[#allocation283_spill] sm:$0xff] }
 0x5da   : > { %v4075_v8 = vadd.f32 %v4074_v48, %v19161_v42  ;;  %v4096_v31 = vadd.f32 %v4095_v52, %v19162_v26  ;;  %v4117_v3 = vadd.f32 %v4116_v13, %v19163_v11  ;;  %v19164_v14 = vld [vmem:[#allocation790_spill] sm:$0xff]  ;;  %v19165_v10 = vld [vmem:[#allocation284_spill] sm:$0xff]  ;;  %v19166_v47 = vld [vmem:[#allocation791_spill] sm:$0xff] }
 0x5db   : > { %v4138_v1 = vadd.f32 %v4137_v0, %v19164_v14  ;;  %v4159_v50 = vadd.f32 %v4158_v4, %v19165_v10  ;;  %v4180_v17 = vadd.f32 %v4179_v33, %v19166_v47  ;;  %v19167_v60 = vld [vmem:[#allocation285_spill] sm:$0xff]  ;;  %v19168_v53 = vld [vmem:[#allocation792_spill] sm:$0xff]  ;;  %v19169_v20 = vld [vmem:[#allocation314_spill] sm:$0xff] }
 0x5dc   : > { %v4201_v6 = vadd.f32 %v4200_v41, %v19167_v60  ;;  %v4222_v36 = vadd.f32 %v4221_v30, %v19168_v53  ;;  %v4076_v40 = vadd.f32 %v4075_v8, %v19169_v20  ;;  %v19170_v19 = vld [vmem:[#allocation821_spill] sm:$0xff]  ;;  %v19171_v34 = vld [vmem:[#allocation315_spill] sm:$0xff]  ;;  %v19172_v42 = vld [vmem:[#allocation822_spill] sm:$0xff] }
 0x5dd   : > { %v4097_v22 = vadd.f32 %v4096_v31, %v19170_v19  ;;  %v4118_v48 = vadd.f32 %v4117_v3, %v19171_v34  ;;  %v4139_v52 = vadd.f32 %v4138_v1, %v19172_v42  ;;  %v19173_v26 = vld [vmem:[#allocation316_spill] sm:$0xff]  ;;  %v19174_v11 = vld [vmem:[#allocation823_spill] sm:$0xff]  ;;  %v19175_v14 = vld [vmem:[#allocation317_spill] sm:$0xff] }
 0x5de   : > { %v4160_v13 = vadd.f32 %v4159_v50, %v19173_v26  ;;  %v4181_v0 = vadd.f32 %v4180_v17, %v19174_v11  ;;  %v4202_v4 = vadd.f32 %v4201_v6, %v19175_v14  ;;  %v19176_v10 = vld [vmem:[#allocation824_spill] sm:$0xff]  ;;  %v19177_v47 = vld [vmem:[#allocation346_spill] sm:$0xff]  ;;  %v19178_v60 = vld [vmem:[#allocation853_spill] sm:$0xff] }
 0x5df   : > { %v4223_v33 = vadd.f32 %v4222_v36, %v19176_v10  ;;  %v4077_v41 = vadd.f32 %v4076_v40, %v19177_v47  ;;  %v4098_v30 = vadd.f32 %v4097_v22, %v19178_v60  ;;  %v19179_v53 = vld [vmem:[#allocation347_spill] sm:$0xff]  ;;  %v19180_v20 = vld [vmem:[#allocation854_spill] sm:$0xff]  ;;  %v19181_v19 = vld [vmem:[#allocation348_spill] sm:$0xff] }
 0x5e0   : > { %v4119_v8 = vadd.f32 %v4118_v48, %v19179_v53  ;;  %v4140_v31 = vadd.f32 %v4139_v52, %v19180_v20  ;;  %v4161_v3 = vadd.f32 %v4160_v13, %v19181_v19  ;;  %v19182_v34 = vld [vmem:[#allocation855_spill] sm:$0xff]  ;;  %v19183_v42 = vld [vmem:[#allocation349_spill] sm:$0xff]  ;;  %v19184_v26 = vld [vmem:[#allocation856_spill] sm:$0xff] }
 0x5e1   : > { %v4182_v1 = vadd.f32 %v4181_v0, %v19182_v34  ;;  %v4203_v50 = vadd.f32 %v4202_v4, %v19183_v42  ;;  %v4224_v17 = vadd.f32 %v4223_v33, %v19184_v26  ;;  %v19185_v11 = vld [vmem:[#allocation378_spill] sm:$0xff]  ;;  %v19186_v14 = vld [vmem:[#allocation885_spill] sm:$0xff]  ;;  %v19187_v10 = vld [vmem:[#allocation379_spill] sm:$0xff] }
 0x5e2   : > { %v4078_v6 = vadd.f32 %v4077_v41, %v19185_v11  ;;  %v4099_v36 = vadd.f32 %v4098_v30, %v19186_v14  ;;  %v4120_v40 = vadd.f32 %v4119_v8, %v19187_v10  ;;  %v19188_v47 = vld [vmem:[#allocation886_spill] sm:$0xff]  ;;  %v19189_v60 = vld [vmem:[#allocation380_spill] sm:$0xff]  ;;  %v19190_v53 = vld [vmem:[#allocation887_spill] sm:$0xff] }
 0x5e3   : > { %v4141_v22 = vadd.f32 %v4140_v31, %v19188_v47  ;;  %v4162_v48 = vadd.f32 %v4161_v3, %v19189_v60  ;;  %v4183_v52 = vadd.f32 %v4182_v1, %v19190_v53  ;;  %v19191_v20 = vld [vmem:[#allocation381_spill] sm:$0xff]  ;;  %v19192_v19 = vld [vmem:[#allocation888_spill] sm:$0xff]  ;;  %v19193_v34 = vld [vmem:[#allocation410_spill] sm:$0xff] }
 0x5e4   : > { %v4204_v13 = vadd.f32 %v4203_v50, %v19191_v20  ;;  %v4225_v0 = vadd.f32 %v4224_v17, %v19192_v19  ;;  %v4079_v4 = vadd.f32 %v4078_v6, %v19193_v34  ;;  %v19194_v42 = vld [vmem:[#allocation917_spill] sm:$0xff]  ;;  %v19195_v26 = vld [vmem:[#allocation411_spill] sm:$0xff]  ;;  %v19196_v11 = vld [vmem:[#allocation918_spill] sm:$0xff] }
 0x5e5   : > { %v4100_v33 = vadd.f32 %v4099_v36, %v19194_v42  ;;  %v4121_v41 = vadd.f32 %v4120_v40, %v19195_v26  ;;  %v4142_v30 = vadd.f32 %v4141_v22, %v19196_v11  ;;  %v19197_v14 = vld [vmem:[#allocation412_spill] sm:$0xff]  ;;  %v19198_v10 = vld [vmem:[#allocation919_spill] sm:$0xff]  ;;  %v19199_v47 = vld [vmem:[#allocation413_spill] sm:$0xff] }
 0x5e6   : > { %v4163_v8 = vadd.f32 %v4162_v48, %v19197_v14  ;;  %v4184_v31 = vadd.f32 %v4183_v52, %v19198_v10  ;;  %v4205_v3 = vadd.f32 %v4204_v13, %v19199_v47  ;;  %v19200_v60 = vld [vmem:[#allocation920_spill] sm:$0xff]  ;;  %v19201_v53 = vld [vmem:[#allocation442_spill] sm:$0xff]  ;;  %v19202_v20 = vld [vmem:[#allocation949_spill] sm:$0xff] }
 0x5e7   : > { %v4226_v1 = vadd.f32 %v4225_v0, %v19200_v60  ;;  %v4080_v50 = vadd.f32 %v4079_v4, %v19201_v53  ;;  %v4101_v17 = vadd.f32 %v4100_v33, %v19202_v20  ;;  %v19203_v19 = vld [vmem:[#allocation443_spill] sm:$0xff]  ;;  %v19204_v34 = vld [vmem:[#allocation950_spill] sm:$0xff]  ;;  %v19205_v42 = vld [vmem:[#allocation444_spill] sm:$0xff] }
 0x5e8   : > { %v4122_v6 = vadd.f32 %v4121_v41, %v19203_v19  ;;  %v4143_v36 = vadd.f32 %v4142_v30, %v19204_v34  ;;  %v4164_v40 = vadd.f32 %v4163_v8, %v19205_v42  ;;  %v19206_v26 = vld [vmem:[#allocation951_spill] sm:$0xff]  ;;  %v19207_v11 = vld [vmem:[#allocation445_spill] sm:$0xff]  ;;  %v19208_v14 = vld [vmem:[#allocation952_spill] sm:$0xff] }
 0x5e9   : > { %v4185_v22 = vadd.f32 %v4184_v31, %v19206_v26  ;;  %v4206_v48 = vadd.f32 %v4205_v3, %v19207_v11  ;;  %v4227_v52 = vadd.f32 %v4226_v1, %v19208_v14  ;;  %v4081_v13 = vadd.f32 %v4080_v50, %v12984_v46  ;;  %v19209_v10 = vld [vmem:[#allocation977_spill] sm:$0xff]  ;;  %v19210_v47 = vld [vmem:[#allocation978_spill] sm:$0xff]  ;;  %v19211_v60 = vld [vmem:[#allocation979_spill] sm:$0xff] }
 0x5ea   : > { %v4102_v0 = vadd.f32 %v4101_v17, %v19209_v10  ;;  %v4123_v4 = vadd.f32 %v4122_v6, %v12994_v62  ;;  %v4144_v33 = vadd.f32 %v4143_v36, %v19210_v47  ;;  %v4165_v41 = vadd.f32 %v4164_v40, %v13004_v35  ;;  %v19212_v53 = vld [vmem:[#allocation980_spill] sm:$0xff] }
 0x5eb   : > { %v4186_v30 = vadd.f32 %v4185_v22, %v19211_v60  ;;  %v4207_v8 = vadd.f32 %v4206_v48, %v19212_v53  ;;  %v4228_v31 = vadd.f32 %v4227_v52, %v13019_v45  ;;  %v4082_v20 = vrot.slane %v4081_v13, 4 }
 0x5ec   : > { %v4103_v3 = vrot.slane %v4102_v0, 4  ;;  %v4124_v19 = vrot.slane %v4123_v4, 4  ;;  %v4145_v1 = vrot.slane %v4144_v33, 4  ;;  %v4166_v34 = vrot.slane %v4165_v41, 4 }
 0x5ed   : > { %v4187_v46 = vrot.slane %v4186_v30, 4  ;;  %v4208_v50 = vrot.slane %v4207_v8, 4  ;;  %v4229_v17 = vrot.slane %v4228_v31, 4  ;;  %v4083_v42 = vadd.f32 %v4082_v20, %v4081_v13 }
 0x5ee   : > { %v4104_v62 = vadd.f32 %v4103_v3, %v4102_v0  ;;  %v4125_v6 = vadd.f32 %v4124_v19, %v4123_v4  ;;  %v4146_v36 = vadd.f32 %v4145_v1, %v4144_v33  ;;  %v4167_v26 = vadd.f32 %v4166_v34, %v4165_v41 }
 0x5ef   : > { %v4188_v35 = vadd.f32 %v4187_v46, %v4186_v30  ;;  %v4209_v40 = vadd.f32 %v4208_v50, %v4207_v8  ;;  %v4230_v22 = vadd.f32 %v4229_v17, %v4228_v31  ;;  %v4084_v11 = vrot.slane %v4083_v42, 2 }
 0x5f0   : > { %v4105_v48 = vrot.slane %v4104_v62, 2  ;;  %v4126_v14 = vrot.slane %v4125_v6, 2  ;;  %v4147_v45 = vrot.slane %v4146_v36, 2  ;;  %v4168_v52 = vrot.slane %v4167_v26, 2 }
 0x5f1   : > { %v4189_v10 = vrot.slane %v4188_v35, 2  ;;  %v4210_v47 = vrot.slane %v4209_v40, 2  ;;  %v4231_v60 = vrot.slane %v4230_v22, 2  ;;  %v4085_v53 = vadd.f32 %v4084_v11, %v4083_v42 }
 0x5f2   : > { %v4106_v63 = vadd.f32 %v4105_v48, %v4104_v62  ;;  %v4127_v15 = vadd.f32 %v4126_v14, %v4125_v6  ;;  %v4148_v56 = vadd.f32 %v4147_v45, %v4146_v36  ;;  %v4169_v13 = vadd.f32 %v4168_v52, %v4167_v26  ;;  %v19216_v14 = vld [vmem:[#allocation127_spill] sm:$0xff]  ;;  %v19218_v45 = vld [vmem:[#allocation158_spill] sm:$0xff] }
 0x5f3   : > { %v4190_v0 = vadd.f32 %v4189_v10, %v4188_v35  ;;  %v4211_v4 = vadd.f32 %v4210_v47, %v4209_v40  ;;  %v4232_v33 = vadd.f32 %v4231_v60, %v4230_v22  ;;  %v4086_v41 = vrot.slane %v4085_v53, 1  ;;  %v19220_v10 = vld [vmem:[#allocation665_spill] sm:$0xff]  ;;  %v19222_v47 = vld [vmem:[#allocation159_spill] sm:$0xff]  ;;  %v19224_v60 = vld [vmem:[#allocation160_spill] sm:$0xff] }
 0x5f4   : > { %v4107_v30 = vrot.slane %v4106_v63, 1  ;;  %v4128_v8 = vrot.slane %v4127_v15, 1  ;;  %v4149_v31 = vrot.slane %v4148_v56, 1  ;;  %v4170_v20 = vrot.slane %v4169_v13, 1 }
 0x5f5   : > { %v4191_v3 = vrot.slane %v4190_v0, 1  ;;  %v4212_v19 = vrot.slane %v4211_v4, 1  ;;  %v4233_v1 = vrot.slane %v4232_v33, 1  ;;  %v14157_v34 = vadd.f32 %v4086_v41, %v4085_v53  ;;  %v19225_v53 = vld [vmem:[#allocation668_spill] sm:$0xff]  ;;  %v19228_v41 = vld [vmem:[#allocation190_spill] sm:$0xff] }
 0x5f6   : > { %v14159_v46 = vadd.f32 %v4107_v30, %v4106_v63  ;;  %v14161_v50 = vadd.f32 %v4128_v8, %v4127_v15  ;;  %v14163_v17 = vadd.f32 %v4149_v31, %v4148_v56  ;;  %v14165_v42 = vadd.f32 %v4170_v20, %v4169_v13  ;;  %v19226_v13 = vld [vmem:[#allocation161_spill] sm:$0xff]  ;;  %v19229_v8 = vld [vmem:[#allocation698_spill] sm:$0xff]  ;;  %v19230_v31 = vld [vmem:[#allocation191_spill] sm:$0xff] }
 0x5f7   : > { %v14167_v62 = vadd.f32 %v4191_v3, %v4190_v0  ;;  %v14169_v6 = vadd.f32 %v4212_v19, %v4211_v4  ;;  %v14171_v36 = vadd.f32 %v4233_v1, %v4232_v33  ;;  %v4299_v26 = vcombine.low %v13149_v54, %v13151_v59  ;;  %v19227_v33 = vld [vmem:[#allocation697_spill] sm:$0xff]  ;;  %v19232_v19 = vld [vmem:[#allocation192_spill] sm:$0xff] }
 0x5f8   : > { %v4300_v35 = vcombine.low %v13153_v12, %v13155_v49  ;;  %v4301_v15 = vcombine.low %v13157_v18, %v13159_v16  ;;  %v4302_v56 = vcombine.low %v13161_v2, %v13163_v5  ;;  %v4306_v63 = vlaneseq  ;;  %v19213_v12 = vld [vmem:[#allocation470_spill] sm:$0xff]  ;;  %v19214_v16 = vld [vmem:[#allocation472_spill] sm:$0xff]  ;;  %v19215_v2 = vld [vmem:[#allocation471_spill] sm:$0xff] }
 0x5f9   : > { %v4348_v40 = vcombine.low %v13293_v25, %v13295_v37  ;;  %v4349_v22 = vcombine.low %v13297_v24, %v13299_v9  ;;  %v5118_v11 = vmov 1966171168   ;;  %v4350_v54 = vcombine.low %v13301_v55, %v13303_v7  ;;  %v19217_v25 = vld [vmem:[#allocation126_spill] sm:$0xff]  ;;  %v19219_v24 = vld [vmem:[#allocation128_spill] sm:$0xff] }
 0x5fa   : > { %v4304_v48 = vunpack.c.l.s4 %v5118_v11  ;;  %v4351_v59 = vcombine.low %v13305_v32, %v13307_v43  ;;  %v4397_v49 = vcombine.low %v19213_v12, %v13439_v57  ;;  %v4307_v18 = vshrl.u32 %v4306_v63, 7  ;;  %v19221_v7 = vld [vmem:[#allocation666_spill] sm:$0xff]  ;;  %v19223_v43 = vld [vmem:[#allocation667_spill] sm:$0xff]  ;;  %v19234_v12 = vld [vmem:[#allocation193_spill] sm:$0xff] }
 0x5fb   : > { %v4398_v5 = vcombine.low %v19215_v2, %v19214_v16  ;;  %v4399_v37 = vcombine.low %v19217_v25, %v19216_v14  ;;  %v4400_v9 = vcombine.low %v19219_v24, %v19218_v45  ;;  %v4446_v55 = vcombine.low %v19220_v10, %v13583_v21  ;;  %v19231_v21 = vld [vmem:[#allocation699_spill] sm:$0xff]  ;;  %v19236_v16 = vld [vmem:[#allocation222_spill] sm:$0xff] }
 0x5fc   : > { %v4305_v52 = vunpack.c.0.s8 %v4304_v48  ;;  %v4447_v32 = vcombine.low %v19222_v47, %v19221_v7  ;;  %v4448_v57 = vcombine.low %v19224_v60, %v19223_v43  ;;  %v4449_v0 = vcombine.low %v19226_v13, %v19225_v53  ;;  %v19233_v48 = vld [vmem:[#allocation700_spill] sm:$0xff] }
 0x5fd   : > { %v4495_v4 = vcombine.low %v13725_v44, %v13727_v58  ;;  %v4496_v30 = vcombine.low %v19228_v41, %v19227_v33  ;;  %v4497_v20 = vcombine.low %v19230_v31, %v19229_v8  ;;  %v4498_v1 = vcombine.low %v19232_v19, %v19231_v21  ;;  %v19235_v58 = vld [vmem:[#allocation729_spill] sm:$0xff] }
 0x5fe   : > { %v14211_v3 = vsub.s32 %v4305_v52, %v4307_v18  ;;  %v4544_v63 = vcombine.low %v13869_v23, %v13871_v29  ;;  %v4545_v11 = vcombine.low %v13873_v51, %v13875_v27  ;;  %v4546_v44 = vcombine.low %v19234_v12, %v19233_v48 }
 0x5ff   : > { %v4547_v2 = vcombine.low %v19236_v16, %v19235_v58  ;;  %v4593_v14 = vcombine.low %v14013_v39, %v14015_v61  ;;  %v4594_v18 = vcombine.low %v14017_v28, %v14019_v38  ;;  %v19238_v16 = vld [vmem:[#allocation223_spill] sm:$0xff] }
 0x600   : > { %v4309_v25 = vrot.slane %v4299_v26, %v14211_v3  ;;  %v4316_v45 = vrot.slane %v4300_v35, %v14211_v3  ;;  %v4323_v23 = vrot.slane %v4301_v15, %v14211_v3  ;;  %v4330_v29 = vrot.slane %v4302_v56, %v14211_v3 }
 0x601   : > { %v4358_v51 = vrot.slane %v4348_v40, %v14211_v3  ;;  %v4365_v27 = vrot.slane %v4349_v22, %v14211_v3  ;;  %v4372_v24 = vrot.slane %v4350_v54, %v14211_v3  ;;  %v4379_v52 = vrot.slane %v4351_v59, %v14211_v3 }
 0x602   : > { %v4331_v39 = vcombine.low %v4309_v25, %v4316_v45  ;;  %v4332_v61 = vcombine.low %v4323_v23, %v4330_v29  ;;  %v4407_v28 = vrot.slane %v4397_v49, %v14211_v3  ;;  %v4414_v38 = vrot.slane %v4398_v5, %v14211_v3  ;;  %v19239_v25 = vld [vmem:[#allocation731_spill] sm:$0xff]  ;;  %v19240_v45 = vld [vmem:[#allocation224_spill] sm:$0xff] }
 0x603   : > { %v4380_v26 = vcombine.low %v4358_v51, %v4365_v27  ;;  %v4381_v35 = vcombine.low %v4372_v24, %v4379_v52  ;;  %v4421_v15 = vrot.slane %v4399_v37, %v14211_v3  ;;  %v4428_v56 = vrot.slane %v4400_v9, %v14211_v3 }
 0x604   : > { %v4339_v40 = vrot.slane %v4331_v39, %v14211_v3  ;;  %v4346_v22 = vrot.slane %v4332_v61, %v14211_v3  ;;  %v4429_v10 = vcombine.low %v4407_v28, %v4414_v38  ;;  %v4456_v54 = vrot.slane %v4446_v55, %v14211_v3  ;;  %v1780_v38 = vld [vmem:[%s5282_s29 + $0x8] sm:$0xff] }
 0x605   : > { %v4388_v59 = vrot.slane %v4380_v26, %v14211_v3  ;;  %v4395_v7 = vrot.slane %v4381_v35, %v14211_v3  ;;  %v4430_v49 = vcombine.low %v4421_v15, %v4428_v56  ;;  %v4463_v5 = vrot.slane %v4447_v32, %v14211_v3  ;;  %v1781_v26 = vld [vmem:[%s5282_s29 + $0x10] sm:$0xff] }
 0x606   : > { %v4347_v47 = vcombine.low %v4339_v40, %v4346_v22  ;;  %v4437_v43 = vrot.slane %v4429_v10, %v14211_v3  ;;  %v4470_v37 = vrot.slane %v4448_v57, %v14211_v3  ;;  %v4477_v9 = vrot.slane %v4449_v0, %v14211_v3  ;;  %v1782_v40 = vld [vmem:[%s5282_s29 + $0x18] sm:$0xff]  ;;  %v1783_v22 = vld [vmem:[%s5282_s29 + $0x20] sm:$0xff]  ;;  %v1784_v10 = vld [vmem:[%s5282_s29 + $0x28] sm:$0xff] }
 0x607   : > { %v4396_v60 = vcombine.low %v4388_v59, %v4395_v7  ;;  %v4444_v53 = vrot.slane %v4430_v49, %v14211_v3  ;;  %v4478_v13 = vcombine.low %v4456_v54, %v4463_v5  ;;  %v4505_v55 = vrot.slane %v4495_v4, %v14211_v3  ;;  %v1785_v5 = vld [vmem:[%s5282_s29 + $0x30] sm:$0xff] }
 0x608   : > { %v4479_v33 = vcombine.low %v4470_v37, %v4477_v9  ;;  %v4512_v41 = vrot.slane %v4496_v30, %v14211_v3  ;;  %v4519_v8 = vrot.slane %v4497_v20, %v14211_v3  ;;  %v4526_v32 = vrot.slane %v4498_v1, %v14211_v3  ;;  %v19237_v20 = vld [vmem:[#allocation730_spill] sm:$0xff] }
 0x609   : > { %v4445_v31 = vcombine.low %v4437_v43, %v4444_v53  ;;  %v4486_v21 = vrot.slane %v4478_v13, %v14211_v3  ;;  %v4554_v57 = vrot.slane %v4544_v63, %v14211_v3  ;;  %v4561_v0 = vrot.slane %v4545_v11, %v14211_v3 }
 0x60a   : > { %v4493_v19 = vrot.slane %v4479_v33, %v14211_v3  ;;  %v4527_v48 = vcombine.low %v4505_v55, %v4512_v41  ;;  %v4528_v12 = vcombine.low %v4519_v8, %v4526_v32  ;;  %v4568_v4 = vrot.slane %v4546_v44, %v14211_v3  ;;  %v1779_v44 = vld [vmem:[%s5282_s29] sm:$0xff]  ;;  %v1786_v55 = vld [vmem:[%s5282_s29 + $0x38] sm:$0xff] }
 0x60b   : > { %v4575_v30 = vrot.slane %v4547_v2, %v14211_v3  ;;  %v4576_v58 = vcombine.low %v4554_v57, %v4561_v0  ;;  %v4595_v1 = vcombine.low %v19238_v16, %v19237_v20  ;;  %v4596_v23 = vcombine.low %v19240_v45, %v19239_v25 }
 0x60c   : > { %v4494_v63 = vcombine.low %v4486_v21, %v4493_v19  ;;  %v4535_v11 = vrot.slane %v4527_v48, %v14211_v3  ;;  %v4542_v29 = vrot.slane %v4528_v12, %v14211_v3  ;;  %v4603_v51 = vrot.slane %v4593_v14, %v14211_v3 }
 0x60d   : > { %v4577_v2 = vcombine.low %v4568_v4, %v4575_v30  ;;  %v4584_v27 = vrot.slane %v4576_v58, %v14211_v3  ;;  %v4610_v24 = vrot.slane %v4594_v18, %v14211_v3  ;;  %v4617_v52 = vrot.slane %v4595_v1, %v14211_v3 }
 0x60e   : > { %v4543_v39 = vcombine.low %v4535_v11, %v4542_v29  ;;  %v4624_v61 = vrot.slane %v4596_v23, %v14211_v3  ;;  %v4642_v28 = vcombine.low %v14157_v34, %v14159_v46  ;;  %v4643_v14 = vcombine.low %v14161_v50, %v14163_v17 }
 0x60f   : > { %v4591_v35 = vrot.slane %v4577_v2, %v14211_v3  ;;  %v4625_v15 = vcombine.low %v4603_v51, %v4610_v24  ;;  %v4644_v56 = vcombine.low %v14165_v42, %v14167_v62  ;;  %v4645_v18 = vcombine.low %v14169_v6, %v14171_v36 }
 0x610   : > { %v4626_v34 = vcombine.low %v4617_v52, %v4624_v61  ;;  %v4652_v46 = vrot.slane %v4642_v28, %v14211_v3  ;;  %v4659_v50 = vrot.slane %v4643_v14, %v14211_v3  ;;  %v4699_v17 = vadd.f32 %v4347_v47, %v1779_v44 }
 0x611   : > { %v4592_v54 = vcombine.low %v4584_v27, %v4591_v35  ;;  %v4633_v59 = vrot.slane %v4625_v15, %v14211_v3  ;;  %v4666_v42 = vrot.slane %v4644_v56, %v14211_v3  ;;  %v4673_v62 = vrot.slane %v4645_v18, %v14211_v3 }
 0x612   : > { %v4640_v6 = vrot.slane %v4626_v34, %v14211_v3  ;;  %v4674_v36 = vcombine.low %v4652_v46, %v4659_v50  ;;  %v4700_v7 = vadd.f32 %v4396_v60, %v1780_v38  ;;  %v4701_v49 = vadd.f32 %v4445_v31, %v1781_v26  ;;  %4707 = vst [vmem:[%s5282_s29] sm:$0xff] %v4699_v17 }
 0x613   : > { %v4675_v47 = vcombine.low %v4666_v42, %v4673_v62  ;;  %v4702_v43 = vadd.f32 %v4494_v63, %v1782_v40  ;;  %v4703_v37 = vadd.f32 %v4543_v39, %v1783_v22  ;;  %v4704_v9 = vadd.f32 %v4592_v54, %v1784_v10 }
 0x614   : > { %v4641_v53 = vcombine.low %v4633_v59, %v4640_v6  ;;  %v4682_v13 = vrot.slane %v4674_v36, %v14211_v3  ;;  %4708 = vst [vmem:[%s5282_s29 + $0x8] sm:$0xff] %v4700_v7  ;;  %4709 = vst [vmem:[%s5282_s29 + $0x10] sm:$0xff] %v4701_v49 }
 0x615   : > { %v4689_v60 = vrot.slane %v4675_v47, %v14211_v3  ;;  %4710 = vst [vmem:[%s5282_s29 + $0x18] sm:$0xff] %v4702_v43  ;;  %4711 = vst [vmem:[%s5282_s29 + $0x20] sm:$0xff] %v4703_v37 }
 0x616   : > { %4712 = vst [vmem:[%s5282_s29 + $0x28] sm:$0xff] %v4704_v9  ;;  %v4705_v33 = vadd.f32 %v4641_v53, %v1785_v5 }
 0x617   : > { %v4690_v41 = vcombine.low %v4682_v13, %v4689_v60 }
 0x618   : > { %4713 = vst [vmem:[%s5282_s29 + $0x30] sm:$0xff] %v4705_v33 }
 0x619   : > { %v4706_v8 = vadd.f32 %v4690_v41, %v1786_v55 }
 0x61b   : > { %4714 = vst [vmem:[%s5282_s29 + $0x38] sm:$0xff] %v4706_v8 }
 0x61c   : > { %4999 = shalt.err (!%p4996_p0)
}
 0x61d   : > { %s5000_s20 = scalar_lea.hbm %s14307_s7, 1024  ;;  %s5004_s21 = scalar_lea.hbm %s14374_s2, 2048 }
 0x61e   : > { %p5001_p2 = scmp.ne.s32.totalorder %s14307_s7, %s5000_s20  ;;  %p5005_p5 = scmp.lt.u32.totalorder %s14307_s7, %s14374_s2 }
 0x61f   : > { %p5006_p1 = scmp.lt.u32.totalorder %s5004_s21, %s5000_s20  ;;  %p5008_p7 = scmp.lt.u32.totalorder %s5000_s20, %s14307_s7 }
 0x620   : > { %p5002_p3 = pnand %p5001_p2, %p5217_p12 }
 0x621   : > { %p5007_p6 = por %p5006_p1, %p5005_p5 }
 0x622   : > { %p5003_p4 = pneg %p5002_p3 }
 0x623   : > { %p5009_p8 = por %p5008_p7, %p5007_p6 }
 0x625   : > { %p5010_p9 = pnand %p5009_p8, %p5003_p4 }
 0x627   : > { %5013 = shalt.err (!%p5010_p9)
}
 0x628   : > { %4856 = dma.vmem_to_hbm [thread:$0]  (%p5217_p12), %s14309_s28, 1024, %s14307_s7, %s4716_s12  }
 0x629 PF: > { %p4862_p10 = scmp.ge.s32.totalorder %s5110_s19, 2  ;;  %s4742_s29 = sand.u32 1, %s5070_s9  }
 0x62a   : > { %p19241_p11 = scmp.ne.s32.totalorder %s15302_s6, 0  ;;  %s4743_s15 = scalar_lea.sflag [#allocation4], %s4742_s29 }
 0x62c   : > { %p4859_p13 = pnand %p4862_p10, %p19241_p11 }
 0x62e   : > { %5063 = dma.done.wait (!%p4859_p13), %s4743_s15, 1024  }
 0x62f   : > { %5065 = vsyncadd (!%p4859_p13), %s4743_s15, 4294966272  ;;  %s18_s19 = sadd.s32 1, %s5110_s19   ;;  %s19242_s16 = sld [smem:[#allocation8_spill]] }
 0x630   : > { %p15_p0 = scmp.ge.s32.totalorder %s18_s19, 6   ;;  %s19243_s3 = sld [smem:[#allocation9_spill]] }
 0x631   : > { %s19244_s18 = sld [smem:[#allocation10_spill]]  ;;  %s19245_s9 = smov %s5074_s10 }
 0x632   : > { %s19246_s10 = smov %s5078_s11  ;;  %s19247_s11 = smov %s5222_s4 }
 0x633   : > { %s19248_s12 = smov %s5086_s13  ;;  %s19249_s13 = smov %s5090_s14 }
 0x634   : > { %s19250_s14 = smov %s5225_s5  ;;  %s19251_s15 = smov %s5102_s17 }
 0x635   :  { %17 = sbr.rel (!%p15_p0) target bundleno = 9 (0x9), region = 80 }
 0x636   : > { %s19252_s17 = smov %s19243_s3 }
 0x63c   :  { %4748 = vsyncpa [#allocation3], 1 }
 0x63d   :  { %4750 = vsyncpa [#allocation3 + $0x1], 1 }
 0x63e   :  { %4751 = vsyncpa [#allocation4], 1 }
 0x63f   :  { %4753 = vsyncpa [#allocation4 + $0x1], 1 }

</bundles_post_ra>
